<compile_context>
chip_gen: v7x
topology: tpu7x:2x2x1
jax: 0.10.0
libtpu: 0.0.40
codegen_flags: <defaults>
</compile_context>

<pallas_src>
import numpy as np
import jax
import jax.numpy as jnp
from jax.experimental import pallas as pl
from jax.experimental.pallas import tpu as pltpu


# ---------------------------------------------------------------------------
# Host-side constant construction (numpy -> one bf16 slab)
# ---------------------------------------------------------------------------
def _pool_sel(h, w):
    """One-hot (h*w, h*w/4) selecting the (even row, even col) window max."""
    m, mo = h * w, (h // 2) * (w // 2)
    sel = np.zeros((m, mo), np.float32)
    wo = w // 2
    for q in range(mo):
        r, c = divmod(q, wo)
        sel[(2 * r) * w + 2 * c, q] = 1.0
    return sel


def _up_sel(h, w):
    """One-hot (h*w, 4*h*w) nearest-neighbour 2x upsample."""
    m, mo = h * w, (2 * h) * (2 * w)
    sel = np.zeros((m, mo), np.float32)
    for p in range(mo):
        r, c = divmod(p, 2 * w)
        sel[(r // 2) * w + (c // 2), p] = 1.0
    return sel


def _build_const_slab(H, W, n_enc):
    """Pack pool/upsample selection matrices + conv boundary masks into one
    (rows, H*W) slab.  Section starts are 16-row aligned (bf16 sublane tile)."""
    COLS = H * W
    blocks, cur = [], 0

    def add(mat):
        nonlocal cur
        r, c = mat.shape
        rp = -(-r // 16) * 16
        blk = np.zeros((rp, COLS), np.float32)
        blk[:r, :c] = mat
        blocks.append(blk)
        off = cur
        cur += rp
        return off

    pool_info, up_info = [], []
    h, w = H, W
    for _ in range(n_enc):
        off = add(_pool_sel(h, w))
        pool_info.append((off, h * w, (h // 2) * (w // 2)))
        h //= 2
        w //= 2
    for _ in range(n_enc):
        off = add(_up_sel(h, w))
        up_info.append((off, h * w, 4 * h * w))
        h *= 2
        w *= 2

    # Horizontal boundary masks (dx = -1 / +1 validity), one pair per resolution.
    mask_info, mask_rows = {}, []
    for k in range(n_enc + 1):
        h, w = H >> k, W >> k
        m = h * w
        j = np.arange(m)
        ml = np.zeros((1, COLS), np.float32)
        mr = np.zeros((1, COLS), np.float32)
        ml[0, :m] = (j % w != 0).astype(np.float32)
        mr[0, :m] = (j % w != (w - 1)).astype(np.float32)
        mask_info[(h, w)] = (cur + len(mask_rows), cur + len(mask_rows) + 1)
        mask_rows.append(ml)
        mask_rows.append(mr)
    blocks.append(np.concatenate(mask_rows, axis=0))

    slab = np.concatenate(blocks, axis=0)
    return slab, pool_info, up_info, mask_info


# ---------------------------------------------------------------------------
# Fused UNet kernel (one batch sample per grid step, everything VMEM-resident)
# ---------------------------------------------------------------------------
def _make_unet_kernel(H, W, conv_info, pool_info, up_info, mask_info,
                      n_enc, n_dec, n_rem):
    def kernel(x_ref, w_ref, b_ref, c_ref, o_ref):
        mask_cache = {}

        def masks(h, w):
            # loaded once per resolution, reused by every conv at that level
            if (h, w) not in mask_cache:
                rl, rr = mask_info[(h, w)]
                m = h * w
                mask_cache[(h, w)] = (c_ref[rl:rl + 1, 0:m],
                                      c_ref[rr:rr + 1, 0:m])
            return mask_cache[(h, w)]

        def conv3x3_lrelu(x, idx, h, w):
            """x: (cin, h*w) bf16 -> (cout, h*w) f32 (bias + LeakyReLU 0.2)."""
            r0, cin, cout = conv_info[idx]
            m = h * w
            mask_l, mask_r = masks(h, w)
            pad = jnp.zeros((cin, w + 1), jnp.bfloat16)
            xp = jnp.concatenate([pad, x, pad], axis=1)      # (cin, m + 2w + 2)
            acc = None
            for di, dy in enumerate((-1, 0, 1)):             # per-dy accumulation
                taps = []
                for dx in (-1, 0, 1):
                    s = (w + 1) + dy * w + dx
                    t = xp[:, s:s + m]                       # bf16 tap
                    if dx == -1:
                        t = t * mask_l
                    elif dx == 1:
                        t = t * mask_r
                    taps.append(t)
                cols = jnp.concatenate(taps, axis=0)         # (3*cin, m) bf16
                wdy = w_ref[di, r0:r0 + cout, 0:3 * cin]     # (cout, 3*cin) bf16
                part = jnp.dot(wdy, cols, preferred_element_type=jnp.float32)
                acc = part if acc is None else acc + part
            y = acc + b_ref[r0:r0 + cout, 0:1]               # f32 bias
            return jnp.maximum(y, 0.2 * y)                   # LeakyReLU(0.2)

        def maxpool2x2(x, h, w, lvl):
            cin = x.shape[0]
            m = h * w
            off, rows, cols = pool_info[lvl]
            pad = jnp.zeros((cin, w + 1), jnp.bfloat16)
            xp = jnp.concatenate([x, pad], axis=1)
            # NOTE: trailing zero pad participates in `win` only at positions the
            # one-hot stride-2 selection never picks (even row/col < h,w), so it
            # can never beat a negative activation in the selected maxima.
            win = jnp.maximum(jnp.maximum(xp[:, 0:m], xp[:, 1:1 + m]),
                              jnp.maximum(xp[:, w:w + m], xp[:, w + 1:w + 1 + m]))
            if cols == 1:                                    # 2x2 -> 1x1
                return win[:, 0:1]
            sel = c_ref[off:off + rows, 0:cols]              # precomputed one-hot
            return jnp.dot(win, sel,
                           preferred_element_type=jnp.float32).astype(jnp.bfloat16)

        def upsample2x(x, h, w, lvl):
            off, rows, cols = up_info[lvl]
            if rows == 1:                                    # 1x1 -> 2x2 replicate
                return jnp.concatenate([x, x, x, x], axis=1)
            sel = c_ref[off:off + rows, 0:cols]              # precomputed one-hot
            return jnp.dot(x, sel,
                           preferred_element_type=jnp.float32).astype(jnp.bfloat16)

        x = x_ref[...]                                       # (C0, H*W) bf16
        h, w = H, W
        idx = 0
        hist = []
        # ---- encoder ----
        for lvl in range(n_enc):
            x = conv3x3_lrelu(x, idx, h, w).astype(jnp.bfloat16)
            idx += 1
            hist.append(x)
            x = maxpool2x2(x, h, w, lvl)
            h //= 2
            w //= 2
        # ---- decoder ----
        for lvl in range(n_dec):
            x = conv3x3_lrelu(x, idx, h, w).astype(jnp.bfloat16)
            idx += 1
            x = upsample2x(x, h, w, lvl)
            h *= 2
            w *= 2
            x = jnp.concatenate([x, hist.pop()], axis=0)     # skip concat
        # ---- remaining convs ----
        for r in range(n_rem):
            y = conv3x3_lrelu(x, idx, h, w)
            idx += 1
            if r == n_rem - 1:
                o_ref[...] = y                               # final output in f32
            else:
                x = y.astype(jnp.bfloat16)

    return kernel


# ---------------------------------------------------------------------------
# Parameter construction (matches the PyTorch module's layer shapes)
# ---------------------------------------------------------------------------
def _init_conv(key, cin, cout):
    k1, k2 = jax.random.split(key)
    w = jax.random.normal(k1, (cout, cin, 3, 3), jnp.float32) * 0.05
    b = jax.random.normal(k2, (cout,), jnp.float32) * 0.01
    return w, b


def build_unet_params(key, infeats):
    enc_nf = [16, 32, 32, 32]          # default encoder features
    dec_nf = [32, 32, 32, 32]          # decoder (first nb_dec_convs entries)
    final_nf = [32, 16, 16]            # remaining convs
    params = {"enc": [], "dec": [], "rem": []}

    prev = infeats
    encoder_nfs = [prev]
    for nf in enc_nf:
        key, sub = jax.random.split(key)
        params["enc"].append(_init_conv(sub, prev, nf))
        prev = nf
        encoder_nfs.append(prev)
    encoder_nfs = encoder_nfs[::-1]    # np.flip

    for level, nf in enumerate(dec_nf):
        key, sub = jax.random.split(key)
        params["dec"].append(_init_conv(sub, prev, nf))
        prev = nf
        prev += encoder_nfs[level]     # skip-connection concat (half_res=False)

    for nf in final_nf:
        key, sub = jax.random.split(key)
        params["rem"].append(_init_conv(sub, prev, nf))
        prev = nf
    return params


def _pack_params(params):
    """Fold all conv weights into one bf16 slab (3, rows, 3*max_cin) laid out
    per-dy, and all biases into one (rows, 1) f32 slab."""
    layers = list(params["enc"]) + list(params["dec"]) + list(params["rem"])

    padded = []
    for i, (w, b) in enumerate(layers):
        cin = w.shape[1]
        if i == 0:                                 # pad input channels to 8
            cpad = (-cin) % 8
            if cpad:
                w = jnp.pad(w, ((0, 0), (0, cpad), (0, 0), (0, 0)))
        padded.append((w, b))

    wc = 3 * max(w.shape[1] for w, _ in padded)
    conv_info = []
    w_blocks = [[], [], []]
    b_blocks = []
    row = 0
    for w, b in padded:
        cout, cin = w.shape[0], w.shape[1]
        wt = jnp.transpose(w, (0, 2, 3, 1))        # (cout, ky, kx, cin)
        for d in range(3):                         # per-dy block, (kx, cin) order
            blk = wt[:, d].reshape(cout, 3 * cin)
            w_blocks[d].append(jnp.pad(blk, ((0, 0), (0, wc - 3 * cin))))
        b_blocks.append(b.reshape(cout, 1))
        conv_info.append((row, cin, cout))
        row += cout

    wslab = jnp.stack([jnp.concatenate(w_blocks[d], axis=0) for d in range(3)],
                      axis=0).astype(jnp.bfloat16)
    bslab = jnp.concatenate(b_blocks, axis=0).astype(jnp.float32)
    return wslab, bslab, conv_info


# ---------------------------------------------------------------------------
# Unet forward (NCHW in / NCHW out)
# ---------------------------------------------------------------------------
def unet_forward(params, x_nchw):
    N, Cin, H, W = x_nchw.shape
    M = H * W
    n_enc = len(params["enc"])
    n_dec = len(params["dec"])
    n_rem = len(params["rem"])

    wslab, bslab, conv_info = _pack_params(params)
    cslab_np, pool_info, up_info, mask_info = _build_const_slab(H, W, n_enc)
    cslab = jnp.asarray(cslab_np).astype(jnp.bfloat16)

    c0 = conv_info[0][1]                 # padded input channels (8)
    cf = conv_info[-1][2]                # final feature count (16)

    # NCHW -> (N, C, H*W): channels in sublanes, pixels in lanes (lane dense).
    x2 = x_nchw.reshape(N, Cin, M)
    if c0 > Cin:
        x2 = jnp.pad(x2, ((0, 0), (0, c0 - Cin), (0, 0)))
    x2 = x2.astype(jnp.bfloat16)

    kernel = _make_unet_kernel(H, W, conv_info, pool_info, up_info, mask_info,
                               n_enc, n_dec, n_rem)

    out = pl.pallas_call(
        kernel,
        out_shape=jax.ShapeDtypeStruct((N, cf, M), jnp.float32),
        grid_spec=pltpu.PrefetchScalarGridSpec(
            num_scalar_prefetch=0,
            grid=(N,),
            in_specs=[
                pl.BlockSpec((None, c0, M), lambda n: (n, 0, 0)),   # activations
                pl.BlockSpec(wslab.shape, lambda n: (0, 0, 0)),     # weight slab
                pl.BlockSpec(bslab.shape, lambda n: (0, 0)),        # bias slab
                pl.BlockSpec(cslab.shape, lambda n: (0, 0)),        # sel/mask slab
            ],
            out_specs=pl.BlockSpec((None, cf, M), lambda n: (n, 0, 0)),
        ),
        compiler_params=pltpu.CompilerParams(
            dimension_semantics=("parallel",),       # batch -> both v7x TCs
            vmem_limit_bytes=32 * 1024 * 1024,       # total footprint << 32 MiB
        ),
    )(x2, wslab, bslab, cslab)
    return out.reshape(N, cf, H, W)


if __name__ == "__main__":
    key = jax.random.PRNGKey(0)
    pkey, xkey = jax.random.split(key)

    N, C, H, W = 2, 4, 16, 16            # batch=2, infeats=4, inshape=(16,16)
    params = build_unet_params(pkey, infeats=C)
    x = jax.random.normal(xkey, (N, C, H, W), jnp.float32)

    fwd = jax.jit(unet_forward)
    out = fwd(params, x)
    jax.block_until_ready(out)

    assert out.shape == (N, 16, H, W), out.shape     # final_nf = 16
    assert out.dtype == jnp.float32
    assert bool(jnp.all(jnp.isfinite(out)))
    print("KERNEL_OK")
</pallas_src>

<mosaic_0001>
module attributes {stable_mosaic.version = 11 : i64} {
  func.func @kernel(%arg0: i32, %arg1: memref<1x8x256xbf16, #tpu.memory_space<vmem>>, %arg2: memref<3x304x192xbf16, #tpu.memory_space<vmem>>, %arg3: memref<304x1xf32, #tpu.memory_space<vmem>>, %arg4: memref<474x256xbf16, #tpu.memory_space<vmem>>, %arg5: memref<1x16x256xf32, #tpu.memory_space<vmem>>) attributes {dimension_semantics = [#tpu.dimension_semantics<parallel>], iteration_bounds = array<i64: 2>, scalar_prefetch = 0 : i64, scratch_operands = 0 : i64, tpu.core_type = #tpu.core_type<tc>, window_params = [{transform_indices = @transform_0, window_bounds = array<i64: 1, 8, 256>}, {pipeline_mode = #tpu.pipeline_mode<synchronous>, transform_indices = @transform_1, window_bounds = array<i64: 3, 304, 192>}, {pipeline_mode = #tpu.pipeline_mode<synchronous>, transform_indices = @transform_2, window_bounds = array<i64: 304, 1>}, {pipeline_mode = #tpu.pipeline_mode<synchronous>, transform_indices = @transform_3, window_bounds = array<i64: 474, 256>}, {transform_indices = @transform_4, window_bounds = array<i64: 1, 16, 256>}]} {
    %c0 = arith.constant 0 : index
    %c0_0 = arith.constant 0 : index
    %c0_1 = arith.constant 0 : index
    %0 = vector.load %arg1[%c0, %c0_0, %c0_1] : memref<1x8x256xbf16, #tpu.memory_space<vmem>>, vector<1x8x256xbf16>
    %1 = vector.shape_cast %0 : vector<1x8x256xbf16> to vector<8x256xbf16>
    %c464 = arith.constant 464 : index
    %c0_2 = arith.constant 0 : index
    %2 = vector.load %arg4[%c464, %c0_2] : memref<474x256xbf16, #tpu.memory_space<vmem>>, vector<1x256xbf16>
    %c465 = arith.constant 465 : index
    %c0_3 = arith.constant 0 : index
    %3 = vector.load %arg4[%c465, %c0_3] : memref<474x256xbf16, #tpu.memory_space<vmem>>, vector<1x256xbf16>
    %cst = arith.constant 0.000000e+00 : bf16
    %4 = vector.broadcast %cst : bf16 to vector<8x17xbf16>
    %5 = tpu.concatenate %4, %1, %4 in 1 : vector<8x17xbf16>, vector<8x256xbf16>, vector<8x17xbf16> -> vector<8x290xbf16>
    %6 = vector.extract_strided_slice %5 {offsets = [0, 0], sizes = [8, 256], strides = [1, 1]} : vector<8x290xbf16> to vector<8x256xbf16>
    %7 = vector.broadcast %2 : vector<1x256xbf16> to vector<8x256xbf16>
    %8 = arith.mulf %6, %7 : vector<8x256xbf16>
    %9 = vector.extract_strided_slice %5 {offsets = [0, 1], sizes = [8, 256], strides = [1, 1]} : vector<8x290xbf16> to vector<8x256xbf16>
    %10 = vector.extract_strided_slice %5 {offsets = [0, 2], sizes = [8, 256], strides = [1, 1]} : vector<8x290xbf16> to vector<8x256xbf16>
    %11 = vector.broadcast %3 : vector<1x256xbf16> to vector<8x256xbf16>
    %12 = arith.mulf %10, %11 : vector<8x256xbf16>
    %13 = tpu.concatenate %8, %9, %12 in 0 : vector<8x256xbf16>, vector<8x256xbf16>, vector<8x256xbf16> -> vector<24x256xbf16>
    %c0_4 = arith.constant 0 : index
    %c0_5 = arith.constant 0 : index
    %c0_6 = arith.constant 0 : index
    %14 = vector.load %arg2[%c0_4, %c0_5, %c0_6] : memref<3x304x192xbf16, #tpu.memory_space<vmem>>, vector<1x16x24xbf16>
    %15 = vector.shape_cast %14 : vector<1x16x24xbf16> to vector<16x24xbf16>
    %cst_7 = arith.constant dense<0.000000e+00> : vector<16x256xf32>
    %16 = tpu.matmul %15, %13, %cst_7 {dimension_numbers = #tpu.dot_dimension_numbers<[1], [0], [0], [1], [0, 0, 1, 1], [], []>} : vector<16x24xbf16>, vector<24x256xbf16>, vector<16x256xf32> -> vector<16x256xf32>
    %17 = vector.extract_strided_slice %5 {offsets = [0, 16], sizes = [8, 256], strides = [1, 1]} : vector<8x290xbf16> to vector<8x256xbf16>
    %18 = vector.broadcast %2 : vector<1x256xbf16> to vector<8x256xbf16>
    %19 = arith.mulf %17, %18 : vector<8x256xbf16>
    %20 = vector.extract_strided_slice %5 {offsets = [0, 17], sizes = [8, 256], strides = [1, 1]} : vector<8x290xbf16> to vector<8x256xbf16>
    %21 = vector.extract_strided_slice %5 {offsets = [0, 18], sizes = [8, 256], strides = [1, 1]} : vector<8x290xbf16> to vector<8x256xbf16>
    %22 = vector.broadcast %3 : vector<1x256xbf16> to vector<8x256xbf16>
    %23 = arith.mulf %21, %22 : vector<8x256xbf16>
    %24 = tpu.concatenate %19, %20, %23 in 0 : vector<8x256xbf16>, vector<8x256xbf16>, vector<8x256xbf16> -> vector<24x256xbf16>
    %c1 = arith.constant 1 : index
    %c0_8 = arith.constant 0 : index
    %c0_9 = arith.constant 0 : index
    %25 = vector.load %arg2[%c1, %c0_8, %c0_9] : memref<3x304x192xbf16, #tpu.memory_space<vmem>>, vector<1x16x24xbf16>
    %26 = vector.shape_cast %25 : vector<1x16x24xbf16> to vector<16x24xbf16>
    %cst_10 = arith.constant dense<0.000000e+00> : vector<16x256xf32>
    %27 = tpu.matmul %26, %24, %cst_10 {dimension_numbers = #tpu.dot_dimension_numbers<[1], [0], [0], [1], [0, 0, 1, 1], [], []>} : vector<16x24xbf16>, vector<24x256xbf16>, vector<16x256xf32> -> vector<16x256xf32>
    %28 = arith.addf %16, %27 : vector<16x256xf32>
    %29 = vector.extract_strided_slice %5 {offsets = [0, 32], sizes = [8, 256], strides = [1, 1]} : vector<8x290xbf16> to vector<8x256xbf16>
    %30 = vector.broadcast %2 : vector<1x256xbf16> to vector<8x256xbf16>
    %31 = arith.mulf %29, %30 : vector<8x256xbf16>
    %32 = vector.extract_strided_slice %5 {offsets = [0, 33], sizes = [8, 256], strides = [1, 1]} : vector<8x290xbf16> to vector<8x256xbf16>
    %33 = vector.extract_strided_slice %5 {offsets = [0, 34], sizes = [8, 256], strides = [1, 1]} : vector<8x290xbf16> to vector<8x256xbf16>
    %34 = vector.broadcast %3 : vector<1x256xbf16> to vector<8x256xbf16>
    %35 = arith.mulf %33, %34 : vector<8x256xbf16>
    %36 = tpu.concatenate %31, %32, %35 in 0 : vector<8x256xbf16>, vector<8x256xbf16>, vector<8x256xbf16> -> vector<24x256xbf16>
    %c2 = arith.constant 2 : index
    %c0_11 = arith.constant 0 : index
    %c0_12 = arith.constant 0 : index
    %37 = vector.load %arg2[%c2, %c0_11, %c0_12] : memref<3x304x192xbf16, #tpu.memory_space<vmem>>, vector<1x16x24xbf16>
    %38 = vector.shape_cast %37 : vector<1x16x24xbf16> to vector<16x24xbf16>
    %cst_13 = arith.constant dense<0.000000e+00> : vector<16x256xf32>
    %39 = tpu.matmul %38, %36, %cst_13 {dimension_numbers = #tpu.dot_dimension_numbers<[1], [0], [0], [1], [0, 0, 1, 1], [], []>} : vector<16x24xbf16>, vector<24x256xbf16>, vector<16x256xf32> -> vector<16x256xf32>
    %40 = arith.addf %28, %39 : vector<16x256xf32>
    %c0_14 = arith.constant 0 : index
    %c0_15 = arith.constant 0 : index
    %41 = vector.load %arg3[%c0_14, %c0_15] : memref<304x1xf32, #tpu.memory_space<vmem>>, vector<16x1xf32>
    %42 = vector.broadcast %41 : vector<16x1xf32> to vector<16x256xf32>
    %43 = arith.addf %40, %42 : vector<16x256xf32>
    %cst_16 = arith.constant 2.000000e-01 : f32
    %44 = vector.broadcast %cst_16 : f32 to vector<16x256xf32>
    %45 = arith.mulf %44, %43 : vector<16x256xf32>
    %46 = arith.maximumf %43, %45 : vector<16x256xf32>
    %47 = arith.truncf %46 : vector<16x256xf32> to vector<16x256xbf16>
    %cst_17 = arith.constant 0.000000e+00 : bf16
    %48 = vector.broadcast %cst_17 : bf16 to vector<16x17xbf16>
    %49 = tpu.concatenate %47, %48 in 1 : vector<16x256xbf16>, vector<16x17xbf16> -> vector<16x273xbf16>
    %50 = vector.extract_strided_slice %49 {offsets = [0, 0], sizes = [16, 256], strides = [1, 1]} : vector<16x273xbf16> to vector<16x256xbf16>
    %51 = vector.extract_strided_slice %49 {offsets = [0, 1], sizes = [16, 256], strides = [1, 1]} : vector<16x273xbf16> to vector<16x256xbf16>
    %52 = arith.maximumf %50, %51 : vector<16x256xbf16>
    %53 = vector.extract_strided_slice %49 {offsets = [0, 16], sizes = [16, 256], strides = [1, 1]} : vector<16x273xbf16> to vector<16x256xbf16>
    %54 = vector.extract_strided_slice %49 {offsets = [0, 17], sizes = [16, 256], strides = [1, 1]} : vector<16x273xbf16> to vector<16x256xbf16>
    %55 = arith.maximumf %53, %54 : vector<16x256xbf16>
    %56 = arith.maximumf %52, %55 : vector<16x256xbf16>
    %c0_18 = arith.constant 0 : index
    %c0_19 = arith.constant 0 : index
    %57 = vector.load %arg4[%c0_18, %c0_19] : memref<474x256xbf16, #tpu.memory_space<vmem>>, vector<256x64xbf16>
    %cst_20 = arith.constant dense<0.000000e+00> : vector<16x64xf32>
    %58 = tpu.matmul %56, %57, %cst_20 {dimension_numbers = #tpu.dot_dimension_numbers<[1], [0], [0], [1], [0, 0, 1, 1], [], []>} : vector<16x256xbf16>, vector<256x64xbf16>, vector<16x64xf32> -> vector<16x64xf32>
    %59 = arith.truncf %58 : vector<16x64xf32> to vector<16x64xbf16>
    %c466 = arith.constant 466 : index
    %c0_21 = arith.constant 0 : index
    %60 = vector.load %arg4[%c466, %c0_21] : memref<474x256xbf16, #tpu.memory_space<vmem>>, vector<1x64xbf16>
    %c467 = arith.constant 467 : index
    %c0_22 = arith.constant 0 : index
    %61 = vector.load %arg4[%c467, %c0_22] : memref<474x256xbf16, #tpu.memory_space<vmem>>, vector<1x64xbf16>
    %cst_23 = arith.constant 0.000000e+00 : bf16
    %62 = vector.broadcast %cst_23 : bf16 to vector<16x9xbf16>
    %63 = tpu.concatenate %62, %59, %62 in 1 : vector<16x9xbf16>, vector<16x64xbf16>, vector<16x9xbf16> -> vector<16x82xbf16>
    %64 = vector.extract_strided_slice %63 {offsets = [0, 0], sizes = [16, 64], strides = [1, 1]} : vector<16x82xbf16> to vector<16x64xbf16>
    %65 = vector.broadcast %60 : vector<1x64xbf16> to vector<16x64xbf16>
    %66 = arith.mulf %64, %65 : vector<16x64xbf16>
    %67 = vector.extract_strided_slice %63 {offsets = [0, 1], sizes = [16, 64], strides = [1, 1]} : vector<16x82xbf16> to vector<16x64xbf16>
    %68 = vector.extract_strided_slice %63 {offsets = [0, 2], sizes = [16, 64], strides = [1, 1]} : vector<16x82xbf16> to vector<16x64xbf16>
    %69 = vector.broadcast %61 : vector<1x64xbf16> to vector<16x64xbf16>
    %70 = arith.mulf %68, %69 : vector<16x64xbf16>
    %71 = tpu.concatenate %66, %67, %70 in 0 : vector<16x64xbf16>, vector<16x64xbf16>, vector<16x64xbf16> -> vector<48x64xbf16>
    %c0_24 = arith.constant 0 : index
    %c16 = arith.constant 16 : index
    %c0_25 = arith.constant 0 : index
    %72 = vector.load %arg2[%c0_24, %c16, %c0_25] : memref<3x304x192xbf16, #tpu.memory_space<vmem>>, vector<1x32x48xbf16>
    %73 = vector.shape_cast %72 : vector<1x32x48xbf16> to vector<32x48xbf16>
    %cst_26 = arith.constant dense<0.000000e+00> : vector<32x64xf32>
    %74 = tpu.matmul %73, %71, %cst_26 {dimension_numbers = #tpu.dot_dimension_numbers<[1], [0], [0], [1], [0, 0, 1, 1], [], []>} : vector<32x48xbf16>, vector<48x64xbf16>, vector<32x64xf32> -> vector<32x64xf32>
    %75 = vector.extract_strided_slice %63 {offsets = [0, 8], sizes = [16, 64], strides = [1, 1]} : vector<16x82xbf16> to vector<16x64xbf16>
    %76 = vector.broadcast %60 : vector<1x64xbf16> to vector<16x64xbf16>
    %77 = arith.mulf %75, %76 : vector<16x64xbf16>
    %78 = vector.extract_strided_slice %63 {offsets = [0, 9], sizes = [16, 64], strides = [1, 1]} : vector<16x82xbf16> to vector<16x64xbf16>
    %79 = vector.extract_strided_slice %63 {offsets = [0, 10], sizes = [16, 64], strides = [1, 1]} : vector<16x82xbf16> to vector<16x64xbf16>
    %80 = vector.broadcast %61 : vector<1x64xbf16> to vector<16x64xbf16>
    %81 = arith.mulf %79, %80 : vector<16x64xbf16>
    %82 = tpu.concatenate %77, %78, %81 in 0 : vector<16x64xbf16>, vector<16x64xbf16>, vector<16x64xbf16> -> vector<48x64xbf16>
    %c1_27 = arith.constant 1 : index
    %c16_28 = arith.constant 16 : index
    %c0_29 = arith.constant 0 : index
    %83 = vector.load %arg2[%c1_27, %c16_28, %c0_29] : memref<3x304x192xbf16, #tpu.memory_space<vmem>>, vector<1x32x48xbf16>
    %84 = vector.shape_cast %83 : vector<1x32x48xbf16> to vector<32x48xbf16>
    %cst_30 = arith.constant dense<0.000000e+00> : vector<32x64xf32>
    %85 = tpu.matmul %84, %82, %cst_30 {dimension_numbers = #tpu.dot_dimension_numbers<[1], [0], [0], [1], [0, 0, 1, 1], [], []>} : vector<32x48xbf16>, vector<48x64xbf16>, vector<32x64xf32> -> vector<32x64xf32>
    %86 = arith.addf %74, %85 : vector<32x64xf32>
    %87 = vector.extract_strided_slice %63 {offsets = [0, 16], sizes = [16, 64], strides = [1, 1]} : vector<16x82xbf16> to vector<16x64xbf16>
    %88 = vector.broadcast %60 : vector<1x64xbf16> to vector<16x64xbf16>
    %89 = arith.mulf %87, %88 : vector<16x64xbf16>
    %90 = vector.extract_strided_slice %63 {offsets = [0, 17], sizes = [16, 64], strides = [1, 1]} : vector<16x82xbf16> to vector<16x64xbf16>
    %91 = vector.extract_strided_slice %63 {offsets = [0, 18], sizes = [16, 64], strides = [1, 1]} : vector<16x82xbf16> to vector<16x64xbf16>
    %92 = vector.broadcast %61 : vector<1x64xbf16> to vector<16x64xbf16>
    %93 = arith.mulf %91, %92 : vector<16x64xbf16>
    %94 = tpu.concatenate %89, %90, %93 in 0 : vector<16x64xbf16>, vector<16x64xbf16>, vector<16x64xbf16> -> vector<48x64xbf16>
    %c2_31 = arith.constant 2 : index
    %c16_32 = arith.constant 16 : index
    %c0_33 = arith.constant 0 : index
    %95 = vector.load %arg2[%c2_31, %c16_32, %c0_33] : memref<3x304x192xbf16, #tpu.memory_space<vmem>>, vector<1x32x48xbf16>
    %96 = vector.shape_cast %95 : vector<1x32x48xbf16> to vector<32x48xbf16>
    %cst_34 = arith.constant dense<0.000000e+00> : vector<32x64xf32>
    %97 = tpu.matmul %96, %94, %cst_34 {dimension_numbers = #tpu.dot_dimension_numbers<[1], [0], [0], [1], [0, 0, 1, 1], [], []>} : vector<32x48xbf16>, vector<48x64xbf16>, vector<32x64xf32> -> vector<32x64xf32>
    %98 = arith.addf %86, %97 : vector<32x64xf32>
    %c16_35 = arith.constant 16 : index
    %c0_36 = arith.constant 0 : index
    %99 = vector.load %arg3[%c16_35, %c0_36] : memref<304x1xf32, #tpu.memory_space<vmem>>, vector<32x1xf32>
    %100 = vector.broadcast %99 : vector<32x1xf32> to vector<32x64xf32>
    %101 = arith.addf %98, %100 : vector<32x64xf32>
    %cst_37 = arith.constant 2.000000e-01 : f32
    %102 = vector.broadcast %cst_37 : f32 to vector<32x64xf32>
    %103 = arith.mulf %102, %101 : vector<32x64xf32>
    %104 = arith.maximumf %101, %103 : vector<32x64xf32>
    %105 = arith.truncf %104 : vector<32x64xf32> to vector<32x64xbf16>
    %cst_38 = arith.constant 0.000000e+00 : bf16
    %106 = vector.broadcast %cst_38 : bf16 to vector<32x9xbf16>
    %107 = tpu.concatenate %105, %106 in 1 : vector<32x64xbf16>, vector<32x9xbf16> -> vector<32x73xbf16>
    %108 = vector.extract_strided_slice %107 {offsets = [0, 0], sizes = [32, 64], strides = [1, 1]} : vector<32x73xbf16> to vector<32x64xbf16>
    %109 = vector.extract_strided_slice %107 {offsets = [0, 1], sizes = [32, 64], strides = [1, 1]} : vector<32x73xbf16> to vector<32x64xbf16>
    %110 = arith.maximumf %108, %109 : vector<32x64xbf16>
    %111 = vector.extract_strided_slice %107 {offsets = [0, 8], sizes = [32, 64], strides = [1, 1]} : vector<32x73xbf16> to vector<32x64xbf16>
    %112 = vector.extract_strided_slice %107 {offsets = [0, 9], sizes = [32, 64], strides = [1, 1]} : vector<32x73xbf16> to vector<32x64xbf16>
    %113 = arith.maximumf %111, %112 : vector<32x64xbf16>
    %114 = arith.maximumf %110, %113 : vector<32x64xbf16>
    %c256 = arith.constant 256 : index
    %c0_39 = arith.constant 0 : index
    %115 = vector.load %arg4[%c256, %c0_39] : memref<474x256xbf16, #tpu.memory_space<vmem>>, vector<64x16xbf16>
    %cst_40 = arith.constant dense<0.000000e+00> : vector<32x16xf32>
    %116 = tpu.matmul %114, %115, %cst_40 {dimension_numbers = #tpu.dot_dimension_numbers<[1], [0], [0], [1], [0, 0, 1, 1], [], []>} : vector<32x64xbf16>, vector<64x16xbf16>, vector<32x16xf32> -> vector<32x16xf32>
    %117 = arith.truncf %116 : vector<32x16xf32> to vector<32x16xbf16>
    %c468 = arith.constant 468 : index
    %c0_41 = arith.constant 0 : index
    %118 = vector.load %arg4[%c468, %c0_41] : memref<474x256xbf16, #tpu.memory_space<vmem>>, vector<1x16xbf16>
    %c469 = arith.constant 469 : index
    %c0_42 = arith.constant 0 : index
    %119 = vector.load %arg4[%c469, %c0_42] : memref<474x256xbf16, #tpu.memory_space<vmem>>, vector<1x16xbf16>
    %cst_43 = arith.constant 0.000000e+00 : bf16
    %120 = vector.broadcast %cst_43 : bf16 to vector<32x5xbf16>
    %121 = tpu.concatenate %120, %117, %120 in 1 : vector<32x5xbf16>, vector<32x16xbf16>, vector<32x5xbf16> -> vector<32x26xbf16>
    %122 = vector.extract_strided_slice %121 {offsets = [0, 0], sizes = [32, 16], strides = [1, 1]} : vector<32x26xbf16> to vector<32x16xbf16>
    %123 = vector.broadcast %118 : vector<1x16xbf16> to vector<32x16xbf16>
    %124 = arith.mulf %122, %123 : vector<32x16xbf16>
    %125 = vector.extract_strided_slice %121 {offsets = [0, 1], sizes = [32, 16], strides = [1, 1]} : vector<32x26xbf16> to vector<32x16xbf16>
    %126 = vector.extract_strided_slice %121 {offsets = [0, 2], sizes = [32, 16], strides = [1, 1]} : vector<32x26xbf16> to vector<32x16xbf16>
    %127 = vector.broadcast %119 : vector<1x16xbf16> to vector<32x16xbf16>
    %128 = arith.mulf %126, %127 : vector<32x16xbf16>
    %129 = tpu.concatenate %124, %125, %128 in 0 : vector<32x16xbf16>, vector<32x16xbf16>, vector<32x16xbf16> -> vector<96x16xbf16>
    %c0_44 = arith.constant 0 : index
    %c48 = arith.constant 48 : index
    %c0_45 = arith.constant 0 : index
    %130 = vector.load %arg2[%c0_44, %c48, %c0_45] : memref<3x304x192xbf16, #tpu.memory_space<vmem>>, vector<1x32x96xbf16>
    %131 = vector.shape_cast %130 : vector<1x32x96xbf16> to vector<32x96xbf16>
    %cst_46 = arith.constant dense<0.000000e+00> : vector<32x16xf32>
    %132 = tpu.matmul %131, %129, %cst_46 {dimension_numbers = #tpu.dot_dimension_numbers<[1], [0], [0], [1], [0, 0, 1, 1], [], []>} : vector<32x96xbf16>, vector<96x16xbf16>, vector<32x16xf32> -> vector<32x16xf32>
    %133 = vector.extract_strided_slice %121 {offsets = [0, 4], sizes = [32, 16], strides = [1, 1]} : vector<32x26xbf16> to vector<32x16xbf16>
    %134 = vector.broadcast %118 : vector<1x16xbf16> to vector<32x16xbf16>
    %135 = arith.mulf %133, %134 : vector<32x16xbf16>
    %136 = vector.extract_strided_slice %121 {offsets = [0, 5], sizes = [32, 16], strides = [1, 1]} : vector<32x26xbf16> to vector<32x16xbf16>
    %137 = vector.extract_strided_slice %121 {offsets = [0, 6], sizes = [32, 16], strides = [1, 1]} : vector<32x26xbf16> to vector<32x16xbf16>
    %138 = vector.broadcast %119 : vector<1x16xbf16> to vector<32x16xbf16>
    %139 = arith.mulf %137, %138 : vector<32x16xbf16>
    %140 = tpu.concatenate %135, %136, %139 in 0 : vector<32x16xbf16>, vector<32x16xbf16>, vector<32x16xbf16> -> vector<96x16xbf16>
    %c1_47 = arith.constant 1 : index
    %c48_48 = arith.constant 48 : index
    %c0_49 = arith.constant 0 : index
    %141 = vector.load %arg2[%c1_47, %c48_48, %c0_49] : memref<3x304x192xbf16, #tpu.memory_space<vmem>>, vector<1x32x96xbf16>
    %142 = vector.shape_cast %141 : vector<1x32x96xbf16> to vector<32x96xbf16>
    %cst_50 = arith.constant dense<0.000000e+00> : vector<32x16xf32>
    %143 = tpu.matmul %142, %140, %cst_50 {dimension_numbers = #tpu.dot_dimension_numbers<[1], [0], [0], [1], [0, 0, 1, 1], [], []>} : vector<32x96xbf16>, vector<96x16xbf16>, vector<32x16xf32> -> vector<32x16xf32>
    %144 = arith.addf %132, %143 : vector<32x16xf32>
    %145 = vector.extract_strided_slice %121 {offsets = [0, 8], sizes = [32, 16], strides = [1, 1]} : vector<32x26xbf16> to vector<32x16xbf16>
    %146 = vector.broadcast %118 : vector<1x16xbf16> to vector<32x16xbf16>
    %147 = arith.mulf %145, %146 : vector<32x16xbf16>
    %148 = vector.extract_strided_slice %121 {offsets = [0, 9], sizes = [32, 16], strides = [1, 1]} : vector<32x26xbf16> to vector<32x16xbf16>
    %149 = vector.extract_strided_slice %121 {offsets = [0, 10], sizes = [32, 16], strides = [1, 1]} : vector<32x26xbf16> to vector<32x16xbf16>
    %150 = vector.broadcast %119 : vector<1x16xbf16> to vector<32x16xbf16>
    %151 = arith.mulf %149, %150 : vector<32x16xbf16>
    %152 = tpu.concatenate %147, %148, %151 in 0 : vector<32x16xbf16>, vector<32x16xbf16>, vector<32x16xbf16> -> vector<96x16xbf16>
    %c2_51 = arith.constant 2 : index
    %c48_52 = arith.constant 48 : index
    %c0_53 = arith.constant 0 : index
    %153 = vector.load %arg2[%c2_51, %c48_52, %c0_53] : memref<3x304x192xbf16, #tpu.memory_space<vmem>>, vector<1x32x96xbf16>
    %154 = vector.shape_cast %153 : vector<1x32x96xbf16> to vector<32x96xbf16>
    %cst_54 = arith.constant dense<0.000000e+00> : vector<32x16xf32>
    %155 = tpu.matmul %154, %152, %cst_54 {dimension_numbers = #tpu.dot_dimension_numbers<[1], [0], [0], [1], [0, 0, 1, 1], [], []>} : vector<32x96xbf16>, vector<96x16xbf16>, vector<32x16xf32> -> vector<32x16xf32>
    %156 = arith.addf %144, %155 : vector<32x16xf32>
    %c48_55 = arith.constant 48 : index
    %c0_56 = arith.constant 0 : index
    %157 = vector.load %arg3[%c48_55, %c0_56] : memref<304x1xf32, #tpu.memory_space<vmem>>, vector<32x1xf32>
    %158 = vector.broadcast %157 : vector<32x1xf32> to vector<32x16xf32>
    %159 = arith.addf %156, %158 : vector<32x16xf32>
    %cst_57 = arith.constant 2.000000e-01 : f32
    %160 = vector.broadcast %cst_57 : f32 to vector<32x16xf32>
    %161 = arith.mulf %160, %159 : vector<32x16xf32>
    %162 = arith.maximumf %159, %161 : vector<32x16xf32>
    %163 = arith.truncf %162 : vector<32x16xf32> to vector<32x16xbf16>
    %cst_58 = arith.constant 0.000000e+00 : bf16
    %164 = vector.broadcast %cst_58 : bf16 to vector<32x5xbf16>
    %165 = tpu.concatenate %163, %164 in 1 : vector<32x16xbf16>, vector<32x5xbf16> -> vector<32x21xbf16>
    %166 = vector.extract_strided_slice %165 {offsets = [0, 0], sizes = [32, 16], strides = [1, 1]} : vector<32x21xbf16> to vector<32x16xbf16>
    %167 = vector.extract_strided_slice %165 {offsets = [0, 1], sizes = [32, 16], strides = [1, 1]} : vector<32x21xbf16> to vector<32x16xbf16>
    %168 = arith.maximumf %166, %167 : vector<32x16xbf16>
    %169 = vector.extract_strided_slice %165 {offsets = [0, 4], sizes = [32, 16], strides = [1, 1]} : vector<32x21xbf16> to vector<32x16xbf16>
    %170 = vector.extract_strided_slice %165 {offsets = [0, 5], sizes = [32, 16], strides = [1, 1]} : vector<32x21xbf16> to vector<32x16xbf16>
    %171 = arith.maximumf %169, %170 : vector<32x16xbf16>
    %172 = arith.maximumf %168, %171 : vector<32x16xbf16>
    %c320 = arith.constant 320 : index
    %c0_59 = arith.constant 0 : index
    %173 = vector.load %arg4[%c320, %c0_59] : memref<474x256xbf16, #tpu.memory_space<vmem>>, vector<16x4xbf16>
    %cst_60 = arith.constant dense<0.000000e+00> : vector<32x4xf32>
    %174 = tpu.matmul %172, %173, %cst_60 {dimension_numbers = #tpu.dot_dimension_numbers<[1], [0], [0], [1], [0, 0, 1, 1], [], []>} : vector<32x16xbf16>, vector<16x4xbf16>, vector<32x4xf32> -> vector<32x4xf32>
    %175 = arith.truncf %174 : vector<32x4xf32> to vector<32x4xbf16>
    %c470 = arith.constant 470 : index
    %c0_61 = arith.constant 0 : index
    %176 = vector.load %arg4[%c470, %c0_61] : memref<474x256xbf16, #tpu.memory_space<vmem>>, vector<1x4xbf16>
    %c471 = arith.constant 471 : index
    %c0_62 = arith.constant 0 : index
    %177 = vector.load %arg4[%c471, %c0_62] : memref<474x256xbf16, #tpu.memory_space<vmem>>, vector<1x4xbf16>
    %cst_63 = arith.constant 0.000000e+00 : bf16
    %178 = vector.broadcast %cst_63 : bf16 to vector<32x3xbf16>
    %179 = tpu.concatenate %178, %175, %178 in 1 : vector<32x3xbf16>, vector<32x4xbf16>, vector<32x3xbf16> -> vector<32x10xbf16>
    %180 = vector.extract_strided_slice %179 {offsets = [0, 0], sizes = [32, 4], strides = [1, 1]} : vector<32x10xbf16> to vector<32x4xbf16>
    %181 = vector.broadcast %176 : vector<1x4xbf16> to vector<32x4xbf16>
    %182 = arith.mulf %180, %181 : vector<32x4xbf16>
    %183 = vector.extract_strided_slice %179 {offsets = [0, 1], sizes = [32, 4], strides = [1, 1]} : vector<32x10xbf16> to vector<32x4xbf16>
    %184 = vector.extract_strided_slice %179 {offsets = [0, 2], sizes = [32, 4], strides = [1, 1]} : vector<32x10xbf16> to vector<32x4xbf16>
    %185 = vector.broadcast %177 : vector<1x4xbf16> to vector<32x4xbf16>
    %186 = arith.mulf %184, %185 : vector<32x4xbf16>
    %187 = tpu.concatenate %182, %183, %186 in 0 : vector<32x4xbf16>, vector<32x4xbf16>, vector<32x4xbf16> -> vector<96x4xbf16>
    %c0_64 = arith.constant 0 : index
    %c80 = arith.constant 80 : index
    %c0_65 = arith.constant 0 : index
    %188 = vector.load %arg2[%c0_64, %c80, %c0_65] : memref<3x304x192xbf16, #tpu.memory_space<vmem>>, vector<1x32x96xbf16>
    %189 = vector.shape_cast %188 : vector<1x32x96xbf16> to vector<32x96xbf16>
    %cst_66 = arith.constant dense<0.000000e+00> : vector<32x4xf32>
    %190 = tpu.matmul %189, %187, %cst_66 {dimension_numbers = #tpu.dot_dimension_numbers<[1], [0], [0], [1], [0, 0, 1, 1], [], []>} : vector<32x96xbf16>, vector<96x4xbf16>, vector<32x4xf32> -> vector<32x4xf32>
    %191 = vector.extract_strided_slice %179 {offsets = [0, 2], sizes = [32, 4], strides = [1, 1]} : vector<32x10xbf16> to vector<32x4xbf16>
    %192 = vector.broadcast %176 : vector<1x4xbf16> to vector<32x4xbf16>
    %193 = arith.mulf %191, %192 : vector<32x4xbf16>
    %194 = vector.extract_strided_slice %179 {offsets = [0, 3], sizes = [32, 4], strides = [1, 1]} : vector<32x10xbf16> to vector<32x4xbf16>
    %195 = vector.extract_strided_slice %179 {offsets = [0, 4], sizes = [32, 4], strides = [1, 1]} : vector<32x10xbf16> to vector<32x4xbf16>
    %196 = vector.broadcast %177 : vector<1x4xbf16> to vector<32x4xbf16>
    %197 = arith.mulf %195, %196 : vector<32x4xbf16>
    %198 = tpu.concatenate %193, %194, %197 in 0 : vector<32x4xbf16>, vector<32x4xbf16>, vector<32x4xbf16> -> vector<96x4xbf16>
    %c1_67 = arith.constant 1 : index
    %c80_68 = arith.constant 80 : index
    %c0_69 = arith.constant 0 : index
    %199 = vector.load %arg2[%c1_67, %c80_68, %c0_69] : memref<3x304x192xbf16, #tpu.memory_space<vmem>>, vector<1x32x96xbf16>
    %200 = vector.shape_cast %199 : vector<1x32x96xbf16> to vector<32x96xbf16>
    %cst_70 = arith.constant dense<0.000000e+00> : vector<32x4xf32>
    %201 = tpu.matmul %200, %198, %cst_70 {dimension_numbers = #tpu.dot_dimension_numbers<[1], [0], [0], [1], [0, 0, 1, 1], [], []>} : vector<32x96xbf16>, vector<96x4xbf16>, vector<32x4xf32> -> vector<32x4xf32>
    %202 = arith.addf %190, %201 : vector<32x4xf32>
    %203 = vector.extract_strided_slice %179 {offsets = [0, 4], sizes = [32, 4], strides = [1, 1]} : vector<32x10xbf16> to vector<32x4xbf16>
    %204 = vector.broadcast %176 : vector<1x4xbf16> to vector<32x4xbf16>
    %205 = arith.mulf %203, %204 : vector<32x4xbf16>
    %206 = vector.extract_strided_slice %179 {offsets = [0, 5], sizes = [32, 4], strides = [1, 1]} : vector<32x10xbf16> to vector<32x4xbf16>
    %207 = vector.extract_strided_slice %179 {offsets = [0, 6], sizes = [32, 4], strides = [1, 1]} : vector<32x10xbf16> to vector<32x4xbf16>
    %208 = vector.broadcast %177 : vector<1x4xbf16> to vector<32x4xbf16>
    %209 = arith.mulf %207, %208 : vector<32x4xbf16>
    %210 = tpu.concatenate %205, %206, %209 in 0 : vector<32x4xbf16>, vector<32x4xbf16>, vector<32x4xbf16> -> vector<96x4xbf16>
    %c2_71 = arith.constant 2 : index
    %c80_72 = arith.constant 80 : index
    %c0_73 = arith.constant 0 : index
    %211 = vector.load %arg2[%c2_71, %c80_72, %c0_73] : memref<3x304x192xbf16, #tpu.memory_space<vmem>>, vector<1x32x96xbf16>
    %212 = vector.shape_cast %211 : vector<1x32x96xbf16> to vector<32x96xbf16>
    %cst_74 = arith.constant dense<0.000000e+00> : vector<32x4xf32>
    %213 = tpu.matmul %212, %210, %cst_74 {dimension_numbers = #tpu.dot_dimension_numbers<[1], [0], [0], [1], [0, 0, 1, 1], [], []>} : vector<32x96xbf16>, vector<96x4xbf16>, vector<32x4xf32> -> vector<32x4xf32>
    %214 = arith.addf %202, %213 : vector<32x4xf32>
    %c80_75 = arith.constant 80 : index
    %c0_76 = arith.constant 0 : index
    %215 = vector.load %arg3[%c80_75, %c0_76] : memref<304x1xf32, #tpu.memory_space<vmem>>, vector<32x1xf32>
    %216 = vector.broadcast %215 : vector<32x1xf32> to vector<32x4xf32>
    %217 = arith.addf %214, %216 : vector<32x4xf32>
    %cst_77 = arith.constant 2.000000e-01 : f32
    %218 = vector.broadcast %cst_77 : f32 to vector<32x4xf32>
    %219 = arith.mulf %218, %217 : vector<32x4xf32>
    %220 = arith.maximumf %217, %219 : vector<32x4xf32>
    %221 = arith.truncf %220 : vector<32x4xf32> to vector<32x4xbf16>
    %cst_78 = arith.constant 0.000000e+00 : bf16
    %222 = vector.broadcast %cst_78 : bf16 to vector<32x3xbf16>
    %223 = tpu.concatenate %221, %222 in 1 : vector<32x4xbf16>, vector<32x3xbf16> -> vector<32x7xbf16>
    %224 = vector.extract_strided_slice %223 {offsets = [0, 0], sizes = [32, 4], strides = [1, 1]} : vector<32x7xbf16> to vector<32x4xbf16>
    %225 = vector.extract_strided_slice %223 {offsets = [0, 1], sizes = [32, 4], strides = [1, 1]} : vector<32x7xbf16> to vector<32x4xbf16>
    %226 = arith.maximumf %224, %225 : vector<32x4xbf16>
    %227 = vector.extract_strided_slice %223 {offsets = [0, 2], sizes = [32, 4], strides = [1, 1]} : vector<32x7xbf16> to vector<32x4xbf16>
    %228 = vector.extract_strided_slice %223 {offsets = [0, 3], sizes = [32, 4], strides = [1, 1]} : vector<32x7xbf16> to vector<32x4xbf16>
    %229 = arith.maximumf %227, %228 : vector<32x4xbf16>
    %230 = arith.maximumf %226, %229 : vector<32x4xbf16>
    %231 = vector.extract_strided_slice %230 {offsets = [0, 0], sizes = [32, 1], strides = [1, 1]} : vector<32x4xbf16> to vector<32x1xbf16>
    %c472 = arith.constant 472 : index
    %c0_79 = arith.constant 0 : index
    %232 = vector.load %arg4[%c472, %c0_79] : memref<474x256xbf16, #tpu.memory_space<vmem>>, vector<1x1xbf16>
    %c473 = arith.constant 473 : index
    %c0_80 = arith.constant 0 : index
    %233 = vector.load %arg4[%c473, %c0_80] : memref<474x256xbf16, #tpu.memory_space<vmem>>, vector<1x1xbf16>
    %cst_81 = arith.constant 0.000000e+00 : bf16
    %234 = vector.broadcast %cst_81 : bf16 to vector<32x2xbf16>
    %235 = tpu.concatenate %234, %231, %234 in 1 : vector<32x2xbf16>, vector<32x1xbf16>, vector<32x2xbf16> -> vector<32x5xbf16>
    %236 = vector.extract_strided_slice %235 {offsets = [0, 0], sizes = [32, 1], strides = [1, 1]} : vector<32x5xbf16> to vector<32x1xbf16>
    %237 = vector.broadcast %232 : vector<1x1xbf16> to vector<32x1xbf16>
    %238 = arith.mulf %236, %237 : vector<32x1xbf16>
    %239 = vector.extract_strided_slice %235 {offsets = [0, 1], sizes = [32, 1], strides = [1, 1]} : vector<32x5xbf16> to vector<32x1xbf16>
    %240 = vector.extract_strided_slice %235 {offsets = [0, 2], sizes = [32, 1], strides = [1, 1]} : vector<32x5xbf16> to vector<32x1xbf16>
    %241 = vector.broadcast %233 : vector<1x1xbf16> to vector<32x1xbf16>
    %242 = arith.mulf %240, %241 : vector<32x1xbf16>
    %243 = tpu.concatenate %238, %239, %242 in 0 : vector<32x1xbf16>, vector<32x1xbf16>, vector<32x1xbf16> -> vector<96x1xbf16>
    %c0_82 = arith.constant 0 : index
    %c112 = arith.constant 112 : index
    %c0_83 = arith.constant 0 : index
    %244 = vector.load %arg2[%c0_82, %c112, %c0_83] : memref<3x304x192xbf16, #tpu.memory_space<vmem>>, vector<1x32x96xbf16>
    %245 = vector.shape_cast %244 : vector<1x32x96xbf16> to vector<32x96xbf16>
    %cst_84 = arith.constant dense<0.000000e+00> : vector<32x1xf32>
    %246 = tpu.matmul %245, %243, %cst_84 {dimension_numbers = #tpu.dot_dimension_numbers<[1], [0], [0], [1], [0, 0, 1, 1], [], []>} : vector<32x96xbf16>, vector<96x1xbf16>, vector<32x1xf32> -> vector<32x1xf32>
    %247 = vector.extract_strided_slice %235 {offsets = [0, 1], sizes = [32, 1], strides = [1, 1]} : vector<32x5xbf16> to vector<32x1xbf16>
    %248 = vector.broadcast %232 : vector<1x1xbf16> to vector<32x1xbf16>
    %249 = arith.mulf %247, %248 : vector<32x1xbf16>
    %250 = vector.extract_strided_slice %235 {offsets = [0, 2], sizes = [32, 1], strides = [1, 1]} : vector<32x5xbf16> to vector<32x1xbf16>
    %251 = vector.extract_strided_slice %235 {offsets = [0, 3], sizes = [32, 1], strides = [1, 1]} : vector<32x5xbf16> to vector<32x1xbf16>
    %252 = vector.broadcast %233 : vector<1x1xbf16> to vector<32x1xbf16>
    %253 = arith.mulf %251, %252 : vector<32x1xbf16>
    %254 = tpu.concatenate %249, %250, %253 in 0 : vector<32x1xbf16>, vector<32x1xbf16>, vector<32x1xbf16> -> vector<96x1xbf16>
    %c1_85 = arith.constant 1 : index
    %c112_86 = arith.constant 112 : index
    %c0_87 = arith.constant 0 : index
    %255 = vector.load %arg2[%c1_85, %c112_86, %c0_87] : memref<3x304x192xbf16, #tpu.memory_space<vmem>>, vector<1x32x96xbf16>
    %256 = vector.shape_cast %255 : vector<1x32x96xbf16> to vector<32x96xbf16>
    %cst_88 = arith.constant dense<0.000000e+00> : vector<32x1xf32>
    %257 = tpu.matmul %256, %254, %cst_88 {dimension_numbers = #tpu.dot_dimension_numbers<[1], [0], [0], [1], [0, 0, 1, 1], [], []>} : vector<32x96xbf16>, vector<96x1xbf16>, vector<32x1xf32> -> vector<32x1xf32>
    %258 = arith.addf %246, %257 : vector<32x1xf32>
    %259 = vector.extract_strided_slice %235 {offsets = [0, 2], sizes = [32, 1], strides = [1, 1]} : vector<32x5xbf16> to vector<32x1xbf16>
    %260 = vector.broadcast %232 : vector<1x1xbf16> to vector<32x1xbf16>
    %261 = arith.mulf %259, %260 : vector<32x1xbf16>
    %262 = vector.extract_strided_slice %235 {offsets = [0, 3], sizes = [32, 1], strides = [1, 1]} : vector<32x5xbf16> to vector<32x1xbf16>
    %263 = vector.extract_strided_slice %235 {offsets = [0, 4], sizes = [32, 1], strides = [1, 1]} : vector<32x5xbf16> to vector<32x1xbf16>
    %264 = vector.broadcast %233 : vector<1x1xbf16> to vector<32x1xbf16>
    %265 = arith.mulf %263, %264 : vector<32x1xbf16>
    %266 = tpu.concatenate %261, %262, %265 in 0 : vector<32x1xbf16>, vector<32x1xbf16>, vector<32x1xbf16> -> vector<96x1xbf16>
    %c2_89 = arith.constant 2 : index
    %c112_90 = arith.constant 112 : index
    %c0_91 = arith.constant 0 : index
    %267 = vector.load %arg2[%c2_89, %c112_90, %c0_91] : memref<3x304x192xbf16, #tpu.memory_space<vmem>>, vector<1x32x96xbf16>
    %268 = vector.shape_cast %267 : vector<1x32x96xbf16> to vector<32x96xbf16>
    %cst_92 = arith.constant dense<0.000000e+00> : vector<32x1xf32>
    %269 = tpu.matmul %268, %266, %cst_92 {dimension_numbers = #tpu.dot_dimension_numbers<[1], [0], [0], [1], [0, 0, 1, 1], [], []>} : vector<32x96xbf16>, vector<96x1xbf16>, vector<32x1xf32> -> vector<32x1xf32>
    %270 = arith.addf %258, %269 : vector<32x1xf32>
    %c112_93 = arith.constant 112 : index
    %c0_94 = arith.constant 0 : index
    %271 = vector.load %arg3[%c112_93, %c0_94] : memref<304x1xf32, #tpu.memory_space<vmem>>, vector<32x1xf32>
    %272 = arith.addf %270, %271 : vector<32x1xf32>
    %cst_95 = arith.constant 2.000000e-01 : f32
    %273 = vector.broadcast %cst_95 : f32 to vector<32x1xf32>
    %274 = arith.mulf %273, %272 : vector<32x1xf32>
    %275 = arith.maximumf %272, %274 : vector<32x1xf32>
    %276 = arith.truncf %275 : vector<32x1xf32> to vector<32x1xbf16>
    %277 = tpu.concatenate %276, %276, %276, %276 in 1 : vector<32x1xbf16>, vector<32x1xbf16>, vector<32x1xbf16>, vector<32x1xbf16> -> vector<32x4xbf16>
    %278 = tpu.concatenate %277, %221 in 0 : vector<32x4xbf16>, vector<32x4xbf16> -> vector<64x4xbf16>
    %cst_96 = arith.constant 0.000000e+00 : bf16
    %279 = vector.broadcast %cst_96 : bf16 to vector<64x3xbf16>
    %280 = tpu.concatenate %279, %278, %279 in 1 : vector<64x3xbf16>, vector<64x4xbf16>, vector<64x3xbf16> -> vector<64x10xbf16>
    %281 = vector.extract_strided_slice %280 {offsets = [0, 0], sizes = [64, 4], strides = [1, 1]} : vector<64x10xbf16> to vector<64x4xbf16>
    %282 = vector.broadcast %176 : vector<1x4xbf16> to vector<64x4xbf16>
    %283 = arith.mulf %281, %282 : vector<64x4xbf16>
    %284 = vector.extract_strided_slice %280 {offsets = [0, 1], sizes = [64, 4], strides = [1, 1]} : vector<64x10xbf16> to vector<64x4xbf16>
    %285 = vector.extract_strided_slice %280 {offsets = [0, 2], sizes = [64, 4], strides = [1, 1]} : vector<64x10xbf16> to vector<64x4xbf16>
    %286 = vector.broadcast %177 : vector<1x4xbf16> to vector<64x4xbf16>
    %287 = arith.mulf %285, %286 : vector<64x4xbf16>
    %288 = tpu.concatenate %283, %284, %287 in 0 : vector<64x4xbf16>, vector<64x4xbf16>, vector<64x4xbf16> -> vector<192x4xbf16>
    %c0_97 = arith.constant 0 : index
    %c144 = arith.constant 144 : index
    %c0_98 = arith.constant 0 : index
    %289 = vector.load %arg2[%c0_97, %c144, %c0_98] : memref<3x304x192xbf16, #tpu.memory_space<vmem>>, vector<1x32x192xbf16>
    %290 = vector.shape_cast %289 : vector<1x32x192xbf16> to vector<32x192xbf16>
    %cst_99 = arith.constant dense<0.000000e+00> : vector<32x4xf32>
    %291 = tpu.matmul %290, %288, %cst_99 {dimension_numbers = #tpu.dot_dimension_numbers<[1], [0], [0], [1], [0, 0, 1, 1], [], []>} : vector<32x192xbf16>, vector<192x4xbf16>, vector<32x4xf32> -> vector<32x4xf32>
    %292 = vector.extract_strided_slice %280 {offsets = [0, 2], sizes = [64, 4], strides = [1, 1]} : vector<64x10xbf16> to vector<64x4xbf16>
    %293 = vector.broadcast %176 : vector<1x4xbf16> to vector<64x4xbf16>
    %294 = arith.mulf %292, %293 : vector<64x4xbf16>
    %295 = vector.extract_strided_slice %280 {offsets = [0, 3], sizes = [64, 4], strides = [1, 1]} : vector<64x10xbf16> to vector<64x4xbf16>
    %296 = vector.extract_strided_slice %280 {offsets = [0, 4], sizes = [64, 4], strides = [1, 1]} : vector<64x10xbf16> to vector<64x4xbf16>
    %297 = vector.broadcast %177 : vector<1x4xbf16> to vector<64x4xbf16>
    %298 = arith.mulf %296, %297 : vector<64x4xbf16>
    %299 = tpu.concatenate %294, %295, %298 in 0 : vector<64x4xbf16>, vector<64x4xbf16>, vector<64x4xbf16> -> vector<192x4xbf16>
    %c1_100 = arith.constant 1 : index
    %c144_101 = arith.constant 144 : index
    %c0_102 = arith.constant 0 : index
    %300 = vector.load %arg2[%c1_100, %c144_101, %c0_102] : memref<3x304x192xbf16, #tpu.memory_space<vmem>>, vector<1x32x192xbf16>
    %301 = vector.shape_cast %300 : vector<1x32x192xbf16> to vector<32x192xbf16>
    %cst_103 = arith.constant dense<0.000000e+00> : vector<32x4xf32>
    %302 = tpu.matmul %301, %299, %cst_103 {dimension_numbers = #tpu.dot_dimension_numbers<[1], [0], [0], [1], [0, 0, 1, 1], [], []>} : vector<32x192xbf16>, vector<192x4xbf16>, vector<32x4xf32> -> vector<32x4xf32>
    %303 = arith.addf %291, %302 : vector<32x4xf32>
    %304 = vector.extract_strided_slice %280 {offsets = [0, 4], sizes = [64, 4], strides = [1, 1]} : vector<64x10xbf16> to vector<64x4xbf16>
    %305 = vector.broadcast %176 : vector<1x4xbf16> to vector<64x4xbf16>
    %306 = arith.mulf %304, %305 : vector<64x4xbf16>
    %307 = vector.extract_strided_slice %280 {offsets = [0, 5], sizes = [64, 4], strides = [1, 1]} : vector<64x10xbf16> to vector<64x4xbf16>
    %308 = vector.extract_strided_slice %280 {offsets = [0, 6], sizes = [64, 4], strides = [1, 1]} : vector<64x10xbf16> to vector<64x4xbf16>
    %309 = vector.broadcast %177 : vector<1x4xbf16> to vector<64x4xbf16>
    %310 = arith.mulf %308, %309 : vector<64x4xbf16>
    %311 = tpu.concatenate %306, %307, %310 in 0 : vector<64x4xbf16>, vector<64x4xbf16>, vector<64x4xbf16> -> vector<192x4xbf16>
    %c2_104 = arith.constant 2 : index
    %c144_105 = arith.constant 144 : index
    %c0_106 = arith.constant 0 : index
    %312 = vector.load %arg2[%c2_104, %c144_105, %c0_106] : memref<3x304x192xbf16, #tpu.memory_space<vmem>>, vector<1x32x192xbf16>
    %313 = vector.shape_cast %312 : vector<1x32x192xbf16> to vector<32x192xbf16>
    %cst_107 = arith.constant dense<0.000000e+00> : vector<32x4xf32>
    %314 = tpu.matmul %313, %311, %cst_107 {dimension_numbers = #tpu.dot_dimension_numbers<[1], [0], [0], [1], [0, 0, 1, 1], [], []>} : vector<32x192xbf16>, vector<192x4xbf16>, vector<32x4xf32> -> vector<32x4xf32>
    %315 = arith.addf %303, %314 : vector<32x4xf32>
    %c144_108 = arith.constant 144 : index
    %c0_109 = arith.constant 0 : index
    %316 = vector.load %arg3[%c144_108, %c0_109] : memref<304x1xf32, #tpu.memory_space<vmem>>, vector<32x1xf32>
    %317 = vector.broadcast %316 : vector<32x1xf32> to vector<32x4xf32>
    %318 = arith.addf %315, %317 : vector<32x4xf32>
    %cst_110 = arith.constant 2.000000e-01 : f32
    %319 = vector.broadcast %cst_110 : f32 to vector<32x4xf32>
    %320 = arith.mulf %319, %318 : vector<32x4xf32>
    %321 = arith.maximumf %318, %320 : vector<32x4xf32>
    %322 = arith.truncf %321 : vector<32x4xf32> to vector<32x4xbf16>
    %c368 = arith.constant 368 : index
    %c0_111 = arith.constant 0 : index
    %323 = vector.load %arg4[%c368, %c0_111] : memref<474x256xbf16, #tpu.memory_space<vmem>>, vector<4x16xbf16>
    %cst_112 = arith.constant dense<0.000000e+00> : vector<32x16xf32>
    %324 = tpu.matmul %322, %323, %cst_112 {dimension_numbers = #tpu.dot_dimension_numbers<[1], [0], [0], [1], [0, 0, 1, 1], [], []>} : vector<32x4xbf16>, vector<4x16xbf16>, vector<32x16xf32> -> vector<32x16xf32>
    %325 = arith.truncf %324 : vector<32x16xf32> to vector<32x16xbf16>
    %326 = tpu.concatenate %325, %163 in 0 : vector<32x16xbf16>, vector<32x16xbf16> -> vector<64x16xbf16>
    %cst_113 = arith.constant 0.000000e+00 : bf16
    %327 = vector.broadcast %cst_113 : bf16 to vector<64x5xbf16>
    %328 = tpu.concatenate %327, %326, %327 in 1 : vector<64x5xbf16>, vector<64x16xbf16>, vector<64x5xbf16> -> vector<64x26xbf16>
    %329 = vector.extract_strided_slice %328 {offsets = [0, 0], sizes = [64, 16], strides = [1, 1]} : vector<64x26xbf16> to vector<64x16xbf16>
    %330 = vector.broadcast %118 : vector<1x16xbf16> to vector<64x16xbf16>
    %331 = arith.mulf %329, %330 : vector<64x16xbf16>
    %332 = vector.extract_strided_slice %328 {offsets = [0, 1], sizes = [64, 16], strides = [1, 1]} : vector<64x26xbf16> to vector<64x16xbf16>
    %333 = vector.extract_strided_slice %328 {offsets = [0, 2], sizes = [64, 16], strides = [1, 1]} : vector<64x26xbf16> to vector<64x16xbf16>
    %334 = vector.broadcast %119 : vector<1x16xbf16> to vector<64x16xbf16>
    %335 = arith.mulf %333, %334 : vector<64x16xbf16>
    %336 = tpu.concatenate %331, %332, %335 in 0 : vector<64x16xbf16>, vector<64x16xbf16>, vector<64x16xbf16> -> vector<192x16xbf16>
    %c0_114 = arith.constant 0 : index
    %c176 = arith.constant 176 : index
    %c0_115 = arith.constant 0 : index
    %337 = vector.load %arg2[%c0_114, %c176, %c0_115] : memref<3x304x192xbf16, #tpu.memory_space<vmem>>, vector<1x32x192xbf16>
    %338 = vector.shape_cast %337 : vector<1x32x192xbf16> to vector<32x192xbf16>
    %cst_116 = arith.constant dense<0.000000e+00> : vector<32x16xf32>
    %339 = tpu.matmul %338, %336, %cst_116 {dimension_numbers = #tpu.dot_dimension_numbers<[1], [0], [0], [1], [0, 0, 1, 1], [], []>} : vector<32x192xbf16>, vector<192x16xbf16>, vector<32x16xf32> -> vector<32x16xf32>
    %340 = vector.extract_strided_slice %328 {offsets = [0, 4], sizes = [64, 16], strides = [1, 1]} : vector<64x26xbf16> to vector<64x16xbf16>
    %341 = vector.broadcast %118 : vector<1x16xbf16> to vector<64x16xbf16>
    %342 = arith.mulf %340, %341 : vector<64x16xbf16>
    %343 = vector.extract_strided_slice %328 {offsets = [0, 5], sizes = [64, 16], strides = [1, 1]} : vector<64x26xbf16> to vector<64x16xbf16>
    %344 = vector.extract_strided_slice %328 {offsets = [0, 6], sizes = [64, 16], strides = [1, 1]} : vector<64x26xbf16> to vector<64x16xbf16>
    %345 = vector.broadcast %119 : vector<1x16xbf16> to vector<64x16xbf16>
    %346 = arith.mulf %344, %345 : vector<64x16xbf16>
    %347 = tpu.concatenate %342, %343, %346 in 0 : vector<64x16xbf16>, vector<64x16xbf16>, vector<64x16xbf16> -> vector<192x16xbf16>
    %c1_117 = arith.constant 1 : index
    %c176_118 = arith.constant 176 : index
    %c0_119 = arith.constant 0 : index
    %348 = vector.load %arg2[%c1_117, %c176_118, %c0_119] : memref<3x304x192xbf16, #tpu.memory_space<vmem>>, vector<1x32x192xbf16>
    %349 = vector.shape_cast %348 : vector<1x32x192xbf16> to vector<32x192xbf16>
    %cst_120 = arith.constant dense<0.000000e+00> : vector<32x16xf32>
    %350 = tpu.matmul %349, %347, %cst_120 {dimension_numbers = #tpu.dot_dimension_numbers<[1], [0], [0], [1], [0, 0, 1, 1], [], []>} : vector<32x192xbf16>, vector<192x16xbf16>, vector<32x16xf32> -> vector<32x16xf32>
    %351 = arith.addf %339, %350 : vector<32x16xf32>
    %352 = vector.extract_strided_slice %328 {offsets = [0, 8], sizes = [64, 16], strides = [1, 1]} : vector<64x26xbf16> to vector<64x16xbf16>
    %353 = vector.broadcast %118 : vector<1x16xbf16> to vector<64x16xbf16>
    %354 = arith.mulf %352, %353 : vector<64x16xbf16>
    %355 = vector.extract_strided_slice %328 {offsets = [0, 9], sizes = [64, 16], strides = [1, 1]} : vector<64x26xbf16> to vector<64x16xbf16>
    %356 = vector.extract_strided_slice %328 {offsets = [0, 10], sizes = [64, 16], strides = [1, 1]} : vector<64x26xbf16> to vector<64x16xbf16>
    %357 = vector.broadcast %119 : vector<1x16xbf16> to vector<64x16xbf16>
    %358 = arith.mulf %356, %357 : vector<64x16xbf16>
    %359 = tpu.concatenate %354, %355, %358 in 0 : vector<64x16xbf16>, vector<64x16xbf16>, vector<64x16xbf16> -> vector<192x16xbf16>
    %c2_121 = arith.constant 2 : index
    %c176_122 = arith.constant 176 : index
    %c0_123 = arith.constant 0 : index
    %360 = vector.load %arg2[%c2_121, %c176_122, %c0_123] : memref<3x304x192xbf16, #tpu.memory_space<vmem>>, vector<1x32x192xbf16>
    %361 = vector.shape_cast %360 : vector<1x32x192xbf16> to vector<32x192xbf16>
    %cst_124 = arith.constant dense<0.000000e+00> : vector<32x16xf32>
    %362 = tpu.matmul %361, %359, %cst_124 {dimension_numbers = #tpu.dot_dimension_numbers<[1], [0], [0], [1], [0, 0, 1, 1], [], []>} : vector<32x192xbf16>, vector<192x16xbf16>, vector<32x16xf32> -> vector<32x16xf32>
    %363 = arith.addf %351, %362 : vector<32x16xf32>
    %c176_125 = arith.constant 176 : index
    %c0_126 = arith.constant 0 : index
    %364 = vector.load %arg3[%c176_125, %c0_126] : memref<304x1xf32, #tpu.memory_space<vmem>>, vector<32x1xf32>
    %365 = vector.broadcast %364 : vector<32x1xf32> to vector<32x16xf32>
    %366 = arith.addf %363, %365 : vector<32x16xf32>
    %cst_127 = arith.constant 2.000000e-01 : f32
    %367 = vector.broadcast %cst_127 : f32 to vector<32x16xf32>
    %368 = arith.mulf %367, %366 : vector<32x16xf32>
    %369 = arith.maximumf %366, %368 : vector<32x16xf32>
    %370 = arith.truncf %369 : vector<32x16xf32> to vector<32x16xbf16>
    %c384 = arith.constant 384 : index
    %c0_128 = arith.constant 0 : index
    %371 = vector.load %arg4[%c384, %c0_128] : memref<474x256xbf16, #tpu.memory_space<vmem>>, vector<16x64xbf16>
    %cst_129 = arith.constant dense<0.000000e+00> : vector<32x64xf32>
    %372 = tpu.matmul %370, %371, %cst_129 {dimension_numbers = #tpu.dot_dimension_numbers<[1], [0], [0], [1], [0, 0, 1, 1], [], []>} : vector<32x16xbf16>, vector<16x64xbf16>, vector<32x64xf32> -> vector<32x64xf32>
    %373 = arith.truncf %372 : vector<32x64xf32> to vector<32x64xbf16>
    %374 = tpu.concatenate %373, %105 in 0 : vector<32x64xbf16>, vector<32x64xbf16> -> vector<64x64xbf16>
    %cst_130 = arith.constant 0.000000e+00 : bf16
    %375 = vector.broadcast %cst_130 : bf16 to vector<64x9xbf16>
    %376 = tpu.concatenate %375, %374, %375 in 1 : vector<64x9xbf16>, vector<64x64xbf16>, vector<64x9xbf16> -> vector<64x82xbf16>
    %377 = vector.extract_strided_slice %376 {offsets = [0, 0], sizes = [64, 64], strides = [1, 1]} : vector<64x82xbf16> to vector<64x64xbf16>
    %378 = vector.broadcast %60 : vector<1x64xbf16> to vector<64x64xbf16>
    %379 = arith.mulf %377, %378 : vector<64x64xbf16>
    %380 = vector.extract_strided_slice %376 {offsets = [0, 1], sizes = [64, 64], strides = [1, 1]} : vector<64x82xbf16> to vector<64x64xbf16>
    %381 = vector.extract_strided_slice %376 {offsets = [0, 2], sizes = [64, 64], strides = [1, 1]} : vector<64x82xbf16> to vector<64x64xbf16>
    %382 = vector.broadcast %61 : vector<1x64xbf16> to vector<64x64xbf16>
    %383 = arith.mulf %381, %382 : vector<64x64xbf16>
    %384 = tpu.concatenate %379, %380, %383 in 0 : vector<64x64xbf16>, vector<64x64xbf16>, vector<64x64xbf16> -> vector<192x64xbf16>
    %c0_131 = arith.constant 0 : index
    %c208 = arith.constant 208 : index
    %c0_132 = arith.constant 0 : index
    %385 = vector.load %arg2[%c0_131, %c208, %c0_132] : memref<3x304x192xbf16, #tpu.memory_space<vmem>>, vector<1x32x192xbf16>
    %386 = vector.shape_cast %385 : vector<1x32x192xbf16> to vector<32x192xbf16>
    %cst_133 = arith.constant dense<0.000000e+00> : vector<32x64xf32>
    %387 = tpu.matmul %386, %384, %cst_133 {dimension_numbers = #tpu.dot_dimension_numbers<[1], [0], [0], [1], [0, 0, 1, 1], [], []>} : vector<32x192xbf16>, vector<192x64xbf16>, vector<32x64xf32> -> vector<32x64xf32>
    %388 = vector.extract_strided_slice %376 {offsets = [0, 8], sizes = [64, 64], strides = [1, 1]} : vector<64x82xbf16> to vector<64x64xbf16>
    %389 = vector.broadcast %60 : vector<1x64xbf16> to vector<64x64xbf16>
    %390 = arith.mulf %388, %389 : vector<64x64xbf16>
    %391 = vector.extract_strided_slice %376 {offsets = [0, 9], sizes = [64, 64], strides = [1, 1]} : vector<64x82xbf16> to vector<64x64xbf16>
    %392 = vector.extract_strided_slice %376 {offsets = [0, 10], sizes = [64, 64], strides = [1, 1]} : vector<64x82xbf16> to vector<64x64xbf16>
    %393 = vector.broadcast %61 : vector<1x64xbf16> to vector<64x64xbf16>
    %394 = arith.mulf %392, %393 : vector<64x64xbf16>
    %395 = tpu.concatenate %390, %391, %394 in 0 : vector<64x64xbf16>, vector<64x64xbf16>, vector<64x64xbf16> -> vector<192x64xbf16>
    %c1_134 = arith.constant 1 : index
    %c208_135 = arith.constant 208 : index
    %c0_136 = arith.constant 0 : index
    %396 = vector.load %arg2[%c1_134, %c208_135, %c0_136] : memref<3x304x192xbf16, #tpu.memory_space<vmem>>, vector<1x32x192xbf16>
    %397 = vector.shape_cast %396 : vector<1x32x192xbf16> to vector<32x192xbf16>
    %cst_137 = arith.constant dense<0.000000e+00> : vector<32x64xf32>
    %398 = tpu.matmul %397, %395, %cst_137 {dimension_numbers = #tpu.dot_dimension_numbers<[1], [0], [0], [1], [0, 0, 1, 1], [], []>} : vector<32x192xbf16>, vector<192x64xbf16>, vector<32x64xf32> -> vector<32x64xf32>
    %399 = arith.addf %387, %398 : vector<32x64xf32>
    %400 = vector.extract_strided_slice %376 {offsets = [0, 16], sizes = [64, 64], strides = [1, 1]} : vector<64x82xbf16> to vector<64x64xbf16>
    %401 = vector.broadcast %60 : vector<1x64xbf16> to vector<64x64xbf16>
    %402 = arith.mulf %400, %401 : vector<64x64xbf16>
    %403 = vector.extract_strided_slice %376 {offsets = [0, 17], sizes = [64, 64], strides = [1, 1]} : vector<64x82xbf16> to vector<64x64xbf16>
    %404 = vector.extract_strided_slice %376 {offsets = [0, 18], sizes = [64, 64], strides = [1, 1]} : vector<64x82xbf16> to vector<64x64xbf16>
    %405 = vector.broadcast %61 : vector<1x64xbf16> to vector<64x64xbf16>
    %406 = arith.mulf %404, %405 : vector<64x64xbf16>
    %407 = tpu.concatenate %402, %403, %406 in 0 : vector<64x64xbf16>, vector<64x64xbf16>, vector<64x64xbf16> -> vector<192x64xbf16>
    %c2_138 = arith.constant 2 : index
    %c208_139 = arith.constant 208 : index
    %c0_140 = arith.constant 0 : index
    %408 = vector.load %arg2[%c2_138, %c208_139, %c0_140] : memref<3x304x192xbf16, #tpu.memory_space<vmem>>, vector<1x32x192xbf16>
    %409 = vector.shape_cast %408 : vector<1x32x192xbf16> to vector<32x192xbf16>
    %cst_141 = arith.constant dense<0.000000e+00> : vector<32x64xf32>
    %410 = tpu.matmul %409, %407, %cst_141 {dimension_numbers = #tpu.dot_dimension_numbers<[1], [0], [0], [1], [0, 0, 1, 1], [], []>} : vector<32x192xbf16>, vector<192x64xbf16>, vector<32x64xf32> -> vector<32x64xf32>
    %411 = arith.addf %399, %410 : vector<32x64xf32>
    %c208_142 = arith.constant 208 : index
    %c0_143 = arith.constant 0 : index
    %412 = vector.load %arg3[%c208_142, %c0_143] : memref<304x1xf32, #tpu.memory_space<vmem>>, vector<32x1xf32>
    %413 = vector.broadcast %412 : vector<32x1xf32> to vector<32x64xf32>
    %414 = arith.addf %411, %413 : vector<32x64xf32>
    %cst_144 = arith.constant 2.000000e-01 : f32
    %415 = vector.broadcast %cst_144 : f32 to vector<32x64xf32>
    %416 = arith.mulf %415, %414 : vector<32x64xf32>
    %417 = arith.maximumf %414, %416 : vector<32x64xf32>
    %418 = arith.truncf %417 : vector<32x64xf32> to vector<32x64xbf16>
    %c400 = arith.constant 400 : index
    %c0_145 = arith.constant 0 : index
    %419 = vector.load %arg4[%c400, %c0_145] : memref<474x256xbf16, #tpu.memory_space<vmem>>, vector<64x256xbf16>
    %cst_146 = arith.constant dense<0.000000e+00> : vector<32x256xf32>
    %420 = tpu.matmul %418, %419, %cst_146 {dimension_numbers = #tpu.dot_dimension_numbers<[1], [0], [0], [1], [0, 0, 1, 1], [], []>} : vector<32x64xbf16>, vector<64x256xbf16>, vector<32x256xf32> -> vector<32x256xf32>
    %421 = arith.truncf %420 : vector<32x256xf32> to vector<32x256xbf16>
    %422 = tpu.concatenate %421, %47 in 0 : vector<32x256xbf16>, vector<16x256xbf16> -> vector<48x256xbf16>
    %cst_147 = arith.constant 0.000000e+00 : bf16
    %423 = vector.broadcast %cst_147 : bf16 to vector<48x17xbf16>
    %424 = tpu.concatenate %423, %422, %423 in 1 : vector<48x17xbf16>, vector<48x256xbf16>, vector<48x17xbf16> -> vector<48x290xbf16>
    %425 = vector.extract_strided_slice %424 {offsets = [0, 0], sizes = [48, 256], strides = [1, 1]} : vector<48x290xbf16> to vector<48x256xbf16>
    %426 = vector.broadcast %2 : vector<1x256xbf16> to vector<48x256xbf16>
    %427 = arith.mulf %425, %426 : vector<48x256xbf16>
    %428 = vector.extract_strided_slice %424 {offsets = [0, 1], sizes = [48, 256], strides = [1, 1]} : vector<48x290xbf16> to vector<48x256xbf16>
    %429 = vector.extract_strided_slice %424 {offsets = [0, 2], sizes = [48, 256], strides = [1, 1]} : vector<48x290xbf16> to vector<48x256xbf16>
    %430 = vector.broadcast %3 : vector<1x256xbf16> to vector<48x256xbf16>
    %431 = arith.mulf %429, %430 : vector<48x256xbf16>
    %432 = tpu.concatenate %427, %428, %431 in 0 : vector<48x256xbf16>, vector<48x256xbf16>, vector<48x256xbf16> -> vector<144x256xbf16>
    %c0_148 = arith.constant 0 : index
    %c240 = arith.constant 240 : index
    %c0_149 = arith.constant 0 : index
    %433 = vector.load %arg2[%c0_148, %c240, %c0_149] : memref<3x304x192xbf16, #tpu.memory_space<vmem>>, vector<1x32x144xbf16>
    %434 = vector.shape_cast %433 : vector<1x32x144xbf16> to vector<32x144xbf16>
    %cst_150 = arith.constant dense<0.000000e+00> : vector<32x256xf32>
    %435 = tpu.matmul %434, %432, %cst_150 {dimension_numbers = #tpu.dot_dimension_numbers<[1], [0], [0], [1], [0, 0, 1, 1], [], []>} : vector<32x144xbf16>, vector<144x256xbf16>, vector<32x256xf32> -> vector<32x256xf32>
    %436 = vector.extract_strided_slice %424 {offsets = [0, 16], sizes = [48, 256], strides = [1, 1]} : vector<48x290xbf16> to vector<48x256xbf16>
    %437 = vector.broadcast %2 : vector<1x256xbf16> to vector<48x256xbf16>
    %438 = arith.mulf %436, %437 : vector<48x256xbf16>
    %439 = vector.extract_strided_slice %424 {offsets = [0, 17], sizes = [48, 256], strides = [1, 1]} : vector<48x290xbf16> to vector<48x256xbf16>
    %440 = vector.extract_strided_slice %424 {offsets = [0, 18], sizes = [48, 256], strides = [1, 1]} : vector<48x290xbf16> to vector<48x256xbf16>
    %441 = vector.broadcast %3 : vector<1x256xbf16> to vector<48x256xbf16>
    %442 = arith.mulf %440, %441 : vector<48x256xbf16>
    %443 = tpu.concatenate %438, %439, %442 in 0 : vector<48x256xbf16>, vector<48x256xbf16>, vector<48x256xbf16> -> vector<144x256xbf16>
    %c1_151 = arith.constant 1 : index
    %c240_152 = arith.constant 240 : index
    %c0_153 = arith.constant 0 : index
    %444 = vector.load %arg2[%c1_151, %c240_152, %c0_153] : memref<3x304x192xbf16, #tpu.memory_space<vmem>>, vector<1x32x144xbf16>
    %445 = vector.shape_cast %444 : vector<1x32x144xbf16> to vector<32x144xbf16>
    %cst_154 = arith.constant dense<0.000000e+00> : vector<32x256xf32>
    %446 = tpu.matmul %445, %443, %cst_154 {dimension_numbers = #tpu.dot_dimension_numbers<[1], [0], [0], [1], [0, 0, 1, 1], [], []>} : vector<32x144xbf16>, vector<144x256xbf16>, vector<32x256xf32> -> vector<32x256xf32>
    %447 = arith.addf %435, %446 : vector<32x256xf32>
    %448 = vector.extract_strided_slice %424 {offsets = [0, 32], sizes = [48, 256], strides = [1, 1]} : vector<48x290xbf16> to vector<48x256xbf16>
    %449 = vector.broadcast %2 : vector<1x256xbf16> to vector<48x256xbf16>
    %450 = arith.mulf %448, %449 : vector<48x256xbf16>
    %451 = vector.extract_strided_slice %424 {offsets = [0, 33], sizes = [48, 256], strides = [1, 1]} : vector<48x290xbf16> to vector<48x256xbf16>
    %452 = vector.extract_strided_slice %424 {offsets = [0, 34], sizes = [48, 256], strides = [1, 1]} : vector<48x290xbf16> to vector<48x256xbf16>
    %453 = vector.broadcast %3 : vector<1x256xbf16> to vector<48x256xbf16>
    %454 = arith.mulf %452, %453 : vector<48x256xbf16>
    %455 = tpu.concatenate %450, %451, %454 in 0 : vector<48x256xbf16>, vector<48x256xbf16>, vector<48x256xbf16> -> vector<144x256xbf16>
    %c2_155 = arith.constant 2 : index
    %c240_156 = arith.constant 240 : index
    %c0_157 = arith.constant 0 : index
    %456 = vector.load %arg2[%c2_155, %c240_156, %c0_157] : memref<3x304x192xbf16, #tpu.memory_space<vmem>>, vector<1x32x144xbf16>
    %457 = vector.shape_cast %456 : vector<1x32x144xbf16> to vector<32x144xbf16>
    %cst_158 = arith.constant dense<0.000000e+00> : vector<32x256xf32>
    %458 = tpu.matmul %457, %455, %cst_158 {dimension_numbers = #tpu.dot_dimension_numbers<[1], [0], [0], [1], [0, 0, 1, 1], [], []>} : vector<32x144xbf16>, vector<144x256xbf16>, vector<32x256xf32> -> vector<32x256xf32>
    %459 = arith.addf %447, %458 : vector<32x256xf32>
    %c240_159 = arith.constant 240 : index
    %c0_160 = arith.constant 0 : index
    %460 = vector.load %arg3[%c240_159, %c0_160] : memref<304x1xf32, #tpu.memory_space<vmem>>, vector<32x1xf32>
    %461 = vector.broadcast %460 : vector<32x1xf32> to vector<32x256xf32>
    %462 = arith.addf %459, %461 : vector<32x256xf32>
    %cst_161 = arith.constant 2.000000e-01 : f32
    %463 = vector.broadcast %cst_161 : f32 to vector<32x256xf32>
    %464 = arith.mulf %463, %462 : vector<32x256xf32>
    %465 = arith.maximumf %462, %464 : vector<32x256xf32>
    %466 = arith.truncf %465 : vector<32x256xf32> to vector<32x256xbf16>
    %cst_162 = arith.constant 0.000000e+00 : bf16
    %467 = vector.broadcast %cst_162 : bf16 to vector<32x17xbf16>
    %468 = tpu.concatenate %467, %466, %467 in 1 : vector<32x17xbf16>, vector<32x256xbf16>, vector<32x17xbf16> -> vector<32x290xbf16>
    %469 = vector.extract_strided_slice %468 {offsets = [0, 0], sizes = [32, 256], strides = [1, 1]} : vector<32x290xbf16> to vector<32x256xbf16>
    %470 = vector.broadcast %2 : vector<1x256xbf16> to vector<32x256xbf16>
    %471 = arith.mulf %469, %470 : vector<32x256xbf16>
    %472 = vector.extract_strided_slice %468 {offsets = [0, 1], sizes = [32, 256], strides = [1, 1]} : vector<32x290xbf16> to vector<32x256xbf16>
    %473 = vector.extract_strided_slice %468 {offsets = [0, 2], sizes = [32, 256], strides = [1, 1]} : vector<32x290xbf16> to vector<32x256xbf16>
    %474 = vector.broadcast %3 : vector<1x256xbf16> to vector<32x256xbf16>
    %475 = arith.mulf %473, %474 : vector<32x256xbf16>
    %476 = tpu.concatenate %471, %472, %475 in 0 : vector<32x256xbf16>, vector<32x256xbf16>, vector<32x256xbf16> -> vector<96x256xbf16>
    %c0_163 = arith.constant 0 : index
    %c272 = arith.constant 272 : index
    %c0_164 = arith.constant 0 : index
    %477 = vector.load %arg2[%c0_163, %c272, %c0_164] : memref<3x304x192xbf16, #tpu.memory_space<vmem>>, vector<1x16x96xbf16>
    %478 = vector.shape_cast %477 : vector<1x16x96xbf16> to vector<16x96xbf16>
    %cst_165 = arith.constant dense<0.000000e+00> : vector<16x256xf32>
    %479 = tpu.matmul %478, %476, %cst_165 {dimension_numbers = #tpu.dot_dimension_numbers<[1], [0], [0], [1], [0, 0, 1, 1], [], []>} : vector<16x96xbf16>, vector<96x256xbf16>, vector<16x256xf32> -> vector<16x256xf32>
    %480 = vector.extract_strided_slice %468 {offsets = [0, 16], sizes = [32, 256], strides = [1, 1]} : vector<32x290xbf16> to vector<32x256xbf16>
    %481 = vector.broadcast %2 : vector<1x256xbf16> to vector<32x256xbf16>
    %482 = arith.mulf %480, %481 : vector<32x256xbf16>
    %483 = vector.extract_strided_slice %468 {offsets = [0, 17], sizes = [32, 256], strides = [1, 1]} : vector<32x290xbf16> to vector<32x256xbf16>
    %484 = vector.extract_strided_slice %468 {offsets = [0, 18], sizes = [32, 256], strides = [1, 1]} : vector<32x290xbf16> to vector<32x256xbf16>
    %485 = vector.broadcast %3 : vector<1x256xbf16> to vector<32x256xbf16>
    %486 = arith.mulf %484, %485 : vector<32x256xbf16>
    %487 = tpu.concatenate %482, %483, %486 in 0 : vector<32x256xbf16>, vector<32x256xbf16>, vector<32x256xbf16> -> vector<96x256xbf16>
    %c1_166 = arith.constant 1 : index
    %c272_167 = arith.constant 272 : index
    %c0_168 = arith.constant 0 : index
    %488 = vector.load %arg2[%c1_166, %c272_167, %c0_168] : memref<3x304x192xbf16, #tpu.memory_space<vmem>>, vector<1x16x96xbf16>
    %489 = vector.shape_cast %488 : vector<1x16x96xbf16> to vector<16x96xbf16>
    %cst_169 = arith.constant dense<0.000000e+00> : vector<16x256xf32>
    %490 = tpu.matmul %489, %487, %cst_169 {dimension_numbers = #tpu.dot_dimension_numbers<[1], [0], [0], [1], [0, 0, 1, 1], [], []>} : vector<16x96xbf16>, vector<96x256xbf16>, vector<16x256xf32> -> vector<16x256xf32>
    %491 = arith.addf %479, %490 : vector<16x256xf32>
    %492 = vector.extract_strided_slice %468 {offsets = [0, 32], sizes = [32, 256], strides = [1, 1]} : vector<32x290xbf16> to vector<32x256xbf16>
    %493 = vector.broadcast %2 : vector<1x256xbf16> to vector<32x256xbf16>
    %494 = arith.mulf %492, %493 : vector<32x256xbf16>
    %495 = vector.extract_strided_slice %468 {offsets = [0, 33], sizes = [32, 256], strides = [1, 1]} : vector<32x290xbf16> to vector<32x256xbf16>
    %496 = vector.extract_strided_slice %468 {offsets = [0, 34], sizes = [32, 256], strides = [1, 1]} : vector<32x290xbf16> to vector<32x256xbf16>
    %497 = vector.broadcast %3 : vector<1x256xbf16> to vector<32x256xbf16>
    %498 = arith.mulf %496, %497 : vector<32x256xbf16>
    %499 = tpu.concatenate %494, %495, %498 in 0 : vector<32x256xbf16>, vector<32x256xbf16>, vector<32x256xbf16> -> vector<96x256xbf16>
    %c2_170 = arith.constant 2 : index
    %c272_171 = arith.constant 272 : index
    %c0_172 = arith.constant 0 : index
    %500 = vector.load %arg2[%c2_170, %c272_171, %c0_172] : memref<3x304x192xbf16, #tpu.memory_space<vmem>>, vector<1x16x96xbf16>
    %501 = vector.shape_cast %500 : vector<1x16x96xbf16> to vector<16x96xbf16>
    %cst_173 = arith.constant dense<0.000000e+00> : vector<16x256xf32>
    %502 = tpu.matmul %501, %499, %cst_173 {dimension_numbers = #tpu.dot_dimension_numbers<[1], [0], [0], [1], [0, 0, 1, 1], [], []>} : vector<16x96xbf16>, vector<96x256xbf16>, vector<16x256xf32> -> vector<16x256xf32>
    %503 = arith.addf %491, %502 : vector<16x256xf32>
    %c272_174 = arith.constant 272 : index
    %c0_175 = arith.constant 0 : index
    %504 = vector.load %arg3[%c272_174, %c0_175] : memref<304x1xf32, #tpu.memory_space<vmem>>, vector<16x1xf32>
    %505 = vector.broadcast %504 : vector<16x1xf32> to vector<16x256xf32>
    %506 = arith.addf %503, %505 : vector<16x256xf32>
    %cst_176 = arith.constant 2.000000e-01 : f32
    %507 = vector.broadcast %cst_176 : f32 to vector<16x256xf32>
    %508 = arith.mulf %507, %506 : vector<16x256xf32>
    %509 = arith.maximumf %506, %508 : vector<16x256xf32>
    %510 = arith.truncf %509 : vector<16x256xf32> to vector<16x256xbf16>
    %cst_177 = arith.constant 0.000000e+00 : bf16
    %511 = vector.broadcast %cst_177 : bf16 to vector<16x17xbf16>
    %512 = tpu.concatenate %511, %510, %511 in 1 : vector<16x17xbf16>, vector<16x256xbf16>, vector<16x17xbf16> -> vector<16x290xbf16>
    %513 = vector.extract_strided_slice %512 {offsets = [0, 0], sizes = [16, 256], strides = [1, 1]} : vector<16x290xbf16> to vector<16x256xbf16>
    %514 = vector.broadcast %2 : vector<1x256xbf16> to vector<16x256xbf16>
    %515 = arith.mulf %513, %514 : vector<16x256xbf16>
    %516 = vector.extract_strided_slice %512 {offsets = [0, 1], sizes = [16, 256], strides = [1, 1]} : vector<16x290xbf16> to vector<16x256xbf16>
    %517 = vector.extract_strided_slice %512 {offsets = [0, 2], sizes = [16, 256], strides = [1, 1]} : vector<16x290xbf16> to vector<16x256xbf16>
    %518 = vector.broadcast %3 : vector<1x256xbf16> to vector<16x256xbf16>
    %519 = arith.mulf %517, %518 : vector<16x256xbf16>
    %520 = tpu.concatenate %515, %516, %519 in 0 : vector<16x256xbf16>, vector<16x256xbf16>, vector<16x256xbf16> -> vector<48x256xbf16>
    %c0_178 = arith.constant 0 : index
    %c288 = arith.constant 288 : index
    %c0_179 = arith.constant 0 : index
    %521 = vector.load %arg2[%c0_178, %c288, %c0_179] : memref<3x304x192xbf16, #tpu.memory_space<vmem>>, vector<1x16x48xbf16>
    %522 = vector.shape_cast %521 : vector<1x16x48xbf16> to vector<16x48xbf16>
    %cst_180 = arith.constant dense<0.000000e+00> : vector<16x256xf32>
    %523 = tpu.matmul %522, %520, %cst_180 {dimension_numbers = #tpu.dot_dimension_numbers<[1], [0], [0], [1], [0, 0, 1, 1], [], []>} : vector<16x48xbf16>, vector<48x256xbf16>, vector<16x256xf32> -> vector<16x256xf32>
    %524 = vector.extract_strided_slice %512 {offsets = [0, 16], sizes = [16, 256], strides = [1, 1]} : vector<16x290xbf16> to vector<16x256xbf16>
    %525 = vector.broadcast %2 : vector<1x256xbf16> to vector<16x256xbf16>
    %526 = arith.mulf %524, %525 : vector<16x256xbf16>
    %527 = vector.extract_strided_slice %512 {offsets = [0, 17], sizes = [16, 256], strides = [1, 1]} : vector<16x290xbf16> to vector<16x256xbf16>
    %528 = vector.extract_strided_slice %512 {offsets = [0, 18], sizes = [16, 256], strides = [1, 1]} : vector<16x290xbf16> to vector<16x256xbf16>
    %529 = vector.broadcast %3 : vector<1x256xbf16> to vector<16x256xbf16>
    %530 = arith.mulf %528, %529 : vector<16x256xbf16>
    %531 = tpu.concatenate %526, %527, %530 in 0 : vector<16x256xbf16>, vector<16x256xbf16>, vector<16x256xbf16> -> vector<48x256xbf16>
    %c1_181 = arith.constant 1 : index
    %c288_182 = arith.constant 288 : index
    %c0_183 = arith.constant 0 : index
    %532 = vector.load %arg2[%c1_181, %c288_182, %c0_183] : memref<3x304x192xbf16, #tpu.memory_space<vmem>>, vector<1x16x48xbf16>
    %533 = vector.shape_cast %532 : vector<1x16x48xbf16> to vector<16x48xbf16>
    %cst_184 = arith.constant dense<0.000000e+00> : vector<16x256xf32>
    %534 = tpu.matmul %533, %531, %cst_184 {dimension_numbers = #tpu.dot_dimension_numbers<[1], [0], [0], [1], [0, 0, 1, 1], [], []>} : vector<16x48xbf16>, vector<48x256xbf16>, vector<16x256xf32> -> vector<16x256xf32>
    %535 = arith.addf %523, %534 : vector<16x256xf32>
    %536 = vector.extract_strided_slice %512 {offsets = [0, 32], sizes = [16, 256], strides = [1, 1]} : vector<16x290xbf16> to vector<16x256xbf16>
    %537 = vector.broadcast %2 : vector<1x256xbf16> to vector<16x256xbf16>
    %538 = arith.mulf %536, %537 : vector<16x256xbf16>
    %539 = vector.extract_strided_slice %512 {offsets = [0, 33], sizes = [16, 256], strides = [1, 1]} : vector<16x290xbf16> to vector<16x256xbf16>
    %540 = vector.extract_strided_slice %512 {offsets = [0, 34], sizes = [16, 256], strides = [1, 1]} : vector<16x290xbf16> to vector<16x256xbf16>
    %541 = vector.broadcast %3 : vector<1x256xbf16> to vector<16x256xbf16>
    %542 = arith.mulf %540, %541 : vector<16x256xbf16>
    %543 = tpu.concatenate %538, %539, %542 in 0 : vector<16x256xbf16>, vector<16x256xbf16>, vector<16x256xbf16> -> vector<48x256xbf16>
    %c2_185 = arith.constant 2 : index
    %c288_186 = arith.constant 288 : index
    %c0_187 = arith.constant 0 : index
    %544 = vector.load %arg2[%c2_185, %c288_186, %c0_187] : memref<3x304x192xbf16, #tpu.memory_space<vmem>>, vector<1x16x48xbf16>
    %545 = vector.shape_cast %544 : vector<1x16x48xbf16> to vector<16x48xbf16>
    %cst_188 = arith.constant dense<0.000000e+00> : vector<16x256xf32>
    %546 = tpu.matmul %545, %543, %cst_188 {dimension_numbers = #tpu.dot_dimension_numbers<[1], [0], [0], [1], [0, 0, 1, 1], [], []>} : vector<16x48xbf16>, vector<48x256xbf16>, vector<16x256xf32> -> vector<16x256xf32>
    %547 = arith.addf %535, %546 : vector<16x256xf32>
    %c288_189 = arith.constant 288 : index
    %c0_190 = arith.constant 0 : index
    %548 = vector.load %arg3[%c288_189, %c0_190] : memref<304x1xf32, #tpu.memory_space<vmem>>, vector<16x1xf32>
    %549 = vector.broadcast %548 : vector<16x1xf32> to vector<16x256xf32>
    %550 = arith.addf %547, %549 : vector<16x256xf32>
    %cst_191 = arith.constant 2.000000e-01 : f32
    %551 = vector.broadcast %cst_191 : f32 to vector<16x256xf32>
    %552 = arith.mulf %551, %550 : vector<16x256xf32>
    %553 = arith.maximumf %550, %552 : vector<16x256xf32>
    %c0_192 = arith.constant 0 : index
    %c0_193 = arith.constant 0 : index
    %c0_194 = arith.constant 0 : index
    %554 = vector.load %arg5[%c0_192, %c0_193, %c0_194] : memref<1x16x256xf32, #tpu.memory_space<vmem>>, vector<1x16x256xf32>
    %555 = vector.shape_cast %554 : vector<1x16x256xf32> to vector<16x256xf32>
    %556 = vector.shape_cast %553 : vector<16x256xf32> to vector<1x16x256xf32>
    tpu.vector_store %arg5[%c0_192, %c0_193, %c0_194], %556 {strides = array<i32>} : memref<1x16x256xf32, #tpu.memory_space<vmem>>, vector<1x16x256xf32>,
    return
  }
  func.func @transform_0(%arg0: i32) -> (i32, i32, i32) {
    %c0_i32 = arith.constant 0 : i32
    %c0_i32_0 = arith.constant 0 : i32
    %c0_i32_1 = arith.constant 0 : i32
    return %arg0, %c0_i32, %c0_i32_0 : i32, i32, i32
  }
  func.func @transform_1(%arg0: i32) -> (i32, i32, i32) {
    %c0_i32 = arith.constant 0 : i32
    %c0_i32_0 = arith.constant 0 : i32
    %c0_i32_1 = arith.constant 0 : i32
    %c0_i32_2 = arith.constant 0 : i32
    return %c0_i32, %c0_i32_0, %c0_i32_1 : i32, i32, i32
  }
  func.func @transform_2(%arg0: i32) -> (i32, i32) {
    %c0_i32 = arith.constant 0 : i32
    %c0_i32_0 = arith.constant 0 : i32
    %c0_i32_1 = arith.constant 0 : i32
    return %c0_i32, %c0_i32_0 : i32, i32
  }
  func.func @transform_3(%arg0: i32) -> (i32, i32) {
    %c0_i32 = arith.constant 0 : i32
    %c0_i32_0 = arith.constant 0 : i32
    %c0_i32_1 = arith.constant 0 : i32
    return %c0_i32, %c0_i32_0 : i32, i32
  }
  func.func @transform_4(%arg0: i32) -> (i32, i32, i32) {
    %c0_i32 = arith.constant 0 : i32
    %c0_i32_0 = arith.constant 0 : i32
    %c0_i32_1 = arith.constant 0 : i32
    return %arg0, %c0_i32, %c0_i32_0 : i32, i32, i32
  }
}

</mosaic_0001>

<bundles_post_ra>
// kernel: squeeze.30
= control target key start
LH: loop header
LB: loop body
LE: loop exit
PB: predicated region body
PF: predicated region fallthrough
CT: control target
= control target key end

     0   :  { %vm515_vm0 = vcmask 1047556   ;;  %vm517_vm1 = vcmask 261120   ;;  %s760_s24 = smov 32   ;;  %vm554_vm2 = vcmask 785920   ;;  %vm597_vm3 = vcmask 523520   ;;  %s828_s0 = inlined_call_operand.vmem [shape: bf16[32,1,3,32], index: 0, kind: input, shape index: {}]   ;;  %s829_s1 = inlined_call_operand.vmem [shape: bf16[32,96], index: 1, kind: output, shape index: {}]  }
   0x1   :  { %v708_v0 = vld [vmem:[%s828_s0 + $0x1a] sm:$0xff]   ;;  %v711_v1 = vld [vmem:[%s828_s0 + $0x12] sm:$0xff]   ;;  %v715_v2 = vld [vmem:[%s828_s0 + $0xa] sm:$0xff]  }
   0x2   :  { %v273_v3 = vunpack.c.h.bf16 %v708_v0  ;;  %v289_v4 = vunpack.c.l.bf16 %v708_v0  ;;  %v321_v5 = vunpack.c.h.bf16 %v711_v1  ;;  %v719_v6 = vld [vmem:[%s828_s0 + $0x2] sm:$0xff]   ;;  %v353_v8 = vunpack.c.l.bf16 %v711_v1  ;;  %v692_v10 = vld [vmem:[%s828_s0 + $0x38] sm:$0xff]   ;;  %v696_v13 = vld [vmem:[%s828_s0 + $0x30] sm:$0xff]  }
   0x3   :  { %v509_v7 = vld [vmem:[%s828_s0] ss:$34 sps:$2 sm:$0xf]   ;;  %v385_v9 = vunpack.c.h.bf16 %v715_v2  ;;  %v417_v11 = vunpack.c.l.bf16 %v715_v2  ;;  %v449_v12 = vunpack.c.h.bf16 %v719_v6  ;;  %v481_v14 = vunpack.c.l.bf16 %v719_v6  ;;  %v700_v16 = vld [vmem:[%s828_s0 + $0x28] sm:$0xff]   ;;  %v704_v19 = vld [vmem:[%s828_s0 + $0x24] sm:$0xf]  }
   0x4   :  { %276 = vst [vmem:[#allocation1 + $0x78] ss:$8 sps:$4 sm:$0xff] %v273_v3   ;;  %292 = vst [vmem:[#allocation1 + $0x68] ss:$8 sps:$4 sm:$0xff] %v289_v4   ;;  %v510_v15 = vunpack.c.l.bf16 %v509_v7  ;;  %v17_v17 = vunpack.c.h.bf16 %v692_v10  ;;  %v49_v18 = vunpack.c.l.bf16 %v692_v10  ;;  %v81_v20 = vunpack.c.h.bf16 %v696_v13  ;;  %s759_s0 = smov 64  }
   0x5   :  { %324 = vst [vmem:[#allocation1 + $0x58] ss:$8 sps:$4 sm:$0xff] %v321_v5   ;;  %356 = vst [vmem:[#allocation1 + $0x48] ss:$8 sps:$4 sm:$0xff] %v353_v8   ;;  %v113_v21 = vunpack.c.l.bf16 %v696_v13  ;;  %v145_v22 = vunpack.c.h.bf16 %v700_v16  ;;  %v177_v23 = vunpack.c.l.bf16 %v700_v16  ;;  %v209_v24 = vunpack.c.l.bf16 %v704_v19 }
   0x6   :  { %388 = vst [vmem:[#allocation1 + $0x38] ss:$8 sps:$4 sm:$0xff] %v385_v9   ;;  %420 = vst [vmem:[#allocation1 + $0x28] ss:$8 sps:$4 sm:$0xff] %v417_v11  }
   0x7   :  { %452 = vst [vmem:[#allocation1 + $0x18] ss:$8 sps:$4 sm:$0xff] %v449_v12   ;;  %484 = vst [vmem:[#allocation1 + $0x8] ss:$8 sps:$4 sm:$0xff] %v481_v14  }
   0x8   :  { %512 = vst [vmem:[#allocation1] ss:$136 sps:$4 sm:$0xff] %v510_v15   ;;  %20 = vst [vmem:[#allocation1 + $0xf0] ss:$8 sps:$4 sm:$0xff] %v17_v17  }
   0x9   :  { %52 = vst [vmem:[#allocation1 + $0xe0] ss:$8 sps:$4 sm:$0xff] %v49_v18   ;;  %84 = vst [vmem:[#allocation1 + $0xd0] ss:$8 sps:$4 sm:$0xff] %v81_v20  }
   0xa   :  { %116 = vst [vmem:[#allocation1 + $0xc0] ss:$8 sps:$4 sm:$0xff] %v113_v21   ;;  %148 = vst [vmem:[#allocation1 + $0xb0] ss:$8 sps:$4 sm:$0xff] %v145_v22  }
   0xb   :  { %180 = vst [vmem:[#allocation1 + $0xa0] ss:$8 sps:$4 sm:$0xff] %v177_v23   ;;  %212 = vst [vmem:[#allocation1 + $0x90] ss:$8 sps:$4 sm:$0xff] %v209_v24  }
   0xc   :  { %v559_v25 = vld [vmem:[#allocation1 + $0x42] ss:$8 sm:$0xf0]   ;;  %v602_v26 = vld [vmem:[#allocation1 + $0x41] ss:$8 sm:$0xf0]  }
   0xd   :  { %v557_v27 = vld [vmem:[#allocation1 + $0x42] ss:$8 sm:$0xf]   ;;  %v600_v28 = vld [vmem:[#allocation1 + $0x41] ss:$8 sm:$0xf]  }
   0xe   :  { %v549_v29 = vld [vmem:[#allocation1 + $0x2] ss:$8 sm:$0xf0]   ;;  %v561_v30 = vsel %vm515_vm0, %v559_v25, %v557_v27  ;;  %v592_v31 = vld [vmem:[#allocation1 + $0x1] ss:$8 sm:$0xf0]   ;;  %v604_v32 = vsel %vm515_vm0, %v602_v26, %v600_v28 }
   0xf   :  { %v547_v33 = vld [vmem:[#allocation1 + $0x2] ss:$8 sm:$0xf]   ;;  %v590_v34 = vld [vmem:[#allocation1 + $0x1] ss:$8 sm:$0xf]  }
  0x10   :  { %v551_v35 = vsel %vm515_vm0, %v549_v29, %v547_v33  ;;  %v594_v36 = vsel %vm515_vm0, %v592_v31, %v590_v34  ;;  %v581_v37 = vld [vmem:[#allocation1 + $0xc2] ss:$8 sm:$0xf0]   ;;  %v624_v38 = vld [vmem:[#allocation1 + $0xc1] ss:$8 sm:$0xf0]  }
  0x11   :  { %v739_v39 = vpack.i.bf16 %v561_v30, %v551_v35  ;;  %v749_v40 = vpack.i.bf16 %v604_v32, %v594_v36  ;;  %v579_v41 = vld [vmem:[#allocation1 + $0xc2] ss:$8 sm:$0xf]   ;;  %v622_v42 = vld [vmem:[#allocation1 + $0xc1] ss:$8 sm:$0xf]  }
  0x12   :  { %v570_v43 = vld [vmem:[#allocation1 + $0x82] ss:$8 sm:$0xf0]   ;;  %v583_v44 = vsel %vm515_vm0, %v581_v37, %v579_v41  ;;  %v613_v45 = vld [vmem:[#allocation1 + $0x81] ss:$8 sm:$0xf0]   ;;  %v626_v46 = vsel %vm515_vm0, %v624_v38, %v622_v42 }
  0x13   :  { %740 = vrot.lane.b32.xlu0 %v739_v39, %s759_s0  ;;  %750 = vrot.lane.b32.xlu1 %v749_v40, %s760_s24  ;;  %v568_v47 = vld [vmem:[#allocation1 + $0x82] ss:$8 sm:$0xf]   ;;  %v611_v48 = vld [vmem:[#allocation1 + $0x81] ss:$8 sm:$0xf]  }
  0x14   :  { %v572_v49 = vsel %vm515_vm0, %v570_v43, %v568_v47  ;;  %v615_v50 = vsel %vm515_vm0, %v613_v45, %v611_v48  ;;  %v513_v51 = vld [vmem:[#allocation1] ss:$8 sm:$0xf]  }
  0x15   :  { %v514_v52 = vld [vmem:[#allocation1] ss:$8 sm:$0xf0]   ;;  %v744_v53 = vpack.i.bf16 %v583_v44, %v572_v49  ;;  %v754_v54 = vpack.i.bf16 %v626_v46, %v615_v50 }
  0x16   :  { %v516_v55 = vsel %vm515_vm0, %v514_v52, %v513_v51  ;;  %v520_v56 = vld [vmem:[#allocation1 + $0x40] ss:$8 sm:$0xf]  }
  0x17   :  { %v522_v57 = vld [vmem:[#allocation1 + $0x40] ss:$8 sm:$0xf0]   ;;  %518 = vst.msk [vmem:[#allocation0] sm:$0xff] %vm517_vm1, %v516_v55   ;;  %745 = vrot.lane.b32.xlu0 %v744_v53, %s759_s0  ;;  %755 = vrot.lane.b32.xlu1 %v754_v54, %s760_s24 }
  0x18   :  { %v524_v58 = vsel %vm515_vm0, %v522_v57, %v520_v56  ;;  %v529_v59 = vld [vmem:[#allocation1 + $0x80] ss:$8 sm:$0xf]  }
  0x19   :  { %v531_v60 = vld [vmem:[#allocation1 + $0x80] ss:$8 sm:$0xf0]   ;;  %527 = vst.msk [vmem:[#allocation0 + $0x8] sm:$0xff] %vm517_vm1, %v524_v58  }
  0x1a   :  { %v533_v61 = vsel %vm515_vm0, %v531_v60, %v529_v59  ;;  %v538_v62 = vld [vmem:[#allocation1 + $0xc0] ss:$8 sm:$0xf]  }
  0x1b   :  { %v540_v63 = vld [vmem:[#allocation1 + $0xc0] ss:$8 sm:$0xf0]   ;;  %536 = vst.msk [vmem:[#allocation0 + $0x10] sm:$0xff] %vm517_vm1, %v533_v61  }
  0x1c   :  { %v542_v0 = vsel %vm515_vm0, %v540_v63, %v538_v62 }
  0x1d   :  { %545 = vst.msk [vmem:[#allocation0 + $0x18] sm:$0xff] %vm517_vm1, %v542_v0  }
  0x85   :  { %v741_v1 = vpop.permute.xlu0 %740  ;;  %v751_v2 = vpop.permute.xlu1 %750 }
  0x86   :  { %v743_v3 = vunpack.i.h.bf16 %v741_v1  ;;  %v742_v4 = vunpack.i.l.bf16 %v741_v1  ;;  %v753_v5 = vunpack.i.h.bf16 %v751_v2  ;;  %v752_v6 = vunpack.i.l.bf16 %v751_v2 }
  0x88   :  { %555 = vst.msk [vmem:[#allocation0] sm:$0xff] %vm554_vm2, %v742_v4   ;;  %566 = vst.msk [vmem:[#allocation0 + $0x8] sm:$0xff] %vm554_vm2, %v743_v3  }
  0x89   :  { %598 = vst.msk [vmem:[#allocation0] sm:$0xff] %vm597_vm3, %v752_v6   ;;  %609 = vst.msk [vmem:[#allocation0 + $0x8] sm:$0xff] %vm597_vm3, %v753_v5   ;;  %v746_v7 = vpop.permute.xlu0 %745  ;;  %v756_v8 = vpop.permute.xlu1 %755 }
  0x8a   :  { %v748_v9 = vunpack.i.h.bf16 %v746_v7  ;;  %v747_v10 = vunpack.i.l.bf16 %v746_v7  ;;  %v758_v11 = vunpack.i.h.bf16 %v756_v8  ;;  %v757_v12 = vunpack.i.l.bf16 %v756_v8 }
  0x8c   :  { %577 = vst.msk [vmem:[#allocation0 + $0x10] sm:$0xff] %vm554_vm2, %v747_v10   ;;  %588 = vst.msk [vmem:[#allocation0 + $0x18] sm:$0xff] %vm554_vm2, %v748_v9  }
  0x8d   :  { %620 = vst.msk [vmem:[#allocation0 + $0x10] sm:$0xff] %vm597_vm3, %v757_v12   ;;  %631 = vst.msk [vmem:[#allocation0 + $0x18] sm:$0xff] %vm597_vm3, %v758_v11  }
  0x90   :  { %v636_v13 = vld [vmem:[#allocation0] sm:$0xff]  ;;  %v641_v14 = vld [vmem:[#allocation0 + $0x8] sm:$0xff] }
  0x91   :  { %v729_v15 = vpack.c.bf16 %v641_v14, %v636_v13 }
  0x93   :  { %730 = vst [vmem:[%s829_s1] sm:$0xff] %v729_v15  }
  0x94   :  { %v647_v16 = vld [vmem:[#allocation0 + $0x10] sm:$0xff]  ;;  %v654_v17 = vld [vmem:[#allocation0 + $0x18] sm:$0xff] }
  0x95   :  { %v734_v18 = vpack.c.bf16 %v654_v17, %v647_v16 }
  0x97   :  { %736 = vst [vmem:[%s829_s1 + $0x8] sm:$0xff] %v734_v18  }

// kernel: squeeze.27
= control target key start
LH: loop header
LB: loop body
LE: loop exit
PB: predicated region body
PF: predicated region fallthrough
CT: control target
= control target key end

     0   :  { %s930_s12 = smov 3  ;;  %s932_s13 = smov 3  ;;  %vm515_vm0 = vcmask 523264   ;;  %vm707_vm1 = vcmask 1047556   ;;  %vm711_vm2 = vcmask 1048064   ;;  %s1044_s0 = inlined_call_operand.vmem [shape: bf16[32,1,3,64], index: 0, kind: input, shape index: {}]   ;;  %s1045_s1 = inlined_call_operand.vmem [shape: bf16[32,192], index: 1, kind: output, shape index: {}]  }
   0x1   :  { %v846_v0 = vld [vmem:[%s1044_s0 + $0x2a] sm:$0xff]   ;;  %v849_v1 = vld [vmem:[%s1044_s0 + $0x22] sm:$0xff]   ;;  %v853_v2 = vld [vmem:[%s1044_s0 + $0x1a] sm:$0xff]   ;;  %s940_s18 = smov 3  ;;  %s942_s19 = smov 3 }
   0x2   :  { %v145_v3 = vunpack.c.h.bf16 %v846_v0  ;;  %v161_v4 = vunpack.c.l.bf16 %v846_v0  ;;  %v193_v5 = vunpack.c.h.bf16 %v849_v1  ;;  %v857_v6 = vld [vmem:[%s1044_s0 + $0x12] sm:$0xff]   ;;  %v861_v7 = vld [vmem:[%s1044_s0 + $0xa] sm:$0xff]   ;;  %v225_v8 = vunpack.c.l.bf16 %v849_v1  ;;  %v865_v10 = vld [vmem:[%s1044_s0 + $0x2] sm:$0xff]   ;;  %s947_s22 = smov 3  ;;  %s949_s23 = smov 3 }
   0x3   :  { %v257_v9 = vunpack.c.h.bf16 %v853_v2  ;;  %v289_v11 = vunpack.c.l.bf16 %v853_v2  ;;  %v321_v12 = vunpack.c.h.bf16 %v857_v6  ;;  %v509_v13 = vld [vmem:[%s1044_s0] ss:$50 sps:$2 sm:$0xf]   ;;  %s954_s26 = smov 3  ;;  %s956_s27 = smov 3  ;;  %v353_v14 = vunpack.c.l.bf16 %v857_v6  ;;  %v838_v16 = vld [vmem:[%s1044_s0 + $0x38] sm:$0xff]  }
   0x4   :  { %148 = vst [vmem:[#allocation1 + $0xb8] ss:$8 sps:$4 sm:$0xff] %v145_v3   ;;  %164 = vst [vmem:[#allocation1 + $0xa8] ss:$8 sps:$4 sm:$0xff] %v161_v4   ;;  %v385_v15 = vunpack.c.h.bf16 %v861_v7  ;;  %s958_s28 = smov 3  ;;  %s960_s29 = smov 3  ;;  %v417_v17 = vunpack.c.l.bf16 %v861_v7  ;;  %v449_v18 = vunpack.c.h.bf16 %v865_v10  ;;  %v481_v20 = vunpack.c.l.bf16 %v865_v10 }
   0x5   :  { %196 = vst [vmem:[#allocation1 + $0x98] ss:$8 sps:$4 sm:$0xff] %v193_v5   ;;  %228 = vst [vmem:[#allocation1 + $0x88] ss:$8 sps:$4 sm:$0xff] %v225_v8   ;;  %s965_s3 = smov 3  ;;  %s967_s4 = smov 3  ;;  %v510_v21 = vunpack.c.l.bf16 %v509_v13  ;;  %v17_v22 = vunpack.c.h.bf16 %v838_v16  ;;  %v49_v23 = vunpack.c.l.bf16 %v838_v16 }
   0x6   :  { %260 = vst [vmem:[#allocation1 + $0x78] ss:$8 sps:$4 sm:$0xff] %v257_v9   ;;  %292 = vst [vmem:[#allocation1 + $0x68] ss:$8 sps:$4 sm:$0xff] %v289_v11   ;;  %v842_v19 = vld [vmem:[%s1044_s0 + $0x34] sm:$0xf]  }
   0x7   :  { %324 = vst [vmem:[#allocation1 + $0x58] ss:$8 sps:$4 sm:$0xff] %v321_v12   ;;  %356 = vst [vmem:[#allocation1 + $0x48] ss:$8 sps:$4 sm:$0xff] %v353_v14   ;;  %s584_s0 = smov 3  ;;  %s590_s7 = smov 3  ;;  %v81_v24 = vunpack.c.l.bf16 %v842_v19 }
   0x8   :  { %388 = vst [vmem:[#allocation1 + $0x38] ss:$8 sps:$4 sm:$0xff] %v385_v15   ;;  %420 = vst [vmem:[#allocation1 + $0x28] ss:$8 sps:$4 sm:$0xff] %v417_v17   ;;  %s972_s8 = smov 3  ;;  %s602_s9 = smov 3 }
   0x9   :  { %452 = vst [vmem:[#allocation1 + $0x18] ss:$8 sps:$4 sm:$0xff] %v449_v18   ;;  %484 = vst [vmem:[#allocation1 + $0x8] ss:$8 sps:$4 sm:$0xff] %v481_v20   ;;  %s608_s10 = smov 3  ;;  %s614_s11 = smov 3 }
   0xa   :  { %512 = vst [vmem:[#allocation1] ss:$200 sps:$4 sm:$0xff] %v510_v21   ;;  %s974_s14 = smov 3  ;;  %s626_s15 = smov 3  ;;  %20 = vst [vmem:[#allocation1 + $0xf0] ss:$8 sps:$4 sm:$0xff] %v17_v22  }
   0xb   :  { %s976_s16 = smov 3  ;;  %s978_s17 = smov 3  ;;  %52 = vst [vmem:[#allocation1 + $0xe0] ss:$8 sps:$4 sm:$0xff] %v49_v23   ;;  %84 = vst [vmem:[#allocation1 + $0xd0] ss:$8 sps:$4 sm:$0xff] %v81_v24  }
   0xc   :  { %v627_v25 = vld [vmem:[#allocation1 + $0x98] ss:$2 sm:%s626_s15]   ;;  %v615_v28 = vld [vmem:[#allocation1 + $0x88] ss:$2 sm:%s614_s11]   ;;  %s668_s20 = smov 3  ;;  %s674_s21 = smov 3 }
   0xd   :  { %v603_v26 = vld [vmem:[#allocation1 + $0x78] ss:$2 sm:%s602_s9]   ;;  %630 = vst.msk [vmem:[#allocation0 + $0x23] ss:$8 sm:$0x3] %vm515_vm0, %v627_v25   ;;  %s910_s24 = smov 64  }
   0xe   :  { %v609_v27 = vld [vmem:[#allocation1 + $0x80] ss:$2 sm:%s608_s10]   ;;  %606 = vst.msk [vmem:[#allocation0 + $0x17] ss:$8 sm:$0x3] %vm515_vm0, %v603_v26   ;;  %s692_s25 = smov 3 }
   0xf   :  { %v579_v29 = vld [vmem:[#allocation1 + $0x58] ss:$2 sm:%s967_s4]   ;;  %v591_v31 = vld [vmem:[#allocation1 + $0x68] ss:$2 sm:%s590_s7]  }
  0x10   :  { %v585_v30 = vld [vmem:[#allocation1 + $0x60] ss:$2 sm:%s584_s0]   ;;  %612 = vst.msk [vmem:[#allocation0 + $0x20] ss:$8 sm:$0x3] %vm515_vm0, %v609_v27  }
  0x11   :  { %618 = vst.msk [vmem:[#allocation0 + $0x21] ss:$8 sm:$0x3] %vm515_vm0, %v615_v28   ;;  %v555_v32 = vld [vmem:[#allocation1 + $0x38] ss:$2 sm:%s956_s27]  }
  0x12   :  { %v561_v33 = vld [vmem:[#allocation1 + $0x40] ss:$2 sm:%s958_s28]   ;;  %582 = vst.msk [vmem:[#allocation0 + $0x13] ss:$8 sm:$0x3] %vm515_vm0, %v579_v29  }
  0x13   :  { %v567_v34 = vld [vmem:[#allocation1 + $0x48] ss:$2 sm:%s960_s29]   ;;  %588 = vst.msk [vmem:[#allocation0 + $0x14] ss:$8 sm:$0x3] %vm515_vm0, %v585_v30  }
  0x14   :  { %594 = vst.msk [vmem:[#allocation0 + $0x15] ss:$8 sm:$0x3] %vm515_vm0, %v591_v31   ;;  %v531_v35 = vld [vmem:[#allocation1 + $0x18] ss:$2 sm:%s942_s19]   ;;  %s662_s19 = smov 3 }
  0x15   :  { %v537_v36 = vld [vmem:[#allocation1 + $0x20] ss:$2 sm:%s947_s22]   ;;  %558 = vst.msk [vmem:[#allocation0 + $0x7] ss:$8 sm:$0x3] %vm515_vm0, %v555_v32   ;;  %s680_s22 = smov 3 }
  0x16   :  { %v543_v37 = vld [vmem:[#allocation1 + $0x28] ss:$2 sm:%s949_s23]   ;;  %564 = vst.msk [vmem:[#allocation0 + $0x10] ss:$8 sm:$0x3] %vm515_vm0, %v561_v33   ;;  %s686_s23 = smov 3 }
  0x17   :  { %570 = vst.msk [vmem:[#allocation0 + $0x11] ss:$8 sm:$0x3] %vm515_vm0, %v567_v34   ;;  %v514_v38 = vld [vmem:[#allocation1] ss:$2 sm:%s930_s12]   ;;  %s644_s12 = smov 3 }
  0x18   :  { %v519_v39 = vld [vmem:[#allocation1 + $0x8] ss:$2 sm:%s932_s13]   ;;  %534 = vst.msk [vmem:[#allocation0 + $0x3] ss:$8 sm:$0x3] %vm515_vm0, %v531_v35   ;;  %s650_s13 = smov 3 }
  0x19   :  { %v525_v40 = vld [vmem:[#allocation1 + $0x10] ss:$2 sm:%s940_s18]   ;;  %540 = vst.msk [vmem:[#allocation0 + $0x4] ss:$8 sm:$0x3] %vm515_vm0, %v537_v36   ;;  %s656_s18 = smov 3 }
  0x1a   :  { %546 = vst.msk [vmem:[#allocation0 + $0x5] ss:$8 sm:$0x3] %vm515_vm0, %v543_v37   ;;  %516 = vst.msk [vmem:[#allocation0] ss:$8 sm:$0x3] %vm515_vm0, %v514_v38  }
  0x1b   :  { %522 = vst.msk [vmem:[#allocation0 + $0x1] ss:$8 sm:$0x3] %vm515_vm0, %v519_v39   ;;  %528 = vst.msk [vmem:[#allocation0 + $0x2] ss:$8 sm:$0x3] %vm515_vm0, %v525_v40  }
  0x1c   :  { %v549_v41 = vld [vmem:[#allocation1 + $0x30] ss:$2 sm:%s954_s26]   ;;  %v633_v45 = vld [vmem:[#allocation1 + $0xa0] ss:$2 sm:%s976_s16]   ;;  %s698_s26 = smov 3 }
  0x1d   :  { %v573_v42 = vld [vmem:[#allocation1 + $0x50] ss:$2 sm:%s965_s3]   ;;  %552 = vst.msk [vmem:[#allocation0 + $0x6] ss:$8 sm:$0x3] %vm515_vm0, %v549_v41  }
  0x1e   :  { %v597_v43 = vld [vmem:[#allocation1 + $0x70] ss:$2 sm:%s972_s8]   ;;  %576 = vst.msk [vmem:[#allocation0 + $0x12] ss:$8 sm:$0x3] %vm515_vm0, %v573_v42  }
  0x1f   :  { %600 = vst.msk [vmem:[#allocation0 + $0x16] ss:$8 sm:$0x3] %vm515_vm0, %v597_v43   ;;  %v621_v44 = vld [vmem:[#allocation1 + $0x90] ss:$2 sm:%s974_s14]  }
  0x20   :  { %v639_v46 = vld [vmem:[#allocation1 + $0xa8] ss:$2 sm:%s978_s17]   ;;  %624 = vst.msk [vmem:[#allocation0 + $0x22] ss:$8 sm:$0x3] %vm515_vm0, %v621_v44  }
  0x21   :  { %636 = vst.msk [vmem:[#allocation0 + $0x24] ss:$8 sm:$0x3] %vm515_vm0, %v633_v45   ;;  %642 = vst.msk [vmem:[#allocation0 + $0x25] ss:$8 sm:$0x3] %vm515_vm0, %v639_v46  }
  0x22   :  { %v704_v47 = vld [vmem:[#allocation1 + $0x1] ss:$8 sm:$0xf]   ;;  %v645_v49 = vld [vmem:[#allocation1 + $0xb0] ss:$2 sm:%s644_s12]  }
  0x23   :  { %v706_v48 = vld [vmem:[#allocation1 + $0x1] ss:$8 sm:$0xf0]   ;;  %648 = vst.msk [vmem:[#allocation0 + $0x26] ss:$8 sm:$0x3] %vm515_vm0, %v645_v49  }
  0x24   :  { %v708_v50 = vsel %vm707_vm1, %v706_v48, %v704_v47  ;;  %v714_v51 = vld [vmem:[#allocation1 + $0x81] ss:$8 sm:$0xf]   ;;  %v651_v54 = vld [vmem:[#allocation1 + $0xb8] ss:$2 sm:%s650_s13]  }
  0x25   :  { %v716_v52 = vld [vmem:[#allocation1 + $0x81] ss:$8 sm:$0xf0]   ;;  %654 = vst.msk [vmem:[#allocation0 + $0x27] ss:$8 sm:$0x3] %vm515_vm0, %v651_v54  }
  0x26   :  { %v718_v53 = vsel %vm707_vm1, %v716_v52, %v714_v51  ;;  %v657_v56 = vld [vmem:[#allocation1 + $0xc0] ss:$2 sm:%s656_s18]   ;;  %v669_v58 = vld [vmem:[#allocation1 + $0xd0] ss:$2 sm:%s668_s20]  }
  0x27   :  { %v900_v55 = vpack.i.bf16 %v718_v53, %v708_v50  ;;  %v663_v57 = vld [vmem:[#allocation1 + $0xc8] ss:$2 sm:%s662_s19]   ;;  %660 = vst.msk [vmem:[#allocation0 + $0x30] ss:$8 sm:$0x3] %vm515_vm0, %v657_v56   ;;  %v768_v19 = vld [vmem:[#allocation0 + $0x18] sm:$0xff] }
  0x28   :  { %666 = vst.msk [vmem:[#allocation0 + $0x31] ss:$8 sm:$0x3] %vm515_vm0, %v663_v57   ;;  %v675_v59 = vld [vmem:[#allocation1 + $0xd8] ss:$2 sm:%s674_s21]   ;;  %v755_v11 = vld [vmem:[#allocation0 + $0x8] sm:$0xff] }
  0x29   :  { %901 = vrot.lane.b32.xlu0 %v900_v55, %s910_s24  ;;  %672 = vst.msk [vmem:[#allocation0 + $0x32] ss:$8 sm:$0x3] %vm515_vm0, %v669_v58   ;;  %678 = vst.msk [vmem:[#allocation0 + $0x33] ss:$8 sm:$0x3] %vm515_vm0, %v675_v59  }
  0x2a   :  { %v681_v60 = vld [vmem:[#allocation1 + $0xe0] ss:$2 sm:%s680_s22]   ;;  %v725_v62 = vld [vmem:[#allocation1 + $0x41] ss:$8 sm:$0xf]  }
  0x2b   :  { %684 = vst.msk [vmem:[#allocation0 + $0x34] ss:$8 sm:$0x3] %vm515_vm0, %v681_v60   ;;  %v687_v61 = vld [vmem:[#allocation1 + $0xe8] ss:$2 sm:%s686_s23]  }
  0x2c   :  { %690 = vst.msk [vmem:[#allocation0 + $0x35] ss:$8 sm:$0x3] %vm515_vm0, %v687_v61   ;;  %v727_v63 = vld [vmem:[#allocation1 + $0x41] ss:$8 sm:$0xf0]  }
  0x2d   :  { %v736_v0 = vld [vmem:[#allocation1 + $0xc1] ss:$8 sm:$0xf]   ;;  %v729_v1 = vsel %vm707_vm1, %v727_v63, %v725_v62  ;;  %v693_v3 = vld [vmem:[#allocation1 + $0xf0] ss:$2 sm:%s692_s25]  }
  0x2e   :  { %v738_v2 = vld [vmem:[#allocation1 + $0xc1] ss:$8 sm:$0xf0]   ;;  %696 = vst.msk [vmem:[#allocation0 + $0x36] ss:$8 sm:$0x3] %vm515_vm0, %v693_v3  }
  0x2f   :  { %v740_v4 = vsel %vm707_vm1, %v738_v2, %v736_v0  ;;  %v699_v5 = vld [vmem:[#allocation1 + $0xf8] ss:$2 sm:%s698_s26]   ;;  %v782_v12 = vld [vmem:[#allocation0 + $0x28] sm:$0xff] }
  0x30   :  { %v905_v6 = vpack.i.bf16 %v740_v4, %v729_v1  ;;  %702 = vst.msk [vmem:[#allocation0 + $0x37] ss:$8 sm:$0x3] %vm515_vm0, %v699_v5  }
  0x32   :  { %906 = vrot.lane.b32.xlu0 %v905_v6, %s910_s24 }
  0x37   :  { %v796_v20 = vld [vmem:[#allocation0 + $0x38] sm:$0xff] }
  0x9b   :  { %v902_v7 = vpop.permute.xlu0 %901 }
  0x9c   :  { %v904_v8 = vunpack.i.h.bf16 %v902_v7  ;;  %v903_v9 = vunpack.i.l.bf16 %v902_v7 }
  0x9e   :  { %712 = vst.msk [vmem:[#allocation0] sm:$0xff] %vm711_vm2, %v903_v9   ;;  %723 = vst.msk [vmem:[#allocation0 + $0x20] sm:$0xff] %vm711_vm2, %v904_v8  }
  0xa4   :  { %v907_v10 = vpop.permute.xlu0 %906 }
  0xa5   :  { %v909_v13 = vunpack.i.h.bf16 %v907_v10  ;;  %v908_v14 = vunpack.i.l.bf16 %v907_v10  ;;  %v750_v15 = vld [vmem:[#allocation0] sm:$0xff] }
  0xa6   :  { %v775_v16 = vld [vmem:[#allocation0 + $0x20] sm:$0xff]  ;;  %v879_v17 = vpack.c.bf16 %v755_v11, %v750_v15 }
  0xa7   :  { %734 = vst.msk [vmem:[#allocation0 + $0x10] sm:$0xff] %vm711_vm2, %v908_v14   ;;  %745 = vst.msk [vmem:[#allocation0 + $0x30] sm:$0xff] %vm711_vm2, %v909_v13   ;;  %v889_v18 = vpack.c.bf16 %v782_v12, %v775_v16 }
  0xa8   :  { %880 = vst [vmem:[%s1045_s1] sm:$0xff] %v879_v17  }
  0xa9   :  { %897 = vst [vmem:[%s1045_s1 + $0x10] sm:$0xff] %v889_v18  }
  0xae   :  { %v761_v21 = vld [vmem:[#allocation0 + $0x10] sm:$0xff] }
  0xaf   :  { %v789_v22 = vld [vmem:[#allocation0 + $0x30] sm:$0xff]  ;;  %v884_v23 = vpack.c.bf16 %v768_v19, %v761_v21 }
  0xb0   :  { %v894_v24 = vpack.c.bf16 %v796_v20, %v789_v22 }
  0xb1   :  { %896 = vst [vmem:[%s1045_s1 + $0x8] sm:$0xff] %v884_v23  }
  0xb2   :  { %898 = vst [vmem:[%s1045_s1 + $0x18] sm:$0xff] %v894_v24  }

// kernel: squeeze.24
= control target key start
LH: loop header
LB: loop body
LE: loop exit
PB: predicated region body
PF: predicated region fallthrough
CT: control target
= control target key end

     0   :  { %vm515_vm0 = vcmask 1047556   ;;  %vm558_vm1 = vcmask 261120   ;;  %vm517_vm2 = vcmask 392192   ;;  %s852_s24 = smov 48   ;;  %vm562_vm3 = vcmask 130048   ;;  %s938_s0 = inlined_call_operand.vmem [shape: bf16[32,1,3,48], index: 0, kind: input, shape index: {}]   ;;  %s939_s1 = inlined_call_operand.vmem [shape: bf16[32,144], index: 1, kind: output, shape index: {}]  }
   0x1   :  { %v776_v0 = vld [vmem:[%s938_s0 + $0x2a] sm:$0xff]   ;;  %v779_v1 = vld [vmem:[%s938_s0 + $0x22] sm:$0xff]   ;;  %v783_v2 = vld [vmem:[%s938_s0 + $0x1a] sm:$0xff]   ;;  %vm565_vm4 = vcmask 1048320   ;;  %vm641_vm5 = vcmask 785792  }
   0x2   :  { %v145_v3 = vunpack.c.h.bf16 %v776_v0  ;;  %v161_v4 = vunpack.c.l.bf16 %v776_v0  ;;  %v193_v5 = vunpack.c.h.bf16 %v779_v1  ;;  %v792_v6 = vld [vmem:[%s938_s0 + $0xe] sm:$0xff]   ;;  %v793_v7 = vld [vmem:[%s938_s0 + $0x6] sm:$0xff]   ;;  %v225_v9 = vunpack.c.l.bf16 %v779_v1  ;;  %v768_v12 = vld [vmem:[%s938_s0 + $0x38] sm:$0xff]  }
   0x3   :  { %v797_v8 = vld [vmem:[%s938_s0 + $0x2] ss:$50 sps:$4 sm:$0xff]   ;;  %v257_v10 = vunpack.c.h.bf16 %v783_v2  ;;  %v509_v11 = vld [vmem:[%s938_s0] ss:$50 sps:$2 sm:$0xf]   ;;  %v401_v13 = vunpack.c.l.bf16 %v792_v6  ;;  %v417_v14 = vunpack.c.h.bf16 %v793_v7  ;;  %v449_v15 = vunpack.c.l.bf16 %v793_v7 }
   0x4   :  { %148 = vst [vmem:[#allocation1 + $0xb8] ss:$8 sps:$4 sm:$0xff] %v145_v3   ;;  %164 = vst [vmem:[#allocation1 + $0xa8] ss:$8 sps:$4 sm:$0xff] %v161_v4   ;;  %v481_v16 = vunpack.c.l.bf16 %v797_v8  ;;  %v510_v17 = vunpack.c.l.bf16 %v509_v11  ;;  %v787_v18 = vld [vmem:[%s938_s0 + $0x16] sm:$0xf]   ;;  %v17_v19 = vunpack.c.h.bf16 %v768_v12  ;;  %v49_v20 = vunpack.c.l.bf16 %v768_v12 }
   0x5   :  { %196 = vst [vmem:[#allocation1 + $0x98] ss:$8 sps:$4 sm:$0xff] %v193_v5   ;;  %228 = vst [vmem:[#allocation1 + $0x88] ss:$8 sps:$4 sm:$0xff] %v225_v9   ;;  %v81_v21 = vunpack.c.h.bf16 %v797_v8  ;;  %v289_v22 = vunpack.c.l.bf16 %v783_v2  ;;  %v321_v23 = vunpack.c.l.bf16 %v787_v18  ;;  %v353_v24 = vunpack.c.h.bf16 %v792_v6  ;;  %s851_s0 = smov 96  }
   0x6   :  { %260 = vst [vmem:[#allocation1 + $0x78] ss:$8 sps:$4 sm:$0xff] %v257_v10   ;;  %404 = vst [vmem:[#allocation1 + $0x38] ss:$8 sps:$4 sm:$0xff] %v401_v13  }
   0x7   :  { %420 = vst [vmem:[#allocation1 + $0x28] ss:$8 sps:$4 sm:$0xff] %v417_v14   ;;  %452 = vst [vmem:[#allocation1 + $0x18] ss:$8 sps:$4 sm:$0xff] %v449_v15  }
   0x8   :  { %484 = vst [vmem:[#allocation1 + $0x8] ss:$8 sps:$4 sm:$0xff] %v481_v16   ;;  %512 = vst [vmem:[#allocation1] ss:$200 sps:$4 sm:$0xff] %v510_v17  }
   0x9   :  { %20 = vst [vmem:[#allocation1 + $0xf0] ss:$8 sps:$4 sm:$0xff] %v17_v19   ;;  %52 = vst [vmem:[#allocation1 + $0xe0] ss:$8 sps:$4 sm:$0xff] %v49_v20  }
   0xa   :  { %84 = vst [vmem:[#allocation1 + $0xd0] ss:$8 sps:$4 sm:$0xff] %v81_v21   ;;  %292 = vst [vmem:[#allocation1 + $0x68] ss:$8 sps:$4 sm:$0xff] %v289_v22  }
   0xb   :  { %324 = vst [vmem:[#allocation1 + $0x58] ss:$8 sps:$4 sm:$0xff] %v321_v23   ;;  %356 = vst [vmem:[#allocation1 + $0x48] ss:$8 sps:$4 sm:$0xff] %v353_v24  }
   0xc   :  { %v570_v25 = vld [vmem:[#allocation1 + $0x82] ss:$8 sm:$0xf0]   ;;  %v646_v43 = vld [vmem:[#allocation1 + $0x81] ss:$8 sm:$0xf0]  }
   0xd   :  { %v576_v26 = vld [vmem:[#allocation1 + $0x82] ss:$8 sm:$0xf0]   ;;  %v644_v42 = vld [vmem:[#allocation1 + $0x81] ss:$8 sm:$0xf]  }
   0xe   :  { %v568_v27 = vld [vmem:[#allocation1 + $0x82] ss:$8 sm:$0xf]   ;;  %v636_v39 = vld [vmem:[#allocation1 + $0x1] ss:$8 sm:$0xf0]   ;;  %v648_v45 = vsel %vm515_vm0, %v646_v43, %v644_v42 }
   0xf   :  { %v574_v28 = vld [vmem:[#allocation1 + $0x82] ss:$8 sm:$0xf]   ;;  %v572_v31 = vsel %vm515_vm0, %v570_v25, %v568_v27  ;;  %v634_v38 = vld [vmem:[#allocation1 + $0x1] ss:$8 sm:$0xf]  }
  0x10   :  { %v549_v29 = vld [vmem:[#allocation1 + $0x2] ss:$8 sm:$0xf0]   ;;  %v578_v32 = vsel %vm515_vm0, %v576_v26, %v574_v28  ;;  %v638_v41 = vsel %vm515_vm0, %v636_v39, %v634_v38  ;;  %v668_v1 = vld [vmem:[#allocation1 + $0xc1] ss:$8 sm:$0xf0]  }
  0x11   :  { %v555_v30 = vld [vmem:[#allocation1 + $0x2] ss:$8 sm:$0xf0]   ;;  %v580_v35 = vsel %vm558_vm1, %v578_v32, %v572_v31  ;;  %v841_v48 = vpack.i.bf16 %v648_v45, %v638_v41  ;;  %v666_v0 = vld [vmem:[#allocation1 + $0xc1] ss:$8 sm:$0xf]  }
  0x12   :  { %v547_v33 = vld [vmem:[#allocation1 + $0x2] ss:$8 sm:$0xf]   ;;  %v655_v60 = vld [vmem:[#allocation1 + $0x41] ss:$8 sm:$0xf]   ;;  %v670_v3 = vsel %vm515_vm0, %v668_v1, %v666_v0 }
  0x13   :  { %v553_v34 = vld [vmem:[#allocation1 + $0x2] ss:$8 sm:$0xf]   ;;  %v551_v36 = vsel %vm515_vm0, %v549_v29, %v547_v33  ;;  %842 = vrot.lane.b32.xlu1 %v841_v48, %s852_s24  ;;  %v657_v61 = vld [vmem:[#allocation1 + $0x41] ss:$8 sm:$0xf0]  }
  0x14   :  { %v557_v37 = vsel %vm515_vm0, %v555_v30, %v553_v34  ;;  %v592_v46 = vld [vmem:[#allocation1 + $0x42] ss:$8 sm:$0xf0]   ;;  %v659_v63 = vsel %vm515_vm0, %v657_v61, %v655_v60  ;;  %v513_v4 = vld [vmem:[#allocation1] ss:$8 sm:$0xf]  }
  0x15   :  { %v559_v40 = vsel %vm558_vm1, %v557_v37, %v551_v36  ;;  %v598_v47 = vld [vmem:[#allocation1 + $0x42] ss:$8 sm:$0xf0]   ;;  %v514_v5 = vld [vmem:[#allocation1] ss:$8 sm:$0xf0]   ;;  %v846_v6 = vpack.i.bf16 %v670_v3, %v659_v63 }
  0x16   :  { %v831_v44 = vpack.i.bf16 %v580_v35, %v559_v40  ;;  %v590_v49 = vld [vmem:[#allocation1 + $0x42] ss:$8 sm:$0xf]   ;;  %v516_v7 = vsel %vm515_vm0, %v514_v5, %v513_v4  ;;  %v529_v8 = vld [vmem:[#allocation1 + $0x80] ss:$8 sm:$0xf]  }
  0x17   :  { %v596_v50 = vld [vmem:[#allocation1 + $0x42] ss:$8 sm:$0xf]   ;;  %v594_v51 = vsel %vm515_vm0, %v592_v46, %v590_v49  ;;  %v531_v9 = vld [vmem:[#allocation1 + $0x80] ss:$8 sm:$0xf0]   ;;  %847 = vrot.lane.b32.xlu1 %v846_v6, %s852_s24 }
  0x18   :  { %832 = vrot.lane.b32.xlu0 %v831_v44, %s851_s0  ;;  %v600_v52 = vsel %vm515_vm0, %v598_v47, %v596_v50  ;;  %v612_v53 = vld [vmem:[#allocation1 + $0xc2] ss:$8 sm:$0xf]   ;;  %518 = vst.msk [vmem:[#allocation0] sm:$0xff] %vm517_vm2, %v516_v7   ;;  %v533_v10 = vsel %vm515_vm0, %v531_v9, %v529_v8 }
  0x19   :  { %v614_v54 = vld [vmem:[#allocation1 + $0xc2] ss:$8 sm:$0xf0]   ;;  %v602_v55 = vsel %vm558_vm1, %v600_v52, %v594_v51  ;;  %v520_v11 = vld [vmem:[#allocation1 + $0x40] ss:$8 sm:$0xf]  }
  0x1a   :  { %v616_v56 = vsel %vm515_vm0, %v614_v54, %v612_v53  ;;  %v618_v57 = vld [vmem:[#allocation1 + $0xc2] ss:$8 sm:$0xf]   ;;  %v522_v12 = vld [vmem:[#allocation1 + $0x40] ss:$8 sm:$0xf0]  }
  0x1b   :  { %v620_v58 = vld [vmem:[#allocation1 + $0xc2] ss:$8 sm:$0xf0]   ;;  %536 = vst.msk [vmem:[#allocation0 + $0x20] sm:$0xff] %vm517_vm2, %v533_v10   ;;  %v524_v13 = vsel %vm515_vm0, %v522_v12, %v520_v11 }
  0x1c   :  { %v622_v59 = vsel %vm515_vm0, %v620_v58, %v618_v57  ;;  %v538_v14 = vld [vmem:[#allocation1 + $0xc0] ss:$8 sm:$0xf]   ;;  %527 = vst.msk [vmem:[#allocation0 + $0x10] sm:$0xff] %vm517_vm2, %v524_v13  }
  0x1d   :  { %v624_v62 = vsel %vm558_vm1, %v622_v59, %v616_v56  ;;  %v540_v15 = vld [vmem:[#allocation1 + $0xc0] ss:$8 sm:$0xf0]  }
  0x1e   :  { %v836_v2 = vpack.i.bf16 %v624_v62, %v602_v55  ;;  %v542_v16 = vsel %vm515_vm0, %v540_v15, %v538_v14 }
  0x1f   :  { %545 = vst.msk [vmem:[#allocation0 + $0x30] sm:$0xff] %vm517_vm2, %v542_v16  }
  0x20   :  { %837 = vrot.lane.b32.xlu0 %v836_v2, %s851_s0 }
  0x85   :  { %v843_v20 = vpop.permute.xlu1 %842 }
  0x86   :  { %v845_v21 = vunpack.i.h.bf16 %v843_v20  ;;  %v844_v22 = vunpack.i.l.bf16 %v843_v20 }
  0x89   :  { %v848_v26 = vpop.permute.xlu1 %847 }
  0x8a   :  { %v833_v17 = vpop.permute.xlu0 %832  ;;  %v850_v27 = vunpack.i.h.bf16 %v848_v26  ;;  %v849_v28 = vunpack.i.l.bf16 %v848_v26 }
  0x8b   :  { %v835_v18 = vunpack.i.h.bf16 %v833_v17  ;;  %v834_v19 = vunpack.i.l.bf16 %v833_v17 }
  0x8d   :  { %585 = vst.msk [vmem:[#allocation0 + $0x28] sm:$0xff] %vm562_vm3, %v835_v18   ;;  %564 = vst.msk [vmem:[#allocation0 + $0x8] sm:$0xff] %vm562_vm3, %v834_v19  }
  0x8e   :  { %566 = vst.msk [vmem:[#allocation0] sm:$0xff] %vm565_vm4, %v834_v19   ;;  %588 = vst.msk [vmem:[#allocation0 + $0x20] sm:$0xff] %vm565_vm4, %v835_v18  }
  0x8f   :  { %642 = vst.msk [vmem:[#allocation0] sm:$0xff] %vm641_vm5, %v844_v22   ;;  %653 = vst.msk [vmem:[#allocation0 + $0x20] sm:$0xff] %vm641_vm5, %v845_v21  }
  0x92   :  { %v838_v23 = vpop.permute.xlu0 %837 }
  0x93   :  { %v840_v24 = vunpack.i.h.bf16 %v838_v23  ;;  %v839_v25 = vunpack.i.l.bf16 %v838_v23 }
  0x94   :  { %v712_v29 = vld [vmem:[#allocation0 + $0x28] sm:$0xff] }
  0x95   :  { %629 = vst.msk [vmem:[#allocation0 + $0x38] sm:$0xff] %vm562_vm3, %v840_v24   ;;  %607 = vst.msk [vmem:[#allocation0 + $0x18] sm:$0xff] %vm562_vm3, %v839_v25   ;;  %v685_v30 = vld [vmem:[#allocation0 + $0x8] sm:$0xff] }
  0x96   :  { %610 = vst.msk [vmem:[#allocation0 + $0x10] sm:$0xff] %vm565_vm4, %v839_v25   ;;  %632 = vst.msk [vmem:[#allocation0 + $0x30] sm:$0xff] %vm565_vm4, %v840_v24   ;;  %v680_v31 = vld [vmem:[#allocation0] sm:$0xff] }
  0x97   :  { %664 = vst.msk [vmem:[#allocation0 + $0x10] sm:$0xff] %vm641_vm5, %v849_v28   ;;  %675 = vst.msk [vmem:[#allocation0 + $0x30] sm:$0xff] %vm641_vm5, %v850_v27   ;;  %v705_v32 = vld [vmem:[#allocation0 + $0x20] sm:$0xff]  ;;  %v809_v33 = vpack.c.bf16 %v685_v30, %v680_v31 }
  0x98   :  { %v819_v34 = vpack.c.bf16 %v712_v29, %v705_v32 }
  0x99   :  { %810 = vst [vmem:[%s939_s1] sm:$0xff] %v809_v33  }
  0x9a   :  { %827 = vst [vmem:[%s939_s1 + $0x10] sm:$0xff] %v819_v34  }
  0x9c   :  { %v726_v35 = vld [vmem:[#allocation0 + $0x38] sm:$0xff] }
  0x9d   :  { %v698_v36 = vld [vmem:[#allocation0 + $0x18] sm:$0xff] }
  0x9e   :  { %v691_v37 = vld [vmem:[#allocation0 + $0x10] sm:$0xff] }
  0x9f   :  { %v719_v38 = vld [vmem:[#allocation0 + $0x30] sm:$0xff]  ;;  %v814_v39 = vpack.c.bf16 %v698_v36, %v691_v37 }
  0xa0   :  { %v824_v40 = vpack.c.bf16 %v726_v35, %v719_v38 }
  0xa1   :  { %826 = vst [vmem:[%s939_s1 + $0x8] sm:$0xff] %v814_v39  }
  0xa2   :  { %828 = vst [vmem:[%s939_s1 + $0x18] sm:$0xff] %v824_v40  }

// kernel: squeeze.23
= control target key start
LH: loop header
LB: loop body
LE: loop exit
PB: predicated region body
PF: predicated region fallthrough
CT: control target
= control target key end

     0   :  { %vm259_vm0 = vcmask 1047556   ;;  %vm261_vm1 = vcmask 261120   ;;  %s376_s14 = smov 32   ;;  %vm280_vm2 = vcmask 785920   ;;  %vm301_vm3 = vcmask 523520   ;;  %s410_s0 = inlined_call_operand.vmem [shape: bf16[16,1,3,32], index: 0, kind: input, shape index: {}]   ;;  %s411_s1 = inlined_call_operand.vmem [shape: bf16[16,96], index: 1, kind: output, shape index: {}]  }
   0x1   :  { %v342_v0 = vld [vmem:[%s410_s0 + $0x18] sm:$0xff]   ;;  %v346_v1 = vld [vmem:[%s410_s0 + $0x10] sm:$0xff]   ;;  %v350_v2 = vld [vmem:[%s410_s0 + $0x8] sm:$0xff]  }
   0x2   :  { %v17_v3 = vunpack.c.h.bf16 %v342_v0  ;;  %v49_v4 = vunpack.c.l.bf16 %v342_v0  ;;  %v354_v5 = vld [vmem:[%s410_s0] sm:$0xff]   ;;  %v81_v6 = vunpack.c.h.bf16 %v346_v1  ;;  %v113_v7 = vunpack.c.l.bf16 %v346_v1  ;;  %s375_s0 = smov 64  }
   0x3   :  { %v145_v8 = vunpack.c.h.bf16 %v350_v2  ;;  %v177_v9 = vunpack.c.l.bf16 %v350_v2  ;;  %v209_v10 = vunpack.c.h.bf16 %v354_v5  ;;  %v240_v11 = vunpack.c.l.bf16 %v354_v5 }
   0x4   :  { %20 = vst [vmem:[#allocation1 + $0x70] ss:$8 sps:$4 sm:$0xff] %v17_v3   ;;  %52 = vst [vmem:[#allocation1 + $0x60] ss:$8 sps:$4 sm:$0xff] %v49_v4  }
   0x5   :  { %84 = vst [vmem:[#allocation1 + $0x50] ss:$8 sps:$4 sm:$0xff] %v81_v6   ;;  %116 = vst [vmem:[#allocation1 + $0x40] ss:$8 sps:$4 sm:$0xff] %v113_v7  }
   0x6   :  { %148 = vst [vmem:[#allocation1 + $0x30] ss:$8 sps:$4 sm:$0xff] %v145_v8   ;;  %180 = vst [vmem:[#allocation1 + $0x20] ss:$8 sps:$4 sm:$0xff] %v177_v9  }
   0x7   :  { %212 = vst [vmem:[#allocation1 + $0x10] ss:$8 sps:$4 sm:$0xff] %v209_v10   ;;  %243 = vst [vmem:[#allocation1] ss:$8 sps:$4 sm:$0xff] %v240_v11  }
   0xb   :  { %v285_v12 = vld [vmem:[#allocation1 + $0x42] ss:$8 sm:$0xf0]   ;;  %v306_v13 = vld [vmem:[#allocation1 + $0x41] ss:$8 sm:$0xf0]  }
   0xc   :  { %v283_v14 = vld [vmem:[#allocation1 + $0x42] ss:$8 sm:$0xf]   ;;  %v304_v15 = vld [vmem:[#allocation1 + $0x41] ss:$8 sm:$0xf]  }
   0xd   :  { %v275_v16 = vld [vmem:[#allocation1 + $0x2] ss:$8 sm:$0xf0]   ;;  %v287_v17 = vsel %vm259_vm0, %v285_v12, %v283_v14  ;;  %v296_v18 = vld [vmem:[#allocation1 + $0x1] ss:$8 sm:$0xf0]   ;;  %v308_v23 = vsel %vm259_vm0, %v306_v13, %v304_v15 }
   0xe   :  { %v273_v19 = vld [vmem:[#allocation1 + $0x2] ss:$8 sm:$0xf]   ;;  %v294_v20 = vld [vmem:[#allocation1 + $0x1] ss:$8 sm:$0xf]  }
   0xf   :  { %v277_v21 = vsel %vm259_vm0, %v275_v16, %v273_v19  ;;  %v298_v22 = vsel %vm259_vm0, %v296_v18, %v294_v20  ;;  %v257_v24 = vld [vmem:[#allocation1] ss:$8 sm:$0xf]  }
  0x10   :  { %v258_v25 = vld [vmem:[#allocation1] ss:$8 sm:$0xf0]   ;;  %v365_v26 = vpack.i.bf16 %v287_v17, %v277_v21  ;;  %v370_v31 = vpack.i.bf16 %v308_v23, %v298_v22 }
  0x11   :  { %v260_v27 = vsel %vm259_vm0, %v258_v25, %v257_v24  ;;  %v264_v28 = vld [vmem:[#allocation1 + $0x40] ss:$8 sm:$0xf]  }
  0x12   :  { %v266_v29 = vld [vmem:[#allocation1 + $0x40] ss:$8 sm:$0xf0]   ;;  %262 = vst.msk [vmem:[#allocation0] sm:$0xff] %vm261_vm1, %v260_v27   ;;  %366 = vrot.lane.b32.xlu0 %v365_v26, %s375_s0 }
  0x13   :  { %v268_v30 = vsel %vm259_vm0, %v266_v29, %v264_v28 }
  0x14   :  { %271 = vst.msk [vmem:[#allocation0 + $0x8] sm:$0xff] %vm261_vm1, %v268_v30  }
  0x16   :  { %371 = vrot.lane.b32.xlu0 %v370_v31, %s376_s14 }
  0x84   :  { %v367_v32 = vpop.permute.xlu0 %366 }
  0x85   :  { %v369_v33 = vunpack.i.h.bf16 %v367_v32  ;;  %v368_v34 = vunpack.i.l.bf16 %v367_v32 }
  0x87   :  { %281 = vst.msk [vmem:[#allocation0] sm:$0xff] %vm280_vm2, %v368_v34   ;;  %292 = vst.msk [vmem:[#allocation0 + $0x8] sm:$0xff] %vm280_vm2, %v369_v33  }
  0x88   :  { %v372_v35 = vpop.permute.xlu0 %371 }
  0x89   :  { %v374_v36 = vunpack.i.h.bf16 %v372_v35  ;;  %v373_v37 = vunpack.i.l.bf16 %v372_v35 }
  0x8b   :  { %302 = vst.msk [vmem:[#allocation0] sm:$0xff] %vm301_vm3, %v373_v37   ;;  %313 = vst.msk [vmem:[#allocation0 + $0x8] sm:$0xff] %vm301_vm3, %v374_v36  }
  0x92   :  { %v318_v38 = vld [vmem:[#allocation0] sm:$0xff]  ;;  %v323_v39 = vld [vmem:[#allocation0 + $0x8] sm:$0xff] }
  0x93   :  { %v361_v40 = vpack.c.bf16 %v323_v39, %v318_v38 }
  0x95   :  { %362 = vst [vmem:[%s411_s1] sm:$0xff] %v361_v40  }

// kernel: squeeze.22
= control target key start
LH: loop header
LB: loop body
LE: loop exit
PB: predicated region body
PF: predicated region fallthrough
CT: control target
= control target key end

     0   :  { %vm259_vm0 = vcmask 1047556   ;;  %vm261_vm1 = vcmask 130048   ;;  %s376_s14 = smov 16   ;;  %vm280_vm2 = vcmask 392448   ;;  %vm301_vm3 = vcmask 261248   ;;  %s410_s0 = inlined_call_operand.vmem [shape: bf16[16,1,3,16], index: 0, kind: input, shape index: {}]   ;;  %s411_s1 = inlined_call_operand.vmem [shape: bf16[16,48], index: 1, kind: output, shape index: {}]  }
   0x1   :  { %v342_v0 = vld [vmem:[%s410_s0 + $0x18] sm:$0xff]   ;;  %v346_v1 = vld [vmem:[%s410_s0 + $0x10] sm:$0xff]   ;;  %v350_v2 = vld [vmem:[%s410_s0 + $0x8] sm:$0xff]  }
   0x2   :  { %v17_v3 = vunpack.c.h.bf16 %v342_v0  ;;  %v49_v4 = vunpack.c.l.bf16 %v342_v0  ;;  %v354_v5 = vld [vmem:[%s410_s0] sm:$0xff]   ;;  %v81_v6 = vunpack.c.h.bf16 %v346_v1  ;;  %v113_v7 = vunpack.c.l.bf16 %v346_v1  ;;  %s375_s0 = smov 32  }
   0x3   :  { %v145_v8 = vunpack.c.h.bf16 %v350_v2  ;;  %v177_v9 = vunpack.c.l.bf16 %v350_v2  ;;  %v209_v10 = vunpack.c.h.bf16 %v354_v5  ;;  %v240_v11 = vunpack.c.l.bf16 %v354_v5 }
   0x4   :  { %20 = vst [vmem:[#allocation1 + $0x70] ss:$8 sps:$4 sm:$0xff] %v17_v3   ;;  %52 = vst [vmem:[#allocation1 + $0x60] ss:$8 sps:$4 sm:$0xff] %v49_v4  }
   0x5   :  { %84 = vst [vmem:[#allocation1 + $0x50] ss:$8 sps:$4 sm:$0xff] %v81_v6   ;;  %116 = vst [vmem:[#allocation1 + $0x40] ss:$8 sps:$4 sm:$0xff] %v113_v7  }
   0x6   :  { %148 = vst [vmem:[#allocation1 + $0x30] ss:$8 sps:$4 sm:$0xff] %v145_v8   ;;  %180 = vst [vmem:[#allocation1 + $0x20] ss:$8 sps:$4 sm:$0xff] %v177_v9  }
   0x7   :  { %212 = vst [vmem:[#allocation1 + $0x10] ss:$8 sps:$4 sm:$0xff] %v209_v10   ;;  %243 = vst [vmem:[#allocation1] ss:$8 sps:$4 sm:$0xff] %v240_v11  }
   0xb   :  { %v285_v12 = vld [vmem:[#allocation1 + $0x42] ss:$8 sm:$0xf0]   ;;  %v306_v13 = vld [vmem:[#allocation1 + $0x41] ss:$8 sm:$0xf0]  }
   0xc   :  { %v283_v14 = vld [vmem:[#allocation1 + $0x42] ss:$8 sm:$0xf]   ;;  %v304_v15 = vld [vmem:[#allocation1 + $0x41] ss:$8 sm:$0xf]  }
   0xd   :  { %v275_v16 = vld [vmem:[#allocation1 + $0x2] ss:$8 sm:$0xf0]   ;;  %v287_v17 = vsel %vm259_vm0, %v285_v12, %v283_v14  ;;  %v296_v18 = vld [vmem:[#allocation1 + $0x1] ss:$8 sm:$0xf0]   ;;  %v308_v23 = vsel %vm259_vm0, %v306_v13, %v304_v15 }
   0xe   :  { %v273_v19 = vld [vmem:[#allocation1 + $0x2] ss:$8 sm:$0xf]   ;;  %v294_v20 = vld [vmem:[#allocation1 + $0x1] ss:$8 sm:$0xf]  }
   0xf   :  { %v277_v21 = vsel %vm259_vm0, %v275_v16, %v273_v19  ;;  %v298_v22 = vsel %vm259_vm0, %v296_v18, %v294_v20  ;;  %v257_v24 = vld [vmem:[#allocation1] ss:$8 sm:$0xf]  }
  0x10   :  { %v258_v25 = vld [vmem:[#allocation1] ss:$8 sm:$0xf0]   ;;  %v365_v26 = vpack.i.bf16 %v287_v17, %v277_v21  ;;  %v370_v31 = vpack.i.bf16 %v308_v23, %v298_v22 }
  0x11   :  { %v260_v27 = vsel %vm259_vm0, %v258_v25, %v257_v24  ;;  %v264_v28 = vld [vmem:[#allocation1 + $0x40] ss:$8 sm:$0xf]  }
  0x12   :  { %v266_v29 = vld [vmem:[#allocation1 + $0x40] ss:$8 sm:$0xf0]   ;;  %262 = vst.msk [vmem:[#allocation0] sm:$0xff] %vm261_vm1, %v260_v27   ;;  %366 = vrot.lane.b32.xlu0 %v365_v26, %s375_s0 }
  0x13   :  { %v268_v30 = vsel %vm259_vm0, %v266_v29, %v264_v28 }
  0x14   :  { %271 = vst.msk [vmem:[#allocation0 + $0x8] sm:$0xff] %vm261_vm1, %v268_v30  }
  0x16   :  { %371 = vrot.lane.b32.xlu0 %v370_v31, %s376_s14 }
  0x84   :  { %v367_v32 = vpop.permute.xlu0 %366 }
  0x85   :  { %v369_v33 = vunpack.i.h.bf16 %v367_v32  ;;  %v368_v34 = vunpack.i.l.bf16 %v367_v32 }
  0x87   :  { %281 = vst.msk [vmem:[#allocation0] sm:$0xff] %vm280_vm2, %v368_v34   ;;  %292 = vst.msk [vmem:[#allocation0 + $0x8] sm:$0xff] %vm280_vm2, %v369_v33  }
  0x88   :  { %v372_v35 = vpop.permute.xlu0 %371 }
  0x89   :  { %v374_v36 = vunpack.i.h.bf16 %v372_v35  ;;  %v373_v37 = vunpack.i.l.bf16 %v372_v35 }
  0x8b   :  { %302 = vst.msk [vmem:[#allocation0] sm:$0xff] %vm301_vm3, %v373_v37   ;;  %313 = vst.msk [vmem:[#allocation0 + $0x8] sm:$0xff] %vm301_vm3, %v374_v36  }
  0x92   :  { %v318_v38 = vld [vmem:[#allocation0] sm:$0xff]  ;;  %v323_v39 = vld [vmem:[#allocation0 + $0x8] sm:$0xff] }
  0x93   :  { %v361_v40 = vpack.c.bf16 %v323_v39, %v318_v38 }
  0x95   :  { %362 = vst [vmem:[%s411_s1] sm:$0xff] %v361_v40  }

// kernel: unet_forward.1
= control target key start
LH: loop header
LB: loop body
LE: loop exit
PB: predicated region body
PF: predicated region fallthrough
CT: control target
= control target key end

     0   :  { %s6676_s15 = smov 0   ;;  %s8895_s0 = inlined_call_operand.vmem [shape: bf16[2,8,256], index: 0, kind: input, shape index: {}]   ;;  %s8896_s1 = inlined_call_operand.vmem [shape: bf16[3,304,192], index: 1, kind: input, shape index: {}]   ;;  %s8897_s2 = inlined_call_operand.vmem [shape: f32[304,1], index: 2, kind: input, shape index: {}]   ;;  %s8898_s3 = inlined_call_operand.vmem [shape: bf16[474,256], index: 3, kind: input, shape index: {}]   ;;  %s8899_s4 = inlined_call_operand.vmem [shape: f32[2,16,256], index: 4, kind: output, shape index: {}]  }
   0x1 LB: > { %s5773_s16 = sadd.s32 4294967295, %s6628_s15   ;;  %p5777_p0 = scmp.ge.s32.totalorder %s6628_s15, 1  ;;  %s6628_s15 = sphi %s6676_s15, %s14_s15  }
   0x2   : > { %p162_p1 = scmp.lt.s32.totalorder %s6628_s15, 3 }
   0x4   : > { %p163_p2 = pnand %p5777_p0, %p162_p1 }
   0x6   : > { %166 = sbr.rel (%p163_p2) target bundleno = 9673 (0x25c9), region = 36 }
   0xd   : > { %v200_v0 = vld [vmem:[%s8898_s3 + $0x1d0] sm:$0x11]  ;;  %v229_v1 = vlaneseq  ;;  %p188_p3 = scmp.lt.s32.totalorder %s5773_s16, 1  ;;  %s6630_s23 = smov 18   ;;  %vm210_vm0 = vcmask 138240   ;;  %vm325_vm1 = vcmask 146432  }
   0xe   : > { %v5784_v2 = vcombine.low %v200_v0, %v200_v0  ;;  %v5785_v3 = vcombine.high %v200_v0, %v200_v0  ;;  %s6631_s24 = smov 17   ;;  %s6632_s25 = smov 34   ;;  %vm507_vm2 = vcmask 277504   ;;  %vm313_vm3 = vcmask 130048  }
   0xf   : > { %v6687_v4 = vshrl.u32 %v229_v1, 7  ;;  %s8912_s16 = smov (!%p188_p3, %s5773_s16), 1  ;;  %s6633_s26 = smov 16   ;;  %vm281_vm4 = vcmask 1039360   ;;  %vm296_vm5 = vcmask 1043456   ;;  %vm293_vm6 = vcmask 1031168  }
  0x10   : > { %v242_v5 = vshrl.u32 %v5784_v2, 16  ;;  %v249_v6 = vshrl.u32 %v5785_v3, 16  ;;  %s6045_s19 = sshll.u32 %s8912_s16, 3  ;;  %v227_v15 = vpack.i.b16 %v5784_v2, %v5784_v2  ;;  %v234_v16 = vpack.i.b16 %v5785_v3, %v5785_v3  ;;  %s6634_s27 = smov 127  }
  0x11   : > { %v6692_v7 = vsub.s32 0, %v6687_v4  ;;  %s192_s22 = scalar_lea.vmem %s8895_s0, %s6045_s19  ;;  %s6635_s28 = smov 126   ;;  %v8900_v54 = vmov 0   ;;  %vm262_vm7 = vcmask 15360   ;;  %vm495_vm8 = vcmask 261120  }
  0x12   : > { %v243_v8 = vpack.i.b16 %v242_v5, %v242_v5  ;;  %v250_v9 = vpack.i.b16 %v249_v6, %v249_v6  ;;  %v199_v10 = vld [vmem:[%s192_s22] sm:$0xff]  ;;  %s6636_s29 = smov 2   ;;  %s6637_s30 = smov 32   ;;  %423 = vmatprep.mubr.bf16.mxu0 %v8900_v54  ;;  %6477 = vset.pattern.permute.xlu0 %v8900_v54  ;;  %vm374_vm9 = vcmask 916480   ;;  %vm381_vm10 = vcmask 195584  }
  0x13   : > { %v5782_v12 = vcombine.low %v199_v10, %v199_v10  ;;  %v5783_v13 = vcombine.high %v199_v10, %v199_v10  ;;  %v6705_v17 = vrot.slane %v227_v15, %v6692_v7  ;;  %v6708_v18 = vrot.slane %v234_v16, %v6692_v7  ;;  %s6638_s5 = smov 112   ;;  %6478 = vset.pattern.permute.xlu1 %v8900_v54  ;;  %s6640_s6 = smov 96  }
  0x14   : > { %v248_v11 = vrot.slane %v243_v8, %v6692_v7  ;;  %v255_v14 = vrot.slane %v250_v9, %v6692_v7  ;;  %vm555_vm11 = vcmask 785408   ;;  %s6641_s21 = smov 10   ;;  %s6642_s22 = smov 8   ;;  %vm850_vm12 = vcmask 72704  }
  0x15   : > { %206 = vrot.lane.b32.xlu0 %v5782_v12, %s6631_s24  ;;  %8905 = vst [vmem:[#allocation2_spill] sm:$0xff] %v6705_v17  ;;  %vm853_vm13 = vcmask 596992   ;;  %vm8904_vm14 = vcmask 392192   ;;  %vm1177_vm15 = vcmask 523264   ;;  %s6646_s8 = smov 4   ;;  %s6647_s9 = smov 6  }
  0x16   : > { %321 = vrot.lane.b32.xlu1 %v248_v11, %s6630_s23 }
  0x19   : > { %208 = vrot.lane.b32.xlu0 %v5783_v13, %s6631_s24 }
  0x1a   : > { %323 = vrot.lane.b32.xlu1 %v255_v14, %s6630_s23 }
  0x1d   : > { %503 = vrot.lane.b32.xlu0 %v248_v11, %s6632_s25 }
  0x1e   : > { %505 = vrot.lane.b32.xlu1 %v255_v14, %s6632_s25  ;;  %s6643_s25 = smov 9  }
  0x21   : > { %309 = vrot.lane.b32.xlu0 %v6705_v17, %s6633_s26 }
  0x22   : > { %311 = vrot.lane.b32.xlu1 %v6708_v18, %s6633_s26 }
  0x87   : > { %v207_v19 = vpop.permute.xlu0 %206 }
  0x88   : > { %v6714_v20 = vpop.permute.xlu1 %321  ;;  %v6725_v26 = vsel %vm210_vm0, 0, %v207_v19 }
  0x89   : > { %v330_v28 = vmul.bf16 %v6714_v20, %v6725_v26  ;;  %v272_v29 = vrot.slane %v6725_v26, 4 }
  0x8b   : > { %v209_v21 = vpop.permute.xlu0 %208 }
  0x8c   : > { %v6717_v22 = vsel %vm210_vm0, %v207_v19, %v209_v21  ;;  %v6720_v23 = vsel %vm210_vm0, %v209_v21, 0  ;;  %v6727_v27 = vpop.permute.xlu1 %323  ;;  %v618_v19 = vld [vmem:[%s8897_s2] sm:$0xff]  ;;  %v619_v21 = vld [vmem:[%s8897_s2 + $0x8] sm:$0xff] }
  0x8d   : > { %v274_v24 = vrot.slane %v6720_v23, 4  ;;  %v273_v25 = vrot.slane %v6717_v22, 4  ;;  %v6736_v30 = vsel %vm325_vm1, %v6714_v20, %v6727_v27  ;;  %v332_v31 = vmul.bf16 %v6727_v27, %v6720_v23 }
  0x8e   : > { %v331_v32 = vmul.bf16 %v6736_v30, %v6717_v22  ;;  %vm1300_vm1 = vcmask 39936  }
  0x8f   : > { %279 = vrot.lane.b32.xlu1 %v274_v24, %s6634_s27  ;;  %277 = vrot.lane.b32.xlu0 %v273_v25, %s6634_s27  ;;  %v6748_v34 = vpop.permute.xlu0 %503 }
  0x90   : > { %v6746_v33 = vpop.permute.xlu1 %505  ;;  %v512_v36 = vmul.bf16 %v6748_v34, %v6725_v26 }
  0x91   : > { %v6754_v35 = vsel %vm507_vm2, %v6748_v34, %v6746_v33  ;;  %v514_v38 = vmul.bf16 %v6746_v33, %v6720_v23  ;;  %vm1305_vm2 = vcmask 171008  }
  0x92   : > { %v513_v37 = vmul.bf16 %v6754_v35, %v6717_v22 }
  0x93   : > { %336 = vrot.lane.b32.xlu1 %v330_v28, %s6635_s28  ;;  %275 = vrot.lane.b32.xlu0 %v272_v29, %s6634_s27  ;;  %v6769_v40 = vpop.permute.xlu0 %309 }
  0x94   : > { %v6767_v39 = vpop.permute.xlu1 %311  ;;  %v318_v51 = vmul.bf16 %v6769_v40, %v6725_v26 }
  0x95   : > { %v6774_v41 = vsel %vm313_vm3, %v6769_v40, %v6767_v39  ;;  %v320_v42 = vmul.bf16 %v6767_v39, %v6720_v23 }
  0x96   : > { %v319_v45 = vmul.bf16 %v6774_v41, %v6717_v22 }
  0x97   : > { %340 = vrot.lane.b32.xlu1 %v332_v31, %s6635_s28  ;;  %338 = vrot.lane.b32.xlu0 %v331_v32, %s6635_s28 }
  0x9b   : > { %260 = vrot.lane.b32.xlu1 %v255_v14, %s6636_s29  ;;  %258 = vrot.lane.b32.xlu0 %v248_v11, %s6636_s29 }
  0x9f   : > { %493 = vrot.lane.b32.xlu1 %v6708_v18, %s6637_s30  ;;  %491 = vrot.lane.b32.xlu0 %v6705_v17, %s6637_s30  ;;  %s6650_s30 = smov 1  }
  0xa3   : > { %518 = vrot.lane.b32.xlu0 %v512_v36, %s6635_s28  ;;  %520 = vrot.lane.b32.xlu1 %v513_v37, %s6635_s28 }
  0xa7   : > { %522 = vrot.lane.b32.xlu0 %v514_v38, %s6635_s28 }
 0x101   : > { %v280_v43 = vpop.permute.xlu1 %279  ;;  %v278_v44 = vpop.permute.xlu0 %277 }
 0x102   : > { %v6781_v46 = vsel %vm281_vm4, %v278_v44, %v280_v43  ;;  %v350_v47 = vsel %vm296_vm5, %v320_v42, %v280_v43 }
 0x103   : > { %366 = vrot.lane.b32.xlu0 %v350_v47, %s6638_s5  ;;  %v347_v48 = vsel %vm296_vm5, %v319_v45, %v6781_v46  ;;  %v6483_v45 = vld [vmem:[%s8896_s1 + $0x130] ss:$8 sps:$4 sm:$0xff]  }
 0x104   : > { %364 = vrot.lane.b32.xlu1 %v347_v48, %s6638_s5 }
 0x105   : > { %v337_v49 = vpop.permute.xlu1 %336  ;;  %v276_v50 = vpop.permute.xlu0 %275 }
 0x106   : > { %v6791_v52 = vsel %vm281_vm4, %v276_v50, %v278_v44 }
 0x107   : > { %v345_v53 = vsel %vm296_vm5, %v318_v51, %v6791_v52 }
 0x108   : > { %362 = vrot.lane.b32.xlu1 %v345_v53, %s6638_s5 }
 0x109   : > { %v341_v55 = vpop.permute.xlu1 %340  ;;  %v339_v56 = vpop.permute.xlu0 %338 }
 0x10a   : > { %v342_v57 = vsel %vm293_vm6, %v337_v49, %v339_v56  ;;  %v343_v58 = vsel %vm293_vm6, %v339_v56, %v341_v55  ;;  %v240_v49 = vmul.bf16 %v6705_v17, %v6725_v26 }
 0x10b   : > { %368 = vrot.lane.b32.xlu0 %v342_v57, %s6638_s5 }
 0x10c   : > { %370 = vrot.lane.b32.xlu1 %v343_v58, %s6638_s5  ;;  %v299_v51 = vsel %vm296_vm5, %v240_v49, %v6791_v52 }
 0x10d   : > { %v6803_v59 = vpop.permute.xlu1 %260  ;;  %v6805_v60 = vpop.permute.xlu0 %258 }
 0x10e   : > { %v267_v61 = vmul.bf16 %v6805_v60, %v6725_v26  ;;  %v6812_v62 = vsel %vm262_vm7, %v6805_v60, %v6803_v59  ;;  %v269_v2 = vmul.bf16 %v6803_v59, %v6720_v23 }
 0x10f   : > { %372 = vrot.lane.b32.xlu0 %v341_v55, %s6638_s5  ;;  %v268_v1 = vmul.bf16 %v6812_v62, %v6717_v22 }
 0x110   : > { %287 = vrot.lane.b32.xlu1 %v267_v61, %s6635_s28 }
 0x111   : > { %v6816_v63 = vpop.permute.xlu1 %493  ;;  %v6818_v0 = vpop.permute.xlu0 %491 }
 0x112   : > { %v6826_v3 = vsel %vm495_vm8, %v6818_v0, %v6816_v63  ;;  %v502_v6 = vmul.bf16 %v6816_v63, %v6720_v23  ;;  %v500_v10 = vmul.bf16 %v6818_v0, %v6725_v26  ;;  %vm1775_vm8 = vcmask 56320  }
 0x113   : > { %289 = vrot.lane.b32.xlu0 %v268_v1, %s6635_s28  ;;  %v501_v5 = vmul.bf16 %v6826_v3, %v6717_v22 }
 0x114   : > { %291 = vrot.lane.b32.xlu1 %v269_v2, %s6635_s28  ;;  %v531_v11 = vsel %vm296_vm5, %v502_v6, %v280_v43  ;;  %v527_v13 = vsel %vm296_vm5, %v500_v10, %v6791_v52  ;;  %v241_v43 = vmul.bf16 %v6708_v18, %v6717_v22  ;;  %v6484_v52 = vld [vmem:[%s8896_s1] ss:$8 sps:$4 sm:$0xff]  }
 0x115   : > { %v519_v8 = vpop.permute.xlu0 %518  ;;  %v529_v9 = vsel %vm296_vm5, %v501_v5, %v6781_v46  ;;  %v521_v12 = vpop.permute.xlu1 %520 }
 0x116   : > { %v524_v15 = vsel %vm293_vm6, %v519_v8, %v521_v12  ;;  %v303_v47 = vsel %vm296_vm5, %v241_v43, %v6781_v46 }
 0x117   : > { %545 = vrot.lane.b32.xlu0 %v529_v9, %s6640_s6  ;;  %v6485_v9 = vld [vmem:[%s8896_s1 + $0x260] ss:$8 sps:$4 sm:$0xff]  }
 0x118   : > { %547 = vrot.lane.b32.xlu1 %v531_v11, %s6640_s6 }
 0x119   : > { %v523_v14 = vpop.permute.xlu0 %522 }
 0x11a   : > { %v525_v16 = vsel %vm293_vm6, %v521_v12, %v523_v14 }
 0x11b   : > { %543 = vrot.lane.b32.xlu0 %v527_v13, %s6640_s6 }
 0x11c   : > { %549 = vrot.lane.b32.xlu1 %v524_v15, %s6640_s6 }
 0x11f   : > { %551 = vrot.lane.b32.xlu0 %v525_v16, %s6640_s6 }
 0x120   : > { %553 = vrot.lane.b32.xlu1 %v523_v14, %s6640_s6 }
 0x123   : > { %622 = vperm.xlu0 %6477, %v618_v19  }
 0x124   : > { %627 = vperm.xlu1 %6478, %v619_v21  }
 0x127   : > { %651 = vrot.lane.b32.xlu0 %v8900_v54, %s6634_s27 }
 0x175   : > { %v367_v23 = vpop.permute.xlu0 %366 }
 0x176   : > { %v365_v24 = vpop.permute.xlu1 %364 }
 0x177   : > { %v376_v25 = vsel %vm374_vm9, %v365_v24, %v367_v23 }
 0x178   : > { %391 = vmatprep.subr.bf16.mxu0 %v376_v25 }
 0x17a   : > { %v363_v28 = vpop.permute.xlu1 %362 }
 0x17b   : > { %v375_v29 = vsel %vm374_vm9, %v363_v28, %v365_v24 }
 0x17c   : > { %392 = vmatpush1.bf16.msra.mxu0 %v375_v29 }
 0x17d   : > { %v369_v31 = vpop.permute.xlu0 %368 }
 0x17e   : > { %v371_v32 = vpop.permute.xlu1 %370 }
 0x17f   : > { %v377_v36 = vsel %vm374_vm9, %v369_v31, %v371_v32  ;;  %v6486_v31 = vld [vmem:[%s8898_s3 + $0x80] ss:$8 sps:$4 sm:$0xff]  }
 0x180   : > { %v386_v44 = vsel %vm296_vm5, %v377_v36, 0  ;;  %6047 = vmatprep.subr.bf16.mxu1 %v6486_v31 }
 0x181   : > { %v373_v37 = vpop.permute.xlu0 %372 }
 0x182   : > { %v378_v38 = vsel %vm374_vm9, %v371_v32, %v373_v37  ;;  %v288_v42 = vpop.permute.xlu1 %287  ;;  %v6487_v32 = vld [vmem:[%s8898_s3] ss:$8 sps:$4 sm:$0xff]  }
 0x183   : > { %5789 = vmatprep.subr.msk.bf16.mxu0 %vm296_vm5, %v378_v38  ;;  %v6488_v38 = vld [vmem:[%s8898_s3 + $0x90] ss:$8 sps:$4 sm:$0xff]   ;;  %6048 = vmatpush3.bf16.msra.mxu1 %v6487_v32 }
 0x184   : > { %394 = vmatpush1.bf16.msra.mxu0 %v386_v44  ;;  %6049 = vmatprep.subr.bf16.mxu1 %v6488_v38 }
 0x185   : > { %448 = vmatprep.subr.bf16.mxu0 %v303_v47  ;;  %v290_v48 = vpop.permute.xlu0 %289 }
 0x186   : > { %v292_v50 = vpop.permute.xlu1 %291  ;;  %v294_v53 = vsel %vm293_vm6, %v288_v42, %v290_v48 }
 0x187   : > { %v295_v22 = vsel %vm293_vm6, %v290_v48, %v292_v50  ;;  %5790 = vmatmul.mubr.msk.bf16.vlgmr.msra.gmra.mrb[0].mxu0 %vm381_vm10, %v6483_v45  ;;  %v443_v26 = vsel %vm296_vm5, %v294_v53, 0  ;;  %v6489_v45 = vld [vmem:[%s8898_s3 + $0x10] ss:$8 sps:$4 sm:$0xff]   ;;  %v6490_v48 = vld [vmem:[%s8898_s3 + $0xa0] ss:$8 sps:$4 sm:$0xff]  }
 0x188   : > { %449 = vmatpush1.bf16.msra.mxu0 %v299_v51  ;;  %480 = vmatprep.mubr.bf16.mxu0 %v8900_v54  ;;  %v6491_v50 = vld [vmem:[%s8898_s3 + $0x20] ss:$8 sps:$4 sm:$0xff]   ;;  %v6493_v53 = vld [vmem:[%s8898_s3 + $0x30] ss:$8 sps:$4 sm:$0xff]  }
 0x189   : > { %5792 = vmatprep.subr.msk.bf16.mxu0 %vm296_vm5, %v295_v22  ;;  %v546_v46 = vpop.permute.xlu0 %545  ;;  %6050 = vmatpush3.bf16.msra.mxu1 %v6489_v45  ;;  %v6492_v22 = vld [vmem:[%s8898_s3 + $0xb0] ss:$8 sps:$4 sm:$0xff]  }
 0x18a   : > { %v548_v55 = vpop.permute.xlu1 %547  ;;  %6051 = vmatprep.subr.bf16.mxu1 %v6490_v48 }
 0x18b   : > { %v557_v56 = vsel %vm555_vm11, %v546_v46, %v548_v55  ;;  %v6495_v55 = vld [vmem:[%s8898_s3 + $0x40] ss:$8 sps:$4 sm:$0xff]  }
 0x18c   : > { %451 = vmatpush1.bf16.msra.mxu0 %v443_v26  ;;  %v6496_v26 = vld [vmem:[%s8898_s3 + $0xd0] ss:$8 sps:$4 sm:$0xff]  }
 0x18d   : > { %571 = vmatprep.subr.bf16.mxu0 %v557_v56  ;;  %v544_v57 = vpop.permute.xlu0 %543  ;;  %6052 = vmatpush3.bf16.msra.mxu1 %v6491_v50  ;;  %v6497_v56 = vld [vmem:[%s8898_s3 + $0x50] ss:$8 sps:$4 sm:$0xff]  }
 0x18e   : > { %v550_v58 = vpop.permute.xlu1 %549  ;;  %v556_v2 = vsel %vm555_vm11, %v544_v57, %v546_v46  ;;  %6053 = vmatprep.subr.bf16.mxu1 %v6492_v22  ;;  %v6494_v46 = vld [vmem:[%s8898_s3 + $0xc0] ss:$8 sps:$4 sm:$0xff]  }
 0x18f   : > { %v6498_v57 = vld [vmem:[%s8898_s3 + $0xe0] ss:$8 sps:$4 sm:$0xff]  }
 0x191   : > { %v552_v61 = vpop.permute.xlu0 %551  ;;  %6054 = vmatpush3.bf16.msra.mxu1 %v6493_v53 }
 0x192   : > { %v554_v1 = vpop.permute.xlu1 %553  ;;  %v558_v6 = vsel %vm555_vm11, %v550_v58, %v552_v61  ;;  %6055 = vmatprep.subr.bf16.mxu1 %v6494_v46  ;;  %v6499_v58 = vld [vmem:[%s8898_s3 + $0x60] ss:$8 sps:$4 sm:$0xff]  }
 0x193   : > { %v559_v5 = vsel %vm555_vm11, %v552_v61, %v554_v1  ;;  %5793 = vmatmul.mubr.msk.bf16.vlgmr.msra.gmra.mrb[0].mxu0 %vm381_vm10, %v6484_v52  ;;  %v566_v8 = vsel %vm296_vm5, %v558_v6, 0  ;;  %v6500_v52 = vld [vmem:[%s8898_s3 + $0xf0] ss:$8 sps:$4 sm:$0xff]  }
 0x194   : > { %572 = vmatpush1.bf16.msra.mxu0 %v556_v2  ;;  %603 = vmatprep.mubr.bf16.mxu0 %v8900_v54  ;;  %v6501_v61 = vld [vmem:[%s8898_s3 + $0x70] ss:$8 sps:$4 sm:$0xff]  }
 0x195   : > { %5797 = vmatprep.subr.msk.bf16.mxu0 %vm296_vm5, %v559_v5  ;;  %6056 = vmatpush3.bf16.msra.mxu1 %v6495_v55  ;;  %vm1770_vm5 = vcmask 23552  }
 0x196   : > { %6057 = vmatprep.subr.bf16.mxu1 %v6496_v26  ;;  %v6502_v26 = vld [vmem:[%s8896_s1 + $0x140] ss:$8 sps:$4 sm:$0xff]  }
 0x198   : > { %574 = vmatpush1.bf16.msra.mxu0 %v566_v8 }
 0x199   : > { %6058 = vmatpush3.bf16.msra.mxu1 %v6497_v56 }
 0x19a   : > { %6059 = vmatprep.subr.bf16.mxu1 %v6498_v57 }
 0x19d   : > { %6060 = vmatpush3.bf16.msra.mxu1 %v6499_v58 }
 0x19e   : > { %6061 = vmatprep.subr.bf16.mxu1 %v6500_v52 }
 0x19f   : > { %5798 = vmatmul.mubr.msk.bf16.vlgmr.msra.gmra.mrb[0].mxu0 %vm381_vm10, %v6485_v9  ;;  %vm2140_vm10 = vcmask 31744  }
 0x1a0   : > { %6177 = vmatprep.mubr.msk.bf16.mxu0 %vm8904_vm14, %v6502_v26 }
 0x1a1   : > { %6062 = vmatpush3.bf16.msra.mxu1 %v6501_v61 }
 0x1a2   : > { %v623_v10 = vpop.permute.xlu0 %622 }
 0x1a3   : > { %v628_v12 = vpop.permute.xlu1 %627 }
 0x1a6   : > { %v652_v49 = vpop.permute.xlu0 %651 }
 0x1a7   : > { %v660_v51 = vmax.bf16 %v8900_v54, %v652_v49 }
 0x272   : > { %v605_v11 = vpop.f32.mrb[0].mxu0 }
 0x273   : > { %v630_v13 = vadd.f32 %v623_v10, %v605_v11  ;;  %v607_v14 = vpop.f32.mrb[1].mxu0 }
 0x274   : > { %v631_v15 = vadd.f32 %v623_v10, %v607_v14  ;;  %v609_v16 = vpop.f32.mrb[2].mxu0 }
 0x275   : > { %v634_v19 = vmul.f32 0.2, %v630_v13  ;;  %v632_v21 = vadd.f32 %v628_v12, %v609_v16  ;;  %v611_v23 = vpop.f32.mrb[3].mxu0 }
 0x276   : > { %v635_v24 = vmul.f32 0.2, %v631_v15  ;;  %v633_v25 = vadd.f32 %v628_v12, %v611_v23  ;;  %v861_v23 = vsub.s32 1, %v6687_v4 }
 0x277   : > { %v636_v28 = vmul.f32 0.2, %v632_v21  ;;  %v638_v36 = vmax.f32 %v630_v13, %v634_v19  ;;  %v846_v19 = vld [vmem:[%s8898_s3 + $0x1d0] sm:$0x2] }
 0x278   : > { %v637_v29 = vmul.f32 0.2, %v633_v25  ;;  %v639_v42 = vmax.f32 %v631_v15, %v635_v24 }
 0x279   : > { %v640_v37 = vmax.f32 %v632_v21, %v636_v28  ;;  %v864_v21 = vshrl.u32 %v846_v19, 16  ;;  %v857_v28 = vpack.i.b16 %v846_v19, %v846_v19  ;;  %v6505_v19 = vld [vmem:[%s8896_s1 + $0x20] ss:$8 sps:$4 sm:$0xff]  }
 0x27a   : > { %v641_v43 = vmax.f32 %v633_v25, %v637_v29 }
 0x27b   : > { %v6904_v44 = vpack.c.bf16 %v640_v37, %v638_v36  ;;  %v865_v24 = vpack.i.b16 %v864_v21, %v864_v21  ;;  %v6966_v29 = vrot.slane %v857_v28, %v861_v23  ;;  %v6507_v28 = vld [vmem:[%s8896_s1 + $0x280] ss:$8 sps:$4 sm:$0xff]  }
 0x27c   : > { %v6909_v47 = vpack.c.bf16 %v641_v43, %v639_v42 }
 0x27d   : > { %v870_v25 = vrot.slane %v865_v24, %v861_v23  ;;  %v6506_v23 = vld [vmem:[%s8896_s1 + $0x270] ss:$8 sps:$4 sm:$0xff]  }
 0x27e   : > { %649 = vrot.lane.b32.xlu1 %v6909_v47, %s6634_s27 }
 0x282   : > { %647 = vrot.lane.b32.xlu1 %v6904_v44, %s6634_s27 }
 0x286   : > { %668 = vrot.lane.b32.xlu1 %v660_v51, %s6638_s5 }
 0x2f0   : > { %v650_v1 = vpop.permute.xlu1 %649 }
 0x2f1   : > { %v654_v2 = vsel %vm281_vm4, %v650_v1, %v652_v49 }
 0x2f2   : > { %v658_v5 = vmax.bf16 %v654_v2, %v6909_v47 }
 0x2f4   : > { %v648_v6 = vpop.permute.xlu1 %647  ;;  %666 = vrot.lane.b32.xlu0 %v658_v5, %s6638_s5 }
 0x2f5   : > { %v653_v8 = vsel %vm281_vm4, %v648_v6, %v650_v1  ;;  %v1139_v6 = vld [vmem:[%s8897_s2 + $0x10] sm:$0xff] }
 0x2f6   : > { %v657_v9 = vmax.bf16 %v653_v8, %v6904_v44  ;;  %v1140_v8 = vld [vmem:[%s8897_s2 + $0x18] sm:$0xff] }
 0x2f8   : > { %664 = vrot.lane.b32.xlu0 %v657_v9, %s6638_s5  ;;  %v669_v10 = vpop.permute.xlu1 %668 }
 0x2fc   : > { %893 = vrot.lane.b32.xlu0 %v870_v25, %s6641_s21 }
 0x300   : > { %889 = vrot.lane.b32.xlu0 %v6966_v29, %s6642_s22 }
 0x366   : > { %v667_v11 = vpop.permute.xlu0 %666 }
 0x367   : > { %v671_v12 = vsel %vm374_vm9, %v667_v11, %v669_v10  ;;  %v1142_v10 = vld [vmem:[%s8897_s2 + $0x28] sm:$0xff] }
 0x368   : > { %v675_v13 = vmax.bf16 %v671_v12, %v658_v5 }
 0x36a   : > { %836 = vmatprep.mubr.bf16.mxu1 %v675_v13  ;;  %v665_v14 = vpop.permute.xlu0 %664 }
 0x36b   : > { %v670_v15 = vsel %vm374_vm9, %v665_v14, %v667_v11  ;;  %v6503_v14 = vld [vmem:[%s8896_s1 + $0x150] ss:$8 sps:$4 sm:$0xff]  }
 0x36c   : > { %v674_v16 = vmax.bf16 %v670_v15, %v657_v9  ;;  %v1141_v9 = vld [vmem:[%s8897_s2 + $0x20] sm:$0xff]  ;;  %v6504_v15 = vld [vmem:[%s8896_s1 + $0x10] ss:$8 sps:$4 sm:$0xff]  }
 0x36e   : > { %837 = vmatmul.mubr.bf16.vlgmr.msra.gmra.mrb[0].mxu1 %v674_v16  ;;  %v6973_v49 = vpop.permute.xlu0 %893 }
 0x372   : > { %v6982_v53 = vpop.permute.xlu0 %889 }
 0x441   : > { %v6063_v31 = vpop.f32.mrb[0].mxu1 }
 0x442   : > { %v6064_v32 = vpop.f32.mrb[1].mxu1 }
 0x443   : > { %v6065_v36 = vadd.f32 %v6064_v32, %v6063_v31  ;;  %v6066_v37 = vpop.f32.mrb[2].mxu1 }
 0x444   : > { %v6067_v38 = vpop.f32.mrb[3].mxu1 }
 0x445   : > { %v6068_v42 = vadd.f32 %v6067_v38, %v6066_v37 }
 0x447   : > { %v845_v43 = vpack.c.bf16 %v6068_v42, %v6065_v36 }
 0x449   : > { %848 = vrot.lane.b32.xlu1 %v845_v43, %s6643_s25 }
 0x44d   : > { %1049 = vrot.lane.b32.xlu1 %v870_v25, %s6630_s23  ;;  %s6644_s23 = smov 120  }
 0x4bb   : > { %v849_v45 = vpop.permute.xlu1 %848 }
 0x4bc   : > { %v852_v48 = vsel %vm850_vm12, 0, %v849_v45 }
 0x4bd   : > { %v854_v50 = vsel %vm853_vm13, %v852_v48, 0 }
 0x4be   : > { %877 = vrot.lane.b32.xlu1 %v854_v50, %s6634_s27  ;;  %v896_v22 = vmul.bf16 %v6973_v49, %v854_v50  ;;  %v892_v55 = vmul.bf16 %v6982_v53, %v854_v50  ;;  %v863_v13 = vmul.bf16 %v6966_v29, %v854_v50 }
 0x4bf   : > { %v6979_v51 = vpop.permute.xlu1 %1049 }
 0x4c0   : > { %898 = vrot.lane.b32.xlu0 %v896_v22, %s6635_s28  ;;  %v1052_v46 = vmul.bf16 %v6979_v51, %v854_v50  ;;  %v6509_v22 = vld [vmem:[%s8898_s3 + $0x110] ss:$8 sps:$4 sm:$0xff]  }
 0x4c2   : > { %872 = vrot.lane.b32.xlu1 %v870_v25, %s6636_s29 }
 0x4c4   : > { %1045 = vrot.lane.b32.xlu0 %v6966_v29, %s6633_s26  ;;  %s6645_s26 = smov 5  }
 0x4c6   : > { %1054 = vrot.lane.b32.xlu1 %v1052_v46, %s6635_s28 }
 0x4c8   : > { %915 = vrot.lane.b32.xlu0 %v892_v55, %s6644_s23 }
 0x530   : > { %v878_v56 = vpop.permute.xlu1 %877 }
 0x531   : > { %917 = vrot.lane.b32.xlu1 %v878_v56, %s6644_s23 }
 0x532   : > { %v899_v57 = vpop.permute.xlu0 %898 }
 0x533   : > { %919 = vrot.lane.b32.xlu0 %v899_v57, %s6644_s23 }
 0x534   : > { %v6996_v58 = vpop.permute.xlu1 %872 }
 0x535   : > { %v875_v52 = vmul.bf16 %v6996_v58, %v854_v50 }
 0x536   : > { %v6999_v61 = vpop.permute.xlu0 %1045 }
 0x537   : > { %881 = vrot.lane.b32.xlu1 %v875_v52, %s6635_s28  ;;  %v1048_v1 = vmul.bf16 %v6999_v61, %v854_v50  ;;  %v6508_v50 = vld [vmem:[%s8898_s3 + $0x100] ss:$8 sps:$4 sm:$0xff]  }
 0x538   : > { %v1055_v5 = vpop.permute.xlu1 %1054  ;;  %6201 = vmatprep.subr.bf16.mxu1 %v6508_v50 }
 0x539   : > { %1071 = vrot.lane.b32.xlu0 %v1048_v1, %s6638_s5  ;;  %6202 = vmatpush3.bf16.msra.mxu1 %v6508_v50 }
 0x53a   : > { %v916_v2 = vpop.permute.xlu0 %915  ;;  %6203 = vmatprep.subr.bf16.mxu1 %v6509_v22 }
 0x53b   : > { %1073 = vrot.lane.b32.xlu1 %v878_v56, %s6638_s5  ;;  %6171 = vmatprep.subr.bf16.mxu0 %v916_v2 }
 0x53c   : > { %6172 = vmatpush3.bf16.msra.mxu0 %v916_v2  ;;  %v6510_v2 = vld [vmem:[%s8898_s3 + $0x120] ss:$8 sps:$4 sm:$0xff]  }
 0x53d   : > { %1075 = vrot.lane.b32.xlu0 %v1055_v5, %s6638_s5  ;;  %6204 = vmatpush3.bf16.msra.mxu1 %v6509_v22 }
 0x53e   : > { %6205 = vmatprep.subr.bf16.mxu1 %v6510_v2 }
 0x53f   : > { %1145 = vperm.xlu1 %6478, %v1139_v6  }
 0x541   : > { %1150 = vperm.xlu0 %6477, %v1140_v8   ;;  %6206 = vmatpush3.bf16.msra.mxu1 %v6510_v2 }
 0x543   : > { %1155 = vperm.xlu1 %6478, %v1141_v9  }
 0x545   : > { %1160 = vperm.xlu0 %6477, %v1142_v10  }
 0x5a3   : > { %v918_v11 = vpop.permute.xlu1 %917 }
 0x5a4   : > { %6173 = vmatprep.subr.bf16.mxu0 %v918_v11 }
 0x5a5   : > { %6174 = vmatpush3.bf16.msra.mxu0 %v918_v11  ;;  %v920_v12 = vpop.permute.xlu0 %919 }
 0x5a6   : > { %6175 = vmatprep.subr.bf16.mxu0 %v920_v12 }
 0x5a9   : > { %6176 = vmatpush3.bf16.msra.mxu0 %v920_v12  ;;  %v882_v16 = vpop.permute.xlu1 %881 }
 0x5aa   : > { %6181 = vmatprep.subr.bf16.mxu0 %v863_v13 }
 0x5ab   : > { %v1072_v21 = vpop.permute.xlu0 %1071 }
 0x5ac   : > { %6178 = vmatmul.mubr.msk.bf16.vlgmr.msra.gmra.mrb[4].mxu0 %vm8904_vm14, %v6503_v14  ;;  %v6511_v14 = vld [vmem:[%s8898_s3 + $0x130] ss:$8 sps:$4 sm:$0xff]  }
 0x5ad   : > { %6182 = vmatpush3.bf16.msra.mxu0 %v863_v13  ;;  %6187 = vmatprep.mubr.msk.bf16.mxu0 %vm8904_vm14, %v6504_v15  ;;  %v1074_v24 = vpop.permute.xlu1 %1073 }
 0x5ae   : > { %6183 = vmatprep.subr.bf16.mxu0 %v878_v56  ;;  %6207 = vmatprep.subr.bf16.mxu1 %v6511_v14 }
 0x5af   : > { %v1076_v25 = vpop.permute.xlu0 %1075  ;;  %6208 = vmatpush3.bf16.msra.mxu1 %v6511_v14 }
 0x5b1   : > { %6184 = vmatpush3.bf16.msra.mxu0 %v878_v56 }
 0x5b2   : > { %6185 = vmatprep.subr.bf16.mxu0 %v882_v16 }
 0x5b5   : > { %6186 = vmatpush3.bf16.msra.mxu0 %v882_v16 }
 0x5b6   : > { %6191 = vmatprep.subr.bf16.mxu0 %v1072_v21 }
 0x5b8   : > { %6188 = vmatmul.mubr.msk.bf16.vlgmr.msra.gmra.mrb[4].mxu0 %vm8904_vm14, %v6505_v19 }
 0x5b9   : > { %6192 = vmatpush3.bf16.msra.mxu0 %v1072_v21  ;;  %6197 = vmatprep.mubr.msk.bf16.mxu0 %vm8904_vm14, %v6506_v23 }
 0x5ba   : > { %6193 = vmatprep.subr.bf16.mxu0 %v1074_v24 }
 0x5bd   : > { %6194 = vmatpush3.bf16.msra.mxu0 %v1074_v24 }
 0x5be   : > { %6195 = vmatprep.subr.bf16.mxu0 %v1076_v25  ;;  %v1146_v31 = vpop.permute.xlu1 %1145 }
 0x5c0   : > { %v1151_v32 = vpop.permute.xlu0 %1150 }
 0x5c1   : > { %6196 = vmatpush3.bf16.msra.mxu0 %v1076_v25 }
 0x5c2   : > { %v1156_v36 = vpop.permute.xlu1 %1155 }
 0x5c4   : > { %6198 = vmatmul.mubr.msk.bf16.vlgmr.msra.gmra.mrb[4].mxu0 %vm8904_vm14, %v6507_v28  ;;  %v1161_v43 = vpop.permute.xlu0 %1160  ;;  %vm2537_vm14 = vcmask 7168  }
 0x697   : > { %v6199_v37 = vpop.f32.mrb[4].mxu0 }
 0x698   : > { %v1165_v38 = vadd.f32 %v6199_v37, %v1156_v36  ;;  %v1120_v42 = vpop.f32.mrb[5].mxu0 }
 0x699   : > { %v1163_v45 = vadd.f32 %v1146_v31, %v1120_v42  ;;  %v6200_v48 = vpop.f32.mrb[6].mxu0  ;;  %v1293_v31 = vld [vmem:[%s8898_s3 + $0x1d0] sm:$0x4]  ;;  %v1315_v42 = vsub.s32 2, %v6687_v4 }
 0x69a   : > { %v1169_v46 = vmul.f32 0.2, %v1165_v38  ;;  %v1166_v55 = vadd.f32 %v6200_v48, %v1161_v43  ;;  %v1123_v26 = vpop.f32.mrb[7].mxu0 }
 0x69b   : > { %v1167_v56 = vmul.f32 0.2, %v1163_v45  ;;  %v1164_v57 = vadd.f32 %v1151_v32, %v1123_v26  ;;  %v1319_v32 = vshrl.u32 %v1293_v31, 16 }
 0x69c   : > { %v1170_v52 = vmul.f32 0.2, %v1166_v55  ;;  %v1173_v5 = vmax.f32 %v1165_v38, %v1169_v46  ;;  %v1311_v38 = vpack.i.b16 %v1293_v31, %v1293_v31 }
 0x69d   : > { %v1168_v1 = vmul.f32 0.2, %v1164_v57  ;;  %v1171_v8 = vmax.f32 %v1163_v45, %v1167_v56  ;;  %v1320_v45 = vpack.i.b16 %v1319_v32, %v1319_v32 }
 0x69e   : > { %v1174_v6 = vmax.f32 %v1166_v55, %v1170_v52  ;;  %v7070_v46 = vrot.slane %v1311_v38, %v1315_v42 }
 0x69f   : > { %v1172_v9 = vmax.f32 %v1164_v57, %v1168_v1  ;;  %v1325_v55 = vrot.slane %v1320_v45, %v1315_v42 }
 0x6a0   : > { %v7048_v10 = vpack.c.bf16 %v1174_v6, %v1173_v5 }
 0x6a1   : > { %v7050_v11 = vpack.c.bf16 %v1172_v9, %v1171_v8 }
 0x6a2   : > { %v1182_v12 = vsel %vm1177_vm15, %v7048_v10, 0 }
 0x6a3   : > { %1188 = vrot.lane.b32.xlu0 %v1182_v12, %s6634_s27  ;;  %v1179_v13 = vsel %vm1177_vm15, %v7050_v11, 0 }
 0x6a4   : > { %1186 = vrot.lane.b32.xlu1 %v1179_v13, %s6634_s27 }
 0x715   : > { %v1189_v15 = vpop.permute.xlu0 %1188 }
 0x716   : > { %v1193_v16 = vmax.bf16 %v1189_v15, %v1182_v12  ;;  %v1187_v19 = vpop.permute.xlu1 %1186 }
 0x717   : > { %v1192_v21 = vmax.bf16 %v1187_v19, %v1179_v13 }
 0x718   : > { %1198 = vrot.lane.b32.xlu0 %v1193_v16, %s6644_s23 }
 0x719   : > { %1196 = vrot.lane.b32.xlu1 %v1192_v21, %s6644_s23 }
 0x78a   : > { %v1199_v23 = vpop.permute.xlu0 %1198 }
 0x78b   : > { %v1197_v24 = vpop.permute.xlu1 %1196  ;;  %v1203_v28 = vmax.bf16 %v1199_v23, %v1193_v16  ;;  %v6512_v23 = vld [vmem:[%s8896_s1 + $0x160] ss:$8 sps:$4 sm:$0xff]  }
 0x78c   : > { %v1202_v25 = vmax.bf16 %v1197_v24, %v1192_v21 }
 0x78e   : > { %6209 = vmatprep.mubr.msk.bf16.mxu1 %vm1177_vm15, %v1202_v25 }
 0x78f   : > { %6210 = vmatmul.mubr.msk.bf16.vlgmr.msra.gmra.mrb[4].mxu1 %vm1177_vm15, %v1203_v28 }
 0x790   : > { %6225 = vmatprep.mubr.msk.bf16.mxu1 %vm555_vm11, %v6512_v23 }
 0x862   : > { %v6211_v36 = vpop.f32.mrb[4].mxu1 }
 0x863   : > { %v1276_v37 = vpop.f32.mrb[5].mxu1 }
 0x864   : > { %v6212_v43 = vpop.f32.mrb[6].mxu1 }
 0x865   : > { %v1292_v48 = vpack.c.bf16 %v6212_v43, %v6211_v36  ;;  %v1279_v50 = vpop.f32.mrb[7].mxu1 }
 0x866   : > { %v1291_v22 = vpack.c.bf16 %v1279_v50, %v1276_v37  ;;  %v1633_v50 = vld [vmem:[%s8897_s2 + $0x30] sm:$0xff] }
 0x867   : > { %1298 = vrot.lane.b32.xlu0 %v1292_v48, %s6645_s26 }
 0x868   : > { %1296 = vrot.lane.b32.xlu1 %v1291_v22, %s6645_s26  ;;  %v1634_v22 = vld [vmem:[%s8897_s2 + $0x38] sm:$0xff] }
 0x86b   : > { %1353 = vrot.lane.b32.xlu0 %v7070_v46, %s6646_s8 }
 0x86c   : > { %1358 = vrot.lane.b32.xlu1 %v1325_v55, %s6647_s9 }
 0x870   : > { %1529 = vrot.lane.b32.xlu1 %v1325_v55, %s6641_s21  ;;  %s6648_s21 = smov 124  }
 0x8d9   : > { %v1299_v26 = vpop.permute.xlu0 %1298 }
 0x8da   : > { %v1304_v56 = vsel %vm1300_vm1, 0, %v1299_v26  ;;  %v1297_v57 = vpop.permute.xlu1 %1296  ;;  %v1636_v26 = vld [vmem:[%s8897_s2 + $0x48] sm:$0xff] }
 0x8db   : > { %v7079_v52 = vsel %vm1305_vm2, %v1304_v56, 0  ;;  %v1302_v1 = vsel %vm1300_vm1, 0, %v1297_v57 }
 0x8dc   : > { %v7083_v2 = vsel %vm1305_vm2, %v1302_v1, 0  ;;  %1336 = vrot.lane.b32.xlu1 %v7079_v52, %s6634_s27 }
 0x8dd   : > { %1334 = vrot.lane.b32.xlu0 %v7083_v2, %s6634_s27  ;;  %v7097_v9 = vpop.permute.xlu0 %1353 }
 0x8de   : > { %v7089_v5 = vpop.permute.xlu1 %1358  ;;  %v1357_v12 = vmul.bf16 %v7097_v9, %v7079_v52  ;;  %v1356_v13 = vmul.bf16 %v7097_v9, %v7083_v2 }
 0x8df   : > { %v1362_v6 = vmul.bf16 %v7089_v5, %v7079_v52  ;;  %v1361_v8 = vmul.bf16 %v7089_v5, %v7083_v2 }
 0x8e1   : > { %1367 = vrot.lane.b32.xlu1 %v1362_v6, %s6635_s28  ;;  %1365 = vrot.lane.b32.xlu0 %v1361_v8, %s6635_s28  ;;  %v1317_v8 = vmul.bf16 %v7070_v46, %v7083_v2 }
 0x8e2   : > { %v7106_v14 = vpop.permute.xlu1 %1529 }
 0x8e3   : > { %v1532_v15 = vmul.bf16 %v7106_v14, %v7083_v2  ;;  %v1533_v16 = vmul.bf16 %v7106_v14, %v7079_v52 }
 0x8e5   : > { %1524 = vrot.lane.b32.xlu1 %v7070_v46, %s6642_s22  ;;  %1327 = vrot.lane.b32.xlu0 %v1325_v55, %s6636_s29  ;;  %v1635_v55 = vld [vmem:[%s8897_s2 + $0x40] sm:$0xff]  ;;  %s6649_s22 = smov 3  }
 0x8e9   : > { %1387 = vrot.lane.b32.xlu1 %v1357_v12, %s6648_s21  ;;  %1385 = vrot.lane.b32.xlu0 %v1356_v13, %s6648_s21  ;;  %v6513_v12 = vld [vmem:[%s8896_s1 + $0x170] ss:$8 sps:$4 sm:$0xff]  }
 0x8ea   : > { %v6514_v13 = vld [vmem:[%s8896_s1 + $0x30] ss:$8 sps:$4 sm:$0xff]  }
 0x8ed   : > { %1536 = vrot.lane.b32.xlu0 %v1532_v15, %s6635_s28  ;;  %v1318_v15 = vmul.bf16 %v7070_v46, %v7079_v52 }
 0x8f1   : > { %1538 = vrot.lane.b32.xlu0 %v1533_v16, %s6635_s28 }
 0x94e   : > { %v7116_v19 = vpop.permute.xlu1 %1336 }
 0x94f   : > { %v1335_v21 = vpop.permute.xlu0 %1334 }
 0x950   : > { %1389 = vrot.lane.b32.xlu1 %v1335_v21, %s6648_s21 }
 0x953   : > { %v1366_v24 = vpop.permute.xlu0 %1365  ;;  %v1368_v25 = vpop.permute.xlu1 %1367 }
 0x954   : > { %1393 = vrot.lane.b32.xlu0 %v1366_v24, %s6648_s21  ;;  %1391 = vrot.lane.b32.xlu1 %v7116_v19, %s6648_s21  ;;  %v6516_v24 = vld [vmem:[%s8896_s1 + $0x290] ss:$8 sps:$4 sm:$0xff]  }
 0x957   : > { %v7126_v28 = vpop.permute.xlu0 %1327  ;;  %v7128_v31 = vpop.permute.xlu1 %1524 }
 0x958   : > { %1395 = vrot.lane.b32.xlu1 %v1368_v25, %s6648_s21  ;;  %v1330_v32 = vmul.bf16 %v7126_v28, %v7083_v2  ;;  %v1331_v36 = vmul.bf16 %v7126_v28, %v7079_v52  ;;  %v1527_v38 = vmul.bf16 %v7128_v31, %v7083_v2  ;;  %v1528_v43 = vmul.bf16 %v7128_v31, %v7079_v52  ;;  %v6515_v52 = vld [vmem:[%s8896_s1 + $0x40] ss:$8 sps:$4 sm:$0xff]  }
 0x95a   : > { %1342 = vrot.lane.b32.xlu0 %v1330_v32, %s6635_s28 }
 0x95b   : > { %v1386_v37 = vpop.permute.xlu0 %1385  ;;  %v1388_v42 = vpop.permute.xlu1 %1387 }
 0x95c   : > { %6213 = vmatprep.subr.bf16.mxu1 %v1386_v37  ;;  %1344 = vrot.lane.b32.xlu1 %v1331_v36, %s6635_s28 }
 0x95d   : > { %6214 = vmatpush3.bf16.msra.mxu1 %v1386_v37  ;;  %v6517_v37 = vld [vmem:[%s8896_s1 + $0x2a0] ss:$8 sps:$4 sm:$0xff]  }
 0x95e   : > { %1556 = vrot.lane.b32.xlu0 %v1527_v38, %s6644_s23  ;;  %6215 = vmatprep.subr.bf16.mxu1 %v1388_v42 }
 0x95f   : > { %v1537_v45 = vpop.permute.xlu0 %1536 }
 0x960   : > { %1558 = vrot.lane.b32.xlu1 %v1528_v43, %s6644_s23 }
 0x961   : > { %6216 = vmatpush3.bf16.msra.mxu1 %v1388_v42 }
 0x962   : > { %1560 = vrot.lane.b32.xlu0 %v1335_v21, %s6644_s23 }
 0x963   : > { %v1539_v48 = vpop.permute.xlu0 %1538 }
 0x964   : > { %1562 = vrot.lane.b32.xlu1 %v7116_v19, %s6644_s23 }
 0x966   : > { %1564 = vrot.lane.b32.xlu0 %v1537_v45, %s6644_s23 }
 0x968   : > { %1566 = vrot.lane.b32.xlu1 %v1539_v48, %s6644_s23 }
 0x96a   : > { %1639 = vperm.xlu0 %6477, %v1633_v50  }
 0x96c   : > { %1644 = vperm.xlu1 %6478, %v1634_v22  }
 0x96e   : > { %1649 = vperm.xlu0 %6477, %v1635_v55  }
 0x970   : > { %1654 = vperm.xlu1 %6478, %v1636_v26  }
 0x9c2   : > { %v1390_v56 = vpop.permute.xlu1 %1389 }
 0x9c3   : > { %6217 = vmatprep.subr.bf16.mxu1 %v1390_v56 }
 0x9c4   : > { %6218 = vmatpush3.bf16.msra.mxu1 %v1390_v56  ;;  %v6518_v56 = vld [vmem:[%s8898_s3 + $0x140] ss:$8 sps:$4 sm:$0xff]  }
 0x9c5   : > { %6261 = vmatprep.subr.bf16.mxu0 %v6518_v56 }
 0x9c6   : > { %v1392_v57 = vpop.permute.xlu1 %1391  ;;  %v1394_v1 = vpop.permute.xlu0 %1393  ;;  %6262 = vmatpush3.bf16.msra.mxu0 %v6518_v56 }
 0x9c7   : > { %6219 = vmatprep.subr.bf16.mxu1 %v1392_v57 }
 0x9c8   : > { %6220 = vmatpush3.bf16.msra.mxu1 %v1392_v57 }
 0x9c9   : > { %6221 = vmatprep.subr.bf16.mxu1 %v1394_v1 }
 0x9ca   : > { %v1396_v6 = vpop.permute.xlu1 %1395 }
 0x9cc   : > { %6222 = vmatpush3.bf16.msra.mxu1 %v1394_v1  ;;  %v1343_v2 = vpop.permute.xlu0 %1342 }
 0x9cd   : > { %6223 = vmatprep.subr.bf16.mxu1 %v1396_v6 }
 0x9ce   : > { %v1345_v16 = vpop.permute.xlu1 %1344 }
 0x9d0   : > { %6224 = vmatpush3.bf16.msra.mxu1 %v1396_v6  ;;  %v1557_v23 = vpop.permute.xlu0 %1556 }
 0x9d1   : > { %6229 = vmatprep.subr.bf16.mxu1 %v1317_v8 }
 0x9d3   : > { %6226 = vmatmul.mubr.msk.bf16.vlgmr.msra.gmra.mrb[8].mxu1 %vm555_vm11, %v6513_v12 }
 0x9d4   : > { %6230 = vmatpush3.bf16.msra.mxu1 %v1317_v8  ;;  %6241 = vmatprep.mubr.msk.bf16.mxu1 %vm555_vm11, %v6514_v13 }
 0x9d5   : > { %6231 = vmatprep.subr.bf16.mxu1 %v1318_v15 }
 0x9d8   : > { %6232 = vmatpush3.bf16.msra.mxu1 %v1318_v15 }
 0x9d9   : > { %6233 = vmatprep.subr.bf16.mxu1 %v1335_v21 }
 0x9dc   : > { %6234 = vmatpush3.bf16.msra.mxu1 %v1335_v21  ;;  %v1559_v21 = vpop.permute.xlu1 %1558 }
 0x9dd   : > { %6235 = vmatprep.subr.bf16.mxu1 %v7116_v19 }
 0x9e0   : > { %6236 = vmatpush3.bf16.msra.mxu1 %v7116_v19  ;;  %v1561_v19 = vpop.permute.xlu0 %1560  ;;  %v1563_v25 = vpop.permute.xlu1 %1562 }
 0x9e1   : > { %6237 = vmatprep.subr.bf16.mxu1 %v1343_v2 }
 0x9e4   : > { %6238 = vmatpush3.bf16.msra.mxu1 %v1343_v2  ;;  %v1565_v32 = vpop.permute.xlu0 %1564  ;;  %v1567_v36 = vpop.permute.xlu1 %1566 }
 0x9e5   : > { %6239 = vmatprep.subr.bf16.mxu1 %v1345_v16 }
 0x9e8   : > { %6240 = vmatpush3.bf16.msra.mxu1 %v1345_v16 }
 0x9e9   : > { %6245 = vmatprep.subr.bf16.mxu1 %v1557_v23  ;;  %v1640_v38 = vpop.permute.xlu0 %1639 }
 0x9eb   : > { %6242 = vmatmul.mubr.msk.bf16.vlgmr.msra.gmra.mrb[8].mxu1 %vm555_vm11, %v6515_v52  ;;  %v1645_v42 = vpop.permute.xlu1 %1644 }
 0x9ec   : > { %6246 = vmatpush3.bf16.msra.mxu1 %v1557_v23  ;;  %6257 = vmatprep.mubr.msk.bf16.mxu1 %vm555_vm11, %v6516_v24 }
 0x9ed   : > { %6247 = vmatprep.subr.bf16.mxu1 %v1559_v21  ;;  %v1650_v43 = vpop.permute.xlu0 %1649 }
 0x9ef   : > { %v1655_v22 = vpop.permute.xlu1 %1654 }
 0x9f0   : > { %6248 = vmatpush3.bf16.msra.mxu1 %v1559_v21 }
 0x9f1   : > { %6249 = vmatprep.subr.bf16.mxu1 %v1561_v19 }
 0x9f4   : > { %6250 = vmatpush3.bf16.msra.mxu1 %v1561_v19 }
 0x9f5   : > { %6251 = vmatprep.subr.bf16.mxu1 %v1563_v25 }
 0x9f8   : > { %6252 = vmatpush3.bf16.msra.mxu1 %v1563_v25 }
 0x9f9   : > { %6253 = vmatprep.subr.bf16.mxu1 %v1565_v32 }
 0x9fc   : > { %6254 = vmatpush3.bf16.msra.mxu1 %v1565_v32 }
 0x9fd   : > { %6255 = vmatprep.subr.bf16.mxu1 %v1567_v36 }
 0xa00   : > { %6256 = vmatpush3.bf16.msra.mxu1 %v1567_v36 }
 0xa03   : > { %6258 = vmatmul.mubr.msk.bf16.vlgmr.msra.gmra.mrb[8].mxu1 %vm555_vm11, %v6517_v37 }
 0xad6   : > { %v6259_v45 = vpop.f32.mrb[8].mxu1 }
 0xad7   : > { %v1659_v48 = vadd.f32 %v6259_v45, %v1650_v43  ;;  %v1614_v50 = vpop.f32.mrb[9].mxu1 }
 0xad8   : > { %v1657_v55 = vadd.f32 %v1640_v38, %v1614_v50  ;;  %v6260_v26 = vpop.f32.mrb[10].mxu1  ;;  %v1763_v50 = vld [vmem:[%s8898_s3 + $0x1d0] sm:$0x8] }
 0xad9   : > { %v1663_v57 = vmul.f32 0.2, %v1659_v48  ;;  %v1660_v1 = vadd.f32 %v6260_v26, %v1655_v22  ;;  %v1617_v6 = vpop.f32.mrb[11].mxu1  ;;  %v1789_v22 = vshrl.u32 %v1763_v50, 16  ;;  %v1781_v56 = vpack.i.b16 %v1763_v50, %v1763_v50 }
 0xada   : > { %v1661_v8 = vmul.f32 0.2, %v1657_v55  ;;  %v1658_v12 = vadd.f32 %v1645_v42, %v1617_v6 }
 0xadb   : > { %v1664_v13 = vmul.f32 0.2, %v1660_v1  ;;  %v1667_v2 = vmax.f32 %v1659_v48, %v1663_v57  ;;  %v1785_v57 = vsub.s32 3, %v6687_v4  ;;  %v1790_v6 = vpack.i.b16 %v1789_v22, %v1789_v22 }
 0xadc   : > { %v1662_v15 = vmul.f32 0.2, %v1658_v12  ;;  %v1665_v52 = vmax.f32 %v1657_v55, %v1661_v8 }
 0xadd   : > { %v1668_v16 = vmax.f32 %v1660_v1, %v1664_v13 }
 0xade   : > { %v1666_v23 = vmax.f32 %v1658_v12, %v1662_v15  ;;  %v7208_v15 = vrot.slane %v1781_v56, %v1785_v57 }
 0xadf   : > { %v7189_v24 = vpack.c.bf16 %v1668_v16, %v1667_v2  ;;  %v1795_v2 = vrot.slane %v1790_v6, %v1785_v57 }
 0xae0   : > { %v7191_v21 = vpack.c.bf16 %v1666_v23, %v1665_v52 }
 0xae1   : > { %v1676_v19 = vsel %vm313_vm3, %v7189_v24, 0 }
 0xae2   : > { %1682 = vrot.lane.b32.xlu1 %v1676_v19, %s6634_s27  ;;  %v1673_v25 = vsel %vm313_vm3, %v7191_v21, 0 }
 0xae3   : > { %1680 = vrot.lane.b32.xlu0 %v1673_v25, %s6634_s27 }
 0xb54   : > { %v1683_v32 = vpop.permute.xlu1 %1682 }
 0xb55   : > { %v1687_v36 = vmax.bf16 %v1683_v32, %v1676_v19  ;;  %v1681_v37 = vpop.permute.xlu0 %1680 }
 0xb56   : > { %v1686_v38 = vmax.bf16 %v1681_v37, %v1673_v25 }
 0xb57   : > { %1692 = vrot.lane.b32.xlu1 %v1687_v36, %s6648_s21 }
 0xb58   : > { %1690 = vrot.lane.b32.xlu0 %v1686_v38, %s6648_s21 }
 0xbc9   : > { %v1693_v42 = vpop.permute.xlu1 %1692 }
 0xbca   : > { %v1691_v43 = vpop.permute.xlu0 %1690  ;;  %v1697_v48 = vmax.bf16 %v1693_v42, %v1687_v36 }
 0xbcb   : > { %v1696_v45 = vmax.bf16 %v1691_v43, %v1686_v38 }
 0xbcd   : > { %6263 = vmatprep.mubr.msk.bf16.mxu0 %vm313_vm3, %v1696_v45 }
 0xbce   : > { %6264 = vmatmul.mubr.msk.bf16.vlgmr.msra.gmra.mrb[8].mxu0 %vm313_vm3, %v1697_v48 }
 0xca1   : > { %v6265_v55 = vpop.f32.mrb[8].mxu0 }
 0xca2   : > { %v1746_v26 = vpop.f32.mrb[9].mxu0 }
 0xca3   : > { %v6266_v1 = vpop.f32.mrb[10].mxu0 }
 0xca4   : > { %v1762_v8 = vpack.c.bf16 %v6266_v1, %v6265_v55  ;;  %v1749_v12 = vpop.f32.mrb[11].mxu0 }
 0xca5   : > { %v1761_v13 = vpack.c.bf16 %v1749_v12, %v1746_v26  ;;  %v6519_v26 = vld [vmem:[%s8896_s1 + $0x180] ss:$8 sps:$4 sm:$0xff]  }
 0xca6   : > { %1768 = vrot.lane.b32.xlu1 %v1762_v8, %s6649_s22  ;;  %6279 = vmatprep.mubr.msk.bf16.mxu0 %vm555_vm11, %v6519_v26 }
 0xca7   : > { %1766 = vrot.lane.b32.xlu0 %v1761_v13, %s6649_s22 }
 0xcaa   : > { %1823 = vrot.lane.b32.xlu1 %v7208_v15, %s6636_s29 }
 0xcab   : > { %1828 = vrot.lane.b32.xlu0 %v1795_v2, %s6646_s8 }
 0xcaf   : > { %1998 = vrot.lane.b32.xlu0 %v1795_v2, %s6647_s9 }
 0xd18   : > { %v1769_v4 = vpop.permute.xlu1 %1768 }
 0xd19   : > { %v1774_v16 = vsel %vm1770_vm5, 0, %v1769_v4  ;;  %v1767_v52 = vpop.permute.xlu0 %1766 }
 0xd1a   : > { %v7217_v23 = vsel %vm1775_vm8, %v1774_v16, 0  ;;  %v1772_v19 = vsel %vm1770_vm5, 0, %v1767_v52 }
 0xd1b   : > { %v7221_v25 = vsel %vm1775_vm8, %v1772_v19, 0  ;;  %1806 = vrot.lane.b32.xlu0 %v7217_v23, %s6634_s27 }
 0xd1c   : > { %1804 = vrot.lane.b32.xlu1 %v7221_v25, %s6634_s27  ;;  %v7235_v38 = vpop.permute.xlu1 %1823 }
 0xd1d   : > { %v7227_v32 = vpop.permute.xlu0 %1828  ;;  %v1827_v42 = vmul.bf16 %v7235_v38, %v7217_v23  ;;  %v1826_v43 = vmul.bf16 %v7235_v38, %v7221_v25 }
 0xd1e   : > { %v1832_v36 = vmul.bf16 %v7227_v32, %v7217_v23  ;;  %v1831_v37 = vmul.bf16 %v7227_v32, %v7221_v25 }
 0xd20   : > { %1837 = vrot.lane.b32.xlu0 %v1832_v36, %s6635_s28  ;;  %1835 = vrot.lane.b32.xlu1 %v1831_v37, %s6635_s28  ;;  %v2102_v36 = vld [vmem:[%s8897_s2 + $0x50] sm:$0xff]  ;;  %v2103_v37 = vld [vmem:[%s8897_s2 + $0x58] sm:$0xff] }
 0xd21   : > { %v7244_v45 = vpop.permute.xlu0 %1998 }
 0xd22   : > { %v2001_v48 = vmul.bf16 %v7244_v45, %v7221_v25  ;;  %v2002_v50 = vmul.bf16 %v7244_v45, %v7217_v23 }
 0xd24   : > { %1993 = vrot.lane.b32.xlu0 %v7208_v15, %s6646_s8  ;;  %1797 = vrot.lane.b32.xlu1 %v1795_v2, %s6636_s29 }
 0xd28   : > { %1857 = vrot.lane.b32.xlu0 %v1827_v42, %s6635_s28  ;;  %1855 = vrot.lane.b32.xlu1 %v1826_v43, %s6635_s28  ;;  %v2104_v42 = vld [vmem:[%s8897_s2 + $0x60] sm:$0xff]  ;;  %v2105_v43 = vld [vmem:[%s8897_s2 + $0x68] sm:$0xff] }
 0xd2c   : > { %2005 = vrot.lane.b32.xlu1 %v2001_v48, %s6635_s28 }
 0xd30   : > { %2007 = vrot.lane.b32.xlu1 %v2002_v50, %s6635_s28 }
 0xd8d   : > { %v7254_v22 = vpop.permute.xlu0 %1806 }
 0xd8e   : > { %v1805_v55 = vpop.permute.xlu1 %1804 }
 0xd8f   : > { %1859 = vrot.lane.b32.xlu0 %v1805_v55, %s6635_s28 }
 0xd92   : > { %v1836_v56 = vpop.permute.xlu1 %1835  ;;  %v1838_v57 = vpop.permute.xlu0 %1837 }
 0xd93   : > { %1863 = vrot.lane.b32.xlu1 %v1836_v56, %s6635_s28  ;;  %1861 = vrot.lane.b32.xlu0 %v7254_v22, %s6635_s28 }
 0xd96   : > { %v7264_v1 = vpop.permute.xlu1 %1797  ;;  %v7266_v6 = vpop.permute.xlu0 %1993 }
 0xd97   : > { %1865 = vrot.lane.b32.xlu0 %v1838_v57, %s6635_s28  ;;  %v1800_v8 = vmul.bf16 %v7264_v1, %v7221_v25  ;;  %v1801_v12 = vmul.bf16 %v7264_v1, %v7217_v23  ;;  %v1996_v2 = vmul.bf16 %v7266_v6, %v7221_v25  ;;  %v1997_v16 = vmul.bf16 %v7266_v6, %v7217_v23 }
 0xd98   : > { %v1787_v57 = vmul.bf16 %v7208_v15, %v7221_v25 }
 0xd99   : > { %1812 = vrot.lane.b32.xlu1 %v1800_v8, %s6635_s28  ;;  %v6520_v8 = vld [vmem:[%s8896_s1 + $0x190] ss:$8 sps:$4 sm:$0xff]  }
 0xd9a   : > { %v1856_v13 = vpop.permute.xlu1 %1855  ;;  %v1858_v4 = vpop.permute.xlu0 %1857 }
 0xd9b   : > { %6267 = vmatprep.subr.bf16.mxu0 %v1856_v13  ;;  %1814 = vrot.lane.b32.xlu0 %v1801_v12, %s6635_s28  ;;  %v6521_v12 = vld [vmem:[%s8896_s1 + $0x50] ss:$8 sps:$4 sm:$0xff]  }
 0xd9c   : > { %6268 = vmatpush3.bf16.msra.mxu0 %v1856_v13  ;;  %v1788_v13 = vmul.bf16 %v7208_v15, %v7217_v23  ;;  %v6522_v23 = vld [vmem:[%s8896_s1 + $0x60] ss:$8 sps:$4 sm:$0xff]  }
 0xd9d   : > { %2025 = vrot.lane.b32.xlu1 %v1996_v2, %s6648_s21  ;;  %6269 = vmatprep.subr.bf16.mxu0 %v1858_v4 }
 0xd9e   : > { %v2006_v52 = vpop.permute.xlu1 %2005 }
 0xd9f   : > { %2027 = vrot.lane.b32.xlu0 %v1997_v16, %s6648_s21  ;;  %v6523_v16 = vld [vmem:[%s8896_s1 + $0x2b0] ss:$8 sps:$4 sm:$0xff]  }
 0xda0   : > { %6270 = vmatpush3.bf16.msra.mxu0 %v1858_v4 }
 0xda1   : > { %2029 = vrot.lane.b32.xlu1 %v1805_v55, %s6648_s21 }
 0xda2   : > { %v2008_v19 = vpop.permute.xlu1 %2007 }
 0xda3   : > { %2031 = vrot.lane.b32.xlu0 %v7254_v22, %s6648_s21 }
 0xda5   : > { %2033 = vrot.lane.b32.xlu1 %v2006_v52, %s6648_s21 }
 0xda7   : > { %2035 = vrot.lane.b32.xlu0 %v2008_v19, %s6648_s21 }
 0xda9   : > { %2108 = vperm.xlu1 %6478, %v2102_v36  }
 0xdab   : > { %2113 = vperm.xlu0 %6477, %v2103_v37   ;;  %v6524_v37 = vld [vmem:[%s8896_s1 + $0x2c0] ss:$8 sps:$4 sm:$0xff]  }
 0xdad   : > { %2118 = vperm.xlu1 %6478, %v2104_v42  }
 0xdaf   : > { %2123 = vperm.xlu0 %6477, %v2105_v43  }
 0xe01   : > { %v1860_v48 = vpop.permute.xlu0 %1859 }
 0xe02   : > { %6271 = vmatprep.subr.bf16.mxu0 %v1860_v48 }
 0xe03   : > { %6272 = vmatpush3.bf16.msra.mxu0 %v1860_v48 }
 0xe05   : > { %v1862_v50 = vpop.permute.xlu0 %1861  ;;  %v1864_v26 = vpop.permute.xlu1 %1863 }
 0xe06   : > { %6273 = vmatprep.subr.bf16.mxu0 %v1862_v50 }
 0xe07   : > { %6274 = vmatpush3.bf16.msra.mxu0 %v1862_v50 }
 0xe08   : > { %6275 = vmatprep.subr.bf16.mxu0 %v1864_v26 }
 0xe09   : > { %v1866_v56 = vpop.permute.xlu0 %1865 }
 0xe0b   : > { %6276 = vmatpush3.bf16.msra.mxu0 %v1864_v26  ;;  %v1813_v25 = vpop.permute.xlu1 %1812 }
 0xe0c   : > { %6277 = vmatprep.subr.bf16.mxu0 %v1866_v56 }
 0xe0d   : > { %v1815_v2 = vpop.permute.xlu0 %1814 }
 0xe0f   : > { %6278 = vmatpush3.bf16.msra.mxu0 %v1866_v56  ;;  %v2026_v4 = vpop.permute.xlu1 %2025 }
 0xe10   : > { %6283 = vmatprep.subr.bf16.mxu0 %v1787_v57 }
 0xe12   : > { %6280 = vmatmul.mubr.msk.bf16.vlgmr.msra.gmra.mrb[12].mxu0 %vm555_vm11, %v6520_v8 }
 0xe13   : > { %6284 = vmatpush3.bf16.msra.mxu0 %v1787_v57  ;;  %6295 = vmatprep.mubr.msk.bf16.mxu0 %vm555_vm11, %v6521_v12 }
 0xe14   : > { %6285 = vmatprep.subr.bf16.mxu0 %v1788_v13 }
 0xe17   : > { %6286 = vmatpush3.bf16.msra.mxu0 %v1788_v13 }
 0xe18   : > { %6287 = vmatprep.subr.bf16.mxu0 %v1805_v55 }
 0xe1b   : > { %6288 = vmatpush3.bf16.msra.mxu0 %v1805_v55  ;;  %v2028_v55 = vpop.permute.xlu0 %2027 }
 0xe1c   : > { %6289 = vmatprep.subr.bf16.mxu0 %v7254_v22 }
 0xe1f   : > { %6290 = vmatpush3.bf16.msra.mxu0 %v7254_v22  ;;  %v2030_v22 = vpop.permute.xlu1 %2029  ;;  %v2032_v52 = vpop.permute.xlu0 %2031 }
 0xe20   : > { %6291 = vmatprep.subr.bf16.mxu0 %v1813_v25 }
 0xe23   : > { %6292 = vmatpush3.bf16.msra.mxu0 %v1813_v25  ;;  %v2034_v19 = vpop.permute.xlu1 %2033  ;;  %v2036_v36 = vpop.permute.xlu0 %2035 }
 0xe24   : > { %6293 = vmatprep.subr.bf16.mxu0 %v1815_v2 }
 0xe27   : > { %6294 = vmatpush3.bf16.msra.mxu0 %v1815_v2 }
 0xe28   : > { %6299 = vmatprep.subr.bf16.mxu0 %v2026_v4  ;;  %v2109_v42 = vpop.permute.xlu1 %2108 }
 0xe2a   : > { %6296 = vmatmul.mubr.msk.bf16.vlgmr.msra.gmra.mrb[12].mxu0 %vm555_vm11, %v6522_v23  ;;  %v2114_v43 = vpop.permute.xlu0 %2113 }
 0xe2b   : > { %6300 = vmatpush3.bf16.msra.mxu0 %v2026_v4  ;;  %6311 = vmatprep.mubr.msk.bf16.mxu0 %vm555_vm11, %v6523_v16 }
 0xe2c   : > { %6301 = vmatprep.subr.bf16.mxu0 %v2028_v55  ;;  %v2119_v48 = vpop.permute.xlu1 %2118 }
 0xe2e   : > { %v2124_v57 = vpop.permute.xlu0 %2123 }
 0xe2f   : > { %6302 = vmatpush3.bf16.msra.mxu0 %v2028_v55 }
 0xe30   : > { %6303 = vmatprep.subr.bf16.mxu0 %v2030_v22 }
 0xe33   : > { %6304 = vmatpush3.bf16.msra.mxu0 %v2030_v22 }
 0xe34   : > { %6305 = vmatprep.subr.bf16.mxu0 %v2032_v52 }
 0xe37   : > { %6306 = vmatpush3.bf16.msra.mxu0 %v2032_v52 }
 0xe38   : > { %6307 = vmatprep.subr.bf16.mxu0 %v2034_v19 }
 0xe3b   : > { %6308 = vmatpush3.bf16.msra.mxu0 %v2034_v19 }
 0xe3c   : > { %6309 = vmatprep.subr.bf16.mxu0 %v2036_v36 }
 0xe3f   : > { %6310 = vmatpush3.bf16.msra.mxu0 %v2036_v36 }
 0xe40   : > { %2712 = vmatprep.subr.bf16.mxu0 %v8900_v54 }
 0xe42   : > { %6312 = vmatmul.mubr.msk.bf16.vlgmr.msra.gmra.mrb[12].mxu0 %vm555_vm11, %v6524_v37 }
 0xf15   : > { %v6313_v50 = vpop.f32.mrb[12].mxu0 }
 0xf16   : > { %v2128_v26 = vadd.f32 %v6313_v50, %v2119_v48  ;;  %v2083_v56 = vpop.f32.mrb[13].mxu0 }
 0xf17   : > { %v2126_v8 = vadd.f32 %v2109_v42, %v2083_v56  ;;  %v6314_v12 = vpop.f32.mrb[14].mxu0 }
 0xf18   : > { %v2132_v13 = vmul.f32 0.2, %v2128_v26  ;;  %v2129_v25 = vadd.f32 %v6314_v12, %v2124_v57  ;;  %v2086_v2 = vpop.f32.mrb[15].mxu0  ;;  %v2167_v57 = vld [vmem:[%s8898_s3 + $0x1d8] sm:$0x1] }
 0xf19   : > { %v2130_v23 = vmul.f32 0.2, %v2126_v8  ;;  %v2127_v4 = vadd.f32 %v2114_v43, %v2086_v2  ;;  %v2184_v12 = vpack.i.b16 %v2167_v57, %v2167_v57 }
 0xf1a   : > { %v2133_v16 = vmul.f32 0.2, %v2129_v25  ;;  %v2136_v22 = vmax.f32 %v2128_v26, %v2132_v13 }
 0xf1b   : > { %v2131_v55 = vmul.f32 0.2, %v2127_v4  ;;  %v2134_v19 = vmax.f32 %v2126_v8, %v2130_v23  ;;  %v2192_v8 = vshrl.u32 %v2167_v57, 16 }
 0xf1c   : > { %v2137_v52 = vmax.f32 %v2129_v25, %v2133_v16  ;;  %v7342_v16 = vrot.slane %v2184_v12, %v6692_v7 }
 0xf1d   : > { %v2135_v36 = vmax.f32 %v2127_v4, %v2131_v55  ;;  %v2193_v25 = vpack.i.b16 %v2192_v8, %v2192_v8 }
 0xf1e   : > { %v7325_v37 = vpack.c.bf16 %v2137_v52, %v2136_v22 }
 0xf1f   : > { %v7327_v54 = vpack.c.bf16 %v2135_v36, %v2134_v19  ;;  %v2198_v55 = vrot.slane %v2193_v25, %v6692_v7 }
 0xf20   : > { %v2145_v42 = vsel %vm2140_vm10, %v7325_v37, 0 }
 0xf21   : > { %2151 = vrot.lane.b32.xlu0 %v2145_v42, %s6634_s27  ;;  %v2142_v48 = vsel %vm2140_vm10, %v7327_v54, 0 }
 0xf22   : > { %2149 = vrot.lane.b32.xlu1 %v2142_v48, %s6634_s27 }
 0xf93   : > { %v2152_v43 = vpop.permute.xlu0 %2151 }
 0xf94   : > { %v2156_v50 = vmax.bf16 %v2152_v43, %v2145_v42  ;;  %v2150_v26 = vpop.permute.xlu1 %2149 }
 0xf95   : > { %v2155_v56 = vmax.bf16 %v2150_v26, %v2142_v48 }
 0xf96   : > { %2161 = vrot.lane.b32.xlu0 %v2156_v50, %s6635_s28 }
 0xf97   : > { %2159 = vrot.lane.b32.xlu1 %v2155_v56, %s6635_s28 }
0x1008   : > { %v2162_v13 = vpop.permute.xlu0 %2161 }
0x1009   : > { %v2166_v2 = vmax.bf16 %v2162_v13, %v2156_v50  ;;  %v2160_v23 = vpop.permute.xlu1 %2159 }
0x100a   : > { %v2165_v4 = vmax.bf16 %v2160_v23, %v2155_v56  ;;  %v6525_v23 = vld [vmem:[%s8896_s1 + $0x1a0] ss:$8 sps:$4 sm:$0xff]  }
0x100b   : > { %2172 = vrot.lane.b32.xlu0 %v2166_v2, %s6636_s29  ;;  %6327 = vmatprep.mubr.msk.bf16.mxu1 %vm555_vm11, %v6525_v23 }
0x100c   : > { %2170 = vrot.lane.b32.xlu1 %v2165_v4, %s6636_s29 }
0x100f   : > { %2226 = vrot.lane.b32.xlu0 %v7342_v16, %s6650_s30 }
0x1010   : > { %2231 = vrot.lane.b32.xlu1 %v2198_v55, %s6649_s22 }
0x1014   : > { %2401 = vrot.lane.b32.xlu1 %v2198_v55, %s6646_s8 }
0x107d   : > { %v2173_v22 = vpop.permute.xlu0 %2172 }
0x107e   : > { %v2178_v52 = vsel %vm262_vm7, 0, %v2173_v22  ;;  %v2171_v19 = vpop.permute.xlu1 %2170 }
0x107f   : > { %v7352_v36 = vsel %vm1770_vm5, %v2178_v52, 0  ;;  %v2176_v42 = vsel %vm262_vm7, 0, %v2171_v19 }
0x1080   : > { %v7356_v48 = vsel %vm1770_vm5, %v2176_v42, 0  ;;  %2209 = vrot.lane.b32.xlu1 %v7352_v36, %s6634_s27 }
0x1081   : > { %2207 = vrot.lane.b32.xlu0 %v7356_v48, %s6634_s27  ;;  %v2227_v26 = vpop.permute.xlu0 %2226 }
0x1082   : > { %v2232_v7 = vpop.permute.xlu1 %2231  ;;  %v2229_v56 = vmul.bf16 %v2227_v26, %v7356_v48  ;;  %v2230_v57 = vmul.bf16 %v2227_v26, %v7352_v36 }
0x1083   : > { %v2234_v43 = vmul.bf16 %v2232_v7, %v7356_v48  ;;  %v2235_v50 = vmul.bf16 %v2232_v7, %v7352_v36 }
0x1085   : > { %2238 = vrot.lane.b32.xlu0 %v2234_v43, %s6635_s28  ;;  %2240 = vrot.lane.b32.xlu1 %v2235_v50, %s6635_s28 }
0x1086   : > { %v2402_v8 = vpop.permute.xlu1 %2401 }
0x1087   : > { %v2404_v12 = vmul.bf16 %v2402_v8, %v7356_v48  ;;  %v2405_v13 = vmul.bf16 %v2402_v8, %v7352_v36 }
0x1089   : > { %2200 = vrot.lane.b32.xlu0 %v2198_v55, %s6636_s29  ;;  %2396 = vrot.lane.b32.xlu1 %v7342_v16, %s6636_s29 }
0x108d   : > { %2260 = vrot.lane.b32.xlu1 %v2230_v57, %s6634_s27  ;;  %2258 = vrot.lane.b32.xlu0 %v2229_v56, %s6634_s27 }
0x1091   : > { %2408 = vrot.lane.b32.xlu0 %v2404_v12, %s6635_s28 }
0x1095   : > { %2410 = vrot.lane.b32.xlu0 %v2405_v13, %s6635_s28 }
0x10f2   : > { %v2210_v25 = vpop.permute.xlu1 %2209 }
0x10f3   : > { %v2208_v2 = vpop.permute.xlu0 %2207 }
0x10f4   : > { %2262 = vrot.lane.b32.xlu1 %v2208_v2, %s6634_s27 }
0x10f7   : > { %v2241_v4 = vpop.permute.xlu1 %2240  ;;  %v2239_v55 = vpop.permute.xlu0 %2238 }
0x10f8   : > { %2264 = vrot.lane.b32.xlu1 %v2210_v25, %s6634_s27  ;;  %2266 = vrot.lane.b32.xlu0 %v2239_v55, %s6634_s27  ;;  %v6526_v55 = vld [vmem:[%s8896_s1 + $0x1b0] ss:$8 sps:$4 sm:$0xff]  }
0x10fb   : > { %v2397_v22 = vpop.permute.xlu1 %2396  ;;  %v2201_v52 = vpop.permute.xlu0 %2200 }
0x10fc   : > { %v2203_v19 = vmul.bf16 %v2201_v52, %v7356_v48  ;;  %2268 = vrot.lane.b32.xlu1 %v2241_v4, %s6634_s27  ;;  %v2204_v42 = vmul.bf16 %v2201_v52, %v7352_v36  ;;  %v2399_v43 = vmul.bf16 %v2397_v22, %v7356_v48  ;;  %v2400_v26 = vmul.bf16 %v2397_v22, %v7352_v36  ;;  %v6527_v22 = vld [vmem:[%s8896_s1 + $0x70] ss:$8 sps:$4 sm:$0xff]  }
0x10fd   : > { %v2190_v4 = vmul.bf16 %v7342_v16, %v7356_v48  ;;  %v2191_v52 = vmul.bf16 %v7342_v16, %v7352_v36  ;;  %v6529_v16 = vld [vmem:[%s8896_s1 + $0x2d0] ss:$8 sps:$4 sm:$0xff]  }
0x10fe   : > { %2215 = vrot.lane.b32.xlu0 %v2203_v19, %s6635_s28 }
0x10ff   : > { %v2259_v7 = vpop.permute.xlu0 %2258  ;;  %v2261_v50 = vpop.permute.xlu1 %2260 }
0x1100   : > { %2217 = vrot.lane.b32.xlu1 %v2204_v42, %s6635_s28  ;;  %6315 = vmatprep.subr.bf16.mxu1 %v2259_v7  ;;  %v6528_v42 = vld [vmem:[%s8896_s1 + $0x80] ss:$8 sps:$4 sm:$0xff]  }
0x1101   : > { %6316 = vmatpush3.bf16.msra.mxu1 %v2259_v7 }
0x1102   : > { %2428 = vrot.lane.b32.xlu0 %v2399_v43, %s6635_s28  ;;  %6317 = vmatprep.subr.bf16.mxu1 %v2261_v50 }
0x1103   : > { %v2409_v56 = vpop.permute.xlu0 %2408 }
0x1104   : > { %2430 = vrot.lane.b32.xlu1 %v2400_v26, %s6635_s28  ;;  %v6530_v26 = vld [vmem:[%s8896_s1 + $0x2e0] ss:$8 sps:$4 sm:$0xff]  }
0x1105   : > { %6318 = vmatpush3.bf16.msra.mxu1 %v2261_v50 }
0x1106   : > { %2432 = vrot.lane.b32.xlu0 %v2208_v2, %s6635_s28 }
0x1107   : > { %v2411_v57 = vpop.permute.xlu0 %2410 }
0x1108   : > { %2434 = vrot.lane.b32.xlu1 %v2210_v25, %s6635_s28 }
0x110a   : > { %2436 = vrot.lane.b32.xlu0 %v2409_v56, %s6635_s28  ;;  %v8906_v56 = vmov 0  }
0x110c   : > { %2438 = vrot.lane.b32.xlu1 %v2411_v57, %s6635_s28  ;;  %v2507_v57 = vld [vmem:[%s8897_s2 + $0x80] sm:$0xff] }
0x1166   : > { %v2263_v8 = vpop.permute.xlu1 %2262 }
0x1167   : > { %6319 = vmatprep.subr.bf16.mxu1 %v2263_v8 }
0x1168   : > { %6320 = vmatpush3.bf16.msra.mxu1 %v2263_v8  ;;  %v2505_v8 = vld [vmem:[%s8897_s2 + $0x70] sm:$0xff] }
0x116a   : > { %v2265_v12 = vpop.permute.xlu1 %2264  ;;  %v2267_v13 = vpop.permute.xlu0 %2266 }
0x116b   : > { %6321 = vmatprep.subr.bf16.mxu1 %v2265_v12 }
0x116c   : > { %6322 = vmatpush3.bf16.msra.mxu1 %v2265_v12 }
0x116d   : > { %6323 = vmatprep.subr.bf16.mxu1 %v2267_v13 }
0x116e   : > { %v2269_v23 = vpop.permute.xlu1 %2268 }
0x1170   : > { %6324 = vmatpush3.bf16.msra.mxu1 %v2267_v13  ;;  %v2216_v48 = vpop.permute.xlu0 %2215  ;;  %v2508_v13 = vld [vmem:[%s8897_s2 + $0x88] sm:$0xff] }
0x1171   : > { %6325 = vmatprep.subr.bf16.mxu1 %v2269_v23 }
0x1172   : > { %v2218_v19 = vpop.permute.xlu1 %2217 }
0x1174   : > { %6326 = vmatpush3.bf16.msra.mxu1 %v2269_v23  ;;  %v2429_v7 = vpop.permute.xlu0 %2428 }
0x1175   : > { %6331 = vmatprep.subr.bf16.mxu1 %v2190_v4 }
0x1176   : > { %v2431_v36 = vpop.permute.xlu1 %2430 }
0x1177   : > { %6328 = vmatmul.mubr.msk.bf16.vlgmr.msra.gmra.mrb[12].mxu1 %vm555_vm11, %v6526_v55  ;;  %v2506_v55 = vld [vmem:[%s8897_s2 + $0x78] sm:$0xff] }
0x1178   : > { %6332 = vmatpush3.bf16.msra.mxu1 %v2190_v4  ;;  %6343 = vmatprep.mubr.msk.bf16.mxu1 %vm555_vm11, %v6527_v22 }
0x1179   : > { %6333 = vmatprep.subr.bf16.mxu1 %v2191_v52 }
0x117c   : > { %6334 = vmatpush3.bf16.msra.mxu1 %v2191_v52 }
0x117d   : > { %6335 = vmatprep.subr.bf16.mxu1 %v2208_v2 }
0x1180   : > { %6336 = vmatpush3.bf16.msra.mxu1 %v2208_v2  ;;  %v2435_v2 = vpop.permute.xlu1 %2434 }
0x1181   : > { %6337 = vmatprep.subr.bf16.mxu1 %v2210_v25 }
0x1184   : > { %6338 = vmatpush3.bf16.msra.mxu1 %v2210_v25  ;;  %v2433_v25 = vpop.permute.xlu0 %2432  ;;  %v2439_v50 = vpop.permute.xlu1 %2438 }
0x1185   : > { %6339 = vmatprep.subr.bf16.mxu1 %v2216_v48 }
0x1188   : > { %6340 = vmatpush3.bf16.msra.mxu1 %v2216_v48  ;;  %v2437_v43 = vpop.permute.xlu0 %2436 }
0x1189   : > { %6341 = vmatprep.subr.bf16.mxu1 %v2218_v19 }
0x118c   : > { %6342 = vmatpush3.bf16.msra.mxu1 %v2218_v19 }
0x118d   : > { %6347 = vmatprep.subr.bf16.mxu1 %v2429_v7 }
0x118f   : > { %6344 = vmatmul.mubr.msk.bf16.vlgmr.msra.gmra.mrb[12].mxu1 %vm555_vm11, %v6528_v42 }
0x1190   : > { %6348 = vmatpush3.bf16.msra.mxu1 %v2429_v7  ;;  %6359 = vmatprep.mubr.msk.bf16.mxu1 %vm555_vm11, %v6529_v16 }
0x1191   : > { %6349 = vmatprep.subr.bf16.mxu1 %v2431_v36 }
0x1194   : > { %6350 = vmatpush3.bf16.msra.mxu1 %v2431_v36 }
0x1195   : > { %6351 = vmatprep.subr.bf16.mxu1 %v2433_v25 }
0x1198   : > { %6352 = vmatpush3.bf16.msra.mxu1 %v2433_v25 }
0x1199   : > { %6353 = vmatprep.subr.bf16.mxu1 %v2435_v2 }
0x119c   : > { %6354 = vmatpush3.bf16.msra.mxu1 %v2435_v2 }
0x119d   : > { %6355 = vmatprep.subr.bf16.mxu1 %v2437_v43 }
0x11a0   : > { %6356 = vmatpush3.bf16.msra.mxu1 %v2437_v43 }
0x11a1   : > { %6357 = vmatprep.subr.bf16.mxu1 %v2439_v50 }
0x11a4   : > { %6358 = vmatpush3.bf16.msra.mxu1 %v2439_v50 }
0x11a5   : > { %2922 = vmatprep.subr.bf16.mxu1 %v8906_v56 }
0x11a7   : > { %6360 = vmatmul.mubr.msk.bf16.vlgmr.msra.gmra.mrb[12].mxu1 %vm555_vm11, %v6530_v26 }
0x127a   : > { %v6361_v12 = vpop.f32.mrb[12].mxu1 }
0x127b   : > { %v2511_v23 = vadd.f32 %v6361_v12, %v2507_v57  ;;  %v2486_v4 = vpop.f32.mrb[13].mxu1 }
0x127c   : > { %v2509_v22 = vadd.f32 %v2505_v8, %v2486_v4  ;;  %v6362_v52 = vpop.f32.mrb[14].mxu1 }
0x127d   : > { %v2515_v48 = vmul.f32 0.2, %v2511_v23  ;;  %v2512_v19 = vadd.f32 %v6362_v52, %v2508_v13  ;;  %v2489_v42 = vpop.f32.mrb[15].mxu1 }
0x127e   : > { %v2513_v7 = vmul.f32 0.2, %v2509_v22  ;;  %v2510_v16 = vadd.f32 %v2506_v55, %v2489_v42 }
0x127f   : > { %v2516_v36 = vmul.f32 0.2, %v2512_v19  ;;  %v2519_v2 = vmax.f32 %v2511_v23, %v2515_v48 }
0x1280   : > { %v2514_v25 = vmul.f32 0.2, %v2510_v16  ;;  %v2517_v50 = vmax.f32 %v2509_v22, %v2513_v7 }
0x1281   : > { %v2520_v43 = vmax.f32 %v2512_v19, %v2516_v36 }
0x1282   : > { %v2518_v26 = vmax.f32 %v2510_v16, %v2514_v25 }
0x1283   : > { %v2522_v17 = vpack.c.bf16 %v2520_v43, %v2519_v2 }
0x1284   : > { %v2521_v57 = vpack.c.bf16 %v2518_v26, %v2517_v50 }
0x1286   : > { %2529 = vrot.lane.b32.xlu1 %v2521_v57, %s6636_s29  ;;  %2525 = vrot.lane.b32.xlu0 %v2521_v57, %s6650_s30 }
0x128a   : > { %2527 = vrot.lane.b32.xlu1 %v2522_v17, %s6650_s30  ;;  %2533 = vrot.lane.b32.xlu0 %v2521_v57, %s6649_s22 }
0x128e   : > { %2535 = vrot.lane.b32.xlu1 %v2522_v17, %s6649_s22  ;;  %2531 = vrot.lane.b32.xlu0 %v2522_v17, %s6636_s29 }
0x12f8   : > { %v2530_v8 = vpop.permute.xlu1 %2529  ;;  %v2526_v12 = vpop.permute.xlu0 %2525 }
0x12f9   : > { %v2540_v13 = vsel %vm2537_vm14, %v2521_v57, %v2526_v12 }
0x12fa   : > { %v2545_v4 = vsel %vm262_vm7, %v2540_v13, %v2530_v8 }
0x12fc   : > { %v2528_v23 = vpop.permute.xlu1 %2527  ;;  %v2534_v55 = vpop.permute.xlu0 %2533 }
0x12fd   : > { %v2549_v22 = vsel %vm1770_vm5, %v2545_v4, %v2534_v55  ;;  %v2543_v52 = vsel %vm2537_vm14, %v2522_v17, %v2528_v23 }
0x12fe   : > { %2556 = vrot.lane.b32.xlu0 %v2549_v22, %s6649_s22 }
0x1300   : > { %v2536_v48 = vpop.permute.xlu1 %2535  ;;  %v2532_v19 = vpop.permute.xlu0 %2531 }
0x1301   : > { %v2547_v42 = vsel %vm262_vm7, %v2543_v52, %v2532_v19  ;;  %vm3020_vm7 = vcmask 1041408  }
0x1302   : > { %2560 = vrot.lane.b32.xlu0 %v7327_v54, %s6649_s22  ;;  %v2551_v7 = vsel %vm1770_vm5, %v2547_v42, %v2536_v48 }
0x1303   : > { %2558 = vrot.lane.b32.xlu1 %v2551_v7, %s6649_s22 }
0x1307   : > { %2562 = vrot.lane.b32.xlu1 %v7325_v37, %s6649_s22 }
0x1370   : > { %v2557_v16 = vpop.permute.xlu0 %2556 }
0x1371   : > { %v2565_v36 = vsel %vm1770_vm5, 0, %v2557_v16 }
0x1372   : > { %v7452_v25 = vsel %vm1775_vm8, %v2565_v36, 0 }
0x1373   : > { %2592 = vrot.lane.b32.xlu0 %v7452_v25, %s6634_s27  ;;  %v2628_v57 = vmul.bf16 %v7452_v25, %v7227_v32  ;;  %v2624_v4 = vmul.bf16 %v7452_v25, %v7235_v38 }
0x1374   : > { %v2561_v17 = vpop.permute.xlu0 %2560 }
0x1375   : > { %v2569_v2 = vsel %vm1770_vm5, 0, %v2561_v17  ;;  %v2559_v54 = vpop.permute.xlu1 %2558 }
0x1376   : > { %v7458_v43 = vsel %vm1775_vm8, %v2569_v2, 0  ;;  %v2567_v50 = vsel %vm1770_vm5, 0, %v2559_v54 }
0x1377   : > { %v7462_v37 = vsel %vm1775_vm8, %v2567_v50, 0  ;;  %2596 = vrot.lane.b32.xlu0 %v7458_v43, %s6634_s27  ;;  %v2630_v13 = vmul.bf16 %v7458_v43, %v7227_v32  ;;  %v2626_v22 = vmul.bf16 %v7458_v43, %v7235_v38  ;;  %v2840_v50 = vmul.bf16 %v7458_v43, %v7244_v45 }
0x1378   : > { %2594 = vrot.lane.b32.xlu1 %v7462_v37, %s6634_s27  ;;  %v2629_v23 = vmul.bf16 %v7462_v37, %v7227_v32  ;;  %v2625_v52 = vmul.bf16 %v7462_v37, %v7235_v38  ;;  %v2839_v17 = vmul.bf16 %v7462_v37, %v7244_v45 }
0x1379   : > { %v2563_v26 = vpop.permute.xlu1 %2562 }
0x137a   : > { %v2571_v8 = vsel %vm1770_vm5, 0, %v2563_v26 }
0x137b   : > { %v7472_v12 = vsel %vm1775_vm8, %v2571_v8, 0  ;;  %2636 = vrot.lane.b32.xlu0 %v2628_v57, %s6635_s28  ;;  %v6531_v57 = vld [vmem:[%s8896_s1 + $0x1c4] ss:$8 sps:$4 sm:$0xff]  }
0x137c   : > { %2598 = vrot.lane.b32.xlu1 %v7472_v12, %s6634_s27  ;;  %v2631_v55 = vmul.bf16 %v7472_v12, %v7227_v32  ;;  %v2627_v48 = vmul.bf16 %v7472_v12, %v7235_v38  ;;  %v2838_v38 = vmul.bf16 %v7452_v25, %v7244_v45  ;;  %v2841_v8 = vmul.bf16 %v7472_v12, %v7244_v45 }
0x137d   : > { %5912 = vmatprep.mubr.msk.bf16.mxu0 %vm1177_vm15, %v6531_v57  ;;  %v2835_v45 = vmul.bf16 %v7462_v37, %v7266_v6  ;;  %v6543_v57 = vld [vmem:[%s8896_s1 + $0x2f4] ss:$8 sps:$4 sm:$0xff]  }
0x137e   : > { %5928 = vmatprep.mubr.msk.bf16.mxu1 %vm1177_vm15, %v6543_v57  ;;  %v2583_v57 = vmul.bf16 %v7472_v12, %v7208_v15 }
0x137f   : > { %2640 = vrot.lane.b32.xlu0 %v2630_v13, %s6635_s28 }
0x1380   : > { %2638 = vrot.lane.b32.xlu1 %v2629_v23, %s6635_s28  ;;  %v2834_v23 = vmul.bf16 %v7452_v25, %v7266_v6 }
0x1383   : > { %2670 = vrot.lane.b32.xlu0 %v2624_v4, %s6635_s28 }
0x1384   : > { %2642 = vrot.lane.b32.xlu1 %v2631_v55, %s6635_s28  ;;  %v2836_v55 = vmul.bf16 %v7458_v43, %v7266_v6 }
0x1387   : > { %2674 = vrot.lane.b32.xlu0 %v2626_v22, %s6635_s28 }
0x1388   : > { %2672 = vrot.lane.b32.xlu1 %v2625_v52, %s6635_s28  ;;  %v2837_v52 = vmul.bf16 %v7472_v12, %v7266_v6  ;;  %v2585_v6 = vmul.bf16 %v7462_v37, %v7264_v1 }
0x138c   : > { %2676 = vrot.lane.b32.xlu1 %v2627_v48, %s6635_s28  ;;  %v2584_v48 = vmul.bf16 %v7452_v25, %v7264_v1 }
0x13e5   : > { %v7498_v32 = vpop.permute.xlu0 %2592 }
0x13e6   : > { %2678 = vrot.lane.b32.xlu0 %v7498_v32, %s6635_s28 }
0x13e9   : > { %v7502_v19 = vpop.permute.xlu0 %2596 }
0x13ea   : > { %v7504_v42 = vpop.permute.xlu1 %2594  ;;  %2682 = vrot.lane.b32.xlu0 %v7502_v19, %s6635_s28 }
0x13eb   : > { %2680 = vrot.lane.b32.xlu1 %v7504_v42, %s6635_s28 }
0x13ed   : > { %v2637_v7 = vpop.permute.xlu0 %2636 }
0x13ee   : > { %v7512_v16 = vpop.permute.xlu1 %2598 }
0x13ef   : > { %2846 = vrot.lane.b32.xlu1 %v2838_v38, %s6635_s28  ;;  %2684 = vrot.lane.b32.xlu0 %v7512_v16, %s6635_s28  ;;  %v2587_v38 = vmul.bf16 %v7472_v12, %v7264_v1 }
0x13f1   : > { %v2641_v36 = vpop.permute.xlu0 %2640 }
0x13f2   : > { %v2639_v2 = vpop.permute.xlu1 %2638 }
0x13f3   : > { %2848 = vrot.lane.b32.xlu1 %v2839_v17, %s6635_s28  ;;  %2686 = vrot.lane.b32.xlu0 %v2637_v7, %s6635_s28  ;;  %v2586_v7 = vmul.bf16 %v7458_v43, %v7264_v1  ;;  %v2977_v17 = vld [vmem:[%s8897_s2 + $0xa0] sm:$0xff] }
0x13f5   : > { %v2671_v54 = vpop.permute.xlu0 %2670 }
0x13f6   : > { %v2643_v26 = vpop.permute.xlu1 %2642  ;;  %2713 = vmatpush1.bf16.msra.mxu0 %v2671_v54 }
0x13f7   : > { %2850 = vrot.lane.b32.xlu1 %v2840_v50, %s6635_s28  ;;  %2688 = vrot.lane.b32.xlu0 %v2639_v2, %s6635_s28 }
0x13f8   : > { %2714 = vmatprep.subr.bf16.mxu0 %v8906_v56 }
0x13f9   : > { %v2675_v4 = vpop.permute.xlu0 %2674 }
0x13fa   : > { %v2673_v13 = vpop.permute.xlu1 %2672 }
0x13fb   : > { %2852 = vrot.lane.b32.xlu1 %v2841_v8, %s6635_s28  ;;  %2690 = vrot.lane.b32.xlu0 %v2641_v36, %s6635_s28  ;;  %v2975_v36 = vld [vmem:[%s8897_s2 + $0x90] sm:$0xff] }
0x13fc   : > { %2715 = vmatpush1.bf16.msra.mxu0 %v2673_v13 }
0x13fd   : > { %2716 = vmatprep.subr.bf16.mxu0 %v8906_v56 }
0x13fe   : > { %v2677_v22 = vpop.permute.xlu1 %2676 }
0x13ff   : > { %2692 = vrot.lane.b32.xlu1 %v2643_v26, %s6635_s28  ;;  %2880 = vrot.lane.b32.xlu0 %v2834_v23, %s6648_s21 }
0x1400   : > { %2717 = vmatpush1.bf16.msra.mxu0 %v2675_v4 }
0x1401   : > { %2718 = vmatprep.subr.bf16.mxu0 %v8906_v56 }
0x1403   : > { %2882 = vrot.lane.b32.xlu1 %v2835_v45, %s6648_s21  ;;  %2884 = vrot.lane.b32.xlu0 %v2836_v55, %s6648_s21 }
0x1404   : > { %2719 = vmatpush1.bf16.msra.mxu0 %v2677_v22  ;;  %v2976_v22 = vld [vmem:[%s8897_s2 + $0x98] sm:$0xff] }
0x1405   : > { %2720 = vmatprep.subr.bf16.mxu0 %v8906_v56 }
0x1407   : > { %2886 = vrot.lane.b32.xlu1 %v2837_v52, %s6648_s21  ;;  %2888 = vrot.lane.b32.xlu0 %v7498_v32, %s6648_s21 }
0x140b   : > { %2890 = vrot.lane.b32.xlu1 %v7504_v42, %s6648_s21  ;;  %2892 = vrot.lane.b32.xlu0 %v7502_v19, %s6648_s21 }
0x140f   : > { %2894 = vrot.lane.b32.xlu1 %v7512_v16, %s6648_s21  ;;  %2608 = vrot.lane.b32.xlu0 %v2584_v48, %s6635_s28 }
0x1413   : > { %2610 = vrot.lane.b32.xlu0 %v2585_v6, %s6635_s28  ;;  %v2978_v6 = vld [vmem:[%s8897_s2 + $0xa8] sm:$0xff] }
0x1417   : > { %2612 = vrot.lane.b32.xlu0 %v2586_v7, %s6635_s28 }
0x141b   : > { %2614 = vrot.lane.b32.xlu0 %v2587_v38, %s6635_s28  ;;  %v6533_v38 = vld [vmem:[%s8896_s1 + $0x1c0] ss:$8 sps:$4 sm:$0xff]  }
0x141f   : > { %2981 = vperm.xlu0 %6477, %v2975_v36   ;;  %v6534_v36 = vld [vmem:[%s8896_s1 + $0x1d4] ss:$8 sps:$4 sm:$0xff]  }
0x1423   : > { %2991 = vperm.xlu0 %6477, %v2977_v17   ;;  %v2580_v17 = vmul.bf16 %v7452_v25, %v7208_v15  ;;  %v6539_v25 = vld [vmem:[%s8896_s1 + $0x94] ss:$8 sps:$4 sm:$0xff]  }
0x1458   : > { %v2679_v2 = vpop.permute.xlu0 %2678 }
0x1459   : > { %2721 = vmatpush1.bf16.msra.mxu0 %v2679_v2 }
0x145a   : > { %2722 = vmatprep.subr.bf16.mxu0 %v8906_v56 }
0x145c   : > { %v2683_v54 = vpop.permute.xlu0 %2682 }
0x145d   : > { %v2681_v50 = vpop.permute.xlu1 %2680 }
0x145e   : > { %2723 = vmatpush1.bf16.msra.mxu0 %v2681_v50  ;;  %v6536_v50 = vld [vmem:[%s8896_s1 + $0x1d0] ss:$8 sps:$4 sm:$0xff]  }
0x145f   : > { %2724 = vmatprep.subr.bf16.mxu0 %v8906_v56 }
0x1461   : > { %v2847_v1 = vpop.permute.xlu1 %2846  ;;  %v2685_v26 = vpop.permute.xlu0 %2684 }
0x1462   : > { %2896 = vrot.lane.b32.xlu1 %v2847_v1, %s6648_s21  ;;  %2725 = vmatpush1.bf16.msra.mxu0 %v2683_v54  ;;  %v2581_v54 = vmul.bf16 %v7462_v37, %v7208_v15 }
0x1463   : > { %2726 = vmatprep.subr.bf16.mxu0 %v8906_v56 }
0x1465   : > { %v2849_v8 = vpop.permute.xlu1 %2848  ;;  %v2687_v13 = vpop.permute.xlu0 %2686 }
0x1466   : > { %2898 = vrot.lane.b32.xlu1 %v2849_v8, %s6648_s21  ;;  %2727 = vmatpush1.bf16.msra.mxu0 %v2685_v26  ;;  %v2582_v26 = vmul.bf16 %v7458_v43, %v7208_v15 }
0x1467   : > { %2728 = vmatprep.subr.bf16.mxu0 %v8906_v56 }
0x1469   : > { %v2851_v23 = vpop.permute.xlu1 %2850  ;;  %v2689_v4 = vpop.permute.xlu0 %2688 }
0x146a   : > { %2900 = vrot.lane.b32.xlu1 %v2851_v23, %s6648_s21  ;;  %2729 = vmatpush1.bf16.msra.mxu0 %v2687_v13  ;;  %v6542_v23 = vld [vmem:[%s8896_s1 + $0xa0] ss:$8 sps:$4 sm:$0xff]  }
0x146b   : > { %2730 = vmatprep.subr.bf16.mxu0 %v8906_v56 }
0x146d   : > { %v2853_v45 = vpop.permute.xlu1 %2852  ;;  %v2691_v55 = vpop.permute.xlu0 %2690 }
0x146e   : > { %2902 = vrot.lane.b32.xlu1 %v2853_v45, %s6648_s21  ;;  %2731 = vmatpush1.bf16.msra.mxu0 %v2689_v4 }
0x146f   : > { %2732 = vmatprep.subr.bf16.mxu0 %v8906_v56 }
0x1471   : > { %v2693_v52 = vpop.permute.xlu1 %2692  ;;  %v2881_v48 = vpop.permute.xlu0 %2880 }
0x1472   : > { %2986 = vperm.xlu1 %6478, %v2976_v22   ;;  %2733 = vmatpush1.bf16.msra.mxu0 %v2691_v55 }
0x1473   : > { %2923 = vmatpush1.bf16.msra.mxu1 %v2881_v48  ;;  %2734 = vmatprep.subr.bf16.mxu0 %v8906_v56  ;;  %v6546_v48 = vld [vmem:[%s8896_s1 + $0x304] ss:$8 sps:$4 sm:$0xff]  }
0x1474   : > { %2924 = vmatprep.subr.bf16.mxu1 %v8906_v56 }
0x1475   : > { %v2883_v7 = vpop.permute.xlu1 %2882  ;;  %v2885_v2 = vpop.permute.xlu0 %2884 }
0x1476   : > { %2996 = vperm.xlu1 %6478, %v2978_v6   ;;  %2735 = vmatpush1.bf16.msra.mxu0 %v2693_v52  ;;  %v6545_v52 = vld [vmem:[%s8896_s1 + $0x2f0] ss:$8 sps:$4 sm:$0xff]   ;;  %v6548_v6 = vld [vmem:[%s8896_s1 + $0x300] ss:$8 sps:$4 sm:$0xff]  }
0x1477   : > { %2925 = vmatpush1.bf16.msra.mxu1 %v2883_v7  ;;  %2785 = vmatprep.subr.bf16.mxu0 %v8906_v56  ;;  %v3013_v7 = vld [vmem:[%s8898_s3 + $0x170] sm:$0x3] }
0x1478   : > { %2926 = vmatprep.subr.bf16.mxu1 %v8906_v56 }
0x1479   : > { %2745 = vmatmul.mubr.bf16.vlgmr.msra.gmra.mrb[16].mxu0 %v6533_v38  ;;  %v2887_v1 = vpop.permute.xlu1 %2886  ;;  %v2889_v37 = vpop.permute.xlu0 %2888  ;;  %v3022_v38 = vsel %vm3020_vm7, %v3013_v7, 0 }
0x147a   : > { %2786 = vmatpush1.bf16.msra.mxu0 %v2580_v17  ;;  %5913 = vmatprep.mubr.msk.bf16.mxu0 %vm1177_vm15, %v6534_v36 }
0x147b   : > { %2927 = vmatpush1.bf16.msra.mxu1 %v2885_v2  ;;  %2787 = vmatprep.subr.bf16.mxu0 %v8906_v56 }
0x147c   : > { %2928 = vmatprep.subr.bf16.mxu1 %v8906_v56 }
0x147d   : > { %v2891_v8 = vpop.permute.xlu1 %2890  ;;  %v2893_v43 = vpop.permute.xlu0 %2892 }
0x147e   : > { %2788 = vmatpush1.bf16.msra.mxu0 %v2581_v54 }
0x147f   : > { %2929 = vmatpush1.bf16.msra.mxu1 %v2887_v1  ;;  %2789 = vmatprep.subr.bf16.mxu0 %v8906_v56 }
0x1480   : > { %2930 = vmatprep.subr.bf16.mxu1 %v8906_v56 }
0x1481   : > { %2753 = vmatmul.mubr.bf16.gmra.mrb[20].mxu0 %v6536_v50  ;;  %v2895_v13 = vpop.permute.xlu1 %2894  ;;  %v2609_v15 = vpop.permute.xlu0 %2608 }
0x1482   : > { %2790 = vmatpush1.bf16.msra.mxu0 %v2582_v26  ;;  %5918 = vmatprep.mubr.msk.bf16.mxu0 %vm1177_vm15, %v6539_v25 }
0x1483   : > { %2931 = vmatpush1.bf16.msra.mxu1 %v2889_v37  ;;  %2791 = vmatprep.subr.bf16.mxu0 %v8906_v56 }
0x1484   : > { %2932 = vmatprep.subr.bf16.mxu1 %v8906_v56 }
0x1485   : > { %v2611_v12 = vpop.permute.xlu0 %2610 }
0x1486   : > { %2792 = vmatpush1.bf16.msra.mxu0 %v2583_v57 }
0x1487   : > { %2933 = vmatpush1.bf16.msra.mxu1 %v2891_v8  ;;  %2793 = vmatprep.subr.bf16.mxu0 %v8906_v56 }
0x1488   : > { %2934 = vmatprep.subr.bf16.mxu1 %v8906_v56 }
0x148a   : > { %2794 = vmatpush1.bf16.msra.mxu0 %v7498_v32  ;;  %v2613_v32 = vpop.permute.xlu0 %2612 }
0x148b   : > { %2935 = vmatpush1.bf16.msra.mxu1 %v2893_v43  ;;  %2795 = vmatprep.subr.bf16.mxu0 %v8906_v56 }
0x148c   : > { %2936 = vmatprep.subr.bf16.mxu1 %v8906_v56 }
0x148e   : > { %2796 = vmatpush1.bf16.msra.mxu0 %v7504_v42  ;;  %v2615_v42 = vpop.permute.xlu0 %2614 }
0x148f   : > { %2937 = vmatpush1.bf16.msra.mxu1 %v2895_v13  ;;  %2797 = vmatprep.subr.bf16.mxu0 %v8906_v56 }
0x1490   : > { %2938 = vmatprep.subr.bf16.mxu1 %v8906_v56 }
0x1492   : > { %2798 = vmatpush1.bf16.msra.mxu0 %v7502_v19  ;;  %v6537_v19 = vld [vmem:[%s8896_s1 + $0x90] ss:$8 sps:$4 sm:$0xff]  }
0x1493   : > { %2799 = vmatprep.subr.bf16.mxu0 %v8906_v56 }
0x1496   : > { %2800 = vmatpush1.bf16.msra.mxu0 %v7512_v16  ;;  %v6540_v16 = vld [vmem:[%s8896_s1 + $0xa4] ss:$8 sps:$4 sm:$0xff]  }
0x1497   : > { %2801 = vmatprep.subr.bf16.mxu0 %v8906_v56 }
0x149a   : > { %2802 = vmatpush1.bf16.msra.mxu0 %v2609_v15 }
0x149b   : > { %2803 = vmatprep.subr.bf16.mxu0 %v8906_v56 }
0x149e   : > { %2804 = vmatpush1.bf16.msra.mxu0 %v2611_v12 }
0x149f   : > { %2805 = vmatprep.subr.bf16.mxu0 %v8906_v56 }
0x14a2   : > { %2806 = vmatpush1.bf16.msra.mxu0 %v2613_v32 }
0x14a3   : > { %2807 = vmatprep.subr.bf16.mxu0 %v8906_v56 }
0x14a6   : > { %2808 = vmatpush1.bf16.msra.mxu0 %v2615_v42 }
0x14a7   : > { %6447 = vmatprep.subr.msk.bf16.mxu0 %vm3020_vm7, %v3013_v7 }
0x14a9   : > { %2818 = vmatmul.mubr.bf16.vlgmr.msra.gmra.mrb[24].mxu0 %v6537_v19 }
0x14aa   : > { %5919 = vmatprep.mubr.msk.bf16.mxu0 %vm1177_vm15, %v6540_v16  ;;  %6364 = vmatpush3.bf16.msra.mxu0 %v3022_v38 }
0x14ab   : > { %3308 = vmatprep.subr.bf16.mxu0 %v8906_v56 }
0x14b1   : > { %2826 = vmatmul.mubr.bf16.gmra.mrb[28].mxu0 %v6542_v23 }
0x14d4   : > { %v2897_v4 = vpop.permute.xlu1 %2896 }
0x14d5   : > { %2939 = vmatpush1.bf16.msra.mxu1 %v2897_v4 }
0x14d6   : > { %2940 = vmatprep.subr.bf16.mxu1 %v8906_v56 }
0x14d8   : > { %v2899_v45 = vpop.permute.xlu1 %2898 }
0x14d9   : > { %2941 = vmatpush1.bf16.msra.mxu1 %v2899_v45 }
0x14da   : > { %2942 = vmatprep.subr.bf16.mxu1 %v8906_v56 }
0x14dc   : > { %v2901_v55 = vpop.permute.xlu1 %2900 }
0x14dd   : > { %2943 = vmatpush1.bf16.msra.mxu1 %v2901_v55 }
0x14de   : > { %2944 = vmatprep.subr.bf16.mxu1 %v8906_v56 }
0x14e0   : > { %v2903_v22 = vpop.permute.xlu1 %2902 }
0x14e1   : > { %2945 = vmatpush1.bf16.msra.mxu1 %v2903_v22  ;;  %v2982_v22 = vpop.permute.xlu0 %2981 }
0x14e2   : > { %3235 = vmatprep.subr.bf16.mxu1 %v8906_v56 }
0x14e4   : > { %2955 = vmatmul.mubr.bf16.vlgmr.msra.gmra.mrb[16].mxu1 %v6545_v52 }
0x14e5   : > { %5929 = vmatprep.mubr.msk.bf16.mxu1 %vm1177_vm15, %v6546_v48 }
0x14ec   : > { %2963 = vmatmul.mubr.bf16.gmra.mrb[20].mxu1 %v6548_v6 }
0x14f1   : > { %v2987_v38 = vpop.permute.xlu1 %2986 }
0x154c   : > { %v2746_v36 = vpop.f32.mrb[16].mxu0 }
0x154d   : > { %v2748_v17 = vpop.f32.mrb[17].mxu0 }
0x154e   : > { %v2749_v2 = vpop.f32.mrb[18].mxu0 }
0x154f   : > { %v2751_v54 = vpop.f32.mrb[19].mxu0 }
0x1554   : > { %v2754_v50 = vpop.f32.mrb[20].mxu0 }
0x1555   : > { %v2756_v1 = vpop.f32.mrb[21].mxu0 }
0x1556   : > { %v2757_v25 = vpop.f32.mrb[22].mxu0 }
0x1557   : > { %v2759_v26 = vpop.f32.mrb[23].mxu0 }
0x157c   : > { %v2819_v37 = vpop.f32.mrb[24].mxu0 }
0x157d   : > { %v2820_v57 = vadd.f32 %v2819_v37, %v2746_v36  ;;  %v2821_v8 = vpop.f32.mrb[25].mxu0 }
0x157e   : > { %v2822_v43 = vpop.f32.mrb[26].mxu0  ;;  %v2992_v8 = vpop.permute.xlu0 %2991 }
0x157f   : > { %v2823_v13 = vadd.f32 %v2822_v43, %v2749_v2  ;;  %v2824_v15 = vpop.f32.mrb[27].mxu0 }
0x1584   : > { %v2827_v12 = vpop.f32.mrb[28].mxu0 }
0x1585   : > { %v2828_v32 = vadd.f32 %v2827_v12, %v2754_v50  ;;  %v2829_v42 = vpop.f32.mrb[29].mxu0 }
0x1586   : > { %v2830_v19 = vpop.f32.mrb[30].mxu0  ;;  %v2997_v42 = vpop.permute.xlu1 %2996 }
0x1587   : > { %v2831_v16 = vadd.f32 %v2830_v19, %v2757_v25  ;;  %v2832_v23 = vpop.f32.mrb[31].mxu0 }
0x15b7   : > { %v2956_v4 = vpop.f32.mrb[16].mxu1 }
0x15b8   : > { %v2971_v45 = vadd.f32 %v2956_v4, %v2820_v57  ;;  %v2958_v55 = vpop.f32.mrb[17].mxu1 }
0x15b9   : > { %v2959_v52 = vpop.f32.mrb[18].mxu1 }
0x15ba   : > { %v2999_v48 = vadd.f32 %v2982_v22, %v2971_v45  ;;  %v2972_v6 = vadd.f32 %v2959_v52, %v2823_v13  ;;  %v2961_v7 = vpop.f32.mrb[19].mxu1 }
0x15bc   : > { %v3003_v36 = vmul.f32 0.2, %v2999_v48  ;;  %v3000_v17 = vadd.f32 %v2987_v38, %v2972_v6 }
0x15be   : > { %v3004_v54 = vmul.f32 0.2, %v3000_v17  ;;  %v3007_v1 = vmax.f32 %v2999_v48, %v3003_v36 }
0x15bf   : > { %v2964_v2 = vpop.f32.mrb[20].mxu1 }
0x15c0   : > { %v3008_v26 = vmax.f32 %v3000_v17, %v3004_v54  ;;  %v2973_v50 = vadd.f32 %v2964_v2, %v2828_v32  ;;  %v2966_v37 = vpop.f32.mrb[21].mxu1 }
0x15c1   : > { %v2967_v25 = vpop.f32.mrb[22].mxu1 }
0x15c2   : > { %v3011_v43 = vpack.c.bf16 %v3008_v26, %v3007_v1  ;;  %v3001_v15 = vadd.f32 %v2992_v8, %v2973_v50  ;;  %v2974_v57 = vadd.f32 %v2967_v25, %v2831_v16  ;;  %v2969_v12 = vpop.f32.mrb[23].mxu1 }
0x15c4   : > { %v3005_v19 = vmul.f32 0.2, %v3001_v15  ;;  %v3002_v23 = vadd.f32 %v2997_v42, %v2974_v57  ;;  %6365 = vmatprep.mubr.msk.bf16.mxu0 %vm2140_vm10, %v3011_v43 }
0x15c6   : > { %v3006_v13 = vmul.f32 0.2, %v3002_v23  ;;  %v3009_v4 = vmax.f32 %v3001_v15, %v3005_v19 }
0x15c8   : > { %v3010_v45 = vmax.f32 %v3002_v23, %v3006_v13 }
0x15ca   : > { %v3012_v55 = vpack.c.bf16 %v3010_v45, %v3009_v4 }
0x15cc   : > { %6366 = vmatmul.mubr.msk.bf16.vlgmr.msra.gmra.mrb[32].mxu0 %vm2140_vm10, %v3012_v55 }
0x169f   : > { %v6367_v22 = vpop.f32.mrb[32].mxu0 }
0x16a0   : > { %v3058_v32 = vpop.f32.mrb[33].mxu0 }
0x16a1   : > { %v6368_v52 = vpop.f32.mrb[34].mxu0 }
0x16a2   : > { %v3074_v48 = vpack.c.bf16 %v6368_v52, %v6367_v22  ;;  %v3061_v6 = vpop.f32.mrb[35].mxu0 }
0x16a3   : > { %v3073_v7 = vpack.c.bf16 %v3061_v6, %v3058_v32 }
0x16a4   : > { %3081 = vrot.lane.b32.xlu1 %v3074_v48, %s6645_s26 }
0x16a5   : > { %3079 = vrot.lane.b32.xlu0 %v3073_v7, %s6645_s26 }
0x16a8   : > { %3085 = vrot.lane.b32.xlu1 %v7189_v24, %s6645_s26 }
0x16a9   : > { %3083 = vrot.lane.b32.xlu0 %v7191_v21, %s6645_s26 }
0x1716   : > { %v3082_v16 = vpop.permute.xlu1 %3081 }
0x1717   : > { %v3090_v38 = vsel %vm1300_vm1, 0, %v3082_v16  ;;  %v3080_v36 = vpop.permute.xlu0 %3079 }
0x1718   : > { %v7681_v17 = vsel %vm1305_vm2, %v3090_v38, 0  ;;  %v3088_v54 = vsel %vm1300_vm1, 0, %v3080_v36 }
0x1719   : > { %v7685_v2 = vsel %vm1305_vm2, %v3088_v54, 0  ;;  %3117 = vrot.lane.b32.xlu1 %v7681_v17, %s6634_s27  ;;  %v3104_v25 = vmul.bf16 %v7681_v17, %v7070_v46  ;;  %v3152_v43 = vmul.bf16 %v7681_v17, %v7089_v5  ;;  %v3148_v23 = vmul.bf16 %v7681_v17, %v7097_v9  ;;  %v6551_v54 = vld [vmem:[%s8896_s1 + $0x1e4] ss:$8 sps:$4 sm:$0xff]  }
0x171a   : > { %v3086_v1 = vpop.permute.xlu1 %3085  ;;  %3115 = vrot.lane.b32.xlu0 %v7685_v2, %s6634_s27  ;;  %v3103_v24 = vmul.bf16 %v7685_v2, %v7070_v46  ;;  %v3151_v15 = vmul.bf16 %v7685_v2, %v7089_v5  ;;  %v3147_v13 = vmul.bf16 %v7685_v2, %v7097_v9  ;;  %v3361_v22 = vmul.bf16 %v7685_v2, %v7106_v14 }
0x171b   : > { %v3094_v21 = vsel %vm1300_vm1, 0, %v3086_v1  ;;  %v3084_v26 = vpop.permute.xlu0 %3083  ;;  %5940 = vmatprep.mubr.msk.bf16.mxu1 %vm1177_vm15, %v6551_v54  ;;  %v6563_v54 = vld [vmem:[%s8896_s1 + $0x314] ss:$8 sps:$4 sm:$0xff]  }
0x171c   : > { %v7695_v50 = vsel %vm1305_vm2, %v3094_v21, 0  ;;  %v3092_v37 = vsel %vm1300_vm1, 0, %v3084_v26  ;;  %3309 = vmatpush1.bf16.msra.mxu0 %v3103_v24  ;;  %v3358_v21 = vmul.bf16 %v7681_v17, %v7128_v31 }
0x171d   : > { %v7699_v8 = vsel %vm1305_vm2, %v3092_v37, 0  ;;  %3121 = vrot.lane.b32.xlu1 %v7695_v50, %s6634_s27  ;;  %3310 = vmatprep.subr.bf16.mxu0 %v8906_v56  ;;  %v3154_v12 = vmul.bf16 %v7695_v50, %v7089_v5  ;;  %v3106_v19 = vmul.bf16 %v7695_v50, %v7070_v46  ;;  %v3364_v38 = vmul.bf16 %v7695_v50, %v7106_v14 }
0x171e   : > { %3119 = vrot.lane.b32.xlu0 %v7699_v8, %s6634_s27  ;;  %v3105_v57 = vmul.bf16 %v7699_v8, %v7070_v46  ;;  %v3153_v42 = vmul.bf16 %v7699_v8, %v7089_v5  ;;  %v3150_v5 = vmul.bf16 %v7695_v50, %v7097_v9  ;;  %v3149_v4 = vmul.bf16 %v7699_v8, %v7097_v9 }
0x171f   : > { %v3362_v9 = vmul.bf16 %v7681_v17, %v7106_v14  ;;  %v3363_v6 = vmul.bf16 %v7699_v8, %v7106_v14  ;;  %v3357_v14 = vmul.bf16 %v7685_v2, %v7128_v31  ;;  %v3359_v26 = vmul.bf16 %v7699_v8, %v7128_v31 }
0x1720   : > { %3311 = vmatpush1.bf16.msra.mxu0 %v3104_v25  ;;  %v3360_v25 = vmul.bf16 %v7695_v50, %v7128_v31  ;;  %v3108_v31 = vmul.bf16 %v7681_v17, %v7126_v28  ;;  %v3500_v17 = vld [vmem:[%s8897_s2 + $0xc0] sm:$0xff] }
0x1721   : > { %3161 = vrot.lane.b32.xlu1 %v3152_v43, %s6635_s28  ;;  %3312 = vmatprep.subr.bf16.mxu0 %v8906_v56  ;;  %v3107_v43 = vmul.bf16 %v7685_v2, %v7126_v28  ;;  %v3498_v2 = vld [vmem:[%s8897_s2 + $0xb0] sm:$0xff] }
0x1722   : > { %3159 = vrot.lane.b32.xlu0 %v3151_v15, %s6635_s28  ;;  %v3109_v15 = vmul.bf16 %v7699_v8, %v7126_v28  ;;  %v6552_v8 = vld [vmem:[%s8896_s1 + $0xb4] ss:$8 sps:$4 sm:$0xff]  }
0x1723   : > { %5946 = vmatprep.mubr.msk.bf16.mxu0 %vm1177_vm15, %v6552_v8 }
0x1724   : > { %3313 = vmatpush1.bf16.msra.mxu0 %v3105_v57  ;;  %v3110_v57 = vmul.bf16 %v7695_v50, %v7126_v28 }
0x1725   : > { %3165 = vrot.lane.b32.xlu1 %v3154_v12, %s6635_s28  ;;  %3314 = vmatprep.subr.bf16.mxu0 %v8906_v56 }
0x1726   : > { %3163 = vrot.lane.b32.xlu0 %v3153_v42, %s6635_s28 }
0x1728   : > { %3315 = vmatpush1.bf16.msra.mxu0 %v3106_v19 }
0x1729   : > { %3195 = vrot.lane.b32.xlu1 %v3148_v23, %s6648_s21  ;;  %3316 = vmatprep.subr.bf16.mxu0 %v8906_v56 }
0x172a   : > { %3193 = vrot.lane.b32.xlu0 %v3147_v13, %s6648_s21 }
0x172d   : > { %3199 = vrot.lane.b32.xlu1 %v3150_v5, %s6648_s21 }
0x172e   : > { %3197 = vrot.lane.b32.xlu0 %v3149_v4, %s6648_s21 }
0x178b   : > { %v3118_v46 = vpop.permute.xlu1 %3117 }
0x178c   : > { %3203 = vrot.lane.b32.xlu1 %v3118_v46, %s6648_s21  ;;  %v3116_v45 = vpop.permute.xlu0 %3115 }
0x178d   : > { %3317 = vmatpush1.bf16.msra.mxu0 %v3116_v45  ;;  %3201 = vrot.lane.b32.xlu0 %v3116_v45, %s6648_s21 }
0x178e   : > { %3318 = vmatprep.subr.bf16.mxu0 %v8906_v56 }
0x178f   : > { %v3122_v55 = vpop.permute.xlu1 %3121 }
0x1790   : > { %v3120_v32 = vpop.permute.xlu0 %3119 }
0x1791   : > { %3319 = vmatpush1.bf16.msra.mxu0 %v3118_v46  ;;  %3369 = vrot.lane.b32.xlu0 %v3361_v22, %s6635_s28  ;;  %v3501_v22 = vld [vmem:[%s8897_s2 + $0xc8] sm:$0xff] }
0x1792   : > { %3205 = vrot.lane.b32.xlu1 %v3120_v32, %s6648_s21  ;;  %3320 = vmatprep.subr.bf16.mxu0 %v8906_v56 }
0x1793   : > { %v3162_v52 = vpop.permute.xlu1 %3161 }
0x1794   : > { %v3160_v48 = vpop.permute.xlu0 %3159 }
0x1795   : > { %3371 = vrot.lane.b32.xlu0 %v3362_v9, %s6635_s28  ;;  %3321 = vmatpush1.bf16.msra.mxu0 %v3120_v32 }
0x1796   : > { %3207 = vrot.lane.b32.xlu1 %v3122_v55, %s6648_s21  ;;  %3322 = vmatprep.subr.bf16.mxu0 %v8906_v56 }
0x1797   : > { %v3166_v16 = vpop.permute.xlu1 %3165 }
0x1798   : > { %v3164_v7 = vpop.permute.xlu0 %3163 }
0x1799   : > { %3373 = vrot.lane.b32.xlu0 %v3363_v6, %s6635_s28  ;;  %3323 = vmatpush1.bf16.msra.mxu0 %v3122_v55  ;;  %v6555_v6 = vld [vmem:[%s8896_s1 + $0x1f4] ss:$8 sps:$4 sm:$0xff]  }
0x179a   : > { %3209 = vrot.lane.b32.xlu1 %v3160_v48, %s6648_s21  ;;  %3324 = vmatprep.subr.bf16.mxu0 %v8906_v56  ;;  %v6549_v48 = vld [vmem:[%s8896_s1 + $0x1e0] ss:$8 sps:$4 sm:$0xff]  }
0x179b   : > { %v3196_v1 = vpop.permute.xlu1 %3195 }
0x179c   : > { %v3194_v36 = vpop.permute.xlu0 %3193 }
0x179d   : > { %3375 = vrot.lane.b32.xlu0 %v3364_v38, %s6635_s28  ;;  %3236 = vmatpush1.bf16.msra.mxu1 %v3194_v36  ;;  %v6557_v36 = vld [vmem:[%s8896_s1 + $0x1f0] ss:$8 sps:$4 sm:$0xff]  }
0x179e   : > { %3211 = vrot.lane.b32.xlu1 %v3162_v52, %s6648_s21  ;;  %3237 = vmatprep.subr.bf16.mxu1 %v8906_v56 }
0x179f   : > { %v3200_v37 = vpop.permute.xlu1 %3199 }
0x17a0   : > { %v3198_v24 = vpop.permute.xlu0 %3197 }
0x17a1   : > { %3213 = vrot.lane.b32.xlu0 %v3164_v7, %s6648_s21  ;;  %3238 = vmatpush1.bf16.msra.mxu1 %v3196_v1 }
0x17a2   : > { %3215 = vrot.lane.b32.xlu1 %v3166_v16, %s6648_s21  ;;  %3239 = vmatprep.subr.bf16.mxu1 %v8906_v56 }
0x17a5   : > { %3403 = vrot.lane.b32.xlu0 %v3357_v14, %s6644_s23  ;;  %3240 = vmatpush1.bf16.msra.mxu1 %v3198_v24 }
0x17a6   : > { %3405 = vrot.lane.b32.xlu1 %v3358_v21, %s6644_s23  ;;  %3241 = vmatprep.subr.bf16.mxu1 %v8906_v56 }
0x17a9   : > { %3407 = vrot.lane.b32.xlu0 %v3359_v26, %s6644_s23  ;;  %3242 = vmatpush1.bf16.msra.mxu1 %v3200_v37 }
0x17aa   : > { %3409 = vrot.lane.b32.xlu1 %v3360_v25, %s6644_s23  ;;  %3243 = vmatprep.subr.bf16.mxu1 %v8906_v56  ;;  %v6554_v25 = vld [vmem:[%s8896_s1 + $0xb0] ss:$8 sps:$4 sm:$0xff]  }
0x17ad   : > { %3411 = vrot.lane.b32.xlu0 %v3116_v45, %s6644_s23 }
0x17ae   : > { %3413 = vrot.lane.b32.xlu1 %v3118_v46, %s6644_s23  ;;  %v3499_v46 = vld [vmem:[%s8897_s2 + $0xb8] sm:$0xff] }
0x17b1   : > { %3415 = vrot.lane.b32.xlu0 %v3120_v32, %s6644_s23 }
0x17b2   : > { %3417 = vrot.lane.b32.xlu1 %v3122_v55, %s6644_s23 }
0x17b5   : > { %3131 = vrot.lane.b32.xlu0 %v3107_v43, %s6635_s28  ;;  %v6558_v43 = vld [vmem:[%s8896_s1 + $0xc4] ss:$8 sps:$4 sm:$0xff]  }
0x17b9   : > { %3133 = vrot.lane.b32.xlu0 %v3108_v31, %s6635_s28 }
0x17bd   : > { %3135 = vrot.lane.b32.xlu0 %v3109_v15, %s6635_s28  ;;  %v6560_v15 = vld [vmem:[%s8896_s1 + $0xc0] ss:$8 sps:$4 sm:$0xff]  }
0x17c1   : > { %3137 = vrot.lane.b32.xlu0 %v3110_v57, %s6635_s28 }
0x17c5   : > { %3504 = vperm.xlu0 %6477, %v3498_v2  }
0x17c9   : > { %3514 = vperm.xlu0 %6477, %v3500_v17  }
0x17fe   : > { %v3204_v12 = vpop.permute.xlu1 %3203 }
0x17ff   : > { %v3202_v28 = vpop.permute.xlu0 %3201 }
0x1800   : > { %3244 = vmatpush1.bf16.msra.mxu1 %v3202_v28  ;;  %v6564_v28 = vld [vmem:[%s8896_s1 + $0x324] ss:$8 sps:$4 sm:$0xff]  }
0x1801   : > { %3245 = vmatprep.subr.bf16.mxu1 %v8906_v56 }
0x1803   : > { %v3370_v50 = vpop.permute.xlu0 %3369 }
0x1804   : > { %v3206_v42 = vpop.permute.xlu1 %3205  ;;  %3246 = vmatpush1.bf16.msra.mxu1 %v3204_v12  ;;  %3419 = vrot.lane.b32.xlu1 %v3370_v50, %s6644_s23  ;;  %v6561_v12 = vld [vmem:[%s8896_s1 + $0x310] ss:$8 sps:$4 sm:$0xff]   ;;  %v6566_v50 = vld [vmem:[%s8896_s1 + $0x320] ss:$8 sps:$4 sm:$0xff]  }
0x1805   : > { %3247 = vmatprep.subr.bf16.mxu1 %v8906_v56 }
0x1807   : > { %v3372_v19 = vpop.permute.xlu0 %3371 }
0x1808   : > { %v3208_v23 = vpop.permute.xlu1 %3207  ;;  %3248 = vmatpush1.bf16.msra.mxu1 %v3206_v42  ;;  %3421 = vrot.lane.b32.xlu1 %v3372_v19, %s6644_s23  ;;  %v6567_v42 = vld [vmem:[%s8898_s3 + $0x180] ss:$8 sps:$4 sm:$0xff]  }
0x1809   : > { %3249 = vmatprep.subr.bf16.mxu1 %v8906_v56 }
0x180b   : > { %v3374_v13 = vpop.permute.xlu0 %3373 }
0x180c   : > { %3250 = vmatpush1.bf16.msra.mxu1 %v3208_v23  ;;  %3423 = vrot.lane.b32.xlu1 %v3374_v13, %s6644_s23  ;;  %v3210_v5 = vpop.permute.xlu1 %3209 }
0x180d   : > { %3251 = vmatprep.subr.bf16.mxu1 %v8906_v56 }
0x180f   : > { %v3376_v4 = vpop.permute.xlu0 %3375 }
0x1810   : > { %3252 = vmatpush1.bf16.msra.mxu1 %v3210_v5  ;;  %3425 = vrot.lane.b32.xlu1 %v3376_v4, %s6644_s23  ;;  %v3212_v45 = vpop.permute.xlu1 %3211 }
0x1811   : > { %3253 = vmatprep.subr.bf16.mxu1 %v8906_v56 }
0x1813   : > { %v3214_v55 = vpop.permute.xlu0 %3213 }
0x1814   : > { %3254 = vmatpush1.bf16.msra.mxu1 %v3212_v45  ;;  %3509 = vperm.xlu1 %6478, %v3499_v46   ;;  %v3216_v9 = vpop.permute.xlu1 %3215 }
0x1815   : > { %3255 = vmatprep.subr.bf16.mxu1 %v8906_v56 }
0x1817   : > { %v3404_v32 = vpop.permute.xlu0 %3403 }
0x1818   : > { %3519 = vperm.xlu1 %6478, %v3501_v22   ;;  %3256 = vmatpush1.bf16.msra.mxu1 %v3214_v55  ;;  %v3406_v16 = vpop.permute.xlu1 %3405 }
0x1819   : > { %3257 = vmatprep.subr.bf16.mxu1 %v8906_v56 }
0x181b   : > { %v3408_v52 = vpop.permute.xlu0 %3407 }
0x181c   : > { %3258 = vmatpush1.bf16.msra.mxu1 %v3216_v9  ;;  %v3410_v14 = vpop.permute.xlu1 %3409 }
0x181d   : > { %3445 = vmatprep.subr.bf16.mxu1 %v8906_v56 }
0x181f   : > { %v3412_v7 = vpop.permute.xlu0 %3411  ;;  %3268 = vmatmul.mubr.bf16.vlgmr.msra.gmra.mrb[24].mxu1 %v6549_v48 }
0x1820   : > { %3446 = vmatpush1.bf16.msra.mxu1 %v3404_v32  ;;  %5941 = vmatprep.mubr.msk.bf16.mxu1 %vm1177_vm15, %v6555_v6  ;;  %v3414_v26 = vpop.permute.xlu1 %3413 }
0x1821   : > { %3447 = vmatprep.subr.bf16.mxu1 %v8906_v56 }
0x1823   : > { %v3416_v38 = vpop.permute.xlu0 %3415 }
0x1824   : > { %3448 = vmatpush1.bf16.msra.mxu1 %v3406_v16  ;;  %v3418_v31 = vpop.permute.xlu1 %3417 }
0x1825   : > { %3449 = vmatprep.subr.bf16.mxu1 %v8906_v56 }
0x1827   : > { %v3132_v1 = vpop.permute.xlu0 %3131  ;;  %3276 = vmatmul.mubr.bf16.gmra.mrb[28].mxu1 %v6557_v36 }
0x1828   : > { %3325 = vmatpush1.bf16.msra.mxu0 %v3132_v1  ;;  %3450 = vmatpush1.bf16.msra.mxu1 %v3408_v52 }
0x1829   : > { %3326 = vmatprep.subr.bf16.mxu0 %v8906_v56  ;;  %3451 = vmatprep.subr.bf16.mxu1 %v8906_v56 }
0x182a   : > { %5956 = vmatprep.mubr.msk.bf16.mxu1 %vm1177_vm15, %v6563_v54 }
0x182b   : > { %v3134_v24 = vpop.permute.xlu0 %3133 }
0x182c   : > { %3327 = vmatpush1.bf16.msra.mxu0 %v3134_v24  ;;  %3452 = vmatpush1.bf16.msra.mxu1 %v3410_v14 }
0x182d   : > { %3328 = vmatprep.subr.bf16.mxu0 %v8906_v56  ;;  %3453 = vmatprep.subr.bf16.mxu1 %v8906_v56 }
0x182f   : > { %v3136_v21 = vpop.permute.xlu0 %3135 }
0x1830   : > { %3329 = vmatpush1.bf16.msra.mxu0 %v3136_v21  ;;  %3454 = vmatpush1.bf16.msra.mxu1 %v3412_v7 }
0x1831   : > { %3330 = vmatprep.subr.bf16.mxu0 %v8906_v56  ;;  %3455 = vmatprep.subr.bf16.mxu1 %v8906_v56 }
0x1833   : > { %v3138_v37 = vpop.permute.xlu0 %3137 }
0x1834   : > { %3331 = vmatpush1.bf16.msra.mxu0 %v3138_v37  ;;  %3456 = vmatpush1.bf16.msra.mxu1 %v3414_v26 }
0x1835   : > { %3457 = vmatprep.subr.bf16.mxu1 %v8906_v56  ;;  %6369 = vmatprep.subr.bf16.mxu0 %v6567_v42 }
0x1837   : > { %3341 = vmatmul.mubr.bf16.vlgmr.msra.gmra.mrb[36].mxu0 %v6554_v25 }
0x1838   : > { %3458 = vmatpush1.bf16.msra.mxu1 %v3416_v38  ;;  %5947 = vmatprep.mubr.msk.bf16.mxu0 %vm1177_vm15, %v6558_v43 }
0x1839   : > { %3459 = vmatprep.subr.bf16.mxu1 %v8906_v56  ;;  %6370 = vmatpush3.bf16.msra.mxu0 %v6567_v42 }
0x183a   : > { %3761 = vmatprep.subr.bf16.mxu0 %v8906_v56 }
0x183c   : > { %3460 = vmatpush1.bf16.msra.mxu1 %v3418_v31 }
0x183d   : > { %3461 = vmatprep.subr.bf16.mxu1 %v8906_v56 }
0x183f   : > { %3349 = vmatmul.mubr.bf16.gmra.mrb[40].mxu0 %v6560_v15 }
0x1844   : > { %v3505_v26 = vpop.permute.xlu0 %3504 }
0x1876   : > { %v3420_v57 = vpop.permute.xlu1 %3419 }
0x1877   : > { %3462 = vmatpush1.bf16.msra.mxu1 %v3420_v57 }
0x1878   : > { %3463 = vmatprep.subr.bf16.mxu1 %v8906_v56 }
0x187a   : > { %v3422_v2 = vpop.permute.xlu1 %3421 }
0x187b   : > { %3464 = vmatpush1.bf16.msra.mxu1 %v3422_v2 }
0x187c   : > { %3465 = vmatprep.subr.bf16.mxu1 %v8906_v56 }
0x187e   : > { %v3424_v17 = vpop.permute.xlu1 %3423 }
0x187f   : > { %3466 = vmatpush1.bf16.msra.mxu1 %v3424_v17 }
0x1880   : > { %3467 = vmatprep.subr.bf16.mxu1 %v8906_v56 }
0x1882   : > { %v3426_v8 = vpop.permute.xlu1 %3425 }
0x1883   : > { %3468 = vmatpush1.bf16.msra.mxu1 %v3426_v8 }
0x1884   : > { %3834 = vmatprep.subr.bf16.mxu1 %v8906_v56 }
0x1886   : > { %3478 = vmatmul.mubr.bf16.vlgmr.msra.gmra.mrb[32].mxu1 %v6561_v12 }
0x1887   : > { %5957 = vmatprep.mubr.msk.bf16.mxu1 %vm1177_vm15, %v6564_v28 }
0x188e   : > { %3486 = vmatmul.mubr.bf16.gmra.mrb[36].mxu1 %v6566_v50 }
0x1893   : > { %v3510_v15 = vpop.permute.xlu1 %3509 }
0x18f2   : > { %v3269_v19 = vpop.f32.mrb[24].mxu1 }
0x18f3   : > { %v3271_v23 = vpop.f32.mrb[25].mxu1 }
0x18f4   : > { %v3272_v13 = vpop.f32.mrb[26].mxu1 }
0x18f5   : > { %v3274_v5 = vpop.f32.mrb[27].mxu1 }
0x18fa   : > { %v3277_v4 = vpop.f32.mrb[28].mxu1 }
0x18fb   : > { %v3279_v46 = vpop.f32.mrb[29].mxu1 }
0x18fc   : > { %v3280_v45 = vpop.f32.mrb[30].mxu1 }
0x18fd   : > { %v3282_v55 = vpop.f32.mrb[31].mxu1 }
0x190a   : > { %v3342_v22 = vpop.f32.mrb[36].mxu0 }
0x190b   : > { %v3343_v32 = vadd.f32 %v3342_v22, %v3269_v19  ;;  %v3344_v9 = vpop.f32.mrb[37].mxu0  ;;  %v3515_v19 = vpop.permute.xlu0 %3514 }
0x190c   : > { %v3345_v52 = vpop.f32.mrb[38].mxu0 }
0x190d   : > { %v3346_v48 = vadd.f32 %v3345_v52, %v3272_v13  ;;  %v3347_v6 = vpop.f32.mrb[39].mxu0 }
0x1912   : > { %v3350_v7 = vpop.f32.mrb[40].mxu0 }
0x1913   : > { %v3351_v16 = vadd.f32 %v3350_v7, %v3277_v4  ;;  %v3352_v38 = vpop.f32.mrb[41].mxu0 }
0x1914   : > { %v3353_v36 = vpop.f32.mrb[42].mxu0 }
0x1915   : > { %v3354_v54 = vadd.f32 %v3353_v36, %v3280_v45  ;;  %v3355_v1 = vpop.f32.mrb[43].mxu0  ;;  %v3520_v45 = vpop.permute.xlu1 %3519 }
0x1959   : > { %v3479_v14 = vpop.f32.mrb[32].mxu1 }
0x195a   : > { %v3494_v24 = vadd.f32 %v3479_v14, %v3343_v32  ;;  %v3481_v21 = vpop.f32.mrb[33].mxu1 }
0x195b   : > { %v3482_v37 = vpop.f32.mrb[34].mxu1 }
0x195c   : > { %v3522_v25 = vadd.f32 %v3505_v26, %v3494_v24  ;;  %v3495_v43 = vadd.f32 %v3482_v37, %v3346_v48  ;;  %v3484_v31 = vpop.f32.mrb[35].mxu1 }
0x195e   : > { %v3526_v57 = vmul.f32 0.2, %v3522_v25  ;;  %v3523_v2 = vadd.f32 %v3510_v15, %v3495_v43 }
0x1960   : > { %v3527_v17 = vmul.f32 0.2, %v3523_v2  ;;  %v3530_v12 = vmax.f32 %v3522_v25, %v3526_v57 }
0x1961   : > { %v3487_v8 = vpop.f32.mrb[36].mxu1 }
0x1962   : > { %v3531_v28 = vmax.f32 %v3523_v2, %v3527_v17  ;;  %v3496_v50 = vadd.f32 %v3487_v8, %v3351_v16  ;;  %v3489_v42 = vpop.f32.mrb[37].mxu1 }
0x1963   : > { %v3490_v23 = vpop.f32.mrb[38].mxu1 }
0x1964   : > { %v3534_v13 = vpack.c.bf16 %v3531_v28, %v3530_v12  ;;  %v3524_v5 = vadd.f32 %v3515_v19, %v3496_v50  ;;  %v3497_v4 = vadd.f32 %v3490_v23, %v3354_v54  ;;  %v3492_v46 = vpop.f32.mrb[39].mxu1 }
0x1966   : > { %v3528_v55 = vmul.f32 0.2, %v3524_v5  ;;  %v3525_v22 = vadd.f32 %v3520_v45, %v3497_v4  ;;  %6371 = vmatprep.mubr.msk.bf16.mxu0 %vm313_vm3, %v3534_v13 }
0x1968   : > { %v3529_v32 = vmul.f32 0.2, %v3525_v22  ;;  %v3532_v9 = vmax.f32 %v3524_v5, %v3528_v55 }
0x196a   : > { %v3533_v52 = vmax.f32 %v3525_v22, %v3529_v32 }
0x196c   : > { %v3535_v48 = vpack.c.bf16 %v3533_v52, %v3532_v9 }
0x196e   : > { %6372 = vmatmul.mubr.msk.bf16.vlgmr.msra.gmra.mrb[44].mxu0 %vm313_vm3, %v3535_v48 }
0x1a41   : > { %v6373_v6 = vpop.f32.mrb[44].mxu0 }
0x1a42   : > { %v3584_v7 = vpop.f32.mrb[45].mxu0 }
0x1a43   : > { %v6374_v16 = vpop.f32.mrb[46].mxu0 }
0x1a44   : > { %v3600_v38 = vpack.c.bf16 %v6374_v16, %v6373_v6  ;;  %v3587_v36 = vpop.f32.mrb[47].mxu0 }
0x1a45   : > { %v3599_v1 = vpack.c.bf16 %v3587_v36, %v3584_v7  ;;  %v6568_v7 = vld [vmem:[%s8896_s1 + $0x204] ss:$8 sps:$4 sm:$0xff]  }
0x1a46   : > { %3607 = vrot.lane.b32.xlu1 %v3600_v38, %s6643_s25  ;;  %5969 = vmatprep.mubr.msk.bf16.mxu0 %vm1177_vm15, %v6568_v7  ;;  %v6577_v7 = vld [vmem:[%s8896_s1 + $0xe4] ss:$8 sps:$4 sm:$0xff]  }
0x1a47   : > { %3605 = vrot.lane.b32.xlu0 %v3599_v1, %s6643_s25 }
0x1a4a   : > { %3611 = vrot.lane.b32.xlu1 %v7048_v10, %s6643_s25 }
0x1a4b   : > { %3609 = vrot.lane.b32.xlu0 %v7050_v11, %s6643_s25  ;;  %s6046_s25 = sshll.u32 %s8912_s16, 5 }
0x1a4c   : > { %s197_s18 = scalar_lea.vmem %s8899_s4, %s6046_s25 }
0x1ab8   : > { %v3608_v54 = vpop.permute.xlu1 %3607 }
0x1ab9   : > { %v3616_v14 = vsel %vm850_vm12, 0, %v3608_v54  ;;  %v3606_v24 = vpop.permute.xlu0 %3605 }
0x1aba   : > { %v7890_v21 = vsel %vm853_vm13, %v3616_v14, 0  ;;  %v3614_v26 = vsel %vm850_vm12, 0, %v3606_v24 }
0x1abb   : > { %v7894_v37 = vsel %vm853_vm13, %v3614_v26, 0  ;;  %3643 = vrot.lane.b32.xlu1 %v7890_v21, %s6634_s27  ;;  %v3630_v2 = vmul.bf16 %v7890_v21, %v6966_v29  ;;  %v3678_v17 = vmul.bf16 %v7890_v21, %v6973_v49  ;;  %v3674_v19 = vmul.bf16 %v7890_v21, %v6982_v53 }
0x1abc   : > { %v3612_v25 = vpop.permute.xlu1 %3611  ;;  %3641 = vrot.lane.b32.xlu0 %v7894_v37, %s6634_s27  ;;  %v3629_v10 = vmul.bf16 %v7894_v37, %v6966_v29  ;;  %v3677_v8 = vmul.bf16 %v7894_v37, %v6973_v49  ;;  %v3673_v23 = vmul.bf16 %v7894_v37, %v6982_v53  ;;  %v3887_v46 = vmul.bf16 %v7894_v37, %v6979_v51 }
0x1abd   : > { %v3620_v11 = vsel %vm850_vm12, 0, %v3612_v25  ;;  %v3610_v43 = vpop.permute.xlu0 %3609  ;;  %v3884_v36 = vmul.bf16 %v7890_v21, %v6999_v61  ;;  %v3633_v24 = vmul.bf16 %v7894_v37, %v6996_v58 }
0x1abe   : > { %v7904_v31 = vsel %vm853_vm13, %v3620_v11, 0  ;;  %v3618_v15 = vsel %vm850_vm12, 0, %v3610_v43  ;;  %3835 = vmatpush1.bf16.msra.mxu1 %v3629_v10  ;;  %v6573_v10 = vld [vmem:[%s8896_s1 + $0xd4] ss:$8 sps:$4 sm:$0xff]  }
0x1abf   : > { %v7908_v57 = vsel %vm853_vm13, %v3618_v15, 0  ;;  %3647 = vrot.lane.b32.xlu1 %v7904_v31, %s6634_s27  ;;  %3836 = vmatprep.subr.bf16.mxu1 %v8906_v56  ;;  %v3680_v28 = vmul.bf16 %v7904_v31, %v6973_v49  ;;  %v3632_v42 = vmul.bf16 %v7904_v31, %v6966_v29  ;;  %v3890_v48 = vmul.bf16 %v7904_v31, %v6979_v51 }
0x1ac0   : > { %3645 = vrot.lane.b32.xlu0 %v7908_v57, %s6634_s27  ;;  %v3631_v12 = vmul.bf16 %v7908_v57, %v6966_v29  ;;  %v3679_v50 = vmul.bf16 %v7908_v57, %v6973_v49  ;;  %v3676_v49 = vmul.bf16 %v7904_v31, %v6982_v53  ;;  %v3675_v13 = vmul.bf16 %v7908_v57, %v6982_v53 }
0x1ac1   : > { %v3888_v53 = vmul.bf16 %v7890_v21, %v6979_v51  ;;  %v3889_v32 = vmul.bf16 %v7908_v57, %v6979_v51  ;;  %v3883_v51 = vmul.bf16 %v7894_v37, %v6999_v61  ;;  %v3885_v1 = vmul.bf16 %v7908_v57, %v6999_v61  ;;  %v4024_v37 = vld [vmem:[%s8897_s2 + $0xd0] sm:$0xff]  ;;  %5975 = vmatprep.mubr.msk.bf16.mxu1 %vm1177_vm15, %v6573_v10 }
0x1ac2   : > { %3837 = vmatpush1.bf16.msra.mxu1 %v3630_v2  ;;  %v3886_v14 = vmul.bf16 %v7904_v31, %v6999_v61  ;;  %v3634_v61 = vmul.bf16 %v7890_v21, %v6996_v58  ;;  %v3635_v26 = vmul.bf16 %v7908_v57, %v6996_v58  ;;  %v3636_v25 = vmul.bf16 %v7904_v31, %v6996_v58  ;;  %v4026_v21 = vld [vmem:[%s8897_s2 + $0xe0] sm:$0xff]  ;;  %v6594_v10 = vld [vmem:[%s8898_s3 + $0x1b4] ss:$8 sps:$4 sm:$0xff]  }
0x1ac3   : > { %3687 = vrot.lane.b32.xlu1 %v3678_v17, %s6635_s28  ;;  %3838 = vmatprep.subr.bf16.mxu1 %v8906_v56 }
0x1ac4   : > { %3685 = vrot.lane.b32.xlu0 %v3677_v8, %s6635_s28 }
0x1ac6   : > { %3839 = vmatpush1.bf16.msra.mxu1 %v3631_v12  ;;  %v4025_v12 = vld [vmem:[%s8897_s2 + $0xd8] sm:$0xff] }
0x1ac7   : > { %3691 = vrot.lane.b32.xlu1 %v3680_v28, %s6635_s28  ;;  %3840 = vmatprep.subr.bf16.mxu1 %v8906_v56 }
0x1ac8   : > { %3689 = vrot.lane.b32.xlu0 %v3679_v50, %s6635_s28 }
0x1aca   : > { %3841 = vmatpush1.bf16.msra.mxu1 %v3632_v42  ;;  %v4027_v42 = vld [vmem:[%s8897_s2 + $0xe8] sm:$0xff] }
0x1acb   : > { %3721 = vrot.lane.b32.xlu1 %v3674_v19, %s6644_s23  ;;  %3842 = vmatprep.subr.bf16.mxu1 %v8906_v56 }
0x1acc   : > { %3719 = vrot.lane.b32.xlu0 %v3673_v23, %s6644_s23 }
0x1acf   : > { %3725 = vrot.lane.b32.xlu1 %v3676_v49, %s6644_s23 }
0x1ad0   : > { %3723 = vrot.lane.b32.xlu0 %v3675_v13, %s6644_s23  ;;  %v6570_v13 = vld [vmem:[%s8896_s1 + $0x200] ss:$8 sps:$4 sm:$0xff]  }
0x1b2d   : > { %v3644_v29 = vpop.permute.xlu1 %3643 }
0x1b2e   : > { %3729 = vrot.lane.b32.xlu1 %v3644_v29, %s6644_s23  ;;  %v3642_v5 = vpop.permute.xlu0 %3641 }
0x1b2f   : > { %3843 = vmatpush1.bf16.msra.mxu1 %v3642_v5  ;;  %3727 = vrot.lane.b32.xlu0 %v3642_v5, %s6644_s23 }
0x1b30   : > { %3844 = vmatprep.subr.bf16.mxu1 %v8906_v56 }
0x1b31   : > { %v3648_v4 = vpop.permute.xlu1 %3647 }
0x1b32   : > { %v3646_v45 = vpop.permute.xlu0 %3645 }
0x1b33   : > { %3845 = vmatpush1.bf16.msra.mxu1 %v3644_v29  ;;  %3895 = vrot.lane.b32.xlu0 %v3887_v46, %s6635_s28 }
0x1b34   : > { %3731 = vrot.lane.b32.xlu1 %v3646_v45, %s6644_s23  ;;  %3846 = vmatprep.subr.bf16.mxu1 %v8906_v56 }
0x1b35   : > { %v3688_v55 = vpop.permute.xlu1 %3687 }
0x1b36   : > { %v3686_v22 = vpop.permute.xlu0 %3685 }
0x1b37   : > { %3897 = vrot.lane.b32.xlu0 %v3888_v53, %s6635_s28  ;;  %3847 = vmatpush1.bf16.msra.mxu1 %v3646_v45  ;;  %v6582_v53 = vld [vmem:[%s8896_s1 + $0x334] ss:$8 sps:$4 sm:$0xff]  }
0x1b38   : > { %3733 = vrot.lane.b32.xlu1 %v3648_v4, %s6644_s23  ;;  %3848 = vmatprep.subr.bf16.mxu1 %v8906_v56 }
0x1b39   : > { %v3692_v52 = vpop.permute.xlu1 %3691 }
0x1b3a   : > { %v3690_v9 = vpop.permute.xlu0 %3689 }
0x1b3b   : > { %3899 = vrot.lane.b32.xlu0 %v3889_v32, %s6635_s28  ;;  %3849 = vmatpush1.bf16.msra.mxu1 %v3648_v4 }
0x1b3c   : > { %3735 = vrot.lane.b32.xlu1 %v3686_v22, %s6644_s23  ;;  %3850 = vmatprep.subr.bf16.mxu1 %v8906_v56 }
0x1b3d   : > { %v3722_v16 = vpop.permute.xlu1 %3721 }
0x1b3e   : > { %v3720_v6 = vpop.permute.xlu0 %3719 }
0x1b3f   : > { %3901 = vrot.lane.b32.xlu0 %v3890_v48, %s6635_s28  ;;  %3762 = vmatpush1.bf16.msra.mxu0 %v3720_v6  ;;  %v6571_v6 = vld [vmem:[%s8896_s1 + $0xd0] ss:$8 sps:$4 sm:$0xff]  }
0x1b40   : > { %3737 = vrot.lane.b32.xlu1 %v3688_v55, %s6644_s23  ;;  %3763 = vmatprep.subr.bf16.mxu0 %v8906_v56 }
0x1b41   : > { %v3726_v54 = vpop.permute.xlu1 %3725 }
0x1b42   : > { %v3724_v38 = vpop.permute.xlu0 %3723 }
0x1b43   : > { %3739 = vrot.lane.b32.xlu0 %v3690_v9, %s6644_s23  ;;  %3764 = vmatpush1.bf16.msra.mxu0 %v3722_v16 }
0x1b44   : > { %3741 = vrot.lane.b32.xlu1 %v3692_v52, %s6644_s23  ;;  %3765 = vmatprep.subr.bf16.mxu0 %v8906_v56 }
0x1b47   : > { %3929 = vrot.lane.b32.xlu0 %v3883_v51, %s6638_s5  ;;  %3766 = vmatpush1.bf16.msra.mxu0 %v3724_v38  ;;  %v6579_v51 = vld [vmem:[%s8896_s1 + $0xe0] ss:$8 sps:$4 sm:$0xff]  }
0x1b48   : > { %3931 = vrot.lane.b32.xlu1 %v3884_v36, %s6638_s5  ;;  %3767 = vmatprep.subr.bf16.mxu0 %v8906_v56 }
0x1b4b   : > { %3933 = vrot.lane.b32.xlu0 %v3885_v1, %s6638_s5  ;;  %3768 = vmatpush1.bf16.msra.mxu0 %v3726_v54 }
0x1b4c   : > { %3935 = vrot.lane.b32.xlu1 %v3886_v14, %s6638_s5  ;;  %3769 = vmatprep.subr.bf16.mxu0 %v8906_v56  ;;  %v6580_v14 = vld [vmem:[%s8896_s1 + $0x330] ss:$8 sps:$4 sm:$0xff]  }
0x1b4f   : > { %3937 = vrot.lane.b32.xlu0 %v3642_v5, %s6638_s5 }
0x1b50   : > { %3939 = vrot.lane.b32.xlu1 %v3644_v29, %s6638_s5  ;;  %v6574_v29 = vld [vmem:[%s8896_s1 + $0x214] ss:$8 sps:$4 sm:$0xff]  }
0x1b53   : > { %3941 = vrot.lane.b32.xlu0 %v3646_v45, %s6638_s5  ;;  %v6576_v45 = vld [vmem:[%s8896_s1 + $0x210] ss:$8 sps:$4 sm:$0xff]  }
0x1b54   : > { %3943 = vrot.lane.b32.xlu1 %v3648_v4, %s6638_s5 }
0x1b57   : > { %3657 = vrot.lane.b32.xlu0 %v3633_v24, %s6635_s28  ;;  %v6583_v24 = vld [vmem:[%s8896_s1 + $0x344] ss:$8 sps:$4 sm:$0xff]  }
0x1b5b   : > { %3659 = vrot.lane.b32.xlu0 %v3634_v61, %s6635_s28  ;;  %v6585_v61 = vld [vmem:[%s8896_s1 + $0x340] ss:$8 sps:$4 sm:$0xff]  }
0x1b5f   : > { %3661 = vrot.lane.b32.xlu0 %v3635_v26, %s6635_s28  ;;  %v6586_v26 = vld [vmem:[%s8898_s3 + $0x190] ss:$8 sps:$4 sm:$0xff]  }
0x1b63   : > { %3663 = vrot.lane.b32.xlu0 %v3636_v25, %s6635_s28  ;;  %v6588_v25 = vld [vmem:[%s8898_s3 + $0x194] ss:$8 sps:$4 sm:$0xff]  }
0x1b67   : > { %4030 = vperm.xlu0 %6477, %v4024_v37   ;;  %v6591_v37 = vld [vmem:[%s8898_s3 + $0x1a4] ss:$8 sps:$4 sm:$0xff]  }
0x1b6b   : > { %4040 = vperm.xlu0 %6477, %v4026_v21   ;;  %v6589_v21 = vld [vmem:[%s8898_s3 + $0x1a0] ss:$8 sps:$4 sm:$0xff]  }
0x1ba0   : > { %v3730_v11 = vpop.permute.xlu1 %3729 }
0x1ba1   : > { %v3728_v58 = vpop.permute.xlu0 %3727 }
0x1ba2   : > { %3770 = vmatpush1.bf16.msra.mxu0 %v3728_v58  ;;  %v6597_v58 = vld [vmem:[%s8898_s3 + $0x1c4] ss:$8 sps:$4 sm:$0xff]  }
0x1ba3   : > { %3771 = vmatprep.subr.bf16.mxu0 %v8906_v56 }
0x1ba5   : > { %v3896_v43 = vpop.permute.xlu0 %3895 }
0x1ba6   : > { %v3732_v31 = vpop.permute.xlu1 %3731  ;;  %3772 = vmatpush1.bf16.msra.mxu0 %v3730_v11  ;;  %3945 = vrot.lane.b32.xlu1 %v3896_v43, %s6638_s5  ;;  %v6592_v11 = vld [vmem:[%s8898_s3 + $0x1b0] ss:$8 sps:$4 sm:$0xff]   ;;  %v6595_v43 = vld [vmem:[%s8898_s3 + $0x1c0] ss:$8 sps:$4 sm:$0xff]  }
0x1ba7   : > { %3773 = vmatprep.subr.bf16.mxu0 %v8906_v56 }
0x1ba9   : > { %v3898_v15 = vpop.permute.xlu0 %3897 }
0x1baa   : > { %v3734_v57 = vpop.permute.xlu1 %3733  ;;  %3774 = vmatpush1.bf16.msra.mxu0 %v3732_v31  ;;  %3947 = vrot.lane.b32.xlu1 %v3898_v15, %s6638_s5 }
0x1bab   : > { %3775 = vmatprep.subr.bf16.mxu0 %v8906_v56 }
0x1bad   : > { %v3900_v2 = vpop.permute.xlu0 %3899 }
0x1bae   : > { %3776 = vmatpush1.bf16.msra.mxu0 %v3734_v57  ;;  %3949 = vrot.lane.b32.xlu1 %v3900_v2, %s6638_s5  ;;  %v3736_v17 = vpop.permute.xlu1 %3735 }
0x1baf   : > { %3777 = vmatprep.subr.bf16.mxu0 %v8906_v56 }
0x1bb1   : > { %v3902_v8 = vpop.permute.xlu0 %3901 }
0x1bb2   : > { %3778 = vmatpush1.bf16.msra.mxu0 %v3736_v17  ;;  %3951 = vrot.lane.b32.xlu1 %v3902_v8, %s6638_s5  ;;  %v3738_v28 = vpop.permute.xlu1 %3737 }
0x1bb3   : > { %3779 = vmatprep.subr.bf16.mxu0 %v8906_v56 }
0x1bb5   : > { %v3740_v50 = vpop.permute.xlu0 %3739 }
0x1bb6   : > { %3780 = vmatpush1.bf16.msra.mxu0 %v3738_v28  ;;  %4035 = vperm.xlu1 %6478, %v4025_v12   ;;  %v3742_v23 = vpop.permute.xlu1 %3741 }
0x1bb7   : > { %3781 = vmatprep.subr.bf16.mxu0 %v8906_v56 }
0x1bb9   : > { %v3930_v19 = vpop.permute.xlu0 %3929 }
0x1bba   : > { %4045 = vperm.xlu1 %6478, %v4027_v42   ;;  %3782 = vmatpush1.bf16.msra.mxu0 %v3740_v50  ;;  %v3932_v4 = vpop.permute.xlu1 %3931 }
0x1bbb   : > { %3783 = vmatprep.subr.bf16.mxu0 %v8906_v56 }
0x1bbd   : > { %v3934_v49 = vpop.permute.xlu0 %3933 }
0x1bbe   : > { %3784 = vmatpush1.bf16.msra.mxu0 %v3742_v23  ;;  %v3936_v22 = vpop.permute.xlu1 %3935 }
0x1bbf   : > { %3971 = vmatprep.subr.bf16.mxu0 %v8906_v56 }
0x1bc1   : > { %v3938_v5 = vpop.permute.xlu0 %3937  ;;  %3794 = vmatmul.mubr.bf16.vlgmr.msra.gmra.mrb[48].mxu0 %v6570_v13 }
0x1bc2   : > { %3972 = vmatpush1.bf16.msra.mxu0 %v3930_v19  ;;  %5970 = vmatprep.mubr.msk.bf16.mxu0 %vm1177_vm15, %v6574_v29  ;;  %v3940_v52 = vpop.permute.xlu1 %3939 }
0x1bc3   : > { %3973 = vmatprep.subr.bf16.mxu0 %v8906_v56 }
0x1bc5   : > { %v3942_v46 = vpop.permute.xlu0 %3941 }
0x1bc6   : > { %3974 = vmatpush1.bf16.msra.mxu0 %v3932_v4  ;;  %v3944_v16 = vpop.permute.xlu1 %3943 }
0x1bc7   : > { %3975 = vmatprep.subr.bf16.mxu0 %v8906_v56 }
0x1bc9   : > { %v3658_v55 = vpop.permute.xlu0 %3657  ;;  %3802 = vmatmul.mubr.bf16.gmra.mrb[52].mxu0 %v6576_v45 }
0x1bca   : > { %3851 = vmatpush1.bf16.msra.mxu1 %v3658_v55  ;;  %3976 = vmatpush1.bf16.msra.mxu0 %v3934_v49 }
0x1bcb   : > { %3852 = vmatprep.subr.bf16.mxu1 %v8906_v56  ;;  %3977 = vmatprep.subr.bf16.mxu0 %v8906_v56 }
0x1bcc   : > { %5985 = vmatprep.mubr.msk.bf16.mxu0 %vm1177_vm15, %v6582_v53 }
0x1bcd   : > { %v3660_v32 = vpop.permute.xlu0 %3659 }
0x1bce   : > { %3853 = vmatpush1.bf16.msra.mxu1 %v3660_v32  ;;  %3978 = vmatpush1.bf16.msra.mxu0 %v3936_v22 }
0x1bcf   : > { %3854 = vmatprep.subr.bf16.mxu1 %v8906_v56  ;;  %3979 = vmatprep.subr.bf16.mxu0 %v8906_v56 }
0x1bd1   : > { %v3662_v9 = vpop.permute.xlu0 %3661 }
0x1bd2   : > { %3855 = vmatpush1.bf16.msra.mxu1 %v3662_v9  ;;  %3980 = vmatpush1.bf16.msra.mxu0 %v3938_v5 }
0x1bd3   : > { %3856 = vmatprep.subr.bf16.mxu1 %v8906_v56  ;;  %3981 = vmatprep.subr.bf16.mxu0 %v8906_v56 }
0x1bd5   : > { %v3664_v48 = vpop.permute.xlu0 %3663 }
0x1bd6   : > { %3857 = vmatpush1.bf16.msra.mxu1 %v3664_v48  ;;  %3982 = vmatpush1.bf16.msra.mxu0 %v3940_v52 }
0x1bd7   : > { %3983 = vmatprep.subr.bf16.mxu0 %v8906_v56  ;;  %4116 = vmatprep.subr.bf16.mxu1 %v6588_v25 }
0x1bd9   : > { %3867 = vmatmul.mubr.bf16.vlgmr.msra.gmra.mrb[40].mxu1 %v6571_v6 }
0x1bda   : > { %3984 = vmatpush1.bf16.msra.mxu0 %v3942_v46  ;;  %5976 = vmatprep.mubr.msk.bf16.mxu1 %vm1177_vm15, %v6577_v7 }
0x1bdb   : > { %3985 = vmatprep.subr.bf16.mxu0 %v8906_v56  ;;  %4117 = vmatpush1.bf16.msra.mxu1 %v6586_v26 }
0x1bdc   : > { %4118 = vmatprep.subr.bf16.mxu1 %v6591_v37 }
0x1bde   : > { %3986 = vmatpush1.bf16.msra.mxu0 %v3944_v16 }
0x1bdf   : > { %3987 = vmatprep.subr.bf16.mxu0 %v8906_v56  ;;  %4119 = vmatpush1.bf16.msra.mxu1 %v6589_v21 }
0x1be0   : > { %4120 = vmatprep.subr.bf16.mxu1 %v6594_v10 }
0x1be1   : > { %3875 = vmatmul.mubr.bf16.gmra.mrb[44].mxu1 %v6579_v51 }
0x1be2   : > { %4148 = vmatprep.mubr.bf16.mxu1 %v8906_v56 }
0x1be3   : > { %4121 = vmatpush1.bf16.msra.mxu1 %v6592_v11 }
0x1be4   : > { %4122 = vmatprep.subr.bf16.mxu1 %v6597_v58 }
0x1be6   : > { %v4031_v9 = vpop.permute.xlu0 %4030 }
0x1be7   : > { %4123 = vmatpush1.bf16.msra.mxu1 %v6595_v43 }
0x1bea   : > { %v4041_v26 = vpop.permute.xlu0 %4040 }
0x1c18   : > { %v3946_v38 = vpop.permute.xlu1 %3945 }
0x1c19   : > { %3988 = vmatpush1.bf16.msra.mxu0 %v3946_v38 }
0x1c1a   : > { %3989 = vmatprep.subr.bf16.mxu0 %v8906_v56 }
0x1c1c   : > { %v3948_v36 = vpop.permute.xlu1 %3947 }
0x1c1d   : > { %3990 = vmatpush1.bf16.msra.mxu0 %v3948_v36 }
0x1c1e   : > { %3991 = vmatprep.subr.bf16.mxu0 %v8906_v56 }
0x1c20   : > { %v3950_v1 = vpop.permute.xlu1 %3949 }
0x1c21   : > { %3992 = vmatpush1.bf16.msra.mxu0 %v3950_v1 }
0x1c22   : > { %3993 = vmatprep.subr.bf16.mxu0 %v8906_v56 }
0x1c24   : > { %v3952_v54 = vpop.permute.xlu1 %3951 }
0x1c25   : > { %3994 = vmatpush1.bf16.msra.mxu0 %v3952_v54 }
0x1c28   : > { %4004 = vmatmul.mubr.bf16.vlgmr.msra.gmra.mrb[56].mxu0 %v6580_v14 }
0x1c29   : > { %5986 = vmatprep.mubr.msk.bf16.mxu0 %vm1177_vm15, %v6583_v24 }
0x1c30   : > { %4012 = vmatmul.mubr.bf16.gmra.mrb[60].mxu0 %v6585_v61 }
0x1c31   : > { %5138 = vmatprep.mubr.bf16.mxu0 %v8906_v56 }
0x1c35   : > { %v4036_v16 = vpop.permute.xlu1 %4035 }
0x1c39   : > { %v4046_v58 = vpop.permute.xlu1 %4045 }
0x1c94   : > { %v3795_v31 = vpop.f32.mrb[48].mxu0 }
0x1c95   : > { %v3797_v15 = vpop.f32.mrb[49].mxu0 }
0x1c96   : > { %v3798_v57 = vpop.f32.mrb[50].mxu0 }
0x1c97   : > { %v3800_v2 = vpop.f32.mrb[51].mxu0 }
0x1c9c   : > { %v3803_v17 = vpop.f32.mrb[52].mxu0 }
0x1c9d   : > { %v3805_v8 = vpop.f32.mrb[53].mxu0 }
0x1c9e   : > { %v3806_v12 = vpop.f32.mrb[54].mxu0 }
0x1c9f   : > { %v3808_v28 = vpop.f32.mrb[55].mxu0 }
0x1cac   : > { %v3868_v50 = vpop.f32.mrb[40].mxu1 }
0x1cad   : > { %v3869_v42 = vadd.f32 %v3868_v50, %v3795_v31  ;;  %v3870_v19 = vpop.f32.mrb[41].mxu1 }
0x1cae   : > { %v3871_v23 = vpop.f32.mrb[42].mxu1 }
0x1caf   : > { %v3872_v49 = vadd.f32 %v3871_v23, %v3798_v57  ;;  %v3873_v13 = vpop.f32.mrb[43].mxu1 }
0x1cb4   : > { %v3876_v29 = vpop.f32.mrb[44].mxu1 }
0x1cb5   : > { %v3877_v5 = vadd.f32 %v3876_v29, %v3803_v17  ;;  %v3878_v4 = vpop.f32.mrb[45].mxu1 }
0x1cb6   : > { %v3879_v46 = vpop.f32.mrb[46].mxu1 }
0x1cb7   : > { %v3880_v45 = vadd.f32 %v3879_v46, %v3806_v12  ;;  %v3881_v53 = vpop.f32.mrb[47].mxu1 }
0x1cfb   : > { %v4005_v55 = vpop.f32.mrb[56].mxu0 }
0x1cfc   : > { %v4020_v22 = vadd.f32 %v4005_v55, %v3869_v42  ;;  %v4007_v32 = vpop.f32.mrb[57].mxu0 }
0x1cfd   : > { %v4008_v52 = vpop.f32.mrb[58].mxu0 }
0x1cfe   : > { %v4048_v48 = vadd.f32 %v4031_v9, %v4020_v22  ;;  %v4021_v6 = vadd.f32 %v4008_v52, %v3872_v49  ;;  %v4010_v7 = vpop.f32.mrb[59].mxu0 }
0x1d00   : > { %v4052_v51 = vmul.f32 0.2, %v4048_v48  ;;  %v4049_v38 = vadd.f32 %v4036_v16, %v4021_v6 }
0x1d02   : > { %v4053_v36 = vmul.f32 0.2, %v4049_v38  ;;  %v4056_v54 = vmax.f32 %v4048_v48, %v4052_v51 }
0x1d03   : > { %v4013_v1 = vpop.f32.mrb[60].mxu0 }
0x1d04   : > { %v4057_v14 = vmax.f32 %v4049_v38, %v4053_v36  ;;  %v4022_v24 = vadd.f32 %v4013_v1, %v3877_v5  ;;  %v4015_v61 = vpop.f32.mrb[61].mxu0 }
0x1d05   : > { %v4016_v25 = vpop.f32.mrb[62].mxu0 }
0x1d06   : > { %v4060_v37 = vpack.c.bf16 %v4057_v14, %v4056_v54  ;;  %v4050_v21 = vadd.f32 %v4041_v26, %v4022_v24  ;;  %v4023_v10 = vadd.f32 %v4016_v25, %v3880_v45  ;;  %v4018_v11 = vpop.f32.mrb[63].mxu0 }
0x1d08   : > { %v4054_v43 = vmul.f32 0.2, %v4050_v21  ;;  %v4051_v31 = vadd.f32 %v4046_v58, %v4023_v10  ;;  %5995 = vmatmul.mubr.msk.bf16.vlgmr.msra.gmra.mrb[48].mxu1 %vm1177_vm15, %v4060_v37 }
0x1d09   : > { %4158 = vmatprep.mubr.bf16.mxu1 %v8906_v56 }
0x1d0a   : > { %v4055_v15 = vmul.f32 0.2, %v4051_v31  ;;  %v4058_v57 = vmax.f32 %v4050_v21, %v4054_v43 }
0x1d0c   : > { %v4059_v2 = vmax.f32 %v4051_v31, %v4055_v15 }
0x1d0e   : > { %v4061_v17 = vpack.c.bf16 %v4059_v2, %v4058_v57 }
0x1d10   : > { %5996 = vmatmul.mubr.msk.bf16.gmra.mrb[52].mxu1 %vm1177_vm15, %v4061_v17 }
0x1ddb   : > { %v4150_v8 = vpop.f32.mrb[48].mxu1 }
0x1ddc   : > { %v4152_v12 = vpop.f32.mrb[49].mxu1 }
0x1ddd   : > { %v4154_v28 = vpop.f32.mrb[50].mxu1 }
0x1dde   : > { %v4169_v50 = vpack.c.bf16 %v4154_v28, %v4150_v8  ;;  %v4156_v42 = vpop.f32.mrb[51].mxu1 }
0x1ddf   : > { %v4170_v19 = vpack.c.bf16 %v4156_v42, %v4152_v12 }
0x1de0   : > { %4177 = vrot.lane.b32.xlu0 %v4169_v50, %s6631_s24 }
0x1de1   : > { %4179 = vrot.lane.b32.xlu1 %v4170_v19, %s6631_s24 }
0x1de3   : > { %v4160_v23 = vpop.f32.mrb[52].mxu1 }
0x1de4   : > { %v4162_v49 = vpop.f32.mrb[53].mxu1 }
0x1de5   : > { %v4164_v13 = vpop.f32.mrb[54].mxu1 }
0x1de6   : > { %v4171_v29 = vpack.c.bf16 %v4164_v13, %v4160_v23  ;;  %v4166_v5 = vpop.f32.mrb[55].mxu1 }
0x1de7   : > { %v4172_v4 = vpack.c.bf16 %v4166_v5, %v4162_v49 }
0x1de8   : > { %4181 = vrot.lane.b32.xlu0 %v4171_v29, %s6631_s24 }
0x1de9   : > { %4183 = vrot.lane.b32.xlu1 %v4172_v4, %s6631_s24 }
0x1dec   : > { %4185 = vrot.lane.b32.xlu0 %v6904_v44, %s6631_s24 }
0x1ded   : > { %4187 = vrot.lane.b32.xlu1 %v6909_v47, %s6631_s24 }
0x1e52   : > { %v4178_v46 = vpop.permute.xlu0 %4177 }
0x1e53   : > { %v4180_v45 = vpop.permute.xlu1 %4179  ;;  %v8146_v7 = vsel %vm210_vm0, 0, %v4178_v46 }
0x1e54   : > { %v8149_v16 = vsel %vm210_vm0, %v4180_v45, 0  ;;  %v4316_v51 = vmul.bf16 %v8146_v7, %v6714_v20  ;;  %v8158_v38 = vsel %vm210_vm0, %v4178_v46, %v4180_v45  ;;  %v4307_v26 = vmul.bf16 %v8146_v7, %v6769_v40 }
0x1e55   : > { %v4318_v36 = vmul.bf16 %v8149_v16, %v6727_v27  ;;  %v4317_v1 = vmul.bf16 %v8158_v38, %v6736_v30  ;;  %v4308_v54 = vmul.bf16 %v8158_v38, %v6774_v41  ;;  %v4309_v25 = vmul.bf16 %v8149_v16, %v6767_v39 }
0x1e56   : > { %v4625_v49 = vmul.bf16 %v8158_v38, %v6754_v35  ;;  %v4624_v4 = vmul.bf16 %v8146_v7, %v6748_v34  ;;  %v4626_v46 = vmul.bf16 %v8149_v16, %v6746_v33 }
0x1e5a   : > { %v4182_v53 = vpop.permute.xlu0 %4181 }
0x1e5b   : > { %v4184_v55 = vpop.permute.xlu1 %4183  ;;  %v8172_v14 = vsel %vm210_vm0, 0, %v4182_v53 }
0x1e5c   : > { %v8178_v24 = vsel %vm210_vm0, %v4182_v53, %v4184_v55  ;;  %v8181_v61 = vsel %vm210_vm0, %v4184_v55, 0  ;;  %v4319_v37 = vmul.bf16 %v8172_v14, %v6714_v20  ;;  %v4310_v21 = vmul.bf16 %v8172_v14, %v6769_v40 }
0x1e5d   : > { %v4320_v10 = vmul.bf16 %v8178_v24, %v6736_v30  ;;  %v4321_v11 = vmul.bf16 %v8181_v61, %v6727_v27  ;;  %v4311_v55 = vmul.bf16 %v8178_v24, %v6774_v41 }
0x1e5e   : > { %v4186_v22 = vpop.permute.xlu0 %4185 }
0x1e5f   : > { %v4188_v32 = vpop.permute.xlu1 %4187  ;;  %v8134_v47 = vsel %vm210_vm0, 0, %v4186_v22 }
0x1e60   : > { %v8122_v9 = vsel %vm210_vm0, %v4186_v22, %v4188_v32  ;;  %v8125_v52 = vsel %vm210_vm0, %v4188_v32, 0  ;;  %v4322_v6 = vmul.bf16 %v8134_v47, %v6714_v20  ;;  %v4313_v31 = vmul.bf16 %v8134_v47, %v6769_v40 }
0x1e61   : > { %4250 = vrot.lane.b32.xlu1 %v8125_v52, %s6634_s27  ;;  %4248 = vrot.lane.b32.xlu0 %v8122_v9, %s6634_s27  ;;  %v4323_v44 = vmul.bf16 %v8122_v9, %v6736_v30  ;;  %v4324_v48 = vmul.bf16 %v8125_v52, %v6727_v27  ;;  %v4315_v58 = vmul.bf16 %v8125_v52, %v6767_v39 }
0x1e62   : > { %v4314_v43 = vmul.bf16 %v8122_v9, %v6774_v41  ;;  %v4312_v22 = vmul.bf16 %v8181_v61, %v6767_v39 }
0x1e65   : > { %4246 = vrot.lane.b32.xlu0 %v8134_v47, %s6634_s27  ;;  %4348 = vrot.lane.b32.xlu1 %v4323_v44, %s6635_s28 }
0x1e69   : > { %4350 = vrot.lane.b32.xlu0 %v4324_v48, %s6635_s28  ;;  %4346 = vrot.lane.b32.xlu1 %v4322_v6, %s6635_s28 }
0x1e6d   : > { %4234 = vrot.lane.b32.xlu0 %v8146_v7, %s6634_s27  ;;  %4238 = vrot.lane.b32.xlu1 %v8149_v16, %s6634_s27 }
0x1e71   : > { %4236 = vrot.lane.b32.xlu0 %v8158_v38, %s6634_s27  ;;  %4334 = vrot.lane.b32.xlu1 %v4316_v51, %s6635_s28 }
0x1e75   : > { %4338 = vrot.lane.b32.xlu0 %v4318_v36, %s6635_s28  ;;  %4336 = vrot.lane.b32.xlu1 %v4317_v1, %s6635_s28 }
0x1e79   : > { %4391 = vrot.lane.b32.xlu0 %v4308_v54, %s6638_s5  ;;  %4240 = vrot.lane.b32.xlu1 %v8172_v14, %s6634_s27 }
0x1e7d   : > { %4244 = vrot.lane.b32.xlu0 %v8181_v61, %s6634_s27  ;;  %4242 = vrot.lane.b32.xlu1 %v8178_v24, %s6634_s27 }
0x1e81   : > { %4389 = vrot.lane.b32.xlu0 %v4307_v26, %s6638_s5  ;;  %4393 = vrot.lane.b32.xlu1 %v4309_v25, %s6638_s5 }
0x1e85   : > { %4340 = vrot.lane.b32.xlu0 %v4319_v37, %s6635_s28  ;;  %4395 = vrot.lane.b32.xlu1 %v4310_v21, %s6638_s5 }
0x1e89   : > { %4342 = vrot.lane.b32.xlu0 %v4320_v10, %s6635_s28  ;;  %4344 = vrot.lane.b32.xlu1 %v4321_v11, %s6635_s28 }
0x1e8d   : > { %4405 = vrot.lane.b32.xlu1 %v4315_v58, %s6638_s5  ;;  %4403 = vrot.lane.b32.xlu0 %v4314_v43, %s6638_s5  ;;  %v4629_v43 = vmul.bf16 %v8181_v61, %v6746_v33 }
0x1e91   : > { %4401 = vrot.lane.b32.xlu0 %v4313_v31, %s6638_s5 }
0x1ed3   : > { %v8214_v15 = vpop.permute.xlu1 %4250  ;;  %v4249_v57 = vpop.permute.xlu0 %4248 }
0x1ed4   : > { %4423 = vrot.lane.b32.xlu0 %v8214_v15, %s6638_s5  ;;  %v8220_v2 = vsel %vm281_vm4, %v4249_v57, %v8214_v15 }
0x1ed5   : > { %4421 = vrot.lane.b32.xlu1 %v8220_v2, %s6638_s5 }
0x1ed7   : > { %v4247_v17 = vpop.permute.xlu0 %4246  ;;  %v4349_v8 = vpop.permute.xlu1 %4348 }
0x1ed8   : > { %v8225_v12 = vsel %vm281_vm4, %v4247_v17, %v4249_v57  ;;  %v4631_v57 = vmul.bf16 %v8122_v9, %v6754_v35  ;;  %v4628_v17 = vmul.bf16 %v8178_v24, %v6754_v35 }
0x1ed9   : > { %4419 = vrot.lane.b32.xlu1 %v8225_v12, %s6638_s5 }
0x1edb   : > { %v4351_v28 = vpop.permute.xlu0 %4350  ;;  %v4347_v50 = vpop.permute.xlu1 %4346 }
0x1edc   : > { %v4357_v42 = vsel %vm293_vm6, %v4349_v8, %v4351_v28  ;;  %v4356_v13 = vsel %vm293_vm6, %v4347_v50, %v4349_v8 }
0x1edd   : > { %4441 = vrot.lane.b32.xlu1 %v4351_v28, %s6638_s5  ;;  %4439 = vrot.lane.b32.xlu0 %v4357_v42, %s6638_s5  ;;  %v4627_v42 = vmul.bf16 %v8172_v14, %v6748_v34 }
0x1edf   : > { %v4235_v19 = vpop.permute.xlu0 %4234  ;;  %v8232_v23 = vpop.permute.xlu1 %4238 }
0x1ee1   : > { %4644 = vrot.lane.b32.xlu1 %v4625_v49, %s6635_s28  ;;  %4437 = vrot.lane.b32.xlu0 %v4356_v13, %s6638_s5  ;;  %v4630_v13 = vmul.bf16 %v8134_v47, %v6748_v34 }
0x1ee3   : > { %v4237_v29 = vpop.permute.xlu0 %4236  ;;  %v4335_v5 = vpop.permute.xlu1 %4334 }
0x1ee4   : > { %v8253_v48 = vsel %vm281_vm4, %v4237_v29, %v8232_v23  ;;  %v8262_v36 = vsel %vm281_vm4, %v4235_v19, %v4237_v29  ;;  %v6600_v19 = vld [vmem:[%s8896_s1 + $0x224] ss:$8 sps:$4 sm:$0xff]   ;;  %v4632_v29 = vmul.bf16 %v8125_v52, %v6746_v33 }
0x1ee5   : > { %4642 = vrot.lane.b32.xlu1 %v4624_v4, %s6635_s28  ;;  %4646 = vrot.lane.b32.xlu0 %v4626_v46, %s6635_s28  ;;  %v4220_v4 = vmul.bf16 %v8158_v38, %v6812_v62  ;;  %v4223_v46 = vmul.bf16 %v8178_v24, %v6812_v62 }
0x1ee6   : > { %6005 = vmatprep.mubr.msk.bf16.mxu1 %vm313_vm3, %v6600_v19 }
0x1ee7   : > { %v4339_v45 = vpop.permute.xlu0 %4338  ;;  %v4337_v53 = vpop.permute.xlu1 %4336 }
0x1ee8   : > { %v4353_v1 = vsel %vm293_vm6, %v4337_v53, %v4339_v45  ;;  %v4352_v21 = vsel %vm293_vm6, %v4335_v5, %v4337_v53  ;;  %v4221_v5 = vmul.bf16 %v8149_v16, %v6803_v59  ;;  %v4222_v53 = vmul.bf16 %v8172_v14, %v6805_v60 }
0x1ee9   : > { %4397 = vrot.lane.b32.xlu1 %v4311_v55, %s6638_s5  ;;  %4399 = vrot.lane.b32.xlu0 %v4312_v22, %s6638_s5  ;;  %v4224_v55 = vmul.bf16 %v8181_v61, %v6803_v59  ;;  %v4227_v22 = vmul.bf16 %v8125_v52, %v6803_v59 }
0x1eeb   : > { %v4392_v32 = vpop.permute.xlu0 %4391  ;;  %v4241_v44 = vpop.permute.xlu1 %4240 }
0x1eed   : > { %4409 = vrot.lane.b32.xlu1 %v8253_v48, %s6638_s5  ;;  %4411 = vrot.lane.b32.xlu0 %v8232_v23, %s6638_s5 }
0x1eef   : > { %v8259_v6 = vpop.permute.xlu0 %4244  ;;  %v4243_v51 = vpop.permute.xlu1 %4242 }
0x1ef0   : > { %v8277_v10 = vsel %vm281_vm4, %v4243_v51, %v8259_v6  ;;  %v8287_v31 = vsel %vm281_vm4, %v4241_v44, %v4243_v51  ;;  %v4616_v44 = vmul.bf16 %v8158_v38, %v6826_v3  ;;  %v4225_v51 = vmul.bf16 %v8134_v47, %v6805_v60 }
0x1ef1   : > { %4407 = vrot.lane.b32.xlu1 %v8262_v36, %s6638_s5  ;;  %4427 = vrot.lane.b32.xlu0 %v4353_v1, %s6638_s5  ;;  %v4615_v1 = vmul.bf16 %v8146_v7, %v6818_v0 }
0x1ef3   : > { %v4390_v54 = vpop.permute.xlu0 %4389  ;;  %v4394_v26 = vpop.permute.xlu1 %4393 }
0x1ef4   : > { %v4443_v25 = vsel %vm374_vm9, %v4390_v54, %v4392_v32  ;;  %v4444_v37 = vsel %vm374_vm9, %v4392_v32, %v4394_v26  ;;  %v4226_v32 = vmul.bf16 %v8122_v9, %v6812_v62  ;;  %v4617_v54 = vmul.bf16 %v8149_v16, %v6816_v63 }
0x1ef5   : > { %4429 = vrot.lane.b32.xlu1 %v4339_v45, %s6638_s5  ;;  %4485 = vmatprep.subr.bf16.mxu1 %v4444_v37  ;;  %v4219_v45 = vmul.bf16 %v8146_v7, %v6805_v60  ;;  %v4620_v26 = vmul.bf16 %v8181_v61, %v6816_v63  ;;  %v4622_v37 = vmul.bf16 %v8122_v9, %v6826_v3 }
0x1ef6   : > { %4425 = vrot.lane.b32.xlu0 %v4352_v21, %s6638_s5  ;;  %4486 = vmatpush1.bf16.msra.mxu1 %v4443_v25  ;;  %v4619_v25 = vmul.bf16 %v8178_v24, %v6826_v3  ;;  %v4618_v16 = vmul.bf16 %v8172_v14, %v6818_v0  ;;  %v4621_v61 = vmul.bf16 %v8134_v47, %v6818_v0 }
0x1ef7   : > { %v4341_v11 = vpop.permute.xlu0 %4340  ;;  %v8281_v58 = vpop.permute.xlu1 %4395  ;;  %v4623_v21 = vmul.bf16 %v8125_v52, %v6816_v63 }
0x1ef9   : > { %4417 = vrot.lane.b32.xlu1 %v8259_v6, %s6638_s5 }
0x1efa   : > { %4415 = vrot.lane.b32.xlu0 %v8277_v10, %s6638_s5 }
0x1efb   : > { %v4343_v8 = vpop.permute.xlu0 %4342  ;;  %v4345_v28 = vpop.permute.xlu1 %4344 }
0x1efc   : > { %v4355_v50 = vsel %vm293_vm6, %v4343_v8, %v4345_v28  ;;  %v4354_v49 = vsel %vm293_vm6, %v4341_v11, %v4343_v8 }
0x1efd   : > { %4652 = vrot.lane.b32.xlu1 %v4629_v43, %s6635_s28 }
0x1efe   : > { %4413 = vrot.lane.b32.xlu0 %v8287_v31, %s6638_s5 }
0x1eff   : > { %v4404_v52 = vpop.permute.xlu0 %4403 }
0x1f01   : > { %4656 = vrot.lane.b32.xlu1 %v4631_v57, %s6635_s28 }
0x1f02   : > { %4650 = vrot.lane.b32.xlu0 %v4628_v17, %s6635_s28 }
0x1f03   : > { %v4402_v11 = vpop.permute.xlu0 %4401 }
0x1f05   : > { %4433 = vrot.lane.b32.xlu1 %v4355_v50, %s6638_s5 }
0x1f06   : > { %4648 = vrot.lane.b32.xlu0 %v4627_v42, %s6635_s28 }
0x1f09   : > { %4431 = vrot.lane.b32.xlu1 %v4354_v49, %s6638_s5 }
0x1f0a   : > { %4435 = vrot.lane.b32.xlu0 %v4345_v28, %s6638_s5 }
0x1f0d   : > { %4654 = vrot.lane.b32.xlu1 %v4630_v13, %s6635_s28 }
0x1f0e   : > { %4658 = vrot.lane.b32.xlu0 %v4632_v29, %s6635_s28 }
0x1f11   : > { %4277 = vrot.lane.b32.xlu1 %v4221_v5, %s6635_s28 }
0x1f12   : > { %4275 = vrot.lane.b32.xlu0 %v4220_v4, %s6635_s28 }
0x1f15   : > { %4281 = vrot.lane.b32.xlu1 %v4223_v46, %s6635_s28 }
0x1f16   : > { %4273 = vrot.lane.b32.xlu0 %v4219_v45, %s6635_s28 }
0x1f19   : > { %4279 = vrot.lane.b32.xlu1 %v4222_v53, %s6635_s28 }
0x1f1a   : > { %4283 = vrot.lane.b32.xlu0 %v4224_v55, %s6635_s28  ;;  %v4447_v55 = vsel %vm374_vm9, %v4402_v11, %v4404_v52 }
0x1f1d   : > { %4289 = vrot.lane.b32.xlu1 %v4227_v22, %s6635_s28 }
0x1f1e   : > { %4287 = vrot.lane.b32.xlu0 %v4226_v32, %s6635_s28 }
0x1f21   : > { %4699 = vrot.lane.b32.xlu1 %v4616_v44, %s6640_s6 }
0x1f22   : > { %4285 = vrot.lane.b32.xlu0 %v4225_v51, %s6635_s28 }
0x1f25   : > { %4697 = vrot.lane.b32.xlu1 %v4615_v1, %s6640_s6 }
0x1f26   : > { %4701 = vrot.lane.b32.xlu0 %v4617_v54, %s6640_s6 }
0x1f29   : > { %4707 = vrot.lane.b32.xlu1 %v4620_v26, %s6640_s6 }
0x1f2a   : > { %4705 = vrot.lane.b32.xlu0 %v4619_v25, %s6640_s6 }
0x1f2d   : > { %4711 = vrot.lane.b32.xlu1 %v4622_v37, %s6640_s6 }
0x1f2e   : > { %4703 = vrot.lane.b32.xlu0 %v4618_v16, %s6640_s6 }
0x1f31   : > { %4709 = vrot.lane.b32.xlu1 %v4621_v61, %s6640_s6 }
0x1f32   : > { %4713 = vrot.lane.b32.xlu0 %v4623_v21, %s6640_s6 }
0x1f35   : > { %4719 = vrot.lane.b32.xlu1 %v8232_v23, %s6640_s6  ;;  %v4406_v23 = vpop.permute.xlu1 %4405 }
0x1f36   : > { %4717 = vrot.lane.b32.xlu0 %v8253_v48, %s6640_s6  ;;  %v4448_v46 = vsel %vm374_vm9, %v4404_v52, %v4406_v23 }
0x1f39   : > { %4723 = vrot.lane.b32.xlu1 %v8277_v10, %s6640_s6 }
0x1f3a   : > { %4715 = vrot.lane.b32.xlu0 %v8262_v36, %s6640_s6 }
0x1f3d   : > { %4721 = vrot.lane.b32.xlu1 %v8287_v31, %s6640_s6 }
0x1f3e   : > { %4725 = vrot.lane.b32.xlu0 %v8259_v6, %s6640_s6 }
0x1f41   : > { %4731 = vrot.lane.b32.xlu1 %v8214_v15, %s6640_s6 }
0x1f42   : > { %4729 = vrot.lane.b32.xlu0 %v8220_v2, %s6640_s6 }
0x1f46   : > { %4727 = vrot.lane.b32.xlu0 %v8225_v12, %s6640_s6  ;;  %v4424_v57 = vpop.permute.xlu0 %4423 }
0x1f47   : > { %v4422_v43 = vpop.permute.xlu1 %4421 }
0x1f48   : > { %v4454_v21 = vsel %vm374_vm9, %v4422_v43, %v4424_v57 }
0x1f4b   : > { %v4420_v17 = vpop.permute.xlu1 %4419 }
0x1f4c   : > { %v4453_v11 = vsel %vm374_vm9, %v4420_v17, %v4422_v43 }
0x1f4f   : > { %v8387_v8 = vpop.permute.xlu1 %4441  ;;  %v8389_v28 = vpop.permute.xlu0 %4439 }
0x1f53   : > { %v4645_v6 = vpop.permute.xlu1 %4644  ;;  %v8391_v50 = vpop.permute.xlu0 %4437 }
0x1f57   : > { %v4643_v42 = vpop.permute.xlu1 %4642  ;;  %v4647_v15 = vpop.permute.xlu0 %4646 }
0x1f58   : > { %4737 = vrot.lane.b32.xlu0 %v4647_v15, %s6640_s6  ;;  %v4661_v19 = vsel %vm293_vm6, %v4645_v6, %v4647_v15  ;;  %v4660_v29 = vsel %vm293_vm6, %v4643_v42, %v4645_v6 }
0x1f59   : > { %4735 = vrot.lane.b32.xlu1 %v4661_v19, %s6640_s6 }
0x1f5b   : > { %v4398_v49 = vpop.permute.xlu1 %4397  ;;  %v4400_v13 = vpop.permute.xlu0 %4399 }
0x1f5c   : > { %v4446_v5 = vsel %vm374_vm9, %v4398_v49, %v4400_v13  ;;  %v4445_v4 = vsel %vm374_vm9, %v8281_v58, %v4398_v49 }
0x1f5d   : > { %4733 = vrot.lane.b32.xlu1 %v4660_v29, %s6640_s6  ;;  %4487 = vmatprep.subr.bf16.mxu1 %v4446_v5 }
0x1f5e   : > { %4488 = vmatpush1.bf16.msra.mxu1 %v4445_v4  ;;  %v4460_v4 = vsel %vm374_vm9, %v8389_v28, %v8387_v8  ;;  %v6598_v8 = vld [vmem:[%s8896_s1 + $0x220] ss:$8 sps:$4 sm:$0xff]  }
0x1f5f   : > { %v4410_v45 = vpop.permute.xlu1 %4409  ;;  %4489 = vmatprep.subr.bf16.mxu1 %v4448_v46  ;;  %v4412_v53 = vpop.permute.xlu0 %4411 }
0x1f60   : > { %v4450_v22 = vsel %vm374_vm9, %v4410_v45, %v4412_v53  ;;  %v4459_v53 = vsel %vm374_vm9, %v8391_v50, %v8389_v28 }
0x1f62   : > { %4490 = vmatpush1.bf16.msra.mxu1 %v4447_v55  ;;  %v4214_v55 = vmul.bf16 %v8158_v38, %v6708_v18  ;;  %v8907_v38 = vld [vmem:[#allocation2_spill] sm:$0xff] }
0x1f63   : > { %v4408_v32 = vpop.permute.xlu1 %4407  ;;  %4491 = vmatprep.subr.bf16.mxu1 %v4450_v22  ;;  %v4428_v44 = vpop.permute.xlu0 %4427  ;;  %v4854_v22 = vld [vmem:[%s8897_s2 + $0xf0] sm:$0xff] }
0x1f64   : > { %v4449_v51 = vsel %vm374_vm9, %v4408_v32, %v4410_v45 }
0x1f66   : > { %4492 = vmatpush1.bf16.msra.mxu1 %v4449_v51  ;;  %v4213_v51 = vmul.bf16 %v8146_v7, %v8907_v38 }
0x1f67   : > { %v4430_v58 = vpop.permute.xlu1 %4429 }
0x1f68   : > { %v4426_v1 = vpop.permute.xlu0 %4425  ;;  %v4456_v42 = vsel %vm374_vm9, %v4428_v44, %v4430_v58  ;;  %v4216_v58 = vmul.bf16 %v8178_v24, %v6708_v18  ;;  %v4218_v24 = vmul.bf16 %v8122_v9, %v6708_v18 }
0x1f69   : > { %v4455_v49 = vsel %vm374_vm9, %v4426_v1, %v4428_v44  ;;  %v6601_v44 = vld [vmem:[%s8896_s1 + $0x234] ss:$8 sps:$4 sm:$0xff]   ;;  %v4856_v1 = vld [vmem:[%s8897_s2 + $0x100] sm:$0xff] }
0x1f6b   : > { %v4418_v54 = vpop.permute.xlu1 %4417 }
0x1f6c   : > { %v4416_v26 = vpop.permute.xlu0 %4415 }
0x1f6d   : > { %v4452_v25 = vsel %vm374_vm9, %v4416_v26, %v4418_v54 }
0x1f6e   : > { %4493 = vmatprep.subr.bf16.mxu1 %v4452_v25  ;;  %v4215_v25 = vmul.bf16 %v8172_v14, %v8907_v38  ;;  %v4217_v14 = vmul.bf16 %v8134_v47, %v8907_v38 }
0x1f6f   : > { %v4653_v37 = vpop.permute.xlu1 %4652 }
0x1f70   : > { %v4414_v16 = vpop.permute.xlu0 %4413  ;;  %4743 = vrot.lane.b32.xlu1 %v4653_v37, %s6640_s6 }
0x1f71   : > { %v4451_v61 = vsel %vm374_vm9, %v4414_v16, %v4416_v26  ;;  %v4855_v26 = vld [vmem:[%s8897_s2 + $0xf8] sm:$0xff] }
0x1f72   : > { %4494 = vmatpush1.bf16.msra.mxu1 %v4451_v61  ;;  %v4857_v61 = vld [vmem:[%s8897_s2 + $0x108] sm:$0xff] }
0x1f73   : > { %4495 = vmatprep.subr.bf16.mxu1 %v4454_v21  ;;  %v4657_v52 = vpop.permute.xlu1 %4656  ;;  %v6606_v21 = vld [vmem:[%s8896_s1 + $0xf4] ss:$8 sps:$4 sm:$0xff]  }
0x1f74   : > { %v4651_v23 = vpop.permute.xlu0 %4650 }
0x1f75   : > { %v4663_v6 = vsel %vm293_vm6, %v4651_v23, %v4653_v37  ;;  %v6603_v37 = vld [vmem:[%s8896_s1 + $0x230] ss:$8 sps:$4 sm:$0xff]  }
0x1f76   : > { %4496 = vmatpush1.bf16.msra.mxu1 %v4453_v11  ;;  %4741 = vrot.lane.b32.xlu0 %v4663_v6, %s6640_s6 }
0x1f77   : > { %4497 = vmatprep.subr.bf16.mxu1 %v4456_v42  ;;  %v4434_v15 = vpop.permute.xlu1 %4433 }
0x1f78   : > { %v4649_v19 = vpop.permute.xlu0 %4648 }
0x1f79   : > { %v4662_v13 = vsel %vm293_vm6, %v4649_v19, %v4651_v23 }
0x1f7a   : > { %4498 = vmatpush1.bf16.msra.mxu1 %v4455_v49  ;;  %4739 = vrot.lane.b32.xlu0 %v4662_v13, %s6640_s6 }
0x1f7b   : > { %v4432_v57 = vpop.permute.xlu1 %4431 }
0x1f7c   : > { %v4457_v43 = vsel %vm374_vm9, %v4432_v57, %v4434_v15  ;;  %v4436_v17 = vpop.permute.xlu0 %4435 }
0x1f7d   : > { %v4458_v29 = vsel %vm374_vm9, %v4434_v15, %v4436_v17  ;;  %v6604_v17 = vld [vmem:[%s8896_s1 + $0xf0] ss:$8 sps:$4 sm:$0xff]  }
0x1f7e   : > { %4499 = vmatprep.subr.bf16.mxu1 %v4458_v29 }
0x1f7f   : > { %4500 = vmatpush1.bf16.msra.mxu1 %v4457_v43  ;;  %v4655_v5 = vpop.permute.xlu1 %4654 }
0x1f80   : > { %4501 = vmatprep.subr.bf16.mxu1 %v4460_v4  ;;  %v4659_v46 = vpop.permute.xlu0 %4658  ;;  %v4664_v50 = vsel %vm293_vm6, %v4655_v5, %v4657_v52  ;;  %v6607_v4 = vld [vmem:[%s8896_s1 + $0x104] ss:$8 sps:$4 sm:$0xff]  }
0x1f81   : > { %4749 = vrot.lane.b32.xlu0 %v4659_v46, %s6640_s6  ;;  %v4665_v45 = vsel %vm293_vm6, %v4657_v52, %v4659_v46 }
0x1f82   : > { %4747 = vrot.lane.b32.xlu1 %v4665_v45, %s6640_s6 }
0x1f83   : > { %4502 = vmatpush1.bf16.msra.mxu1 %v4459_v53  ;;  %v4278_v32 = vpop.permute.xlu1 %4277 }
0x1f84   : > { %4562 = vmatprep.subr.bf16.mxu1 %v4214_v55  ;;  %v4276_v28 = vpop.permute.xlu0 %4275 }
0x1f85   : > { %4860 = vperm.xlu0 %6477, %v4854_v22   ;;  %v4292_v19 = vsel %vm293_vm6, %v4276_v28, %v4278_v32  ;;  %v6609_v32 = vld [vmem:[%s8896_s1 + $0x100] ss:$8 sps:$4 sm:$0xff]  }
0x1f86   : > { %4745 = vrot.lane.b32.xlu1 %v4664_v50, %s6640_s6  ;;  %4518 = vmatmul.mubr.bf16.vlgmr.msra.gmra.mrb[56].mxu1 %v6598_v8 }
0x1f87   : > { %4563 = vmatpush1.bf16.msra.mxu1 %v4213_v51  ;;  %v4282_v54 = vpop.permute.xlu1 %4281  ;;  %6006 = vmatprep.mubr.msk.bf16.mxu1 %vm313_vm3, %v6601_v44 }
0x1f88   : > { %4564 = vmatprep.subr.bf16.mxu1 %v4216_v58  ;;  %v4274_v7 = vpop.permute.xlu0 %4273 }
0x1f89   : > { %4870 = vperm.xlu0 %6477, %v4856_v1  }
0x1f8a   : > { %4865 = vperm.xlu1 %6478, %v4855_v26  }
0x1f8b   : > { %4565 = vmatpush1.bf16.msra.mxu1 %v4215_v25  ;;  %v4280_v16 = vpop.permute.xlu1 %4279 }
0x1f8c   : > { %v4284_v52 = vpop.permute.xlu0 %4283  ;;  %4566 = vmatprep.subr.bf16.mxu1 %v4218_v24 }
0x1f8d   : > { %v4294_v13 = vsel %vm293_vm6, %v4282_v54, %v4284_v52 }
0x1f8e   : > { %4875 = vperm.xlu1 %6478, %v4857_v61   ;;  %4528 = vmatmul.mubr.bf16.gmra.mrb[60].mxu1 %v6603_v37 }
0x1f8f   : > { %4567 = vmatpush1.bf16.msra.mxu1 %v4217_v14  ;;  %v4290_v9 = vpop.permute.xlu1 %4289  ;;  %6011 = vmatprep.mubr.msk.bf16.mxu1 %vm313_vm3, %v6606_v21 }
0x1f90   : > { %v4288_v23 = vpop.permute.xlu0 %4287  ;;  %4568 = vmatprep.subr.bf16.mxu1 %v8253_v48  ;;  %v4291_v48 = vsel %vm293_vm6, %v4274_v7, %v4276_v28  ;;  %v6612_v28 = vld [vmem:[%s8896_s1 + $0x354] ss:$8 sps:$4 sm:$0xff]  }
0x1f93   : > { %4569 = vmatpush1.bf16.msra.mxu1 %v8262_v36  ;;  %v4700_v11 = vpop.permute.xlu1 %4699 }
0x1f94   : > { %v4286_v6 = vpop.permute.xlu0 %4285  ;;  %4570 = vmatprep.subr.bf16.mxu1 %v8277_v10 }
0x1f95   : > { %v4295_v43 = vsel %vm293_vm6, %v4286_v6, %v4288_v23 }
0x1f97   : > { %4571 = vmatpush1.bf16.msra.mxu1 %v8287_v31  ;;  %v4698_v42 = vpop.permute.xlu1 %4697  ;;  %v4293_v31 = vsel %vm293_vm6, %v4280_v16, %v4282_v54 }
0x1f98   : > { %v4702_v15 = vpop.permute.xlu0 %4701  ;;  %4572 = vmatprep.subr.bf16.mxu1 %v8220_v2  ;;  %v4296_v2 = vsel %vm293_vm6, %v4288_v23, %v4290_v9  ;;  %v4751_v45 = vsel %vm555_vm11, %v4698_v42, %v4700_v11 }
0x1f99   : > { %v4752_v5 = vsel %vm555_vm11, %v4700_v11, %v4702_v15 }
0x1f9b   : > { %4573 = vmatpush1.bf16.msra.mxu1 %v8225_v12  ;;  %v4708_v47 = vpop.permute.xlu1 %4707 }
0x1f9c   : > { %v4706_v49 = vpop.permute.xlu0 %4705  ;;  %4574 = vmatprep.subr.bf16.mxu1 %v4292_v19 }
0x1f9d   : > { %v4754_v53 = vsel %vm555_vm11, %v4706_v49, %v4708_v47 }
0x1f9f   : > { %4575 = vmatpush1.bf16.msra.mxu1 %v4291_v48  ;;  %v4712_v36 = vpop.permute.xlu1 %4711 }
0x1fa0   : > { %v4704_v10 = vpop.permute.xlu0 %4703  ;;  %4576 = vmatprep.subr.bf16.mxu1 %v4294_v13 }
0x1fa1   : > { %v4753_v8 = vsel %vm555_vm11, %v4704_v10, %v4706_v49  ;;  %v6610_v10 = vld [vmem:[%s8896_s1 + $0x350] ss:$8 sps:$4 sm:$0xff]  }
0x1fa3   : > { %4577 = vmatpush1.bf16.msra.mxu1 %v4293_v31  ;;  %v4710_v57 = vpop.permute.xlu1 %4709  ;;  %v6613_v31 = vld [vmem:[%s8896_s1 + $0x364] ss:$8 sps:$4 sm:$0xff]  }
0x1fa4   : > { %v4714_v12 = vpop.permute.xlu0 %4713  ;;  %4578 = vmatprep.subr.bf16.mxu1 %v4296_v2  ;;  %v4755_v51 = vsel %vm555_vm11, %v4710_v57, %v4712_v36  ;;  %v6615_v57 = vld [vmem:[%s8896_s1 + $0x360] ss:$8 sps:$4 sm:$0xff]  }
0x1fa5   : > { %v4756_v44 = vsel %vm555_vm11, %v4712_v36, %v4714_v12 }
0x1fa7   : > { %4579 = vmatpush1.bf16.msra.mxu1 %v4295_v43  ;;  %v4720_v29 = vpop.permute.xlu1 %4719 }
0x1fa8   : > { %v4718_v46 = vpop.permute.xlu0 %4717  ;;  %4793 = vmatprep.subr.bf16.mxu1 %v4752_v5 }
0x1fa9   : > { %v4758_v1 = vsel %vm555_vm11, %v4718_v46, %v4720_v29 }
0x1faa   : > { %4595 = vmatmul.mubr.bf16.vlgmr.msra.gmra.mrb[56].mxu1 %v6604_v17 }
0x1fab   : > { %4794 = vmatpush1.bf16.msra.mxu1 %v4751_v45  ;;  %6012 = vmatprep.mubr.msk.bf16.mxu1 %vm313_vm3, %v6607_v4  ;;  %v4724_v55 = vpop.permute.xlu1 %4723 }
0x1fac   : > { %v4716_v22 = vpop.permute.xlu0 %4715  ;;  %4795 = vmatprep.subr.bf16.mxu1 %v4754_v53 }
0x1fad   : > { %v4757_v26 = vsel %vm555_vm11, %v4716_v22, %v4718_v46 }
0x1faf   : > { %4796 = vmatpush1.bf16.msra.mxu1 %v4753_v8  ;;  %v4722_v58 = vpop.permute.xlu1 %4721 }
0x1fb0   : > { %v4726_v50 = vpop.permute.xlu0 %4725  ;;  %4797 = vmatprep.subr.bf16.mxu1 %v4756_v44  ;;  %v4759_v24 = vsel %vm555_vm11, %v4722_v58, %v4724_v55 }
0x1fb1   : > { %v4760_v7 = vsel %vm555_vm11, %v4724_v55, %v4726_v50 }
0x1fb2   : > { %4605 = vmatmul.mubr.bf16.gmra.mrb[60].mxu1 %v6609_v32 }
0x1fb3   : > { %4798 = vmatpush1.bf16.msra.mxu1 %v4755_v51  ;;  %6021 = vmatprep.mubr.msk.bf16.mxu1 %vm313_vm3, %v6612_v28  ;;  %v4732_v25 = vpop.permute.xlu1 %4731 }
0x1fb4   : > { %4799 = vmatprep.subr.bf16.mxu1 %v4758_v1  ;;  %v4730_v54 = vpop.permute.xlu0 %4729 }
0x1fb5   : > { %v4762_v16 = vsel %vm555_vm11, %v4730_v54, %v4732_v25 }
0x1fb7   : > { %4800 = vmatpush1.bf16.msra.mxu1 %v4757_v26 }
0x1fb8   : > { %4801 = vmatprep.subr.bf16.mxu1 %v4760_v7  ;;  %v4728_v37 = vpop.permute.xlu0 %4727 }
0x1fb9   : > { %v4761_v61 = vsel %vm555_vm11, %v4728_v37, %v4730_v54 }
0x1fbb   : > { %4802 = vmatpush1.bf16.msra.mxu1 %v4759_v24 }
0x1fbc   : > { %4803 = vmatprep.subr.bf16.mxu1 %v4762_v16 }
0x1fbf   : > { %4804 = vmatpush1.bf16.msra.mxu1 %v4761_v61 }
0x1fca   : > { %v4738_v21 = vpop.permute.xlu0 %4737 }
0x1fcb   : > { %v4736_v52 = vpop.permute.xlu1 %4735 }
0x1fcc   : > { %v4764_v14 = vsel %vm555_vm11, %v4736_v52, %v4738_v21 }
0x1fcd   : > { %4805 = vmatprep.subr.bf16.mxu1 %v4764_v14 }
0x1fcf   : > { %v4734_v9 = vpop.permute.xlu1 %4733 }
0x1fd0   : > { %v4763_v23 = vsel %vm555_vm11, %v4734_v9, %v4736_v52 }
0x1fd1   : > { %4806 = vmatpush1.bf16.msra.mxu1 %v4763_v23 }
0x1fe2   : > { %v4744_v11 = vpop.permute.xlu1 %4743 }
0x1fe8   : > { %v4742_v6 = vpop.permute.xlu0 %4741 }
0x1fe9   : > { %v4766_v42 = vsel %vm555_vm11, %v4742_v6, %v4744_v11 }
0x1fea   : > { %4807 = vmatprep.subr.bf16.mxu1 %v4766_v42 }
0x1fec   : > { %v4740_v15 = vpop.permute.xlu0 %4739 }
0x1fed   : > { %v4765_v47 = vsel %vm555_vm11, %v4740_v15, %v4742_v6 }
0x1fee   : > { %4808 = vmatpush1.bf16.msra.mxu1 %v4765_v47 }
0x1ff3   : > { %v4750_v19 = vpop.permute.xlu0 %4749 }
0x1ff4   : > { %v4748_v49 = vpop.permute.xlu1 %4747 }
0x1ff5   : > { %v4768_v48 = vsel %vm555_vm11, %v4748_v49, %v4750_v19 }
0x1ff6   : > { %4809 = vmatprep.subr.bf16.mxu1 %v4768_v48 }
0x1ff8   : > { %v4746_v36 = vpop.permute.xlu1 %4745 }
0x1ff9   : > { %v4767_v13 = vsel %vm555_vm11, %v4746_v36, %v4748_v49 }
0x1ffa   : > { %4810 = vmatpush1.bf16.msra.mxu1 %v4767_v13 }
0x1ffd   : > { %4826 = vmatmul.mubr.bf16.vlgmr.msra.gmra.mrb[56].mxu1 %v6610_v10 }
0x1ffe   : > { %6022 = vmatprep.mubr.msk.bf16.mxu1 %vm313_vm3, %v6613_v31 }
0x2004   : > { %v4861_v2 = vpop.permute.xlu0 %4860 }
0x2005   : > { %4836 = vmatmul.mubr.bf16.gmra.mrb[60].mxu1 %v6615_v57 }
0x2008   : > { %v4871_v50 = vpop.permute.xlu0 %4870 }
0x2009   : > { %v4866_v29 = vpop.permute.xlu1 %4865 }
0x200d   : > { %v4876_v25 = vpop.permute.xlu1 %4875 }
0x20d0   : > { %v4827_v12 = vpop.f32.mrb[56].mxu1 }
0x20d1   : > { %v4878_v43 = vadd.f32 %v4861_v2, %v4827_v12  ;;  %v4829_v17 = vpop.f32.mrb[57].mxu1 }
0x20d2   : > { %v4879_v5 = vadd.f32 %v4861_v2, %v4829_v17  ;;  %v4831_v4 = vpop.f32.mrb[58].mxu1 }
0x20d3   : > { %v4886_v46 = vmul.f32 0.2, %v4878_v43  ;;  %v4880_v45 = vadd.f32 %v4866_v29, %v4831_v4  ;;  %v4833_v53 = vpop.f32.mrb[59].mxu1 }
0x20d4   : > { %v4887_v55 = vmul.f32 0.2, %v4879_v5  ;;  %v4881_v22 = vadd.f32 %v4866_v29, %v4833_v53 }
0x20d5   : > { %v4888_v8 = vmul.f32 0.2, %v4880_v45  ;;  %v4894_v44 = vmax.f32 %v4878_v43, %v4886_v46 }
0x20d6   : > { %v4889_v32 = vmul.f32 0.2, %v4881_v22  ;;  %v4895_v51 = vmax.f32 %v4879_v5, %v4887_v55 }
0x20d7   : > { %v4896_v28 = vmax.f32 %v4880_v45, %v4888_v8 }
0x20d8   : > { %v4897_v58 = vmax.f32 %v4881_v22, %v4889_v32  ;;  %v4837_v1 = vpop.f32.mrb[60].mxu1 }
0x20d9   : > { %v4902_v54 = vpack.c.bf16 %v4896_v28, %v4894_v44  ;;  %v4882_v26 = vadd.f32 %v4871_v50, %v4837_v1  ;;  %v4839_v7 = vpop.f32.mrb[61].mxu1 }
0x20da   : > { %v4903_v24 = vpack.c.bf16 %v4897_v58, %v4895_v51  ;;  %v4883_v37 = vadd.f32 %v4871_v50, %v4839_v7  ;;  %v4841_v16 = vpop.f32.mrb[62].mxu1 }
0x20db   : > { %v4890_v61 = vmul.f32 0.2, %v4882_v26  ;;  %v4884_v21 = vadd.f32 %v4876_v25, %v4841_v16  ;;  %4910 = vrot.lane.b32.xlu0 %v4902_v54, %s6631_s24  ;;  %v4843_v52 = vpop.f32.mrb[63].mxu1 }
0x20dc   : > { %v4891_v14 = vmul.f32 0.2, %v4883_v37  ;;  %v4885_v9 = vadd.f32 %v4876_v25, %v4843_v52  ;;  %4912 = vrot.lane.b32.xlu1 %v4903_v24, %s6631_s24 }
0x20dd   : > { %v4892_v23 = vmul.f32 0.2, %v4884_v21  ;;  %v4898_v6 = vmax.f32 %v4882_v26, %v4890_v61 }
0x20de   : > { %v4893_v11 = vmul.f32 0.2, %v4885_v9  ;;  %v4899_v15 = vmax.f32 %v4883_v37, %v4891_v14 }
0x20df   : > { %v4900_v42 = vmax.f32 %v4884_v21, %v4892_v23 }
0x20e0   : > { %v4901_v47 = vmax.f32 %v4885_v9, %v4893_v11 }
0x20e1   : > { %v4904_v19 = vpack.c.bf16 %v4900_v42, %v4898_v6 }
0x20e2   : > { %v4905_v49 = vpack.c.bf16 %v4901_v47, %v4899_v15 }
0x20e3   : > { %4914 = vrot.lane.b32.xlu0 %v4904_v19, %s6631_s24 }
0x20e4   : > { %4916 = vrot.lane.b32.xlu1 %v4905_v49, %s6631_s24 }
0x214d   : > { %v4911_v48 = vpop.permute.xlu0 %4910 }
0x214e   : > { %v8526_v36 = vsel %vm210_vm0, 0, %v4911_v48  ;;  %v4913_v13 = vpop.permute.xlu1 %4912 }
0x214f   : > { %v8529_v10 = vsel %vm210_vm0, %v4913_v13, 0  ;;  %4948 = vrot.lane.b32.xlu0 %v8526_v36, %s6634_s27  ;;  %v8536_v31 = vsel %vm210_vm0, %v4911_v48, %v4913_v13  ;;  %v5002_v5 = vmul.bf16 %v8526_v36, %v6714_v20  ;;  %v4996_v22 = vmul.bf16 %v8526_v36, %v6769_v40 }
0x2150   : > { %4952 = vrot.lane.b32.xlu1 %v8529_v10, %s6634_s27  ;;  %v5003_v2 = vmul.bf16 %v8536_v31, %v6736_v30  ;;  %v5004_v4 = vmul.bf16 %v8529_v10, %v6727_v27  ;;  %v4997_v53 = vmul.bf16 %v8536_v31, %v6774_v41  ;;  %v4998_v8 = vmul.bf16 %v8529_v10, %v6767_v39 }
0x2151   : > { %v5207_v32 = vmul.bf16 %v8536_v31, %v6754_v35  ;;  %v5206_v28 = vmul.bf16 %v8526_v36, %v6748_v34  ;;  %v5208_v50 = vmul.bf16 %v8529_v10, %v6746_v33 }
0x2153   : > { %4950 = vrot.lane.b32.xlu0 %v8536_v31, %s6634_s27 }
0x2155   : > { %v4915_v57 = vpop.permute.xlu0 %4914 }
0x2156   : > { %v8543_v12 = vsel %vm210_vm0, 0, %v4915_v57  ;;  %v4917_v43 = vpop.permute.xlu1 %4916 }
0x2157   : > { %5016 = vrot.lane.b32.xlu0 %v5003_v2, %s6635_s28  ;;  %4954 = vrot.lane.b32.xlu1 %v8543_v12, %s6634_s27  ;;  %v8549_v17 = vsel %vm210_vm0, %v4915_v57, %v4917_v43  ;;  %v8552_v29 = vsel %vm210_vm0, %v4917_v43, 0  ;;  %v5005_v55 = vmul.bf16 %v8543_v12, %v6714_v20  ;;  %v4999_v44 = vmul.bf16 %v8543_v12, %v6769_v40 }
0x2158   : > { %v5007_v46 = vmul.bf16 %v8552_v29, %v6727_v27  ;;  %v5006_v45 = vmul.bf16 %v8549_v17, %v6736_v30  ;;  %v5209_v51 = vmul.bf16 %v8543_v12, %v6748_v34  ;;  %v5000_v58 = vmul.bf16 %v8549_v17, %v6774_v41 }
0x2159   : > { %v5001_v1 = vmul.bf16 %v8552_v29, %v6767_v39  ;;  %v5211_v54 = vmul.bf16 %v8552_v29, %v6746_v33  ;;  %v5210_v26 = vmul.bf16 %v8549_v17, %v6754_v35 }
0x215b   : > { %4958 = vrot.lane.b32.xlu0 %v8552_v29, %s6634_s27  ;;  %4956 = vrot.lane.b32.xlu1 %v8549_v17, %s6634_s27 }
0x215f   : > { %5014 = vrot.lane.b32.xlu0 %v5002_v5, %s6635_s28  ;;  %5018 = vrot.lane.b32.xlu1 %v5004_v4, %s6635_s28 }
0x2163   : > { %5024 = vrot.lane.b32.xlu0 %v5007_v46, %s6635_s28  ;;  %5022 = vrot.lane.b32.xlu1 %v5006_v45, %s6635_s28 }
0x2167   : > { %5045 = vrot.lane.b32.xlu0 %v4997_v53, %s6638_s5  ;;  %5020 = vrot.lane.b32.xlu1 %v5005_v55, %s6635_s28  ;;  %v4939_v53 = vmul.bf16 %v8536_v31, %v6812_v62  ;;  %v4940_v55 = vmul.bf16 %v8529_v10, %v6803_v59 }
0x216b   : > { %5043 = vrot.lane.b32.xlu0 %v4996_v22, %s6638_s5  ;;  %5047 = vrot.lane.b32.xlu1 %v4998_v8, %s6638_s5  ;;  %v4938_v8 = vmul.bf16 %v8526_v36, %v6805_v60 }
0x216f   : > { %5220 = vrot.lane.b32.xlu0 %v5207_v32, %s6635_s28  ;;  %5049 = vrot.lane.b32.xlu1 %v4999_v44, %s6638_s5  ;;  %v4942_v44 = vmul.bf16 %v8549_v17, %v6812_v62 }
0x2173   : > { %5218 = vrot.lane.b32.xlu0 %v5206_v28, %s6635_s28  ;;  %5222 = vrot.lane.b32.xlu1 %v5208_v50, %s6635_s28  ;;  %v4943_v50 = vmul.bf16 %v8552_v29, %v6803_v59 }
0x2177   : > { %5224 = vrot.lane.b32.xlu0 %v5209_v51, %s6635_s28  ;;  %5051 = vrot.lane.b32.xlu1 %v5000_v58, %s6638_s5  ;;  %v4941_v58 = vmul.bf16 %v8543_v12, %v6805_v60 }
0x217b   : > { %5053 = vrot.lane.b32.xlu0 %v5001_v1, %s6638_s5  ;;  %5228 = vrot.lane.b32.xlu1 %v5211_v54, %s6635_s28  ;;  %v5201_v54 = vmul.bf16 %v8536_v31, %v6826_v3 }
0x217f   : > { %5226 = vrot.lane.b32.xlu0 %v5210_v26, %s6635_s28 }
0x21c1   : > { %v4949_v7 = vpop.permute.xlu0 %4948 }
0x21c2   : > { %v8609_v25 = vpop.permute.xlu1 %4952 }
0x21c3   : > { %5059 = vrot.lane.b32.xlu0 %v8609_v25, %s6638_s5 }
0x21c5   : > { %v4951_v24 = vpop.permute.xlu0 %4950 }
0x21c6   : > { %v8615_v37 = vsel %vm281_vm4, %v4951_v24, %v8609_v25  ;;  %v8620_v21 = vsel %vm281_vm4, %v4949_v7, %v4951_v24  ;;  %v5202_v24 = vmul.bf16 %v8529_v10, %v6816_v63  ;;  %v5203_v10 = vmul.bf16 %v8543_v12, %v6818_v0 }
0x21c7   : > { %5057 = vrot.lane.b32.xlu1 %v8615_v37, %s6638_s5 }
0x21c9   : > { %v5017_v16 = vpop.permute.xlu0 %5016  ;;  %v4955_v61 = vpop.permute.xlu1 %4954 }
0x21cb   : > { %5055 = vrot.lane.b32.xlu1 %v8620_v21, %s6638_s5 }
0x21cd   : > { %v8624_v52 = vpop.permute.xlu0 %4958  ;;  %v4957_v14 = vpop.permute.xlu1 %4956 }
0x21ce   : > { %v8631_v6 = vsel %vm281_vm4, %v4957_v14, %v8624_v52  ;;  %v8638_v47 = vsel %vm281_vm4, %v4955_v61, %v4957_v14  ;;  %v5204_v61 = vmul.bf16 %v8549_v17, %v6826_v3  ;;  %v5205_v14 = vmul.bf16 %v8552_v29, %v6816_v63 }
0x21d1   : > { %v5015_v9 = vpop.permute.xlu0 %5014  ;;  %v5019_v23 = vpop.permute.xlu1 %5018 }
0x21d2   : > { %v5027_v11 = vsel %vm293_vm6, %v5017_v16, %v5019_v23  ;;  %5071 = vrot.lane.b32.xlu1 %v5019_v23, %s6638_s5  ;;  %v5026_v48 = vsel %vm293_vm6, %v5015_v9, %v5017_v16  ;;  %v5200_v16 = vmul.bf16 %v8526_v36, %v6818_v0 }
0x21d3   : > { %5069 = vrot.lane.b32.xlu0 %v5027_v11, %s6638_s5 }
0x21d5   : > { %v5025_v42 = vpop.permute.xlu0 %5024  ;;  %v5023_v15 = vpop.permute.xlu1 %5022 }
0x21d6   : > { %5063 = vrot.lane.b32.xlu1 %v8631_v6, %s6638_s5  ;;  %v5029_v13 = vsel %vm293_vm6, %v5023_v15, %v5025_v42 }
0x21d7   : > { %5065 = vrot.lane.b32.xlu0 %v8624_v52, %s6638_s5 }
0x21d9   : > { %v5046_v19 = vpop.permute.xlu0 %5045  ;;  %v5021_v49 = vpop.permute.xlu1 %5020 }
0x21da   : > { %5061 = vrot.lane.b32.xlu1 %v8638_v47, %s6638_s5  ;;  %v5028_v4 = vsel %vm293_vm6, %v5021_v49, %v5023_v15  ;;  %v5358_v15 = vld [vmem:[%s8897_s2 + $0x118] sm:$0xff] }
0x21db   : > { %5067 = vrot.lane.b32.xlu0 %v5026_v48, %s6638_s5 }
0x21dd   : > { %v5044_v57 = vpop.permute.xlu0 %5043  ;;  %v5048_v2 = vpop.permute.xlu1 %5047 }
0x21de   : > { %v5079_v43 = vsel %vm374_vm9, %v5044_v57, %v5046_v19  ;;  %5075 = vrot.lane.b32.xlu1 %v5029_v13, %s6638_s5  ;;  %v5080_v5 = vsel %vm374_vm9, %v5046_v19, %v5048_v2 }
0x21df   : > { %5077 = vrot.lane.b32.xlu0 %v5025_v42, %s6638_s5  ;;  %5106 = vmatprep.subr.bf16.mxu0 %v5080_v5 }
0x21e0   : > { %5107 = vmatpush1.bf16.msra.mxu0 %v5079_v43 }
0x21e1   : > { %v5221_v46 = vpop.permute.xlu0 %5220  ;;  %v5050_v45 = vpop.permute.xlu1 %5049 }
0x21e2   : > { %5073 = vrot.lane.b32.xlu1 %v5028_v4, %s6638_s5 }
0x21e3   : > { %4976 = vrot.lane.b32.xlu0 %v4939_v53, %s6635_s28 }
0x21e5   : > { %v5219_v22 = vpop.permute.xlu0 %5218  ;;  %v5223_v32 = vpop.permute.xlu1 %5222 }
0x21e6   : > { %4978 = vrot.lane.b32.xlu1 %v4940_v55, %s6635_s28  ;;  %v5231_v29 = vsel %vm293_vm6, %v5221_v46, %v5223_v32  ;;  %v5230_v9 = vsel %vm293_vm6, %v5219_v22, %v5221_v46 }
0x21e7   : > { %4974 = vrot.lane.b32.xlu0 %v4938_v8, %s6635_s28 }
0x21e9   : > { %v5225_v28 = vpop.permute.xlu0 %5224  ;;  %v5052_v51 = vpop.permute.xlu1 %5051 }
0x21ea   : > { %4982 = vrot.lane.b32.xlu1 %v4942_v44, %s6635_s28  ;;  %v5081_v7 = vsel %vm374_vm9, %v5050_v45, %v5052_v51 }
0x21eb   : > { %4984 = vrot.lane.b32.xlu0 %v4943_v50, %s6635_s28 }
0x21ed   : > { %v5054_v1 = vpop.permute.xlu0 %5053 }
0x21ee   : > { %4980 = vrot.lane.b32.xlu1 %v4941_v58, %s6635_s28  ;;  %v5082_v26 = vsel %vm374_vm9, %v5052_v51, %v5054_v1  ;;  %v4935_v1 = vmul.bf16 %v8536_v31, %v6708_v18 }
0x21ef   : > { %5249 = vrot.lane.b32.xlu0 %v5201_v54, %s6640_s6  ;;  %5108 = vmatprep.subr.bf16.mxu0 %v5082_v26  ;;  %v6616_v54 = vld [vmem:[%s8896_s1 + $0x240] ss:$8 sps:$4 sm:$0xff]  }
0x21f0   : > { %5109 = vmatpush1.bf16.msra.mxu0 %v5081_v7  ;;  %v4934_v7 = vmul.bf16 %v8526_v36, %v8907_v38 }
0x21f1   : > { %v5227_v23 = vpop.permute.xlu0 %5226 }
0x21f2   : > { %5251 = vrot.lane.b32.xlu1 %v5202_v24, %s6640_s6  ;;  %v5232_v42 = vsel %vm293_vm6, %v5225_v28, %v5227_v23 }
0x21f3   : > { %5247 = vrot.lane.b32.xlu0 %v5200_v16, %s6640_s6  ;;  %v4937_v16 = vmul.bf16 %v8549_v17, %v6708_v18 }
0x21f6   : > { %5255 = vrot.lane.b32.xlu1 %v5204_v61, %s6640_s6  ;;  %v4936_v61 = vmul.bf16 %v8543_v12, %v8907_v38 }
0x21f7   : > { %5257 = vrot.lane.b32.xlu0 %v5205_v14, %s6640_s6 }
0x21fa   : > { %5253 = vrot.lane.b32.xlu1 %v5203_v10, %s6640_s6 }
0x21fb   : > { %5261 = vrot.lane.b32.xlu0 %v8615_v37, %s6640_s6 }
0x21fe   : > { %5263 = vrot.lane.b32.xlu1 %v8609_v25, %s6640_s6  ;;  %v5229_v25 = vpop.permute.xlu1 %5228 }
0x21ff   : > { %5259 = vrot.lane.b32.xlu0 %v8620_v21, %s6640_s6  ;;  %v5233_v11 = vsel %vm293_vm6, %v5227_v23, %v5229_v25 }
0x2202   : > { %5267 = vrot.lane.b32.xlu1 %v8631_v6, %s6640_s6 }
0x2203   : > { %5269 = vrot.lane.b32.xlu0 %v8624_v52, %s6640_s6  ;;  %v5357_v52 = vld [vmem:[%s8897_s2 + $0x110] sm:$0xff] }
0x2206   : > { %5265 = vrot.lane.b32.xlu1 %v8638_v47, %s6640_s6 }
0x2207   : > { %5273 = vrot.lane.b32.xlu0 %v5231_v29, %s6640_s6 }
0x220a   : > { %5275 = vrot.lane.b32.xlu1 %v5223_v32, %s6640_s6 }
0x220b   : > { %5271 = vrot.lane.b32.xlu0 %v5230_v9, %s6640_s6 }
0x220e   : > { %5279 = vrot.lane.b32.xlu1 %v5233_v11, %s6640_s6 }
0x220f   : > { %5281 = vrot.lane.b32.xlu0 %v5229_v25, %s6640_s6 }
0x2212   : > { %5277 = vrot.lane.b32.xlu1 %v5232_v42, %s6640_s6 }
0x2213   : > { %5361 = vperm.xlu0 %6477, %v5357_v52  }
0x2216   : > { %5366 = vperm.xlu1 %6478, %v5358_v15  }
0x2235   : > { %v5060_v19 = vpop.permute.xlu0 %5059 }
0x2239   : > { %v5058_v49 = vpop.permute.xlu1 %5057 }
0x223a   : > { %v5084_v48 = vsel %vm374_vm9, %v5058_v49, %v5060_v19 }
0x223b   : > { %5110 = vmatprep.subr.bf16.mxu0 %v5084_v48 }
0x223d   : > { %v5056_v13 = vpop.permute.xlu1 %5055 }
0x223e   : > { %v5083_v57 = vsel %vm374_vm9, %v5056_v13, %v5058_v49 }
0x223f   : > { %5111 = vmatpush1.bf16.msra.mxu0 %v5083_v57 }
0x2244   : > { %v5072_v2 = vpop.permute.xlu1 %5071 }
0x2245   : > { %v5070_v43 = vpop.permute.xlu0 %5069 }
0x2246   : > { %v5088_v22 = vsel %vm374_vm9, %v5070_v43, %v5072_v2 }
0x2248   : > { %v5064_v5 = vpop.permute.xlu1 %5063 }
0x2249   : > { %v5066_v4 = vpop.permute.xlu0 %5065 }
0x224a   : > { %v5086_v46 = vsel %vm374_vm9, %v5064_v5, %v5066_v4 }
0x224b   : > { %5112 = vmatprep.subr.bf16.mxu0 %v5086_v46 }
0x224c   : > { %v5062_v45 = vpop.permute.xlu1 %5061 }
0x224d   : > { %v5085_v53 = vsel %vm374_vm9, %v5062_v45, %v5064_v5  ;;  %v5068_v55 = vpop.permute.xlu0 %5067 }
0x224e   : > { %5113 = vmatpush1.bf16.msra.mxu0 %v5085_v53  ;;  %v5087_v32 = vsel %vm374_vm9, %v5068_v55, %v5070_v43 }
0x224f   : > { %5114 = vmatprep.subr.bf16.mxu0 %v5088_v22 }
0x2250   : > { %v5076_v8 = vpop.permute.xlu1 %5075 }
0x2251   : > { %v5078_v44 = vpop.permute.xlu0 %5077 }
0x2252   : > { %5115 = vmatpush1.bf16.msra.mxu0 %v5087_v32  ;;  %v5090_v28 = vsel %vm374_vm9, %v5076_v8, %v5078_v44 }
0x2253   : > { %5116 = vmatprep.subr.bf16.mxu0 %v5090_v28 }
0x2254   : > { %v5074_v50 = vpop.permute.xlu1 %5073 }
0x2255   : > { %v5089_v51 = vsel %vm374_vm9, %v5074_v50, %v5076_v8  ;;  %v4977_v58 = vpop.permute.xlu0 %4976 }
0x2256   : > { %5117 = vmatpush1.bf16.msra.mxu0 %v5089_v51 }
0x2257   : > { %5157 = vmatprep.subr.bf16.mxu0 %v4935_v1 }
0x2258   : > { %v4979_v26 = vpop.permute.xlu1 %4978 }
0x2259   : > { %v4975_v24 = vpop.permute.xlu0 %4974  ;;  %6026 = vmatmul.mubr.msk.bf16.vlgmr.msra.gmra.mrb[64].mxu0 %vm555_vm11, %v6616_v54  ;;  %v4987_v9 = vsel %vm293_vm6, %v4977_v58, %v4979_v26 }
0x225a   : > { %5158 = vmatpush1.bf16.msra.mxu0 %v4934_v7  ;;  %5189 = vmatprep.mubr.bf16.mxu0 %v8906_v56  ;;  %v4986_v12 = vsel %vm293_vm6, %v4975_v24, %v4977_v58  ;;  %v6618_v58 = vld [vmem:[%s8896_s1 + $0x370] ss:$8 sps:$4 sm:$0xff]  }
0x225b   : > { %5159 = vmatprep.subr.bf16.mxu0 %v4937_v16 }
0x225c   : > { %v4983_v31 = vpop.permute.xlu1 %4982 }
0x225d   : > { %v4985_v14 = vpop.permute.xlu0 %4984 }
0x225e   : > { %5160 = vmatpush1.bf16.msra.mxu0 %v4936_v61 }
0x225f   : > { %5161 = vmatprep.subr.bf16.mxu0 %v8615_v37  ;;  %v4989_v37 = vsel %vm293_vm6, %v4983_v31, %v4985_v14 }
0x2260   : > { %v4981_v10 = vpop.permute.xlu1 %4980 }
0x2261   : > { %v5250_v36 = vpop.permute.xlu0 %5249 }
0x2262   : > { %5162 = vmatpush1.bf16.msra.mxu0 %v8620_v21  ;;  %v4988_v21 = vsel %vm293_vm6, %v4981_v10, %v4983_v31 }
0x2263   : > { %5163 = vmatprep.subr.bf16.mxu0 %v8631_v6  ;;  %v6617_v6 = vld [vmem:[%s8896_s1 + $0x110] ss:$8 sps:$4 sm:$0xff]  }
0x2264   : > { %v5252_v29 = vpop.permute.xlu1 %5251 }
0x2265   : > { %v5248_v17 = vpop.permute.xlu0 %5247 }
0x2266   : > { %5164 = vmatpush1.bf16.msra.mxu0 %v8638_v47  ;;  %v5284_v47 = vsel %vm555_vm11, %v5250_v36, %v5252_v29  ;;  %v5283_v15 = vsel %vm555_vm11, %v5248_v17, %v5250_v36 }
0x2267   : > { %5165 = vmatprep.subr.bf16.mxu0 %v4987_v9 }
0x2268   : > { %v5256_v23 = vpop.permute.xlu1 %5255 }
0x2269   : > { %v5258_v25 = vpop.permute.xlu0 %5257 }
0x226a   : > { %5166 = vmatpush1.bf16.msra.mxu0 %v4986_v12  ;;  %v5286_v49 = vsel %vm555_vm11, %v5256_v23, %v5258_v25 }
0x226b   : > { %5167 = vmatprep.subr.bf16.mxu0 %v4989_v37 }
0x226c   : > { %v5254_v11 = vpop.permute.xlu1 %5253 }
0x226d   : > { %v5262_v52 = vpop.permute.xlu0 %5261  ;;  %v5285_v13 = vsel %vm555_vm11, %v5254_v11, %v5256_v23 }
0x226e   : > { %5168 = vmatpush1.bf16.msra.mxu0 %v4988_v21 }
0x226f   : > { %5310 = vmatprep.subr.bf16.mxu0 %v5284_v47 }
0x2270   : > { %v5264_v42 = vpop.permute.xlu1 %5263 }
0x2271   : > { %v5260_v19 = vpop.permute.xlu0 %5259  ;;  %6028 = vmatmul.mubr.msk.bf16.vlgmr.msra.gmra.mrb[64].mxu0 %vm555_vm11, %v6617_v6  ;;  %v5288_v2 = vsel %vm555_vm11, %v5262_v52, %v5264_v42 }
0x2272   : > { %5311 = vmatpush1.bf16.msra.mxu0 %v5283_v15  ;;  %5342 = vmatprep.mubr.bf16.mxu0 %v8906_v56  ;;  %v5287_v5 = vsel %vm555_vm11, %v5260_v19, %v5262_v52 }
0x2273   : > { %5312 = vmatprep.subr.bf16.mxu0 %v5286_v49 }
0x2274   : > { %v5268_v48 = vpop.permute.xlu1 %5267 }
0x2275   : > { %v5270_v57 = vpop.permute.xlu0 %5269 }
0x2276   : > { %5313 = vmatpush1.bf16.msra.mxu0 %v5285_v13  ;;  %v5290_v46 = vsel %vm555_vm11, %v5268_v48, %v5270_v57 }
0x2277   : > { %5314 = vmatprep.subr.bf16.mxu0 %v5288_v2 }
0x2278   : > { %v5266_v43 = vpop.permute.xlu1 %5265 }
0x2279   : > { %v5274_v4 = vpop.permute.xlu0 %5273  ;;  %v5289_v53 = vsel %vm555_vm11, %v5266_v43, %v5268_v48 }
0x227a   : > { %5315 = vmatpush1.bf16.msra.mxu0 %v5287_v5 }
0x227b   : > { %5316 = vmatprep.subr.bf16.mxu0 %v5290_v46 }
0x227c   : > { %v5276_v45 = vpop.permute.xlu1 %5275 }
0x227d   : > { %v5272_v55 = vpop.permute.xlu0 %5271  ;;  %v5292_v22 = vsel %vm555_vm11, %v5274_v4, %v5276_v45 }
0x227e   : > { %5317 = vmatpush1.bf16.msra.mxu0 %v5289_v53  ;;  %v5291_v32 = vsel %vm555_vm11, %v5272_v55, %v5274_v4 }
0x227f   : > { %5318 = vmatprep.subr.bf16.mxu0 %v5292_v22 }
0x2280   : > { %v5280_v8 = vpop.permute.xlu1 %5279 }
0x2281   : > { %v5282_v44 = vpop.permute.xlu0 %5281 }
0x2282   : > { %5319 = vmatpush1.bf16.msra.mxu0 %v5291_v32  ;;  %v5294_v28 = vsel %vm555_vm11, %v5280_v8, %v5282_v44 }
0x2283   : > { %5320 = vmatprep.subr.bf16.mxu0 %v5294_v28 }
0x2284   : > { %v5278_v50 = vpop.permute.xlu1 %5277 }
0x2285   : > { %v5293_v51 = vsel %vm555_vm11, %v5278_v50, %v5280_v8 }
0x2286   : > { %5321 = vmatpush1.bf16.msra.mxu0 %v5293_v51 }
0x2289   : > { %6032 = vmatmul.mubr.msk.bf16.vlgmr.msra.gmra.mrb[64].mxu0 %vm555_vm11, %v6618_v58 }
0x228a   : > { %5521 = vmatprep.mubr.bf16.mxu0 %v8906_v56 }
0x2292   : > { %v5362_v1 = vpop.permute.xlu0 %5361 }
0x2295   : > { %v5367_v24 = vpop.permute.xlu1 %5366 }
0x235c   : > { %v5344_v54 = vpop.f32.mrb[64].mxu0 }
0x235d   : > { %v5369_v26 = vadd.f32 %v5362_v1, %v5344_v54  ;;  %v5346_v7 = vpop.f32.mrb[65].mxu0 }
0x235e   : > { %v5370_v16 = vadd.f32 %v5362_v1, %v5346_v7  ;;  %v5348_v31 = vpop.f32.mrb[66].mxu0 }
0x235f   : > { %v5373_v61 = vmul.f32 0.2, %v5369_v26  ;;  %v5371_v14 = vadd.f32 %v5367_v24, %v5348_v31  ;;  %v5350_v10 = vpop.f32.mrb[67].mxu0 }
0x2360   : > { %v5374_v36 = vmul.f32 0.2, %v5370_v16  ;;  %v5372_v29 = vadd.f32 %v5367_v24, %v5350_v10 }
0x2361   : > { %v5375_v17 = vmul.f32 0.2, %v5371_v14  ;;  %v5377_v23 = vmax.f32 %v5369_v26, %v5373_v61 }
0x2362   : > { %v5376_v9 = vmul.f32 0.2, %v5372_v29  ;;  %v5378_v25 = vmax.f32 %v5370_v16, %v5374_v36 }
0x2363   : > { %v5379_v12 = vmax.f32 %v5371_v14, %v5375_v17  ;;  %v6619_v17 = vld [vmem:[%s8896_s1 + $0x250] ss:$8 sps:$4 sm:$0xff]  }
0x2364   : > { %v5380_v37 = vmax.f32 %v5372_v29, %v5376_v9 }
0x2365   : > { %v5381_v11 = vpack.c.bf16 %v5379_v12, %v5377_v23 }
0x2366   : > { %v5382_v21 = vpack.c.bf16 %v5380_v37, %v5378_v25 }
0x2367   : > { %5385 = vrot.lane.b32.xlu0 %v5381_v11, %s6631_s24 }
0x2368   : > { %5387 = vrot.lane.b32.xlu1 %v5382_v21, %s6631_s24 }
0x23d9   : > { %v5386_v52 = vpop.permute.xlu0 %5385 }
0x23da   : > { %v8771_v6 = vsel %vm210_vm0, 0, %v5386_v52  ;;  %v5388_v47 = vpop.permute.xlu1 %5387 }
0x23db   : > { %v8774_v42 = vsel %vm210_vm0, %v5386_v52, %v5388_v47  ;;  %v5395_v15 = vsel %vm210_vm0, %v5388_v47, 0  ;;  %5404 = vrot.lane.b32.xlu0 %v8771_v6, %s6634_s27  ;;  %v5432_v48 = vmul.bf16 %v8771_v6, %v6714_v20  ;;  %v5399_v50 = vmul.bf16 %v8771_v6, %v6805_v60 }
0x23dc   : > { %5408 = vrot.lane.b32.xlu1 %v5395_v15, %s6634_s27  ;;  %v5433_v19 = vmul.bf16 %v8774_v42, %v6736_v30  ;;  %v5434_v49 = vmul.bf16 %v5395_v15, %v6727_v27  ;;  %v5587_v13 = vmul.bf16 %v8774_v42, %v6754_v35  ;;  %v5588_v57 = vmul.bf16 %v5395_v15, %v6746_v33 }
0x23dd   : > { %v5586_v30 = vmul.bf16 %v8771_v6, %v6748_v34  ;;  %v5429_v27 = vmul.bf16 %v8771_v6, %v6769_v40  ;;  %v5431_v20 = vmul.bf16 %v5395_v15, %v6767_v39  ;;  %v5430_v35 = vmul.bf16 %v8774_v42, %v6774_v41 }
0x23de   : > { %v5401_v22 = vmul.bf16 %v5395_v15, %v6803_v59  ;;  %v5400_v8 = vmul.bf16 %v8774_v42, %v6812_v62  ;;  %v5584_v28 = vmul.bf16 %v8774_v42, %v6826_v3  ;;  %v5583_v62 = vmul.bf16 %v8771_v6, %v6818_v0  ;;  %v5690_v3 = vld [vmem:[%s8897_s2 + $0x120] sm:$0xff] }
0x23df   : > { %5406 = vrot.lane.b32.xlu0 %v8774_v42, %s6634_s27  ;;  %v5585_v1 = vmul.bf16 %v5395_v15, %v6816_v63  ;;  %v5691_v63 = vld [vmem:[%s8897_s2 + $0x128] sm:$0xff]  ;;  %v5398_v29 = vmul.bf16 %v8774_v42, %v6708_v18  ;;  %v5397_v12 = vmul.bf16 %v8771_v6, %v8907_v38  ;;  %vm8908_vm0 = vcmask 392192  }
0x23e0   : > { %5440 = vrot.lane.b32.xlu1 %v5433_v19, %s6635_s28  ;;  %v6620_v38 = vld [vmem:[%s8896_s1 + $0x120] ss:$8 sps:$4 sm:$0xff]   ;;  %vm8909_vm3 = vmmov %vm8908_vm0 }
0x23e3   : > { %5442 = vrot.lane.b32.xlu0 %v5434_v49, %s6635_s28 }
0x23e4   : > { %5438 = vrot.lane.b32.xlu1 %v5432_v48, %s6635_s28 }
0x23e7   : > { %5594 = vrot.lane.b32.xlu0 %v5587_v13, %s6635_s28 }
0x23e8   : > { %5596 = vrot.lane.b32.xlu1 %v5588_v57, %s6635_s28 }
0x23eb   : > { %5592 = vrot.lane.b32.xlu0 %v5586_v30, %s6635_s28 }
0x23ec   : > { %5456 = vrot.lane.b32.xlu1 %v5429_v27, %s6638_s5 }
0x23ef   : > { %5460 = vrot.lane.b32.xlu0 %v5431_v20, %s6638_s5 }
0x23f0   : > { %5458 = vrot.lane.b32.xlu1 %v5430_v35, %s6638_s5  ;;  %v6621_v35 = vld [vmem:[%s8896_s1 + $0x380] ss:$8 sps:$4 sm:$0xff]  }
0x244d   : > { %v5405_v33 = vpop.permute.xlu0 %5404 }
0x244e   : > { %v5409_v2 = vpop.permute.xlu1 %5408 }
0x244f   : > { %5466 = vrot.lane.b32.xlu1 %v5409_v2, %s6638_s5 }
0x2451   : > { %v5407_v34 = vpop.permute.xlu0 %5406 }
0x2452   : > { %v8808_v40 = vsel %vm281_vm4, %v5407_v34, %v5409_v2  ;;  %v5441_v43 = vpop.permute.xlu1 %5440  ;;  %v8813_v5 = vsel %vm281_vm4, %v5405_v33, %v5407_v34  ;;  %vm8910_vm4 = vmmov %vm8908_vm0 }
0x2453   : > { %5464 = vrot.lane.b32.xlu0 %v8808_v40, %s6638_s5 }
0x2455   : > { %v5443_v39 = vpop.permute.xlu0 %5442 }
0x2456   : > { %v5445_v41 = vsel %vm293_vm6, %v5441_v43, %v5443_v39  ;;  %v5439_v4 = vpop.permute.xlu1 %5438 }
0x2457   : > { %5462 = vrot.lane.b32.xlu0 %v8813_v5, %s6638_s5  ;;  %5470 = vrot.lane.b32.xlu1 %v5445_v41, %s6638_s5  ;;  %v5444_v45 = vsel %vm293_vm6, %v5439_v4, %v5441_v43 }
0x2459   : > { %v5595_v46 = vpop.permute.xlu0 %5594 }
0x245a   : > { %v5597_v53 = vpop.permute.xlu1 %5596 }
0x245b   : > { %5472 = vrot.lane.b32.xlu0 %v5443_v39, %s6638_s5  ;;  %5468 = vrot.lane.b32.xlu1 %v5444_v45, %s6638_s5  ;;  %v5599_v60 = vsel %vm293_vm6, %v5595_v46, %v5597_v53 }
0x245d   : > { %v5593_v55 = vpop.permute.xlu0 %5592 }
0x245e   : > { %v5457_v32 = vpop.permute.xlu1 %5456  ;;  %v5598_v0 = vsel %vm293_vm6, %v5593_v55, %v5595_v46 }
0x245f   : > { %5421 = vrot.lane.b32.xlu1 %v5401_v22, %s6635_s28  ;;  %5419 = vrot.lane.b32.xlu0 %v5400_v8, %s6635_s28 }
0x2461   : > { %v5461_v44 = vpop.permute.xlu0 %5460 }
0x2462   : > { %v5459_v51 = vpop.permute.xlu1 %5458 }
0x2463   : > { %v5474_v58 = vsel %vm374_vm9, %v5457_v32, %v5459_v51  ;;  %5612 = vrot.lane.b32.xlu1 %v5584_v28, %s6640_s6  ;;  %5417 = vrot.lane.b32.xlu0 %v5399_v50, %s6635_s28  ;;  %v5475_v59 = vsel %vm374_vm9, %v5459_v51, %v5461_v44 }
0x2464   : > { %5489 = vmatprep.subr.bf16.mxu0 %v5475_v59 }
0x2465   : > { %5490 = vmatpush1.bf16.msra.mxu0 %v5474_v58 }
0x2467   : > { %5610 = vrot.lane.b32.xlu1 %v5583_v62, %s6640_s6  ;;  %5614 = vrot.lane.b32.xlu0 %v5585_v1, %s6640_s6 }
0x246b   : > { %5620 = vrot.lane.b32.xlu1 %v5409_v2, %s6640_s6  ;;  %5618 = vrot.lane.b32.xlu0 %v8808_v40, %s6640_s6 }
0x246f   : > { %5624 = vrot.lane.b32.xlu1 %v5599_v60, %s6640_s6  ;;  %5616 = vrot.lane.b32.xlu0 %v8813_v5, %s6640_s6 }
0x2473   : > { %5622 = vrot.lane.b32.xlu1 %v5598_v0, %s6640_s6  ;;  %5626 = vrot.lane.b32.xlu0 %v5597_v53, %s6640_s6 }
0x2477   : > { %5699 = vperm.xlu1 %6478, %v5691_v63   ;;  %5694 = vperm.xlu0 %6477, %v5690_v3  }
0x24c1   : > { %v5467_v54 = vpop.permute.xlu1 %5466 }
0x24c5   : > { %v5465_v26 = vpop.permute.xlu0 %5464 }
0x24c6   : > { %v5477_v7 = vsel %vm374_vm9, %v5465_v26, %v5467_v54 }
0x24c7   : > { %5491 = vmatprep.subr.bf16.mxu0 %v5477_v7 }
0x24c9   : > { %v5463_v24 = vpop.permute.xlu0 %5462  ;;  %v5471_v16 = vpop.permute.xlu1 %5470 }
0x24ca   : > { %v5476_v31 = vsel %vm374_vm9, %v5463_v24, %v5465_v26 }
0x24cb   : > { %5492 = vmatpush1.bf16.msra.mxu0 %v5476_v31 }
0x24cd   : > { %v5473_v61 = vpop.permute.xlu0 %5472  ;;  %v5469_v14 = vpop.permute.xlu1 %5468 }
0x24ce   : > { %v5478_v10 = vsel %vm374_vm9, %v5469_v14, %v5471_v16  ;;  %v5479_v36 = vsel %vm374_vm9, %v5471_v16, %v5473_v61 }
0x24cf   : > { %5493 = vmatprep.subr.bf16.mxu0 %v5479_v36 }
0x24d0   : > { %5494 = vmatpush1.bf16.msra.mxu0 %v5478_v10 }
0x24d1   : > { %v5422_v9 = vpop.permute.xlu1 %5421  ;;  %v5420_v23 = vpop.permute.xlu0 %5419  ;;  %5540 = vmatprep.subr.bf16.mxu0 %v5398_v29 }
0x24d2   : > { %v5424_v18 = vsel %vm293_vm6, %v5420_v23, %v5422_v9 }
0x24d3   : > { %6036 = vmatmul.mubr.msk.bf16.vlgmr.msra.gmra.mrb[68].mxu0 %vm8908_vm0, %v6619_v17 }
0x24d4   : > { %5541 = vmatpush1.bf16.msra.mxu0 %v5397_v12  ;;  %5572 = vmatprep.mubr.bf16.mxu0 %v8906_v56 }
0x24d5   : > { %v5613_v25 = vpop.permute.xlu1 %5612  ;;  %v5418_v37 = vpop.permute.xlu0 %5417  ;;  %5542 = vmatprep.subr.bf16.mxu0 %v8808_v40 }
0x24d6   : > { %v5423_v52 = vsel %vm293_vm6, %v5418_v37, %v5420_v23 }
0x24d8   : > { %5543 = vmatpush1.bf16.msra.mxu0 %v8813_v5 }
0x24d9   : > { %v5611_v11 = vpop.permute.xlu1 %5610  ;;  %v5615_v21 = vpop.permute.xlu0 %5614  ;;  %5544 = vmatprep.subr.bf16.mxu0 %v5424_v18 }
0x24da   : > { %v5629_v6 = vsel %vm555_vm11, %v5613_v25, %v5615_v21  ;;  %v5628_v15 = vsel %vm555_vm11, %v5611_v11, %v5613_v25 }
0x24dc   : > { %5545 = vmatpush1.bf16.msra.mxu0 %v5423_v52 }
0x24dd   : > { %v5621_v47 = vpop.permute.xlu1 %5620  ;;  %v5619_v42 = vpop.permute.xlu0 %5618  ;;  %5643 = vmatprep.subr.bf16.mxu0 %v5629_v6 }
0x24de   : > { %v5631_v19 = vsel %vm555_vm11, %v5619_v42, %v5621_v47 }
0x24df   : > { %6038 = vmatmul.mubr.msk.bf16.vlgmr.msra.gmra.mrb[68].mxu0 %vm8909_vm3, %v6620_v38 }
0x24e0   : > { %5644 = vmatpush1.bf16.msra.mxu0 %v5628_v15  ;;  %5675 = vmatprep.mubr.bf16.mxu0 %v8906_v56 }
0x24e1   : > { %v5625_v49 = vpop.permute.xlu1 %5624  ;;  %v5617_v48 = vpop.permute.xlu0 %5616  ;;  %5645 = vmatprep.subr.bf16.mxu0 %v5631_v19 }
0x24e2   : > { %v5630_v13 = vsel %vm555_vm11, %v5617_v48, %v5619_v42 }
0x24e4   : > { %5646 = vmatpush1.bf16.msra.mxu0 %v5630_v13 }
0x24e5   : > { %v5623_v57 = vpop.permute.xlu1 %5622  ;;  %v5627_v30 = vpop.permute.xlu0 %5626 }
0x24e6   : > { %v5632_v27 = vsel %vm555_vm11, %v5623_v57, %v5625_v49  ;;  %v5633_v20 = vsel %vm555_vm11, %v5625_v49, %v5627_v30 }
0x24e7   : > { %5647 = vmatprep.subr.bf16.mxu0 %v5633_v20 }
0x24e8   : > { %5648 = vmatpush1.bf16.msra.mxu0 %v5632_v27 }
0x24eb   : > { %6042 = vmatmul.mubr.msk.bf16.vlgmr.msra.gmra.mrb[68].mxu0 %vm8910_vm4, %v6621_v35 }
0x24f6   : > { %v5695_v56 = vpop.permute.xlu0 %5694  ;;  %v5700_v40 = vpop.permute.xlu1 %5699 }
0x25be   : > { %v5677_v33 = vpop.f32.mrb[68].mxu0 }
0x25bf   : > { %v5702_v2 = vadd.f32 %v5695_v56, %v5677_v33  ;;  %v5679_v34 = vpop.f32.mrb[69].mxu0 }
0x25c0   : > { %v5703_v43 = vadd.f32 %v5695_v56, %v5679_v34  ;;  %v5681_v39 = vpop.f32.mrb[70].mxu0 }
0x25c1   : > { %v5706_v5 = vmul.f32 0.2, %v5702_v2  ;;  %v5704_v41 = vadd.f32 %v5700_v40, %v5681_v39  ;;  %v5683_v4 = vpop.f32.mrb[71].mxu0 }
0x25c2   : > { %v5707_v46 = vmul.f32 0.2, %v5703_v43  ;;  %v5705_v45 = vadd.f32 %v5700_v40, %v5683_v4 }
0x25c3   : > { %v5710_v53 = vmax.f32 %v5702_v2, %v5706_v5  ;;  %v5708_v55 = vmul.f32 0.2, %v5704_v41 }
0x25c4   : > { %v5711_v22 = vmax.f32 %v5703_v43, %v5707_v46  ;;  %v5709_v8 = vmul.f32 0.2, %v5705_v45 }
0x25c5   : > { %5714 = vst [vmem:[%s197_s18] sm:$0xff] %v5710_v53  ;;  %v5712_v32 = vmax.f32 %v5704_v41, %v5708_v55 }
0x25c6   : > { %5715 = vst [vmem:[%s197_s18 + $0x8] sm:$0xff] %v5711_v22  ;;  %v5713_v44 = vmax.f32 %v5705_v45, %v5709_v8 }
0x25c7   : > { %5716 = vst [vmem:[%s197_s18 + $0x10] sm:$0xff] %v5712_v32 }
0x25c8   : > { %5717 = vst [vmem:[%s197_s18 + $0x18] sm:$0xff] %v5713_v44 }
0x25c9 PF: > { %s14_s15 = sadd.s32 1, %s6628_s15  }
0x25ca   : > { %p11_p4 = scmp.ge.s32.totalorder %s14_s15, 4  }
0x25cc   :  { %13 = sbr.rel (!%p11_p4) target bundleno = 1 (0x1), region = 68 }

</bundles_post_ra>
